<compile_context>
chip_gen: v7x
topology: tpu7x:2x2x1
jax: 0.10.0
libtpu: 0.0.40
codegen_flags: <defaults>
</compile_context>

<pallas_src>
import functools

import jax
import jax.numpy as jnp
from jax.experimental import pallas as pl
from jax.experimental.pallas import tpu as pltpu


# ------------------------------ fused Pallas kernel ------------------------------

def _make_trunk_kernel(H, W, in_nc, nf, nb, cup):
    """Builds the fused per-image kernel (channels-on-sublanes, spatial-on-lanes)."""
    HW = H * W
    K9 = 9 * nf
    f32 = jnp.float32
    bf16 = jnp.bfloat16

    def kernel(x_ref, w_in_ref, b_in_ref, w1_ref, b1_ref, w2_ref, b2_ref,
               wf_ref, bfu_ref, wu_ref, bu_ref, m_ref,
               o_ref,
               patch_ref, outB_ref, fused_ref):
        # Boundary-validity masks (f32 0/1), built in the wrapper:
        #   m[0]: y-1 valid, m[1]: y+1 valid, m[2]: x-1 valid, m[3]: x+1 valid.

        def build_patch(act_f32):
            """im2col of a (nf, HW) activation into patch_ref (9*nf, HW) bf16.

            Spatial shifts are XLU lane-rolls; wrapped values are zeroed by the masks,
            reproducing the conv's zero padding exactly.  All stores into patch_ref are
            tile-aligned full-width sublane slices (offsets are multiples of nf=32).
            """
            rows = []
            for dy in (-1, 0, 1):                      # shift along rows: +/- W lanes
                if dy == 0:
                    r = act_f32
                else:
                    r = pltpu.roll(act_f32, shift=(-dy * W) % HW, axis=1)
                    r = r * (m_ref[0] if dy == -1 else m_ref[1])
                rows.append(r)
            for t in range(9):                         # 9 taps, tap-major K layout
                dy, dx = t // 3 - 1, t % 3 - 1
                r = rows[dy + 1]
                if dx != 0:                            # shift along cols: +/- 1 lane
                    r = pltpu.roll(r, shift=(-dx) % HW, axis=1)
                    r = r * (m_ref[2] if dx == -1 else m_ref[3])
                patch_ref[t * nf:(t + 1) * nf, :] = r.astype(bf16)

        def conv_from_patch(w, b, relu=False):
            # ONE MXU dot per conv: (cout, 9*nf) @ (9*nf, HW) -> (cout, HW), f32 acc.
            acc = jnp.dot(w, patch_ref[...], preferred_element_type=f32) + b
            if relu:
                acc = jnp.maximum(acc, 0.0)
            return acc                                 # (cout, HW) f32

        # ---- conv_in: input arrives pre-im2col'ed as (9*in_nc, HW) bf16 -> one dot ----
        feat = jnp.dot(w_in_ref[...], x_ref[0],
                       preferred_element_type=f32) + b_in_ref[...]          # (nf, HW)
        outB_ref[...] = feat
        fused_ref[...] = jnp.broadcast_to(bfu_ref[...], (nf, HW))           # fusion bias

        # ---- residual trunk + incremental 1x1 fusion ---------------------------------
        for i in range(nb):
            build_patch(outB_ref[...])
            h = conv_from_patch(w1_ref[i], b1_ref[i], relu=True)
            build_patch(h)
            outB_ref[...] = conv_from_patch(w2_ref[i], b2_ref[i]) + outB_ref[...]
            fused_ref[...] = fused_ref[...] + jnp.dot(
                wf_ref[i], outB_ref[...].astype(bf16),
                preferred_element_type=f32)                                 # fusion slice

        # ---- upsampler conv (nf -> out_nc*scale^2), lane-dense (cup, HW) store --------
        build_patch(fused_ref[...])
        up = conv_from_patch(wu_ref[...], bu_ref[...])                      # (cup, HW)
        o_ref[0] = up.astype(o_ref.dtype)

    return kernel


# ------------------------------ wrapper (plain JAX) ------------------------------

def pixel_shuffle_nchw(x, r):
    # PyTorch PixelShuffle semantics: out[n,c,h*r+i,w*r+j] = in[n, c*r*r + i*r + j, h, w].
    N, C, H, W = x.shape
    c = C // (r * r)
    x = x.reshape(N, c, r, r, H, W)
    x = jnp.transpose(x, (0, 1, 4, 2, 5, 3))            # N, c, H, i, W, j
    return x.reshape(N, c, H * r, W * r)


def trunk_struct_forward(x_nchw, params, nb, scale):
    x = x_nchw.astype(jnp.float32)                      # NCHW
    N, in_nc, H, W = x.shape
    nf = params["conv_in"][0].shape[-1]
    cup = params["up"][0].shape[-1]
    HW = H * W
    K9 = 9 * nf

    # ---- pre-im2col the (tiny) network input: (N, 9*in_nc, HW) bf16, tap-major --------
    xp = jnp.pad(x, ((0, 0), (0, 0), (1, 1), (1, 1)))
    taps = [xp[:, :, kh:kh + H, kw:kw + W] for kh in range(3) for kw in range(3)]
    x_pre = jnp.stack(taps, axis=1).reshape(N, 9 * in_nc, HW).astype(jnp.bfloat16)

    # ---- pack weights for the (cout, K) @ (K, HW) layout; bf16 MXU, f32 biases --------
    def pack3x3(w):                                     # HWIO (3,3,cin,cout) -> (cout, 9*cin)
        kh, kw, cin, cout = w.shape
        return w.reshape(kh * kw * cin, cout).T.astype(jnp.bfloat16)

    def packb(b):                                       # (cout,) -> (cout, 1) f32 (lane bcast)
        return b.reshape(-1, 1).astype(jnp.float32)

    w_in = pack3x3(params["conv_in"][0]); b_in = packb(params["conv_in"][1])
    w1 = jnp.stack([pack3x3(blk[0][0]) for blk in params["blocks"]])        # (nb, nf, 9nf)
    b1 = jnp.stack([packb(blk[0][1]) for blk in params["blocks"]])          # (nb, nf, 1)
    w2 = jnp.stack([pack3x3(blk[1][0]) for blk in params["blocks"]])
    b2 = jnp.stack([packb(blk[1][1]) for blk in params["blocks"]])
    wf = jnp.transpose(params["fusion"][0].reshape(nb, nf, nf),
                       (0, 2, 1)).astype(jnp.bfloat16)                      # (nb, cout, cin)
    bfu = packb(params["fusion"][1])
    wu = pack3x3(params["up"][0]); bu = packb(params["up"][1])

    # ---- boundary-validity masks (exact zero padding), f32 {0,1}, built once ---------
    yy, xx = jnp.meshgrid(jnp.arange(H), jnp.arange(W), indexing="ij")
    yy = yy.reshape(1, HW); xx = xx.reshape(1, HW)
    masks = jnp.stack([yy >= 1, yy <= H - 2, xx >= 1, xx <= W - 2]).astype(jnp.float32)
    masks = jnp.broadcast_to(masks, (4, nf, HW))        # (4, nf, HW)

    const2 = lambda n: (0, 0)
    const3 = lambda n: (0, 0, 0)

    kernel = _make_trunk_kernel(H, W, in_nc, nf, nb, cup)

    up_flat = pl.pallas_call(
        kernel,
        out_shape=jax.ShapeDtypeStruct((N, cup, HW), jnp.float32),
        grid=(N,),
        in_specs=[
            pl.BlockSpec((1, 9 * in_nc, HW), lambda n: (n, 0, 0)),
            pl.BlockSpec((nf, 9 * in_nc), const2),
            pl.BlockSpec((nf, 1), const2),
            pl.BlockSpec((nb, nf, K9), const3),
            pl.BlockSpec((nb, nf, 1), const3),
            pl.BlockSpec((nb, nf, K9), const3),
            pl.BlockSpec((nb, nf, 1), const3),
            pl.BlockSpec((nb, nf, nf), const3),
            pl.BlockSpec((nf, 1), const2),
            pl.BlockSpec((cup, K9), const2),
            pl.BlockSpec((cup, 1), const2),
            pl.BlockSpec((4, nf, HW), const3),
        ],
        out_specs=pl.BlockSpec((1, cup, HW), lambda n: (n, 0, 0)),
        scratch_shapes=[
            pltpu.VMEM((K9, HW), jnp.bfloat16),         # im2col patch (one dot per conv)
            pltpu.VMEM((nf, HW), jnp.float32),          # outB (residual carry)
            pltpu.VMEM((nf, HW), jnp.float32),          # incremental fusion accumulator
        ],
        compiler_params=pltpu.CompilerParams(
            dimension_semantics=("parallel",)),         # v7x: one image per TensorCore
    )(x_pre, w_in, b_in, w1, b1, w2, b2, wf, bfu, wu, bu, masks)

    up = up_flat.reshape(N, cup, H, W)                  # already NCHW
    return pixel_shuffle_nchw(up, scale)


# ------------------------------ parameter init -----------------------------------

def init_params(key, in_nc, out_nc, nf, nb, scale):
    def conv_init(k, kh, kw, cin, cout):
        k1, k2 = jax.random.split(k)
        w = jax.random.normal(k1, (kh, kw, cin, cout), jnp.float32) / jnp.sqrt(kh * kw * cin)
        b = 0.01 * jax.random.normal(k2, (cout,), jnp.float32)
        return w, b

    keys = jax.random.split(key, 3 + 2 * nb)
    params = {"conv_in": conv_init(keys[0], 3, 3, in_nc, nf), "blocks": []}
    for i in range(nb):
        params["blocks"].append((conv_init(keys[1 + 2 * i], 3, 3, nf, nf),
                                 conv_init(keys[2 + 2 * i], 3, 3, nf, nf)))
    params["fusion"] = conv_init(keys[1 + 2 * nb], 1, 1, nf * nb, nf)
    params["up"] = conv_init(keys[2 + 2 * nb], 3, 3, nf, out_nc * scale * scale)
    return params


# ------------------------------ pure-JAX references ------------------------------

def _conv_ref(x, w, b, pad, relu=False, residual=None, bf16_ops=True):
    lhs = x.astype(jnp.bfloat16) if bf16_ops else x
    rhs = w.astype(jnp.bfloat16) if bf16_ops else w
    y = jax.lax.conv_general_dilated(
        lhs, rhs, (1, 1), [(pad, pad), (pad, pad)],
        dimension_numbers=("NHWC", "HWIO", "NHWC"),
        preferred_element_type=jnp.float32)
    y = y + b.reshape(1, 1, 1, -1)
    if relu:
        y = jnp.maximum(y, 0.0)
    if residual is not None:
        y = y + residual
    return y


def trunk_struct_ref(x_nchw, params, nb, scale, use_bf16=True):
    x = jnp.transpose(x_nchw, (0, 2, 3, 1)).astype(jnp.float32)   # NCHW -> NHWC
    w, b = params["conv_in"]
    outB = _conv_ref(x, w, b, 1, bf16_ops=use_bf16)
    outs = []
    for i in range(nb):
        (w1, b1), (w2, b2) = params["blocks"][i]
        h = _conv_ref(outB, w1, b1, 1, relu=True, bf16_ops=use_bf16)
        outB = _conv_ref(h, w2, b2, 1, residual=outB, bf16_ops=use_bf16)
        outs.append(outB)
    out_cat = jnp.concatenate(outs, axis=-1)
    wf, bf_ = params["fusion"]
    fused = _conv_ref(out_cat, wf, bf_, 0, bf16_ops=use_bf16)
    wu, bu = params["up"]
    up = _conv_ref(fused, wu, bu, 1, bf16_ops=use_bf16)
    up_nchw = jnp.transpose(up, (0, 3, 1, 2))
    return pixel_shuffle_nchw(up_nchw, scale)


# --------------------------------------- main -------------------------------------

if __name__ == "__main__":
    in_nc, out_nc, struct_nf, struct_nb, scale = 4, 3, 32, 4, 2
    N, H, W = 2, 16, 16

    key = jax.random.PRNGKey(0)
    kx, kp = jax.random.split(key)
    x = jax.random.normal(kx, (N, in_nc, H, W), jnp.float32)       # NCHW input
    params = init_params(kp, in_nc, out_nc, struct_nf, struct_nb, scale)

    fwd = jax.jit(functools.partial(trunk_struct_forward, nb=struct_nb, scale=scale))
    out = jax.block_until_ready(fwd(x, params))

    ref_bf16 = jax.block_until_ready(trunk_struct_ref(x, params, struct_nb, scale, True))
    ref_f32 = jax.block_until_ready(trunk_struct_ref(x, params, struct_nb, scale, False))

    assert out.shape == (N, out_nc, H * scale, W * scale), out.shape
    assert bool(jnp.all(jnp.isfinite(out)))

    err_bf16 = float(jnp.max(jnp.abs(out - ref_bf16)) / (jnp.max(jnp.abs(ref_bf16)) + 1e-8))
    err_f32 = float(jnp.max(jnp.abs(out - ref_f32)) / (jnp.max(jnp.abs(ref_f32)) + 1e-8))
    assert err_bf16 < 5e-3, f"mismatch vs bf16-matched reference: {err_bf16}"
    assert err_f32 < 5e-2, f"mismatch vs f32 reference: {err_f32}"

    print("KERNEL_OK")
</pallas_src>

<mosaic_0001>
module attributes {stable_mosaic.version = 11 : i64} {
  func.func @kernel(%arg0: i32, %arg1: memref<1x36x256xbf16, #tpu.memory_space<vmem>>, %arg2: memref<32x36xbf16, #tpu.memory_space<vmem>>, %arg3: memref<32x1xf32, #tpu.memory_space<vmem>>, %arg4: memref<4x32x288xbf16, #tpu.memory_space<vmem>>, %arg5: memref<4x32x1xf32, #tpu.memory_space<vmem>>, %arg6: memref<4x32x288xbf16, #tpu.memory_space<vmem>>, %arg7: memref<4x32x1xf32, #tpu.memory_space<vmem>>, %arg8: memref<4x32x32xbf16, #tpu.memory_space<vmem>>, %arg9: memref<32x1xf32, #tpu.memory_space<vmem>>, %arg10: memref<12x288xbf16, #tpu.memory_space<vmem>>, %arg11: memref<12x1xf32, #tpu.memory_space<vmem>>, %arg12: memref<4x32x256xf32, #tpu.memory_space<vmem>>, %arg13: memref<1x12x256xf32, #tpu.memory_space<vmem>>, %arg14: memref<288x256xbf16, #tpu.memory_space<vmem>>, %arg15: memref<32x256xf32, #tpu.memory_space<vmem>>, %arg16: memref<32x256xf32, #tpu.memory_space<vmem>>) attributes {dimension_semantics = [#tpu.dimension_semantics<parallel>], iteration_bounds = array<i64: 2>, scalar_prefetch = 0 : i64, scratch_operands = 3 : i64, tpu.core_type = #tpu.core_type<tc>, window_params = [{transform_indices = @transform_0, window_bounds = array<i64: 1, 36, 256>}, {pipeline_mode = #tpu.pipeline_mode<synchronous>, transform_indices = @transform_1, window_bounds = array<i64: 32, 36>}, {pipeline_mode = #tpu.pipeline_mode<synchronous>, transform_indices = @transform_2, window_bounds = array<i64: 32, 1>}, {pipeline_mode = #tpu.pipeline_mode<synchronous>, transform_indices = @transform_3, window_bounds = array<i64: 4, 32, 288>}, {pipeline_mode = #tpu.pipeline_mode<synchronous>, transform_indices = @transform_4, window_bounds = array<i64: 4, 32, 1>}, {pipeline_mode = #tpu.pipeline_mode<synchronous>, transform_indices = @transform_5, window_bounds = array<i64: 4, 32, 288>}, {pipeline_mode = #tpu.pipeline_mode<synchronous>, transform_indices = @transform_6, window_bounds = array<i64: 4, 32, 1>}, {pipeline_mode = #tpu.pipeline_mode<synchronous>, transform_indices = @transform_7, window_bounds = array<i64: 4, 32, 32>}, {pipeline_mode = #tpu.pipeline_mode<synchronous>, transform_indices = @transform_8, window_bounds = array<i64: 32, 1>}, {pipeline_mode = #tpu.pipeline_mode<synchronous>, transform_indices = @transform_9, window_bounds = array<i64: 12, 288>}, {pipeline_mode = #tpu.pipeline_mode<synchronous>, transform_indices = @transform_10, window_bounds = array<i64: 12, 1>}, {pipeline_mode = #tpu.pipeline_mode<synchronous>, transform_indices = @transform_11, window_bounds = array<i64: 4, 32, 256>}, {transform_indices = @transform_12, window_bounds = array<i64: 1, 12, 256>}]} {
    %c0 = arith.constant 0 : index
    %c0_0 = arith.constant 0 : index
    %0 = vector.load %arg2[%c0, %c0_0] : memref<32x36xbf16, #tpu.memory_space<vmem>>, vector<32x36xbf16>
    %c0_1 = arith.constant 0 : index
    %c0_2 = arith.constant 0 : index
    %c0_3 = arith.constant 0 : index
    %1 = vector.load %arg1[%c0_1, %c0_2, %c0_3] : memref<1x36x256xbf16, #tpu.memory_space<vmem>>, vector<1x36x256xbf16>
    %2 = vector.shape_cast %1 : vector<1x36x256xbf16> to vector<36x256xbf16>
    %cst = arith.constant dense<0.000000e+00> : vector<32x256xf32>
    %3 = tpu.matmul %0, %2, %cst {dimension_numbers = #tpu.dot_dimension_numbers<[1], [0], [0], [1], [0, 0, 1, 1], [], []>} : vector<32x36xbf16>, vector<36x256xbf16>, vector<32x256xf32> -> vector<32x256xf32>
    %c0_4 = arith.constant 0 : index
    %c0_5 = arith.constant 0 : index
    %4 = vector.load %arg3[%c0_4, %c0_5] : memref<32x1xf32, #tpu.memory_space<vmem>>, vector<32x1xf32>
    %5 = vector.broadcast %4 : vector<32x1xf32> to vector<32x256xf32>
    %6 = arith.addf %3, %5 : vector<32x256xf32>
    %c0_6 = arith.constant 0 : index
    %c0_7 = arith.constant 0 : index
    %7 = vector.load %arg15[%c0_6, %c0_7] : memref<32x256xf32, #tpu.memory_space<vmem>>, vector<32x256xf32>
    tpu.vector_store %arg15[%c0_6, %c0_7], %6 {strides = array<i32>} : memref<32x256xf32, #tpu.memory_space<vmem>>, vector<32x256xf32>,
    %c0_8 = arith.constant 0 : index
    %c0_9 = arith.constant 0 : index
    %8 = vector.load %arg9[%c0_8, %c0_9] : memref<32x1xf32, #tpu.memory_space<vmem>>, vector<32x1xf32>
    %9 = vector.shape_cast %8 : vector<32x1xf32> to vector<32x1xf32>
    %10 = vector.broadcast %9 : vector<32x1xf32> to vector<32x256xf32>
    %c0_10 = arith.constant 0 : index
    %c0_11 = arith.constant 0 : index
    %11 = vector.load %arg16[%c0_10, %c0_11] : memref<32x256xf32, #tpu.memory_space<vmem>>, vector<32x256xf32>
    tpu.vector_store %arg16[%c0_10, %c0_11], %10 {strides = array<i32>} : memref<32x256xf32, #tpu.memory_space<vmem>>, vector<32x256xf32>,
    %c0_12 = arith.constant 0 : index
    %c0_13 = arith.constant 0 : index
    %12 = vector.load %arg15[%c0_12, %c0_13] : memref<32x256xf32, #tpu.memory_space<vmem>>, vector<32x256xf32>
    %c16_i32 = arith.constant 16 : i32
    %13 = tpu.dynamic_rotate %12 by %c16_i32 dim 1 : vector<32x256xf32>, i32 -> vector<32x256xf32>
    %c0_14 = arith.constant 0 : index
    %c0_15 = arith.constant 0 : index
    %c0_16 = arith.constant 0 : index
    %14 = vector.load %arg12[%c0_14, %c0_15, %c0_16] : memref<4x32x256xf32, #tpu.memory_space<vmem>>, vector<1x32x256xf32>
    %15 = vector.shape_cast %14 : vector<1x32x256xf32> to vector<32x256xf32>
    %16 = arith.mulf %13, %15 : vector<32x256xf32>
    %c240_i32 = arith.constant 240 : i32
    %17 = tpu.dynamic_rotate %12 by %c240_i32 dim 1 : vector<32x256xf32>, i32 -> vector<32x256xf32>
    %c1 = arith.constant 1 : index
    %c0_17 = arith.constant 0 : index
    %c0_18 = arith.constant 0 : index
    %18 = vector.load %arg12[%c1, %c0_17, %c0_18] : memref<4x32x256xf32, #tpu.memory_space<vmem>>, vector<1x32x256xf32>
    %19 = vector.shape_cast %18 : vector<1x32x256xf32> to vector<32x256xf32>
    %20 = arith.mulf %17, %19 : vector<32x256xf32>
    %c1_i32 = arith.constant 1 : i32
    %21 = tpu.dynamic_rotate %16 by %c1_i32 dim 1 : vector<32x256xf32>, i32 -> vector<32x256xf32>
    %c2 = arith.constant 2 : index
    %c0_19 = arith.constant 0 : index
    %c0_20 = arith.constant 0 : index
    %22 = vector.load %arg12[%c2, %c0_19, %c0_20] : memref<4x32x256xf32, #tpu.memory_space<vmem>>, vector<1x32x256xf32>
    %23 = vector.shape_cast %22 : vector<1x32x256xf32> to vector<32x256xf32>
    %24 = arith.mulf %21, %23 : vector<32x256xf32>
    %25 = arith.truncf %24 : vector<32x256xf32> to vector<32x256xbf16>
    %c0_21 = arith.constant 0 : index
    %c0_22 = arith.constant 0 : index
    %26 = vector.load %arg14[%c0_21, %c0_22] : memref<288x256xbf16, #tpu.memory_space<vmem>>, vector<32x256xbf16>
    tpu.vector_store %arg14[%c0_21, %c0_22], %25 {strides = array<i32>} : memref<288x256xbf16, #tpu.memory_space<vmem>>, vector<32x256xbf16>,
    %27 = arith.truncf %16 : vector<32x256xf32> to vector<32x256xbf16>
    %c32 = arith.constant 32 : index
    %c0_23 = arith.constant 0 : index
    %28 = vector.load %arg14[%c32, %c0_23] : memref<288x256xbf16, #tpu.memory_space<vmem>>, vector<32x256xbf16>
    tpu.vector_store %arg14[%c32, %c0_23], %27 {strides = array<i32>} : memref<288x256xbf16, #tpu.memory_space<vmem>>, vector<32x256xbf16>,
    %c255_i32 = arith.constant 255 : i32
    %29 = tpu.dynamic_rotate %16 by %c255_i32 dim 1 : vector<32x256xf32>, i32 -> vector<32x256xf32>
    %c3 = arith.constant 3 : index
    %c0_24 = arith.constant 0 : index
    %c0_25 = arith.constant 0 : index
    %30 = vector.load %arg12[%c3, %c0_24, %c0_25] : memref<4x32x256xf32, #tpu.memory_space<vmem>>, vector<1x32x256xf32>
    %31 = vector.shape_cast %30 : vector<1x32x256xf32> to vector<32x256xf32>
    %32 = arith.mulf %29, %31 : vector<32x256xf32>
    %33 = arith.truncf %32 : vector<32x256xf32> to vector<32x256xbf16>
    %c64 = arith.constant 64 : index
    %c0_26 = arith.constant 0 : index
    %34 = vector.load %arg14[%c64, %c0_26] : memref<288x256xbf16, #tpu.memory_space<vmem>>, vector<32x256xbf16>
    tpu.vector_store %arg14[%c64, %c0_26], %33 {strides = array<i32>} : memref<288x256xbf16, #tpu.memory_space<vmem>>, vector<32x256xbf16>,
    %c1_i32_27 = arith.constant 1 : i32
    %35 = tpu.dynamic_rotate %12 by %c1_i32_27 dim 1 : vector<32x256xf32>, i32 -> vector<32x256xf32>
    %c2_28 = arith.constant 2 : index
    %c0_29 = arith.constant 0 : index
    %c0_30 = arith.constant 0 : index
    %36 = vector.load %arg12[%c2_28, %c0_29, %c0_30] : memref<4x32x256xf32, #tpu.memory_space<vmem>>, vector<1x32x256xf32>
    %37 = vector.shape_cast %36 : vector<1x32x256xf32> to vector<32x256xf32>
    %38 = arith.mulf %35, %37 : vector<32x256xf32>
    %39 = arith.truncf %38 : vector<32x256xf32> to vector<32x256xbf16>
    %c96 = arith.constant 96 : index
    %c0_31 = arith.constant 0 : index
    %40 = vector.load %arg14[%c96, %c0_31] : memref<288x256xbf16, #tpu.memory_space<vmem>>, vector<32x256xbf16>
    tpu.vector_store %arg14[%c96, %c0_31], %39 {strides = array<i32>} : memref<288x256xbf16, #tpu.memory_space<vmem>>, vector<32x256xbf16>,
    %41 = arith.truncf %12 : vector<32x256xf32> to vector<32x256xbf16>
    %c128 = arith.constant 128 : index
    %c0_32 = arith.constant 0 : index
    %42 = vector.load %arg14[%c128, %c0_32] : memref<288x256xbf16, #tpu.memory_space<vmem>>, vector<32x256xbf16>
    tpu.vector_store %arg14[%c128, %c0_32], %41 {strides = array<i32>} : memref<288x256xbf16, #tpu.memory_space<vmem>>, vector<32x256xbf16>,
    %c255_i32_33 = arith.constant 255 : i32
    %43 = tpu.dynamic_rotate %12 by %c255_i32_33 dim 1 : vector<32x256xf32>, i32 -> vector<32x256xf32>
    %c3_34 = arith.constant 3 : index
    %c0_35 = arith.constant 0 : index
    %c0_36 = arith.constant 0 : index
    %44 = vector.load %arg12[%c3_34, %c0_35, %c0_36] : memref<4x32x256xf32, #tpu.memory_space<vmem>>, vector<1x32x256xf32>
    %45 = vector.shape_cast %44 : vector<1x32x256xf32> to vector<32x256xf32>
    %46 = arith.mulf %43, %45 : vector<32x256xf32>
    %47 = arith.truncf %46 : vector<32x256xf32> to vector<32x256xbf16>
    %c160 = arith.constant 160 : index
    %c0_37 = arith.constant 0 : index
    %48 = vector.load %arg14[%c160, %c0_37] : memref<288x256xbf16, #tpu.memory_space<vmem>>, vector<32x256xbf16>
    tpu.vector_store %arg14[%c160, %c0_37], %47 {strides = array<i32>} : memref<288x256xbf16, #tpu.memory_space<vmem>>, vector<32x256xbf16>,
    %c1_i32_38 = arith.constant 1 : i32
    %49 = tpu.dynamic_rotate %20 by %c1_i32_38 dim 1 : vector<32x256xf32>, i32 -> vector<32x256xf32>
    %c2_39 = arith.constant 2 : index
    %c0_40 = arith.constant 0 : index
    %c0_41 = arith.constant 0 : index
    %50 = vector.load %arg12[%c2_39, %c0_40, %c0_41] : memref<4x32x256xf32, #tpu.memory_space<vmem>>, vector<1x32x256xf32>
    %51 = vector.shape_cast %50 : vector<1x32x256xf32> to vector<32x256xf32>
    %52 = arith.mulf %49, %51 : vector<32x256xf32>
    %53 = arith.truncf %52 : vector<32x256xf32> to vector<32x256xbf16>
    %c192 = arith.constant 192 : index
    %c0_42 = arith.constant 0 : index
    %54 = vector.load %arg14[%c192, %c0_42] : memref<288x256xbf16, #tpu.memory_space<vmem>>, vector<32x256xbf16>
    tpu.vector_store %arg14[%c192, %c0_42], %53 {strides = array<i32>} : memref<288x256xbf16, #tpu.memory_space<vmem>>, vector<32x256xbf16>,
    %55 = arith.truncf %20 : vector<32x256xf32> to vector<32x256xbf16>
    %c224 = arith.constant 224 : index
    %c0_43 = arith.constant 0 : index
    %56 = vector.load %arg14[%c224, %c0_43] : memref<288x256xbf16, #tpu.memory_space<vmem>>, vector<32x256xbf16>
    tpu.vector_store %arg14[%c224, %c0_43], %55 {strides = array<i32>} : memref<288x256xbf16, #tpu.memory_space<vmem>>, vector<32x256xbf16>,
    %c255_i32_44 = arith.constant 255 : i32
    %57 = tpu.dynamic_rotate %20 by %c255_i32_44 dim 1 : vector<32x256xf32>, i32 -> vector<32x256xf32>
    %c3_45 = arith.constant 3 : index
    %c0_46 = arith.constant 0 : index
    %c0_47 = arith.constant 0 : index
    %58 = vector.load %arg12[%c3_45, %c0_46, %c0_47] : memref<4x32x256xf32, #tpu.memory_space<vmem>>, vector<1x32x256xf32>
    %59 = vector.shape_cast %58 : vector<1x32x256xf32> to vector<32x256xf32>
    %60 = arith.mulf %57, %59 : vector<32x256xf32>
    %61 = arith.truncf %60 : vector<32x256xf32> to vector<32x256xbf16>
    %c256 = arith.constant 256 : index
    %c0_48 = arith.constant 0 : index
    %62 = vector.load %arg14[%c256, %c0_48] : memref<288x256xbf16, #tpu.memory_space<vmem>>, vector<32x256xbf16>
    tpu.vector_store %arg14[%c256, %c0_48], %61 {strides = array<i32>} : memref<288x256xbf16, #tpu.memory_space<vmem>>, vector<32x256xbf16>,
    %c0_49 = arith.constant 0 : index
    %c0_50 = arith.constant 0 : index
    %c0_51 = arith.constant 0 : index
    %63 = vector.load %arg4[%c0_49, %c0_50, %c0_51] : memref<4x32x288xbf16, #tpu.memory_space<vmem>>, vector<1x32x288xbf16>
    %64 = vector.shape_cast %63 : vector<1x32x288xbf16> to vector<32x288xbf16>
    %c0_52 = arith.constant 0 : index
    %c0_53 = arith.constant 0 : index
    %c0_54 = arith.constant 0 : index
    %65 = vector.load %arg5[%c0_52, %c0_53, %c0_54] : memref<4x32x1xf32, #tpu.memory_space<vmem>>, vector<1x32x1xf32>
    %66 = vector.shape_cast %65 : vector<1x32x1xf32> to vector<32x1xf32>
    %c0_55 = arith.constant 0 : index
    %c0_56 = arith.constant 0 : index
    %67 = vector.load %arg14[%c0_55, %c0_56] : memref<288x256xbf16, #tpu.memory_space<vmem>>, vector<288x256xbf16>
    %cst_57 = arith.constant dense<0.000000e+00> : vector<32x256xf32>
    %68 = tpu.matmul %64, %67, %cst_57 {dimension_numbers = #tpu.dot_dimension_numbers<[1], [0], [0], [1], [0, 0, 1, 1], [], []>} : vector<32x288xbf16>, vector<288x256xbf16>, vector<32x256xf32> -> vector<32x256xf32>
    %69 = vector.broadcast %66 : vector<32x1xf32> to vector<32x256xf32>
    %70 = arith.addf %68, %69 : vector<32x256xf32>
    %cst_58 = arith.constant 0.000000e+00 : f32
    %71 = vector.broadcast %cst_58 : f32 to vector<32x256xf32>
    %72 = arith.maximumf %70, %71 : vector<32x256xf32>
    %c16_i32_59 = arith.constant 16 : i32
    %73 = tpu.dynamic_rotate %72 by %c16_i32_59 dim 1 : vector<32x256xf32>, i32 -> vector<32x256xf32>
    %c0_60 = arith.constant 0 : index
    %c0_61 = arith.constant 0 : index
    %c0_62 = arith.constant 0 : index
    %74 = vector.load %arg12[%c0_60, %c0_61, %c0_62] : memref<4x32x256xf32, #tpu.memory_space<vmem>>, vector<1x32x256xf32>
    %75 = vector.shape_cast %74 : vector<1x32x256xf32> to vector<32x256xf32>
    %76 = arith.mulf %73, %75 : vector<32x256xf32>
    %c240_i32_63 = arith.constant 240 : i32
    %77 = tpu.dynamic_rotate %72 by %c240_i32_63 dim 1 : vector<32x256xf32>, i32 -> vector<32x256xf32>
    %c1_64 = arith.constant 1 : index
    %c0_65 = arith.constant 0 : index
    %c0_66 = arith.constant 0 : index
    %78 = vector.load %arg12[%c1_64, %c0_65, %c0_66] : memref<4x32x256xf32, #tpu.memory_space<vmem>>, vector<1x32x256xf32>
    %79 = vector.shape_cast %78 : vector<1x32x256xf32> to vector<32x256xf32>
    %80 = arith.mulf %77, %79 : vector<32x256xf32>
    %c1_i32_67 = arith.constant 1 : i32
    %81 = tpu.dynamic_rotate %76 by %c1_i32_67 dim 1 : vector<32x256xf32>, i32 -> vector<32x256xf32>
    %c2_68 = arith.constant 2 : index
    %c0_69 = arith.constant 0 : index
    %c0_70 = arith.constant 0 : index
    %82 = vector.load %arg12[%c2_68, %c0_69, %c0_70] : memref<4x32x256xf32, #tpu.memory_space<vmem>>, vector<1x32x256xf32>
    %83 = vector.shape_cast %82 : vector<1x32x256xf32> to vector<32x256xf32>
    %84 = arith.mulf %81, %83 : vector<32x256xf32>
    %85 = arith.truncf %84 : vector<32x256xf32> to vector<32x256xbf16>
    %c0_71 = arith.constant 0 : index
    %c0_72 = arith.constant 0 : index
    %86 = vector.load %arg14[%c0_71, %c0_72] : memref<288x256xbf16, #tpu.memory_space<vmem>>, vector<32x256xbf16>
    tpu.vector_store %arg14[%c0_71, %c0_72], %85 {strides = array<i32>} : memref<288x256xbf16, #tpu.memory_space<vmem>>, vector<32x256xbf16>,
    %87 = arith.truncf %76 : vector<32x256xf32> to vector<32x256xbf16>
    %c32_73 = arith.constant 32 : index
    %c0_74 = arith.constant 0 : index
    %88 = vector.load %arg14[%c32_73, %c0_74] : memref<288x256xbf16, #tpu.memory_space<vmem>>, vector<32x256xbf16>
    tpu.vector_store %arg14[%c32_73, %c0_74], %87 {strides = array<i32>} : memref<288x256xbf16, #tpu.memory_space<vmem>>, vector<32x256xbf16>,
    %c255_i32_75 = arith.constant 255 : i32
    %89 = tpu.dynamic_rotate %76 by %c255_i32_75 dim 1 : vector<32x256xf32>, i32 -> vector<32x256xf32>
    %c3_76 = arith.constant 3 : index
    %c0_77 = arith.constant 0 : index
    %c0_78 = arith.constant 0 : index
    %90 = vector.load %arg12[%c3_76, %c0_77, %c0_78] : memref<4x32x256xf32, #tpu.memory_space<vmem>>, vector<1x32x256xf32>
    %91 = vector.shape_cast %90 : vector<1x32x256xf32> to vector<32x256xf32>
    %92 = arith.mulf %89, %91 : vector<32x256xf32>
    %93 = arith.truncf %92 : vector<32x256xf32> to vector<32x256xbf16>
    %c64_79 = arith.constant 64 : index
    %c0_80 = arith.constant 0 : index
    %94 = vector.load %arg14[%c64_79, %c0_80] : memref<288x256xbf16, #tpu.memory_space<vmem>>, vector<32x256xbf16>
    tpu.vector_store %arg14[%c64_79, %c0_80], %93 {strides = array<i32>} : memref<288x256xbf16, #tpu.memory_space<vmem>>, vector<32x256xbf16>,
    %c1_i32_81 = arith.constant 1 : i32
    %95 = tpu.dynamic_rotate %72 by %c1_i32_81 dim 1 : vector<32x256xf32>, i32 -> vector<32x256xf32>
    %c2_82 = arith.constant 2 : index
    %c0_83 = arith.constant 0 : index
    %c0_84 = arith.constant 0 : index
    %96 = vector.load %arg12[%c2_82, %c0_83, %c0_84] : memref<4x32x256xf32, #tpu.memory_space<vmem>>, vector<1x32x256xf32>
    %97 = vector.shape_cast %96 : vector<1x32x256xf32> to vector<32x256xf32>
    %98 = arith.mulf %95, %97 : vector<32x256xf32>
    %99 = arith.truncf %98 : vector<32x256xf32> to vector<32x256xbf16>
    %c96_85 = arith.constant 96 : index
    %c0_86 = arith.constant 0 : index
    %100 = vector.load %arg14[%c96_85, %c0_86] : memref<288x256xbf16, #tpu.memory_space<vmem>>, vector<32x256xbf16>
    tpu.vector_store %arg14[%c96_85, %c0_86], %99 {strides = array<i32>} : memref<288x256xbf16, #tpu.memory_space<vmem>>, vector<32x256xbf16>,
    %101 = arith.truncf %72 : vector<32x256xf32> to vector<32x256xbf16>
    %c128_87 = arith.constant 128 : index
    %c0_88 = arith.constant 0 : index
    %102 = vector.load %arg14[%c128_87, %c0_88] : memref<288x256xbf16, #tpu.memory_space<vmem>>, vector<32x256xbf16>
    tpu.vector_store %arg14[%c128_87, %c0_88], %101 {strides = array<i32>} : memref<288x256xbf16, #tpu.memory_space<vmem>>, vector<32x256xbf16>,
    %c255_i32_89 = arith.constant 255 : i32
    %103 = tpu.dynamic_rotate %72 by %c255_i32_89 dim 1 : vector<32x256xf32>, i32 -> vector<32x256xf32>
    %c3_90 = arith.constant 3 : index
    %c0_91 = arith.constant 0 : index
    %c0_92 = arith.constant 0 : index
    %104 = vector.load %arg12[%c3_90, %c0_91, %c0_92] : memref<4x32x256xf32, #tpu.memory_space<vmem>>, vector<1x32x256xf32>
    %105 = vector.shape_cast %104 : vector<1x32x256xf32> to vector<32x256xf32>
    %106 = arith.mulf %103, %105 : vector<32x256xf32>
    %107 = arith.truncf %106 : vector<32x256xf32> to vector<32x256xbf16>
    %c160_93 = arith.constant 160 : index
    %c0_94 = arith.constant 0 : index
    %108 = vector.load %arg14[%c160_93, %c0_94] : memref<288x256xbf16, #tpu.memory_space<vmem>>, vector<32x256xbf16>
    tpu.vector_store %arg14[%c160_93, %c0_94], %107 {strides = array<i32>} : memref<288x256xbf16, #tpu.memory_space<vmem>>, vector<32x256xbf16>,
    %c1_i32_95 = arith.constant 1 : i32
    %109 = tpu.dynamic_rotate %80 by %c1_i32_95 dim 1 : vector<32x256xf32>, i32 -> vector<32x256xf32>
    %c2_96 = arith.constant 2 : index
    %c0_97 = arith.constant 0 : index
    %c0_98 = arith.constant 0 : index
    %110 = vector.load %arg12[%c2_96, %c0_97, %c0_98] : memref<4x32x256xf32, #tpu.memory_space<vmem>>, vector<1x32x256xf32>
    %111 = vector.shape_cast %110 : vector<1x32x256xf32> to vector<32x256xf32>
    %112 = arith.mulf %109, %111 : vector<32x256xf32>
    %113 = arith.truncf %112 : vector<32x256xf32> to vector<32x256xbf16>
    %c192_99 = arith.constant 192 : index
    %c0_100 = arith.constant 0 : index
    %114 = vector.load %arg14[%c192_99, %c0_100] : memref<288x256xbf16, #tpu.memory_space<vmem>>, vector<32x256xbf16>
    tpu.vector_store %arg14[%c192_99, %c0_100], %113 {strides = array<i32>} : memref<288x256xbf16, #tpu.memory_space<vmem>>, vector<32x256xbf16>,
    %115 = arith.truncf %80 : vector<32x256xf32> to vector<32x256xbf16>
    %c224_101 = arith.constant 224 : index
    %c0_102 = arith.constant 0 : index
    %116 = vector.load %arg14[%c224_101, %c0_102] : memref<288x256xbf16, #tpu.memory_space<vmem>>, vector<32x256xbf16>
    tpu.vector_store %arg14[%c224_101, %c0_102], %115 {strides = array<i32>} : memref<288x256xbf16, #tpu.memory_space<vmem>>, vector<32x256xbf16>,
    %c255_i32_103 = arith.constant 255 : i32
    %117 = tpu.dynamic_rotate %80 by %c255_i32_103 dim 1 : vector<32x256xf32>, i32 -> vector<32x256xf32>
    %c3_104 = arith.constant 3 : index
    %c0_105 = arith.constant 0 : index
    %c0_106 = arith.constant 0 : index
    %118 = vector.load %arg12[%c3_104, %c0_105, %c0_106] : memref<4x32x256xf32, #tpu.memory_space<vmem>>, vector<1x32x256xf32>
    %119 = vector.shape_cast %118 : vector<1x32x256xf32> to vector<32x256xf32>
    %120 = arith.mulf %117, %119 : vector<32x256xf32>
    %121 = arith.truncf %120 : vector<32x256xf32> to vector<32x256xbf16>
    %c256_107 = arith.constant 256 : index
    %c0_108 = arith.constant 0 : index
    %122 = vector.load %arg14[%c256_107, %c0_108] : memref<288x256xbf16, #tpu.memory_space<vmem>>, vector<32x256xbf16>
    tpu.vector_store %arg14[%c256_107, %c0_108], %121 {strides = array<i32>} : memref<288x256xbf16, #tpu.memory_space<vmem>>, vector<32x256xbf16>,
    %c0_109 = arith.constant 0 : index
    %c0_110 = arith.constant 0 : index
    %c0_111 = arith.constant 0 : index
    %123 = vector.load %arg6[%c0_109, %c0_110, %c0_111] : memref<4x32x288xbf16, #tpu.memory_space<vmem>>, vector<1x32x288xbf16>
    %124 = vector.shape_cast %123 : vector<1x32x288xbf16> to vector<32x288xbf16>
    %c0_112 = arith.constant 0 : index
    %c0_113 = arith.constant 0 : index
    %c0_114 = arith.constant 0 : index
    %125 = vector.load %arg7[%c0_112, %c0_113, %c0_114] : memref<4x32x1xf32, #tpu.memory_space<vmem>>, vector<1x32x1xf32>
    %126 = vector.shape_cast %125 : vector<1x32x1xf32> to vector<32x1xf32>
    %c0_115 = arith.constant 0 : index
    %c0_116 = arith.constant 0 : index
    %127 = vector.load %arg14[%c0_115, %c0_116] : memref<288x256xbf16, #tpu.memory_space<vmem>>, vector<288x256xbf16>
    %cst_117 = arith.constant dense<0.000000e+00> : vector<32x256xf32>
    %128 = tpu.matmul %124, %127, %cst_117 {dimension_numbers = #tpu.dot_dimension_numbers<[1], [0], [0], [1], [0, 0, 1, 1], [], []>} : vector<32x288xbf16>, vector<288x256xbf16>, vector<32x256xf32> -> vector<32x256xf32>
    %129 = vector.broadcast %126 : vector<32x1xf32> to vector<32x256xf32>
    %130 = arith.addf %128, %129 : vector<32x256xf32>
    %c0_118 = arith.constant 0 : index
    %c0_119 = arith.constant 0 : index
    %131 = vector.load %arg15[%c0_118, %c0_119] : memref<32x256xf32, #tpu.memory_space<vmem>>, vector<32x256xf32>
    %132 = arith.addf %130, %131 : vector<32x256xf32>
    %c0_120 = arith.constant 0 : index
    %c0_121 = arith.constant 0 : index
    %133 = vector.load %arg15[%c0_120, %c0_121] : memref<32x256xf32, #tpu.memory_space<vmem>>, vector<32x256xf32>
    tpu.vector_store %arg15[%c0_120, %c0_121], %132 {strides = array<i32>} : memref<32x256xf32, #tpu.memory_space<vmem>>, vector<32x256xf32>,
    %c0_122 = arith.constant 0 : index
    %c0_123 = arith.constant 0 : index
    %134 = vector.load %arg16[%c0_122, %c0_123] : memref<32x256xf32, #tpu.memory_space<vmem>>, vector<32x256xf32>
    %c0_124 = arith.constant 0 : index
    %c0_125 = arith.constant 0 : index
    %c0_126 = arith.constant 0 : index
    %135 = vector.load %arg8[%c0_124, %c0_125, %c0_126] : memref<4x32x32xbf16, #tpu.memory_space<vmem>>, vector<1x32x32xbf16>
    %136 = vector.shape_cast %135 : vector<1x32x32xbf16> to vector<32x32xbf16>
    %c0_127 = arith.constant 0 : index
    %c0_128 = arith.constant 0 : index
    %137 = vector.load %arg15[%c0_127, %c0_128] : memref<32x256xf32, #tpu.memory_space<vmem>>, vector<32x256xf32>
    %138 = arith.truncf %137 : vector<32x256xf32> to vector<32x256xbf16>
    %cst_129 = arith.constant dense<0.000000e+00> : vector<32x256xf32>
    %139 = tpu.matmul %136, %138, %cst_129 {dimension_numbers = #tpu.dot_dimension_numbers<[1], [0], [0], [1], [0, 0, 1, 1], [], []>} : vector<32x32xbf16>, vector<32x256xbf16>, vector<32x256xf32> -> vector<32x256xf32>
    %140 = arith.addf %134, %139 : vector<32x256xf32>
    %c0_130 = arith.constant 0 : index
    %c0_131 = arith.constant 0 : index
    %141 = vector.load %arg16[%c0_130, %c0_131] : memref<32x256xf32, #tpu.memory_space<vmem>>, vector<32x256xf32>
    tpu.vector_store %arg16[%c0_130, %c0_131], %140 {strides = array<i32>} : memref<32x256xf32, #tpu.memory_space<vmem>>, vector<32x256xf32>,
    %c0_132 = arith.constant 0 : index
    %c0_133 = arith.constant 0 : index
    %142 = vector.load %arg15[%c0_132, %c0_133] : memref<32x256xf32, #tpu.memory_space<vmem>>, vector<32x256xf32>
    %c16_i32_134 = arith.constant 16 : i32
    %143 = tpu.dynamic_rotate %142 by %c16_i32_134 dim 1 : vector<32x256xf32>, i32 -> vector<32x256xf32>
    %c0_135 = arith.constant 0 : index
    %c0_136 = arith.constant 0 : index
    %c0_137 = arith.constant 0 : index
    %144 = vector.load %arg12[%c0_135, %c0_136, %c0_137] : memref<4x32x256xf32, #tpu.memory_space<vmem>>, vector<1x32x256xf32>
    %145 = vector.shape_cast %144 : vector<1x32x256xf32> to vector<32x256xf32>
    %146 = arith.mulf %143, %145 : vector<32x256xf32>
    %c240_i32_138 = arith.constant 240 : i32
    %147 = tpu.dynamic_rotate %142 by %c240_i32_138 dim 1 : vector<32x256xf32>, i32 -> vector<32x256xf32>
    %c1_139 = arith.constant 1 : index
    %c0_140 = arith.constant 0 : index
    %c0_141 = arith.constant 0 : index
    %148 = vector.load %arg12[%c1_139, %c0_140, %c0_141] : memref<4x32x256xf32, #tpu.memory_space<vmem>>, vector<1x32x256xf32>
    %149 = vector.shape_cast %148 : vector<1x32x256xf32> to vector<32x256xf32>
    %150 = arith.mulf %147, %149 : vector<32x256xf32>
    %c1_i32_142 = arith.constant 1 : i32
    %151 = tpu.dynamic_rotate %146 by %c1_i32_142 dim 1 : vector<32x256xf32>, i32 -> vector<32x256xf32>
    %c2_143 = arith.constant 2 : index
    %c0_144 = arith.constant 0 : index
    %c0_145 = arith.constant 0 : index
    %152 = vector.load %arg12[%c2_143, %c0_144, %c0_145] : memref<4x32x256xf32, #tpu.memory_space<vmem>>, vector<1x32x256xf32>
    %153 = vector.shape_cast %152 : vector<1x32x256xf32> to vector<32x256xf32>
    %154 = arith.mulf %151, %153 : vector<32x256xf32>
    %155 = arith.truncf %154 : vector<32x256xf32> to vector<32x256xbf16>
    %c0_146 = arith.constant 0 : index
    %c0_147 = arith.constant 0 : index
    %156 = vector.load %arg14[%c0_146, %c0_147] : memref<288x256xbf16, #tpu.memory_space<vmem>>, vector<32x256xbf16>
    tpu.vector_store %arg14[%c0_146, %c0_147], %155 {strides = array<i32>} : memref<288x256xbf16, #tpu.memory_space<vmem>>, vector<32x256xbf16>,
    %157 = arith.truncf %146 : vector<32x256xf32> to vector<32x256xbf16>
    %c32_148 = arith.constant 32 : index
    %c0_149 = arith.constant 0 : index
    %158 = vector.load %arg14[%c32_148, %c0_149] : memref<288x256xbf16, #tpu.memory_space<vmem>>, vector<32x256xbf16>
    tpu.vector_store %arg14[%c32_148, %c0_149], %157 {strides = array<i32>} : memref<288x256xbf16, #tpu.memory_space<vmem>>, vector<32x256xbf16>,
    %c255_i32_150 = arith.constant 255 : i32
    %159 = tpu.dynamic_rotate %146 by %c255_i32_150 dim 1 : vector<32x256xf32>, i32 -> vector<32x256xf32>
    %c3_151 = arith.constant 3 : index
    %c0_152 = arith.constant 0 : index
    %c0_153 = arith.constant 0 : index
    %160 = vector.load %arg12[%c3_151, %c0_152, %c0_153] : memref<4x32x256xf32, #tpu.memory_space<vmem>>, vector<1x32x256xf32>
    %161 = vector.shape_cast %160 : vector<1x32x256xf32> to vector<32x256xf32>
    %162 = arith.mulf %159, %161 : vector<32x256xf32>
    %163 = arith.truncf %162 : vector<32x256xf32> to vector<32x256xbf16>
    %c64_154 = arith.constant 64 : index
    %c0_155 = arith.constant 0 : index
    %164 = vector.load %arg14[%c64_154, %c0_155] : memref<288x256xbf16, #tpu.memory_space<vmem>>, vector<32x256xbf16>
    tpu.vector_store %arg14[%c64_154, %c0_155], %163 {strides = array<i32>} : memref<288x256xbf16, #tpu.memory_space<vmem>>, vector<32x256xbf16>,
    %c1_i32_156 = arith.constant 1 : i32
    %165 = tpu.dynamic_rotate %142 by %c1_i32_156 dim 1 : vector<32x256xf32>, i32 -> vector<32x256xf32>
    %c2_157 = arith.constant 2 : index
    %c0_158 = arith.constant 0 : index
    %c0_159 = arith.constant 0 : index
    %166 = vector.load %arg12[%c2_157, %c0_158, %c0_159] : memref<4x32x256xf32, #tpu.memory_space<vmem>>, vector<1x32x256xf32>
    %167 = vector.shape_cast %166 : vector<1x32x256xf32> to vector<32x256xf32>
    %168 = arith.mulf %165, %167 : vector<32x256xf32>
    %169 = arith.truncf %168 : vector<32x256xf32> to vector<32x256xbf16>
    %c96_160 = arith.constant 96 : index
    %c0_161 = arith.constant 0 : index
    %170 = vector.load %arg14[%c96_160, %c0_161] : memref<288x256xbf16, #tpu.memory_space<vmem>>, vector<32x256xbf16>
    tpu.vector_store %arg14[%c96_160, %c0_161], %169 {strides = array<i32>} : memref<288x256xbf16, #tpu.memory_space<vmem>>, vector<32x256xbf16>,
    %171 = arith.truncf %142 : vector<32x256xf32> to vector<32x256xbf16>
    %c128_162 = arith.constant 128 : index
    %c0_163 = arith.constant 0 : index
    %172 = vector.load %arg14[%c128_162, %c0_163] : memref<288x256xbf16, #tpu.memory_space<vmem>>, vector<32x256xbf16>
    tpu.vector_store %arg14[%c128_162, %c0_163], %171 {strides = array<i32>} : memref<288x256xbf16, #tpu.memory_space<vmem>>, vector<32x256xbf16>,
    %c255_i32_164 = arith.constant 255 : i32
    %173 = tpu.dynamic_rotate %142 by %c255_i32_164 dim 1 : vector<32x256xf32>, i32 -> vector<32x256xf32>
    %c3_165 = arith.constant 3 : index
    %c0_166 = arith.constant 0 : index
    %c0_167 = arith.constant 0 : index
    %174 = vector.load %arg12[%c3_165, %c0_166, %c0_167] : memref<4x32x256xf32, #tpu.memory_space<vmem>>, vector<1x32x256xf32>
    %175 = vector.shape_cast %174 : vector<1x32x256xf32> to vector<32x256xf32>
    %176 = arith.mulf %173, %175 : vector<32x256xf32>
    %177 = arith.truncf %176 : vector<32x256xf32> to vector<32x256xbf16>
    %c160_168 = arith.constant 160 : index
    %c0_169 = arith.constant 0 : index
    %178 = vector.load %arg14[%c160_168, %c0_169] : memref<288x256xbf16, #tpu.memory_space<vmem>>, vector<32x256xbf16>
    tpu.vector_store %arg14[%c160_168, %c0_169], %177 {strides = array<i32>} : memref<288x256xbf16, #tpu.memory_space<vmem>>, vector<32x256xbf16>,
    %c1_i32_170 = arith.constant 1 : i32
    %179 = tpu.dynamic_rotate %150 by %c1_i32_170 dim 1 : vector<32x256xf32>, i32 -> vector<32x256xf32>
    %c2_171 = arith.constant 2 : index
    %c0_172 = arith.constant 0 : index
    %c0_173 = arith.constant 0 : index
    %180 = vector.load %arg12[%c2_171, %c0_172, %c0_173] : memref<4x32x256xf32, #tpu.memory_space<vmem>>, vector<1x32x256xf32>
    %181 = vector.shape_cast %180 : vector<1x32x256xf32> to vector<32x256xf32>
    %182 = arith.mulf %179, %181 : vector<32x256xf32>
    %183 = arith.truncf %182 : vector<32x256xf32> to vector<32x256xbf16>
    %c192_174 = arith.constant 192 : index
    %c0_175 = arith.constant 0 : index
    %184 = vector.load %arg14[%c192_174, %c0_175] : memref<288x256xbf16, #tpu.memory_space<vmem>>, vector<32x256xbf16>
    tpu.vector_store %arg14[%c192_174, %c0_175], %183 {strides = array<i32>} : memref<288x256xbf16, #tpu.memory_space<vmem>>, vector<32x256xbf16>,
    %185 = arith.truncf %150 : vector<32x256xf32> to vector<32x256xbf16>
    %c224_176 = arith.constant 224 : index
    %c0_177 = arith.constant 0 : index
    %186 = vector.load %arg14[%c224_176, %c0_177] : memref<288x256xbf16, #tpu.memory_space<vmem>>, vector<32x256xbf16>
    tpu.vector_store %arg14[%c224_176, %c0_177], %185 {strides = array<i32>} : memref<288x256xbf16, #tpu.memory_space<vmem>>, vector<32x256xbf16>,
    %c255_i32_178 = arith.constant 255 : i32
    %187 = tpu.dynamic_rotate %150 by %c255_i32_178 dim 1 : vector<32x256xf32>, i32 -> vector<32x256xf32>
    %c3_179 = arith.constant 3 : index
    %c0_180 = arith.constant 0 : index
    %c0_181 = arith.constant 0 : index
    %188 = vector.load %arg12[%c3_179, %c0_180, %c0_181] : memref<4x32x256xf32, #tpu.memory_space<vmem>>, vector<1x32x256xf32>
    %189 = vector.shape_cast %188 : vector<1x32x256xf32> to vector<32x256xf32>
    %190 = arith.mulf %187, %189 : vector<32x256xf32>
    %191 = arith.truncf %190 : vector<32x256xf32> to vector<32x256xbf16>
    %c256_182 = arith.constant 256 : index
    %c0_183 = arith.constant 0 : index
    %192 = vector.load %arg14[%c256_182, %c0_183] : memref<288x256xbf16, #tpu.memory_space<vmem>>, vector<32x256xbf16>
    tpu.vector_store %arg14[%c256_182, %c0_183], %191 {strides = array<i32>} : memref<288x256xbf16, #tpu.memory_space<vmem>>, vector<32x256xbf16>,
    %c1_184 = arith.constant 1 : index
    %c0_185 = arith.constant 0 : index
    %c0_186 = arith.constant 0 : index
    %193 = vector.load %arg4[%c1_184, %c0_185, %c0_186] : memref<4x32x288xbf16, #tpu.memory_space<vmem>>, vector<1x32x288xbf16>
    %194 = vector.shape_cast %193 : vector<1x32x288xbf16> to vector<32x288xbf16>
    %c1_187 = arith.constant 1 : index
    %c0_188 = arith.constant 0 : index
    %c0_189 = arith.constant 0 : index
    %195 = vector.load %arg5[%c1_187, %c0_188, %c0_189] : memref<4x32x1xf32, #tpu.memory_space<vmem>>, vector<1x32x1xf32>
    %196 = vector.shape_cast %195 : vector<1x32x1xf32> to vector<32x1xf32>
    %c0_190 = arith.constant 0 : index
    %c0_191 = arith.constant 0 : index
    %197 = vector.load %arg14[%c0_190, %c0_191] : memref<288x256xbf16, #tpu.memory_space<vmem>>, vector<288x256xbf16>
    %cst_192 = arith.constant dense<0.000000e+00> : vector<32x256xf32>
    %198 = tpu.matmul %194, %197, %cst_192 {dimension_numbers = #tpu.dot_dimension_numbers<[1], [0], [0], [1], [0, 0, 1, 1], [], []>} : vector<32x288xbf16>, vector<288x256xbf16>, vector<32x256xf32> -> vector<32x256xf32>
    %199 = vector.broadcast %196 : vector<32x1xf32> to vector<32x256xf32>
    %200 = arith.addf %198, %199 : vector<32x256xf32>
    %cst_193 = arith.constant 0.000000e+00 : f32
    %201 = vector.broadcast %cst_193 : f32 to vector<32x256xf32>
    %202 = arith.maximumf %200, %201 : vector<32x256xf32>
    %c16_i32_194 = arith.constant 16 : i32
    %203 = tpu.dynamic_rotate %202 by %c16_i32_194 dim 1 : vector<32x256xf32>, i32 -> vector<32x256xf32>
    %c0_195 = arith.constant 0 : index
    %c0_196 = arith.constant 0 : index
    %c0_197 = arith.constant 0 : index
    %204 = vector.load %arg12[%c0_195, %c0_196, %c0_197] : memref<4x32x256xf32, #tpu.memory_space<vmem>>, vector<1x32x256xf32>
    %205 = vector.shape_cast %204 : vector<1x32x256xf32> to vector<32x256xf32>
    %206 = arith.mulf %203, %205 : vector<32x256xf32>
    %c240_i32_198 = arith.constant 240 : i32
    %207 = tpu.dynamic_rotate %202 by %c240_i32_198 dim 1 : vector<32x256xf32>, i32 -> vector<32x256xf32>
    %c1_199 = arith.constant 1 : index
    %c0_200 = arith.constant 0 : index
    %c0_201 = arith.constant 0 : index
    %208 = vector.load %arg12[%c1_199, %c0_200, %c0_201] : memref<4x32x256xf32, #tpu.memory_space<vmem>>, vector<1x32x256xf32>
    %209 = vector.shape_cast %208 : vector<1x32x256xf32> to vector<32x256xf32>
    %210 = arith.mulf %207, %209 : vector<32x256xf32>
    %c1_i32_202 = arith.constant 1 : i32
    %211 = tpu.dynamic_rotate %206 by %c1_i32_202 dim 1 : vector<32x256xf32>, i32 -> vector<32x256xf32>
    %c2_203 = arith.constant 2 : index
    %c0_204 = arith.constant 0 : index
    %c0_205 = arith.constant 0 : index
    %212 = vector.load %arg12[%c2_203, %c0_204, %c0_205] : memref<4x32x256xf32, #tpu.memory_space<vmem>>, vector<1x32x256xf32>
    %213 = vector.shape_cast %212 : vector<1x32x256xf32> to vector<32x256xf32>
    %214 = arith.mulf %211, %213 : vector<32x256xf32>
    %215 = arith.truncf %214 : vector<32x256xf32> to vector<32x256xbf16>
    %c0_206 = arith.constant 0 : index
    %c0_207 = arith.constant 0 : index
    %216 = vector.load %arg14[%c0_206, %c0_207] : memref<288x256xbf16, #tpu.memory_space<vmem>>, vector<32x256xbf16>
    tpu.vector_store %arg14[%c0_206, %c0_207], %215 {strides = array<i32>} : memref<288x256xbf16, #tpu.memory_space<vmem>>, vector<32x256xbf16>,
    %217 = arith.truncf %206 : vector<32x256xf32> to vector<32x256xbf16>
    %c32_208 = arith.constant 32 : index
    %c0_209 = arith.constant 0 : index
    %218 = vector.load %arg14[%c32_208, %c0_209] : memref<288x256xbf16, #tpu.memory_space<vmem>>, vector<32x256xbf16>
    tpu.vector_store %arg14[%c32_208, %c0_209], %217 {strides = array<i32>} : memref<288x256xbf16, #tpu.memory_space<vmem>>, vector<32x256xbf16>,
    %c255_i32_210 = arith.constant 255 : i32
    %219 = tpu.dynamic_rotate %206 by %c255_i32_210 dim 1 : vector<32x256xf32>, i32 -> vector<32x256xf32>
    %c3_211 = arith.constant 3 : index
    %c0_212 = arith.constant 0 : index
    %c0_213 = arith.constant 0 : index
    %220 = vector.load %arg12[%c3_211, %c0_212, %c0_213] : memref<4x32x256xf32, #tpu.memory_space<vmem>>, vector<1x32x256xf32>
    %221 = vector.shape_cast %220 : vector<1x32x256xf32> to vector<32x256xf32>
    %222 = arith.mulf %219, %221 : vector<32x256xf32>
    %223 = arith.truncf %222 : vector<32x256xf32> to vector<32x256xbf16>
    %c64_214 = arith.constant 64 : index
    %c0_215 = arith.constant 0 : index
    %224 = vector.load %arg14[%c64_214, %c0_215] : memref<288x256xbf16, #tpu.memory_space<vmem>>, vector<32x256xbf16>
    tpu.vector_store %arg14[%c64_214, %c0_215], %223 {strides = array<i32>} : memref<288x256xbf16, #tpu.memory_space<vmem>>, vector<32x256xbf16>,
    %c1_i32_216 = arith.constant 1 : i32
    %225 = tpu.dynamic_rotate %202 by %c1_i32_216 dim 1 : vector<32x256xf32>, i32 -> vector<32x256xf32>
    %c2_217 = arith.constant 2 : index
    %c0_218 = arith.constant 0 : index
    %c0_219 = arith.constant 0 : index
    %226 = vector.load %arg12[%c2_217, %c0_218, %c0_219] : memref<4x32x256xf32, #tpu.memory_space<vmem>>, vector<1x32x256xf32>
    %227 = vector.shape_cast %226 : vector<1x32x256xf32> to vector<32x256xf32>
    %228 = arith.mulf %225, %227 : vector<32x256xf32>
    %229 = arith.truncf %228 : vector<32x256xf32> to vector<32x256xbf16>
    %c96_220 = arith.constant 96 : index
    %c0_221 = arith.constant 0 : index
    %230 = vector.load %arg14[%c96_220, %c0_221] : memref<288x256xbf16, #tpu.memory_space<vmem>>, vector<32x256xbf16>
    tpu.vector_store %arg14[%c96_220, %c0_221], %229 {strides = array<i32>} : memref<288x256xbf16, #tpu.memory_space<vmem>>, vector<32x256xbf16>,
    %231 = arith.truncf %202 : vector<32x256xf32> to vector<32x256xbf16>
    %c128_222 = arith.constant 128 : index
    %c0_223 = arith.constant 0 : index
    %232 = vector.load %arg14[%c128_222, %c0_223] : memref<288x256xbf16, #tpu.memory_space<vmem>>, vector<32x256xbf16>
    tpu.vector_store %arg14[%c128_222, %c0_223], %231 {strides = array<i32>} : memref<288x256xbf16, #tpu.memory_space<vmem>>, vector<32x256xbf16>,
    %c255_i32_224 = arith.constant 255 : i32
    %233 = tpu.dynamic_rotate %202 by %c255_i32_224 dim 1 : vector<32x256xf32>, i32 -> vector<32x256xf32>
    %c3_225 = arith.constant 3 : index
    %c0_226 = arith.constant 0 : index
    %c0_227 = arith.constant 0 : index
    %234 = vector.load %arg12[%c3_225, %c0_226, %c0_227] : memref<4x32x256xf32, #tpu.memory_space<vmem>>, vector<1x32x256xf32>
    %235 = vector.shape_cast %234 : vector<1x32x256xf32> to vector<32x256xf32>
    %236 = arith.mulf %233, %235 : vector<32x256xf32>
    %237 = arith.truncf %236 : vector<32x256xf32> to vector<32x256xbf16>
    %c160_228 = arith.constant 160 : index
    %c0_229 = arith.constant 0 : index
    %238 = vector.load %arg14[%c160_228, %c0_229] : memref<288x256xbf16, #tpu.memory_space<vmem>>, vector<32x256xbf16>
    tpu.vector_store %arg14[%c160_228, %c0_229], %237 {strides = array<i32>} : memref<288x256xbf16, #tpu.memory_space<vmem>>, vector<32x256xbf16>,
    %c1_i32_230 = arith.constant 1 : i32
    %239 = tpu.dynamic_rotate %210 by %c1_i32_230 dim 1 : vector<32x256xf32>, i32 -> vector<32x256xf32>
    %c2_231 = arith.constant 2 : index
    %c0_232 = arith.constant 0 : index
    %c0_233 = arith.constant 0 : index
    %240 = vector.load %arg12[%c2_231, %c0_232, %c0_233] : memref<4x32x256xf32, #tpu.memory_space<vmem>>, vector<1x32x256xf32>
    %241 = vector.shape_cast %240 : vector<1x32x256xf32> to vector<32x256xf32>
    %242 = arith.mulf %239, %241 : vector<32x256xf32>
    %243 = arith.truncf %242 : vector<32x256xf32> to vector<32x256xbf16>
    %c192_234 = arith.constant 192 : index
    %c0_235 = arith.constant 0 : index
    %244 = vector.load %arg14[%c192_234, %c0_235] : memref<288x256xbf16, #tpu.memory_space<vmem>>, vector<32x256xbf16>
    tpu.vector_store %arg14[%c192_234, %c0_235], %243 {strides = array<i32>} : memref<288x256xbf16, #tpu.memory_space<vmem>>, vector<32x256xbf16>,
    %245 = arith.truncf %210 : vector<32x256xf32> to vector<32x256xbf16>
    %c224_236 = arith.constant 224 : index
    %c0_237 = arith.constant 0 : index
    %246 = vector.load %arg14[%c224_236, %c0_237] : memref<288x256xbf16, #tpu.memory_space<vmem>>, vector<32x256xbf16>
    tpu.vector_store %arg14[%c224_236, %c0_237], %245 {strides = array<i32>} : memref<288x256xbf16, #tpu.memory_space<vmem>>, vector<32x256xbf16>,
    %c255_i32_238 = arith.constant 255 : i32
    %247 = tpu.dynamic_rotate %210 by %c255_i32_238 dim 1 : vector<32x256xf32>, i32 -> vector<32x256xf32>
    %c3_239 = arith.constant 3 : index
    %c0_240 = arith.constant 0 : index
    %c0_241 = arith.constant 0 : index
    %248 = vector.load %arg12[%c3_239, %c0_240, %c0_241] : memref<4x32x256xf32, #tpu.memory_space<vmem>>, vector<1x32x256xf32>
    %249 = vector.shape_cast %248 : vector<1x32x256xf32> to vector<32x256xf32>
    %250 = arith.mulf %247, %249 : vector<32x256xf32>
    %251 = arith.truncf %250 : vector<32x256xf32> to vector<32x256xbf16>
    %c256_242 = arith.constant 256 : index
    %c0_243 = arith.constant 0 : index
    %252 = vector.load %arg14[%c256_242, %c0_243] : memref<288x256xbf16, #tpu.memory_space<vmem>>, vector<32x256xbf16>
    tpu.vector_store %arg14[%c256_242, %c0_243], %251 {strides = array<i32>} : memref<288x256xbf16, #tpu.memory_space<vmem>>, vector<32x256xbf16>,
    %c1_244 = arith.constant 1 : index
    %c0_245 = arith.constant 0 : index
    %c0_246 = arith.constant 0 : index
    %253 = vector.load %arg6[%c1_244, %c0_245, %c0_246] : memref<4x32x288xbf16, #tpu.memory_space<vmem>>, vector<1x32x288xbf16>
    %254 = vector.shape_cast %253 : vector<1x32x288xbf16> to vector<32x288xbf16>
    %c1_247 = arith.constant 1 : index
    %c0_248 = arith.constant 0 : index
    %c0_249 = arith.constant 0 : index
    %255 = vector.load %arg7[%c1_247, %c0_248, %c0_249] : memref<4x32x1xf32, #tpu.memory_space<vmem>>, vector<1x32x1xf32>
    %256 = vector.shape_cast %255 : vector<1x32x1xf32> to vector<32x1xf32>
    %c0_250 = arith.constant 0 : index
    %c0_251 = arith.constant 0 : index
    %257 = vector.load %arg14[%c0_250, %c0_251] : memref<288x256xbf16, #tpu.memory_space<vmem>>, vector<288x256xbf16>
    %cst_252 = arith.constant dense<0.000000e+00> : vector<32x256xf32>
    %258 = tpu.matmul %254, %257, %cst_252 {dimension_numbers = #tpu.dot_dimension_numbers<[1], [0], [0], [1], [0, 0, 1, 1], [], []>} : vector<32x288xbf16>, vector<288x256xbf16>, vector<32x256xf32> -> vector<32x256xf32>
    %259 = vector.broadcast %256 : vector<32x1xf32> to vector<32x256xf32>
    %260 = arith.addf %258, %259 : vector<32x256xf32>
    %c0_253 = arith.constant 0 : index
    %c0_254 = arith.constant 0 : index
    %261 = vector.load %arg15[%c0_253, %c0_254] : memref<32x256xf32, #tpu.memory_space<vmem>>, vector<32x256xf32>
    %262 = arith.addf %260, %261 : vector<32x256xf32>
    %c0_255 = arith.constant 0 : index
    %c0_256 = arith.constant 0 : index
    %263 = vector.load %arg15[%c0_255, %c0_256] : memref<32x256xf32, #tpu.memory_space<vmem>>, vector<32x256xf32>
    tpu.vector_store %arg15[%c0_255, %c0_256], %262 {strides = array<i32>} : memref<32x256xf32, #tpu.memory_space<vmem>>, vector<32x256xf32>,
    %c0_257 = arith.constant 0 : index
    %c0_258 = arith.constant 0 : index
    %264 = vector.load %arg16[%c0_257, %c0_258] : memref<32x256xf32, #tpu.memory_space<vmem>>, vector<32x256xf32>
    %c1_259 = arith.constant 1 : index
    %c0_260 = arith.constant 0 : index
    %c0_261 = arith.constant 0 : index
    %265 = vector.load %arg8[%c1_259, %c0_260, %c0_261] : memref<4x32x32xbf16, #tpu.memory_space<vmem>>, vector<1x32x32xbf16>
    %266 = vector.shape_cast %265 : vector<1x32x32xbf16> to vector<32x32xbf16>
    %c0_262 = arith.constant 0 : index
    %c0_263 = arith.constant 0 : index
    %267 = vector.load %arg15[%c0_262, %c0_263] : memref<32x256xf32, #tpu.memory_space<vmem>>, vector<32x256xf32>
    %268 = arith.truncf %267 : vector<32x256xf32> to vector<32x256xbf16>
    %cst_264 = arith.constant dense<0.000000e+00> : vector<32x256xf32>
    %269 = tpu.matmul %266, %268, %cst_264 {dimension_numbers = #tpu.dot_dimension_numbers<[1], [0], [0], [1], [0, 0, 1, 1], [], []>} : vector<32x32xbf16>, vector<32x256xbf16>, vector<32x256xf32> -> vector<32x256xf32>
    %270 = arith.addf %264, %269 : vector<32x256xf32>
    %c0_265 = arith.constant 0 : index
    %c0_266 = arith.constant 0 : index
    %271 = vector.load %arg16[%c0_265, %c0_266] : memref<32x256xf32, #tpu.memory_space<vmem>>, vector<32x256xf32>
    tpu.vector_store %arg16[%c0_265, %c0_266], %270 {strides = array<i32>} : memref<32x256xf32, #tpu.memory_space<vmem>>, vector<32x256xf32>,
    %c0_267 = arith.constant 0 : index
    %c0_268 = arith.constant 0 : index
    %272 = vector.load %arg15[%c0_267, %c0_268] : memref<32x256xf32, #tpu.memory_space<vmem>>, vector<32x256xf32>
    %c16_i32_269 = arith.constant 16 : i32
    %273 = tpu.dynamic_rotate %272 by %c16_i32_269 dim 1 : vector<32x256xf32>, i32 -> vector<32x256xf32>
    %c0_270 = arith.constant 0 : index
    %c0_271 = arith.constant 0 : index
    %c0_272 = arith.constant 0 : index
    %274 = vector.load %arg12[%c0_270, %c0_271, %c0_272] : memref<4x32x256xf32, #tpu.memory_space<vmem>>, vector<1x32x256xf32>
    %275 = vector.shape_cast %274 : vector<1x32x256xf32> to vector<32x256xf32>
    %276 = arith.mulf %273, %275 : vector<32x256xf32>
    %c240_i32_273 = arith.constant 240 : i32
    %277 = tpu.dynamic_rotate %272 by %c240_i32_273 dim 1 : vector<32x256xf32>, i32 -> vector<32x256xf32>
    %c1_274 = arith.constant 1 : index
    %c0_275 = arith.constant 0 : index
    %c0_276 = arith.constant 0 : index
    %278 = vector.load %arg12[%c1_274, %c0_275, %c0_276] : memref<4x32x256xf32, #tpu.memory_space<vmem>>, vector<1x32x256xf32>
    %279 = vector.shape_cast %278 : vector<1x32x256xf32> to vector<32x256xf32>
    %280 = arith.mulf %277, %279 : vector<32x256xf32>
    %c1_i32_277 = arith.constant 1 : i32
    %281 = tpu.dynamic_rotate %276 by %c1_i32_277 dim 1 : vector<32x256xf32>, i32 -> vector<32x256xf32>
    %c2_278 = arith.constant 2 : index
    %c0_279 = arith.constant 0 : index
    %c0_280 = arith.constant 0 : index
    %282 = vector.load %arg12[%c2_278, %c0_279, %c0_280] : memref<4x32x256xf32, #tpu.memory_space<vmem>>, vector<1x32x256xf32>
    %283 = vector.shape_cast %282 : vector<1x32x256xf32> to vector<32x256xf32>
    %284 = arith.mulf %281, %283 : vector<32x256xf32>
    %285 = arith.truncf %284 : vector<32x256xf32> to vector<32x256xbf16>
    %c0_281 = arith.constant 0 : index
    %c0_282 = arith.constant 0 : index
    %286 = vector.load %arg14[%c0_281, %c0_282] : memref<288x256xbf16, #tpu.memory_space<vmem>>, vector<32x256xbf16>
    tpu.vector_store %arg14[%c0_281, %c0_282], %285 {strides = array<i32>} : memref<288x256xbf16, #tpu.memory_space<vmem>>, vector<32x256xbf16>,
    %287 = arith.truncf %276 : vector<32x256xf32> to vector<32x256xbf16>
    %c32_283 = arith.constant 32 : index
    %c0_284 = arith.constant 0 : index
    %288 = vector.load %arg14[%c32_283, %c0_284] : memref<288x256xbf16, #tpu.memory_space<vmem>>, vector<32x256xbf16>
    tpu.vector_store %arg14[%c32_283, %c0_284], %287 {strides = array<i32>} : memref<288x256xbf16, #tpu.memory_space<vmem>>, vector<32x256xbf16>,
    %c255_i32_285 = arith.constant 255 : i32
    %289 = tpu.dynamic_rotate %276 by %c255_i32_285 dim 1 : vector<32x256xf32>, i32 -> vector<32x256xf32>
    %c3_286 = arith.constant 3 : index
    %c0_287 = arith.constant 0 : index
    %c0_288 = arith.constant 0 : index
    %290 = vector.load %arg12[%c3_286, %c0_287, %c0_288] : memref<4x32x256xf32, #tpu.memory_space<vmem>>, vector<1x32x256xf32>
    %291 = vector.shape_cast %290 : vector<1x32x256xf32> to vector<32x256xf32>
    %292 = arith.mulf %289, %291 : vector<32x256xf32>
    %293 = arith.truncf %292 : vector<32x256xf32> to vector<32x256xbf16>
    %c64_289 = arith.constant 64 : index
    %c0_290 = arith.constant 0 : index
    %294 = vector.load %arg14[%c64_289, %c0_290] : memref<288x256xbf16, #tpu.memory_space<vmem>>, vector<32x256xbf16>
    tpu.vector_store %arg14[%c64_289, %c0_290], %293 {strides = array<i32>} : memref<288x256xbf16, #tpu.memory_space<vmem>>, vector<32x256xbf16>,
    %c1_i32_291 = arith.constant 1 : i32
    %295 = tpu.dynamic_rotate %272 by %c1_i32_291 dim 1 : vector<32x256xf32>, i32 -> vector<32x256xf32>
    %c2_292 = arith.constant 2 : index
    %c0_293 = arith.constant 0 : index
    %c0_294 = arith.constant 0 : index
    %296 = vector.load %arg12[%c2_292, %c0_293, %c0_294] : memref<4x32x256xf32, #tpu.memory_space<vmem>>, vector<1x32x256xf32>
    %297 = vector.shape_cast %296 : vector<1x32x256xf32> to vector<32x256xf32>
    %298 = arith.mulf %295, %297 : vector<32x256xf32>
    %299 = arith.truncf %298 : vector<32x256xf32> to vector<32x256xbf16>
    %c96_295 = arith.constant 96 : index
    %c0_296 = arith.constant 0 : index
    %300 = vector.load %arg14[%c96_295, %c0_296] : memref<288x256xbf16, #tpu.memory_space<vmem>>, vector<32x256xbf16>
    tpu.vector_store %arg14[%c96_295, %c0_296], %299 {strides = array<i32>} : memref<288x256xbf16, #tpu.memory_space<vmem>>, vector<32x256xbf16>,
    %301 = arith.truncf %272 : vector<32x256xf32> to vector<32x256xbf16>
    %c128_297 = arith.constant 128 : index
    %c0_298 = arith.constant 0 : index
    %302 = vector.load %arg14[%c128_297, %c0_298] : memref<288x256xbf16, #tpu.memory_space<vmem>>, vector<32x256xbf16>
    tpu.vector_store %arg14[%c128_297, %c0_298], %301 {strides = array<i32>} : memref<288x256xbf16, #tpu.memory_space<vmem>>, vector<32x256xbf16>,
    %c255_i32_299 = arith.constant 255 : i32
    %303 = tpu.dynamic_rotate %272 by %c255_i32_299 dim 1 : vector<32x256xf32>, i32 -> vector<32x256xf32>
    %c3_300 = arith.constant 3 : index
    %c0_301 = arith.constant 0 : index
    %c0_302 = arith.constant 0 : index
    %304 = vector.load %arg12[%c3_300, %c0_301, %c0_302] : memref<4x32x256xf32, #tpu.memory_space<vmem>>, vector<1x32x256xf32>
    %305 = vector.shape_cast %304 : vector<1x32x256xf32> to vector<32x256xf32>
    %306 = arith.mulf %303, %305 : vector<32x256xf32>
    %307 = arith.truncf %306 : vector<32x256xf32> to vector<32x256xbf16>
    %c160_303 = arith.constant 160 : index
    %c0_304 = arith.constant 0 : index
    %308 = vector.load %arg14[%c160_303, %c0_304] : memref<288x256xbf16, #tpu.memory_space<vmem>>, vector<32x256xbf16>
    tpu.vector_store %arg14[%c160_303, %c0_304], %307 {strides = array<i32>} : memref<288x256xbf16, #tpu.memory_space<vmem>>, vector<32x256xbf16>,
    %c1_i32_305 = arith.constant 1 : i32
    %309 = tpu.dynamic_rotate %280 by %c1_i32_305 dim 1 : vector<32x256xf32>, i32 -> vector<32x256xf32>
    %c2_306 = arith.constant 2 : index
    %c0_307 = arith.constant 0 : index
    %c0_308 = arith.constant 0 : index
    %310 = vector.load %arg12[%c2_306, %c0_307, %c0_308] : memref<4x32x256xf32, #tpu.memory_space<vmem>>, vector<1x32x256xf32>
    %311 = vector.shape_cast %310 : vector<1x32x256xf32> to vector<32x256xf32>
    %312 = arith.mulf %309, %311 : vector<32x256xf32>
    %313 = arith.truncf %312 : vector<32x256xf32> to vector<32x256xbf16>
    %c192_309 = arith.constant 192 : index
    %c0_310 = arith.constant 0 : index
    %314 = vector.load %arg14[%c192_309, %c0_310] : memref<288x256xbf16, #tpu.memory_space<vmem>>, vector<32x256xbf16>
    tpu.vector_store %arg14[%c192_309, %c0_310], %313 {strides = array<i32>} : memref<288x256xbf16, #tpu.memory_space<vmem>>, vector<32x256xbf16>,
    %315 = arith.truncf %280 : vector<32x256xf32> to vector<32x256xbf16>
    %c224_311 = arith.constant 224 : index
    %c0_312 = arith.constant 0 : index
    %316 = vector.load %arg14[%c224_311, %c0_312] : memref<288x256xbf16, #tpu.memory_space<vmem>>, vector<32x256xbf16>
    tpu.vector_store %arg14[%c224_311, %c0_312], %315 {strides = array<i32>} : memref<288x256xbf16, #tpu.memory_space<vmem>>, vector<32x256xbf16>,
    %c255_i32_313 = arith.constant 255 : i32
    %317 = tpu.dynamic_rotate %280 by %c255_i32_313 dim 1 : vector<32x256xf32>, i32 -> vector<32x256xf32>
    %c3_314 = arith.constant 3 : index
    %c0_315 = arith.constant 0 : index
    %c0_316 = arith.constant 0 : index
    %318 = vector.load %arg12[%c3_314, %c0_315, %c0_316] : memref<4x32x256xf32, #tpu.memory_space<vmem>>, vector<1x32x256xf32>
    %319 = vector.shape_cast %318 : vector<1x32x256xf32> to vector<32x256xf32>
    %320 = arith.mulf %317, %319 : vector<32x256xf32>
    %321 = arith.truncf %320 : vector<32x256xf32> to vector<32x256xbf16>
    %c256_317 = arith.constant 256 : index
    %c0_318 = arith.constant 0 : index
    %322 = vector.load %arg14[%c256_317, %c0_318] : memref<288x256xbf16, #tpu.memory_space<vmem>>, vector<32x256xbf16>
    tpu.vector_store %arg14[%c256_317, %c0_318], %321 {strides = array<i32>} : memref<288x256xbf16, #tpu.memory_space<vmem>>, vector<32x256xbf16>,
    %c2_319 = arith.constant 2 : index
    %c0_320 = arith.constant 0 : index
    %c0_321 = arith.constant 0 : index
    %323 = vector.load %arg4[%c2_319, %c0_320, %c0_321] : memref<4x32x288xbf16, #tpu.memory_space<vmem>>, vector<1x32x288xbf16>
    %324 = vector.shape_cast %323 : vector<1x32x288xbf16> to vector<32x288xbf16>
    %c2_322 = arith.constant 2 : index
    %c0_323 = arith.constant 0 : index
    %c0_324 = arith.constant 0 : index
    %325 = vector.load %arg5[%c2_322, %c0_323, %c0_324] : memref<4x32x1xf32, #tpu.memory_space<vmem>>, vector<1x32x1xf32>
    %326 = vector.shape_cast %325 : vector<1x32x1xf32> to vector<32x1xf32>
    %c0_325 = arith.constant 0 : index
    %c0_326 = arith.constant 0 : index
    %327 = vector.load %arg14[%c0_325, %c0_326] : memref<288x256xbf16, #tpu.memory_space<vmem>>, vector<288x256xbf16>
    %cst_327 = arith.constant dense<0.000000e+00> : vector<32x256xf32>
    %328 = tpu.matmul %324, %327, %cst_327 {dimension_numbers = #tpu.dot_dimension_numbers<[1], [0], [0], [1], [0, 0, 1, 1], [], []>} : vector<32x288xbf16>, vector<288x256xbf16>, vector<32x256xf32> -> vector<32x256xf32>
    %329 = vector.broadcast %326 : vector<32x1xf32> to vector<32x256xf32>
    %330 = arith.addf %328, %329 : vector<32x256xf32>
    %cst_328 = arith.constant 0.000000e+00 : f32
    %331 = vector.broadcast %cst_328 : f32 to vector<32x256xf32>
    %332 = arith.maximumf %330, %331 : vector<32x256xf32>
    %c16_i32_329 = arith.constant 16 : i32
    %333 = tpu.dynamic_rotate %332 by %c16_i32_329 dim 1 : vector<32x256xf32>, i32 -> vector<32x256xf32>
    %c0_330 = arith.constant 0 : index
    %c0_331 = arith.constant 0 : index
    %c0_332 = arith.constant 0 : index
    %334 = vector.load %arg12[%c0_330, %c0_331, %c0_332] : memref<4x32x256xf32, #tpu.memory_space<vmem>>, vector<1x32x256xf32>
    %335 = vector.shape_cast %334 : vector<1x32x256xf32> to vector<32x256xf32>
    %336 = arith.mulf %333, %335 : vector<32x256xf32>
    %c240_i32_333 = arith.constant 240 : i32
    %337 = tpu.dynamic_rotate %332 by %c240_i32_333 dim 1 : vector<32x256xf32>, i32 -> vector<32x256xf32>
    %c1_334 = arith.constant 1 : index
    %c0_335 = arith.constant 0 : index
    %c0_336 = arith.constant 0 : index
    %338 = vector.load %arg12[%c1_334, %c0_335, %c0_336] : memref<4x32x256xf32, #tpu.memory_space<vmem>>, vector<1x32x256xf32>
    %339 = vector.shape_cast %338 : vector<1x32x256xf32> to vector<32x256xf32>
    %340 = arith.mulf %337, %339 : vector<32x256xf32>
    %c1_i32_337 = arith.constant 1 : i32
    %341 = tpu.dynamic_rotate %336 by %c1_i32_337 dim 1 : vector<32x256xf32>, i32 -> vector<32x256xf32>
    %c2_338 = arith.constant 2 : index
    %c0_339 = arith.constant 0 : index
    %c0_340 = arith.constant 0 : index
    %342 = vector.load %arg12[%c2_338, %c0_339, %c0_340] : memref<4x32x256xf32, #tpu.memory_space<vmem>>, vector<1x32x256xf32>
    %343 = vector.shape_cast %342 : vector<1x32x256xf32> to vector<32x256xf32>
    %344 = arith.mulf %341, %343 : vector<32x256xf32>
    %345 = arith.truncf %344 : vector<32x256xf32> to vector<32x256xbf16>
    %c0_341 = arith.constant 0 : index
    %c0_342 = arith.constant 0 : index
    %346 = vector.load %arg14[%c0_341, %c0_342] : memref<288x256xbf16, #tpu.memory_space<vmem>>, vector<32x256xbf16>
    tpu.vector_store %arg14[%c0_341, %c0_342], %345 {strides = array<i32>} : memref<288x256xbf16, #tpu.memory_space<vmem>>, vector<32x256xbf16>,
    %347 = arith.truncf %336 : vector<32x256xf32> to vector<32x256xbf16>
    %c32_343 = arith.constant 32 : index
    %c0_344 = arith.constant 0 : index
    %348 = vector.load %arg14[%c32_343, %c0_344] : memref<288x256xbf16, #tpu.memory_space<vmem>>, vector<32x256xbf16>
    tpu.vector_store %arg14[%c32_343, %c0_344], %347 {strides = array<i32>} : memref<288x256xbf16, #tpu.memory_space<vmem>>, vector<32x256xbf16>,
    %c255_i32_345 = arith.constant 255 : i32
    %349 = tpu.dynamic_rotate %336 by %c255_i32_345 dim 1 : vector<32x256xf32>, i32 -> vector<32x256xf32>
    %c3_346 = arith.constant 3 : index
    %c0_347 = arith.constant 0 : index
    %c0_348 = arith.constant 0 : index
    %350 = vector.load %arg12[%c3_346, %c0_347, %c0_348] : memref<4x32x256xf32, #tpu.memory_space<vmem>>, vector<1x32x256xf32>
    %351 = vector.shape_cast %350 : vector<1x32x256xf32> to vector<32x256xf32>
    %352 = arith.mulf %349, %351 : vector<32x256xf32>
    %353 = arith.truncf %352 : vector<32x256xf32> to vector<32x256xbf16>
    %c64_349 = arith.constant 64 : index
    %c0_350 = arith.constant 0 : index
    %354 = vector.load %arg14[%c64_349, %c0_350] : memref<288x256xbf16, #tpu.memory_space<vmem>>, vector<32x256xbf16>
    tpu.vector_store %arg14[%c64_349, %c0_350], %353 {strides = array<i32>} : memref<288x256xbf16, #tpu.memory_space<vmem>>, vector<32x256xbf16>,
    %c1_i32_351 = arith.constant 1 : i32
    %355 = tpu.dynamic_rotate %332 by %c1_i32_351 dim 1 : vector<32x256xf32>, i32 -> vector<32x256xf32>
    %c2_352 = arith.constant 2 : index
    %c0_353 = arith.constant 0 : index
    %c0_354 = arith.constant 0 : index
    %356 = vector.load %arg12[%c2_352, %c0_353, %c0_354] : memref<4x32x256xf32, #tpu.memory_space<vmem>>, vector<1x32x256xf32>
    %357 = vector.shape_cast %356 : vector<1x32x256xf32> to vector<32x256xf32>
    %358 = arith.mulf %355, %357 : vector<32x256xf32>
    %359 = arith.truncf %358 : vector<32x256xf32> to vector<32x256xbf16>
    %c96_355 = arith.constant 96 : index
    %c0_356 = arith.constant 0 : index
    %360 = vector.load %arg14[%c96_355, %c0_356] : memref<288x256xbf16, #tpu.memory_space<vmem>>, vector<32x256xbf16>
    tpu.vector_store %arg14[%c96_355, %c0_356], %359 {strides = array<i32>} : memref<288x256xbf16, #tpu.memory_space<vmem>>, vector<32x256xbf16>,
    %361 = arith.truncf %332 : vector<32x256xf32> to vector<32x256xbf16>
    %c128_357 = arith.constant 128 : index
    %c0_358 = arith.constant 0 : index
    %362 = vector.load %arg14[%c128_357, %c0_358] : memref<288x256xbf16, #tpu.memory_space<vmem>>, vector<32x256xbf16>
    tpu.vector_store %arg14[%c128_357, %c0_358], %361 {strides = array<i32>} : memref<288x256xbf16, #tpu.memory_space<vmem>>, vector<32x256xbf16>,
    %c255_i32_359 = arith.constant 255 : i32
    %363 = tpu.dynamic_rotate %332 by %c255_i32_359 dim 1 : vector<32x256xf32>, i32 -> vector<32x256xf32>
    %c3_360 = arith.constant 3 : index
    %c0_361 = arith.constant 0 : index
    %c0_362 = arith.constant 0 : index
    %364 = vector.load %arg12[%c3_360, %c0_361, %c0_362] : memref<4x32x256xf32, #tpu.memory_space<vmem>>, vector<1x32x256xf32>
    %365 = vector.shape_cast %364 : vector<1x32x256xf32> to vector<32x256xf32>
    %366 = arith.mulf %363, %365 : vector<32x256xf32>
    %367 = arith.truncf %366 : vector<32x256xf32> to vector<32x256xbf16>
    %c160_363 = arith.constant 160 : index
    %c0_364 = arith.constant 0 : index
    %368 = vector.load %arg14[%c160_363, %c0_364] : memref<288x256xbf16, #tpu.memory_space<vmem>>, vector<32x256xbf16>
    tpu.vector_store %arg14[%c160_363, %c0_364], %367 {strides = array<i32>} : memref<288x256xbf16, #tpu.memory_space<vmem>>, vector<32x256xbf16>,
    %c1_i32_365 = arith.constant 1 : i32
    %369 = tpu.dynamic_rotate %340 by %c1_i32_365 dim 1 : vector<32x256xf32>, i32 -> vector<32x256xf32>
    %c2_366 = arith.constant 2 : index
    %c0_367 = arith.constant 0 : index
    %c0_368 = arith.constant 0 : index
    %370 = vector.load %arg12[%c2_366, %c0_367, %c0_368] : memref<4x32x256xf32, #tpu.memory_space<vmem>>, vector<1x32x256xf32>
    %371 = vector.shape_cast %370 : vector<1x32x256xf32> to vector<32x256xf32>
    %372 = arith.mulf %369, %371 : vector<32x256xf32>
    %373 = arith.truncf %372 : vector<32x256xf32> to vector<32x256xbf16>
    %c192_369 = arith.constant 192 : index
    %c0_370 = arith.constant 0 : index
    %374 = vector.load %arg14[%c192_369, %c0_370] : memref<288x256xbf16, #tpu.memory_space<vmem>>, vector<32x256xbf16>
    tpu.vector_store %arg14[%c192_369, %c0_370], %373 {strides = array<i32>} : memref<288x256xbf16, #tpu.memory_space<vmem>>, vector<32x256xbf16>,
    %375 = arith.truncf %340 : vector<32x256xf32> to vector<32x256xbf16>
    %c224_371 = arith.constant 224 : index
    %c0_372 = arith.constant 0 : index
    %376 = vector.load %arg14[%c224_371, %c0_372] : memref<288x256xbf16, #tpu.memory_space<vmem>>, vector<32x256xbf16>
    tpu.vector_store %arg14[%c224_371, %c0_372], %375 {strides = array<i32>} : memref<288x256xbf16, #tpu.memory_space<vmem>>, vector<32x256xbf16>,
    %c255_i32_373 = arith.constant 255 : i32
    %377 = tpu.dynamic_rotate %340 by %c255_i32_373 dim 1 : vector<32x256xf32>, i32 -> vector<32x256xf32>
    %c3_374 = arith.constant 3 : index
    %c0_375 = arith.constant 0 : index
    %c0_376 = arith.constant 0 : index
    %378 = vector.load %arg12[%c3_374, %c0_375, %c0_376] : memref<4x32x256xf32, #tpu.memory_space<vmem>>, vector<1x32x256xf32>
    %379 = vector.shape_cast %378 : vector<1x32x256xf32> to vector<32x256xf32>
    %380 = arith.mulf %377, %379 : vector<32x256xf32>
    %381 = arith.truncf %380 : vector<32x256xf32> to vector<32x256xbf16>
    %c256_377 = arith.constant 256 : index
    %c0_378 = arith.constant 0 : index
    %382 = vector.load %arg14[%c256_377, %c0_378] : memref<288x256xbf16, #tpu.memory_space<vmem>>, vector<32x256xbf16>
    tpu.vector_store %arg14[%c256_377, %c0_378], %381 {strides = array<i32>} : memref<288x256xbf16, #tpu.memory_space<vmem>>, vector<32x256xbf16>,
    %c2_379 = arith.constant 2 : index
    %c0_380 = arith.constant 0 : index
    %c0_381 = arith.constant 0 : index
    %383 = vector.load %arg6[%c2_379, %c0_380, %c0_381] : memref<4x32x288xbf16, #tpu.memory_space<vmem>>, vector<1x32x288xbf16>
    %384 = vector.shape_cast %383 : vector<1x32x288xbf16> to vector<32x288xbf16>
    %c2_382 = arith.constant 2 : index
    %c0_383 = arith.constant 0 : index
    %c0_384 = arith.constant 0 : index
    %385 = vector.load %arg7[%c2_382, %c0_383, %c0_384] : memref<4x32x1xf32, #tpu.memory_space<vmem>>, vector<1x32x1xf32>
    %386 = vector.shape_cast %385 : vector<1x32x1xf32> to vector<32x1xf32>
    %c0_385 = arith.constant 0 : index
    %c0_386 = arith.constant 0 : index
    %387 = vector.load %arg14[%c0_385, %c0_386] : memref<288x256xbf16, #tpu.memory_space<vmem>>, vector<288x256xbf16>
    %cst_387 = arith.constant dense<0.000000e+00> : vector<32x256xf32>
    %388 = tpu.matmul %384, %387, %cst_387 {dimension_numbers = #tpu.dot_dimension_numbers<[1], [0], [0], [1], [0, 0, 1, 1], [], []>} : vector<32x288xbf16>, vector<288x256xbf16>, vector<32x256xf32> -> vector<32x256xf32>
    %389 = vector.broadcast %386 : vector<32x1xf32> to vector<32x256xf32>
    %390 = arith.addf %388, %389 : vector<32x256xf32>
    %c0_388 = arith.constant 0 : index
    %c0_389 = arith.constant 0 : index
    %391 = vector.load %arg15[%c0_388, %c0_389] : memref<32x256xf32, #tpu.memory_space<vmem>>, vector<32x256xf32>
    %392 = arith.addf %390, %391 : vector<32x256xf32>
    %c0_390 = arith.constant 0 : index
    %c0_391 = arith.constant 0 : index
    %393 = vector.load %arg15[%c0_390, %c0_391] : memref<32x256xf32, #tpu.memory_space<vmem>>, vector<32x256xf32>
    tpu.vector_store %arg15[%c0_390, %c0_391], %392 {strides = array<i32>} : memref<32x256xf32, #tpu.memory_space<vmem>>, vector<32x256xf32>,
    %c0_392 = arith.constant 0 : index
    %c0_393 = arith.constant 0 : index
    %394 = vector.load %arg16[%c0_392, %c0_393] : memref<32x256xf32, #tpu.memory_space<vmem>>, vector<32x256xf32>
    %c2_394 = arith.constant 2 : index
    %c0_395 = arith.constant 0 : index
    %c0_396 = arith.constant 0 : index
    %395 = vector.load %arg8[%c2_394, %c0_395, %c0_396] : memref<4x32x32xbf16, #tpu.memory_space<vmem>>, vector<1x32x32xbf16>
    %396 = vector.shape_cast %395 : vector<1x32x32xbf16> to vector<32x32xbf16>
    %c0_397 = arith.constant 0 : index
    %c0_398 = arith.constant 0 : index
    %397 = vector.load %arg15[%c0_397, %c0_398] : memref<32x256xf32, #tpu.memory_space<vmem>>, vector<32x256xf32>
    %398 = arith.truncf %397 : vector<32x256xf32> to vector<32x256xbf16>
    %cst_399 = arith.constant dense<0.000000e+00> : vector<32x256xf32>
    %399 = tpu.matmul %396, %398, %cst_399 {dimension_numbers = #tpu.dot_dimension_numbers<[1], [0], [0], [1], [0, 0, 1, 1], [], []>} : vector<32x32xbf16>, vector<32x256xbf16>, vector<32x256xf32> -> vector<32x256xf32>
    %400 = arith.addf %394, %399 : vector<32x256xf32>
    %c0_400 = arith.constant 0 : index
    %c0_401 = arith.constant 0 : index
    %401 = vector.load %arg16[%c0_400, %c0_401] : memref<32x256xf32, #tpu.memory_space<vmem>>, vector<32x256xf32>
    tpu.vector_store %arg16[%c0_400, %c0_401], %400 {strides = array<i32>} : memref<32x256xf32, #tpu.memory_space<vmem>>, vector<32x256xf32>,
    %c0_402 = arith.constant 0 : index
    %c0_403 = arith.constant 0 : index
    %402 = vector.load %arg15[%c0_402, %c0_403] : memref<32x256xf32, #tpu.memory_space<vmem>>, vector<32x256xf32>
    %c16_i32_404 = arith.constant 16 : i32
    %403 = tpu.dynamic_rotate %402 by %c16_i32_404 dim 1 : vector<32x256xf32>, i32 -> vector<32x256xf32>
    %c0_405 = arith.constant 0 : index
    %c0_406 = arith.constant 0 : index
    %c0_407 = arith.constant 0 : index
    %404 = vector.load %arg12[%c0_405, %c0_406, %c0_407] : memref<4x32x256xf32, #tpu.memory_space<vmem>>, vector<1x32x256xf32>
    %405 = vector.shape_cast %404 : vector<1x32x256xf32> to vector<32x256xf32>
    %406 = arith.mulf %403, %405 : vector<32x256xf32>
    %c240_i32_408 = arith.constant 240 : i32
    %407 = tpu.dynamic_rotate %402 by %c240_i32_408 dim 1 : vector<32x256xf32>, i32 -> vector<32x256xf32>
    %c1_409 = arith.constant 1 : index
    %c0_410 = arith.constant 0 : index
    %c0_411 = arith.constant 0 : index
    %408 = vector.load %arg12[%c1_409, %c0_410, %c0_411] : memref<4x32x256xf32, #tpu.memory_space<vmem>>, vector<1x32x256xf32>
    %409 = vector.shape_cast %408 : vector<1x32x256xf32> to vector<32x256xf32>
    %410 = arith.mulf %407, %409 : vector<32x256xf32>
    %c1_i32_412 = arith.constant 1 : i32
    %411 = tpu.dynamic_rotate %406 by %c1_i32_412 dim 1 : vector<32x256xf32>, i32 -> vector<32x256xf32>
    %c2_413 = arith.constant 2 : index
    %c0_414 = arith.constant 0 : index
    %c0_415 = arith.constant 0 : index
    %412 = vector.load %arg12[%c2_413, %c0_414, %c0_415] : memref<4x32x256xf32, #tpu.memory_space<vmem>>, vector<1x32x256xf32>
    %413 = vector.shape_cast %412 : vector<1x32x256xf32> to vector<32x256xf32>
    %414 = arith.mulf %411, %413 : vector<32x256xf32>
    %415 = arith.truncf %414 : vector<32x256xf32> to vector<32x256xbf16>
    %c0_416 = arith.constant 0 : index
    %c0_417 = arith.constant 0 : index
    %416 = vector.load %arg14[%c0_416, %c0_417] : memref<288x256xbf16, #tpu.memory_space<vmem>>, vector<32x256xbf16>
    tpu.vector_store %arg14[%c0_416, %c0_417], %415 {strides = array<i32>} : memref<288x256xbf16, #tpu.memory_space<vmem>>, vector<32x256xbf16>,
    %417 = arith.truncf %406 : vector<32x256xf32> to vector<32x256xbf16>
    %c32_418 = arith.constant 32 : index
    %c0_419 = arith.constant 0 : index
    %418 = vector.load %arg14[%c32_418, %c0_419] : memref<288x256xbf16, #tpu.memory_space<vmem>>, vector<32x256xbf16>
    tpu.vector_store %arg14[%c32_418, %c0_419], %417 {strides = array<i32>} : memref<288x256xbf16, #tpu.memory_space<vmem>>, vector<32x256xbf16>,
    %c255_i32_420 = arith.constant 255 : i32
    %419 = tpu.dynamic_rotate %406 by %c255_i32_420 dim 1 : vector<32x256xf32>, i32 -> vector<32x256xf32>
    %c3_421 = arith.constant 3 : index
    %c0_422 = arith.constant 0 : index
    %c0_423 = arith.constant 0 : index
    %420 = vector.load %arg12[%c3_421, %c0_422, %c0_423] : memref<4x32x256xf32, #tpu.memory_space<vmem>>, vector<1x32x256xf32>
    %421 = vector.shape_cast %420 : vector<1x32x256xf32> to vector<32x256xf32>
    %422 = arith.mulf %419, %421 : vector<32x256xf32>
    %423 = arith.truncf %422 : vector<32x256xf32> to vector<32x256xbf16>
    %c64_424 = arith.constant 64 : index
    %c0_425 = arith.constant 0 : index
    %424 = vector.load %arg14[%c64_424, %c0_425] : memref<288x256xbf16, #tpu.memory_space<vmem>>, vector<32x256xbf16>
    tpu.vector_store %arg14[%c64_424, %c0_425], %423 {strides = array<i32>} : memref<288x256xbf16, #tpu.memory_space<vmem>>, vector<32x256xbf16>,
    %c1_i32_426 = arith.constant 1 : i32
    %425 = tpu.dynamic_rotate %402 by %c1_i32_426 dim 1 : vector<32x256xf32>, i32 -> vector<32x256xf32>
    %c2_427 = arith.constant 2 : index
    %c0_428 = arith.constant 0 : index
    %c0_429 = arith.constant 0 : index
    %426 = vector.load %arg12[%c2_427, %c0_428, %c0_429] : memref<4x32x256xf32, #tpu.memory_space<vmem>>, vector<1x32x256xf32>
    %427 = vector.shape_cast %426 : vector<1x32x256xf32> to vector<32x256xf32>
    %428 = arith.mulf %425, %427 : vector<32x256xf32>
    %429 = arith.truncf %428 : vector<32x256xf32> to vector<32x256xbf16>
    %c96_430 = arith.constant 96 : index
    %c0_431 = arith.constant 0 : index
    %430 = vector.load %arg14[%c96_430, %c0_431] : memref<288x256xbf16, #tpu.memory_space<vmem>>, vector<32x256xbf16>
    tpu.vector_store %arg14[%c96_430, %c0_431], %429 {strides = array<i32>} : memref<288x256xbf16, #tpu.memory_space<vmem>>, vector<32x256xbf16>,
    %431 = arith.truncf %402 : vector<32x256xf32> to vector<32x256xbf16>
    %c128_432 = arith.constant 128 : index
    %c0_433 = arith.constant 0 : index
    %432 = vector.load %arg14[%c128_432, %c0_433] : memref<288x256xbf16, #tpu.memory_space<vmem>>, vector<32x256xbf16>
    tpu.vector_store %arg14[%c128_432, %c0_433], %431 {strides = array<i32>} : memref<288x256xbf16, #tpu.memory_space<vmem>>, vector<32x256xbf16>,
    %c255_i32_434 = arith.constant 255 : i32
    %433 = tpu.dynamic_rotate %402 by %c255_i32_434 dim 1 : vector<32x256xf32>, i32 -> vector<32x256xf32>
    %c3_435 = arith.constant 3 : index
    %c0_436 = arith.constant 0 : index
    %c0_437 = arith.constant 0 : index
    %434 = vector.load %arg12[%c3_435, %c0_436, %c0_437] : memref<4x32x256xf32, #tpu.memory_space<vmem>>, vector<1x32x256xf32>
    %435 = vector.shape_cast %434 : vector<1x32x256xf32> to vector<32x256xf32>
    %436 = arith.mulf %433, %435 : vector<32x256xf32>
    %437 = arith.truncf %436 : vector<32x256xf32> to vector<32x256xbf16>
    %c160_438 = arith.constant 160 : index
    %c0_439 = arith.constant 0 : index
    %438 = vector.load %arg14[%c160_438, %c0_439] : memref<288x256xbf16, #tpu.memory_space<vmem>>, vector<32x256xbf16>
    tpu.vector_store %arg14[%c160_438, %c0_439], %437 {strides = array<i32>} : memref<288x256xbf16, #tpu.memory_space<vmem>>, vector<32x256xbf16>,
    %c1_i32_440 = arith.constant 1 : i32
    %439 = tpu.dynamic_rotate %410 by %c1_i32_440 dim 1 : vector<32x256xf32>, i32 -> vector<32x256xf32>
    %c2_441 = arith.constant 2 : index
    %c0_442 = arith.constant 0 : index
    %c0_443 = arith.constant 0 : index
    %440 = vector.load %arg12[%c2_441, %c0_442, %c0_443] : memref<4x32x256xf32, #tpu.memory_space<vmem>>, vector<1x32x256xf32>
    %441 = vector.shape_cast %440 : vector<1x32x256xf32> to vector<32x256xf32>
    %442 = arith.mulf %439, %441 : vector<32x256xf32>
    %443 = arith.truncf %442 : vector<32x256xf32> to vector<32x256xbf16>
    %c192_444 = arith.constant 192 : index
    %c0_445 = arith.constant 0 : index
    %444 = vector.load %arg14[%c192_444, %c0_445] : memref<288x256xbf16, #tpu.memory_space<vmem>>, vector<32x256xbf16>
    tpu.vector_store %arg14[%c192_444, %c0_445], %443 {strides = array<i32>} : memref<288x256xbf16, #tpu.memory_space<vmem>>, vector<32x256xbf16>,
    %445 = arith.truncf %410 : vector<32x256xf32> to vector<32x256xbf16>
    %c224_446 = arith.constant 224 : index
    %c0_447 = arith.constant 0 : index
    %446 = vector.load %arg14[%c224_446, %c0_447] : memref<288x256xbf16, #tpu.memory_space<vmem>>, vector<32x256xbf16>
    tpu.vector_store %arg14[%c224_446, %c0_447], %445 {strides = array<i32>} : memref<288x256xbf16, #tpu.memory_space<vmem>>, vector<32x256xbf16>,
    %c255_i32_448 = arith.constant 255 : i32
    %447 = tpu.dynamic_rotate %410 by %c255_i32_448 dim 1 : vector<32x256xf32>, i32 -> vector<32x256xf32>
    %c3_449 = arith.constant 3 : index
    %c0_450 = arith.constant 0 : index
    %c0_451 = arith.constant 0 : index
    %448 = vector.load %arg12[%c3_449, %c0_450, %c0_451] : memref<4x32x256xf32, #tpu.memory_space<vmem>>, vector<1x32x256xf32>
    %449 = vector.shape_cast %448 : vector<1x32x256xf32> to vector<32x256xf32>
    %450 = arith.mulf %447, %449 : vector<32x256xf32>
    %451 = arith.truncf %450 : vector<32x256xf32> to vector<32x256xbf16>
    %c256_452 = arith.constant 256 : index
    %c0_453 = arith.constant 0 : index
    %452 = vector.load %arg14[%c256_452, %c0_453] : memref<288x256xbf16, #tpu.memory_space<vmem>>, vector<32x256xbf16>
    tpu.vector_store %arg14[%c256_452, %c0_453], %451 {strides = array<i32>} : memref<288x256xbf16, #tpu.memory_space<vmem>>, vector<32x256xbf16>,
    %c3_454 = arith.constant 3 : index
    %c0_455 = arith.constant 0 : index
    %c0_456 = arith.constant 0 : index
    %453 = vector.load %arg4[%c3_454, %c0_455, %c0_456] : memref<4x32x288xbf16, #tpu.memory_space<vmem>>, vector<1x32x288xbf16>
    %454 = vector.shape_cast %453 : vector<1x32x288xbf16> to vector<32x288xbf16>
    %c3_457 = arith.constant 3 : index
    %c0_458 = arith.constant 0 : index
    %c0_459 = arith.constant 0 : index
    %455 = vector.load %arg5[%c3_457, %c0_458, %c0_459] : memref<4x32x1xf32, #tpu.memory_space<vmem>>, vector<1x32x1xf32>
    %456 = vector.shape_cast %455 : vector<1x32x1xf32> to vector<32x1xf32>
    %c0_460 = arith.constant 0 : index
    %c0_461 = arith.constant 0 : index
    %457 = vector.load %arg14[%c0_460, %c0_461] : memref<288x256xbf16, #tpu.memory_space<vmem>>, vector<288x256xbf16>
    %cst_462 = arith.constant dense<0.000000e+00> : vector<32x256xf32>
    %458 = tpu.matmul %454, %457, %cst_462 {dimension_numbers = #tpu.dot_dimension_numbers<[1], [0], [0], [1], [0, 0, 1, 1], [], []>} : vector<32x288xbf16>, vector<288x256xbf16>, vector<32x256xf32> -> vector<32x256xf32>
    %459 = vector.broadcast %456 : vector<32x1xf32> to vector<32x256xf32>
    %460 = arith.addf %458, %459 : vector<32x256xf32>
    %cst_463 = arith.constant 0.000000e+00 : f32
    %461 = vector.broadcast %cst_463 : f32 to vector<32x256xf32>
    %462 = arith.maximumf %460, %461 : vector<32x256xf32>
    %c16_i32_464 = arith.constant 16 : i32
    %463 = tpu.dynamic_rotate %462 by %c16_i32_464 dim 1 : vector<32x256xf32>, i32 -> vector<32x256xf32>
    %c0_465 = arith.constant 0 : index
    %c0_466 = arith.constant 0 : index
    %c0_467 = arith.constant 0 : index
    %464 = vector.load %arg12[%c0_465, %c0_466, %c0_467] : memref<4x32x256xf32, #tpu.memory_space<vmem>>, vector<1x32x256xf32>
    %465 = vector.shape_cast %464 : vector<1x32x256xf32> to vector<32x256xf32>
    %466 = arith.mulf %463, %465 : vector<32x256xf32>
    %c240_i32_468 = arith.constant 240 : i32
    %467 = tpu.dynamic_rotate %462 by %c240_i32_468 dim 1 : vector<32x256xf32>, i32 -> vector<32x256xf32>
    %c1_469 = arith.constant 1 : index
    %c0_470 = arith.constant 0 : index
    %c0_471 = arith.constant 0 : index
    %468 = vector.load %arg12[%c1_469, %c0_470, %c0_471] : memref<4x32x256xf32, #tpu.memory_space<vmem>>, vector<1x32x256xf32>
    %469 = vector.shape_cast %468 : vector<1x32x256xf32> to vector<32x256xf32>
    %470 = arith.mulf %467, %469 : vector<32x256xf32>
    %c1_i32_472 = arith.constant 1 : i32
    %471 = tpu.dynamic_rotate %466 by %c1_i32_472 dim 1 : vector<32x256xf32>, i32 -> vector<32x256xf32>
    %c2_473 = arith.constant 2 : index
    %c0_474 = arith.constant 0 : index
    %c0_475 = arith.constant 0 : index
    %472 = vector.load %arg12[%c2_473, %c0_474, %c0_475] : memref<4x32x256xf32, #tpu.memory_space<vmem>>, vector<1x32x256xf32>
    %473 = vector.shape_cast %472 : vector<1x32x256xf32> to vector<32x256xf32>
    %474 = arith.mulf %471, %473 : vector<32x256xf32>
    %475 = arith.truncf %474 : vector<32x256xf32> to vector<32x256xbf16>
    %c0_476 = arith.constant 0 : index
    %c0_477 = arith.constant 0 : index
    %476 = vector.load %arg14[%c0_476, %c0_477] : memref<288x256xbf16, #tpu.memory_space<vmem>>, vector<32x256xbf16>
    tpu.vector_store %arg14[%c0_476, %c0_477], %475 {strides = array<i32>} : memref<288x256xbf16, #tpu.memory_space<vmem>>, vector<32x256xbf16>,
    %477 = arith.truncf %466 : vector<32x256xf32> to vector<32x256xbf16>
    %c32_478 = arith.constant 32 : index
    %c0_479 = arith.constant 0 : index
    %478 = vector.load %arg14[%c32_478, %c0_479] : memref<288x256xbf16, #tpu.memory_space<vmem>>, vector<32x256xbf16>
    tpu.vector_store %arg14[%c32_478, %c0_479], %477 {strides = array<i32>} : memref<288x256xbf16, #tpu.memory_space<vmem>>, vector<32x256xbf16>,
    %c255_i32_480 = arith.constant 255 : i32
    %479 = tpu.dynamic_rotate %466 by %c255_i32_480 dim 1 : vector<32x256xf32>, i32 -> vector<32x256xf32>
    %c3_481 = arith.constant 3 : index
    %c0_482 = arith.constant 0 : index
    %c0_483 = arith.constant 0 : index
    %480 = vector.load %arg12[%c3_481, %c0_482, %c0_483] : memref<4x32x256xf32, #tpu.memory_space<vmem>>, vector<1x32x256xf32>
    %481 = vector.shape_cast %480 : vector<1x32x256xf32> to vector<32x256xf32>
    %482 = arith.mulf %479, %481 : vector<32x256xf32>
    %483 = arith.truncf %482 : vector<32x256xf32> to vector<32x256xbf16>
    %c64_484 = arith.constant 64 : index
    %c0_485 = arith.constant 0 : index
    %484 = vector.load %arg14[%c64_484, %c0_485] : memref<288x256xbf16, #tpu.memory_space<vmem>>, vector<32x256xbf16>
    tpu.vector_store %arg14[%c64_484, %c0_485], %483 {strides = array<i32>} : memref<288x256xbf16, #tpu.memory_space<vmem>>, vector<32x256xbf16>,
    %c1_i32_486 = arith.constant 1 : i32
    %485 = tpu.dynamic_rotate %462 by %c1_i32_486 dim 1 : vector<32x256xf32>, i32 -> vector<32x256xf32>
    %c2_487 = arith.constant 2 : index
    %c0_488 = arith.constant 0 : index
    %c0_489 = arith.constant 0 : index
    %486 = vector.load %arg12[%c2_487, %c0_488, %c0_489] : memref<4x32x256xf32, #tpu.memory_space<vmem>>, vector<1x32x256xf32>
    %487 = vector.shape_cast %486 : vector<1x32x256xf32> to vector<32x256xf32>
    %488 = arith.mulf %485, %487 : vector<32x256xf32>
    %489 = arith.truncf %488 : vector<32x256xf32> to vector<32x256xbf16>
    %c96_490 = arith.constant 96 : index
    %c0_491 = arith.constant 0 : index
    %490 = vector.load %arg14[%c96_490, %c0_491] : memref<288x256xbf16, #tpu.memory_space<vmem>>, vector<32x256xbf16>
    tpu.vector_store %arg14[%c96_490, %c0_491], %489 {strides = array<i32>} : memref<288x256xbf16, #tpu.memory_space<vmem>>, vector<32x256xbf16>,
    %491 = arith.truncf %462 : vector<32x256xf32> to vector<32x256xbf16>
    %c128_492 = arith.constant 128 : index
    %c0_493 = arith.constant 0 : index
    %492 = vector.load %arg14[%c128_492, %c0_493] : memref<288x256xbf16, #tpu.memory_space<vmem>>, vector<32x256xbf16>
    tpu.vector_store %arg14[%c128_492, %c0_493], %491 {strides = array<i32>} : memref<288x256xbf16, #tpu.memory_space<vmem>>, vector<32x256xbf16>,
    %c255_i32_494 = arith.constant 255 : i32
    %493 = tpu.dynamic_rotate %462 by %c255_i32_494 dim 1 : vector<32x256xf32>, i32 -> vector<32x256xf32>
    %c3_495 = arith.constant 3 : index
    %c0_496 = arith.constant 0 : index
    %c0_497 = arith.constant 0 : index
    %494 = vector.load %arg12[%c3_495, %c0_496, %c0_497] : memref<4x32x256xf32, #tpu.memory_space<vmem>>, vector<1x32x256xf32>
    %495 = vector.shape_cast %494 : vector<1x32x256xf32> to vector<32x256xf32>
    %496 = arith.mulf %493, %495 : vector<32x256xf32>
    %497 = arith.truncf %496 : vector<32x256xf32> to vector<32x256xbf16>
    %c160_498 = arith.constant 160 : index
    %c0_499 = arith.constant 0 : index
    %498 = vector.load %arg14[%c160_498, %c0_499] : memref<288x256xbf16, #tpu.memory_space<vmem>>, vector<32x256xbf16>
    tpu.vector_store %arg14[%c160_498, %c0_499], %497 {strides = array<i32>} : memref<288x256xbf16, #tpu.memory_space<vmem>>, vector<32x256xbf16>,
    %c1_i32_500 = arith.constant 1 : i32
    %499 = tpu.dynamic_rotate %470 by %c1_i32_500 dim 1 : vector<32x256xf32>, i32 -> vector<32x256xf32>
    %c2_501 = arith.constant 2 : index
    %c0_502 = arith.constant 0 : index
    %c0_503 = arith.constant 0 : index
    %500 = vector.load %arg12[%c2_501, %c0_502, %c0_503] : memref<4x32x256xf32, #tpu.memory_space<vmem>>, vector<1x32x256xf32>
    %501 = vector.shape_cast %500 : vector<1x32x256xf32> to vector<32x256xf32>
    %502 = arith.mulf %499, %501 : vector<32x256xf32>
    %503 = arith.truncf %502 : vector<32x256xf32> to vector<32x256xbf16>
    %c192_504 = arith.constant 192 : index
    %c0_505 = arith.constant 0 : index
    %504 = vector.load %arg14[%c192_504, %c0_505] : memref<288x256xbf16, #tpu.memory_space<vmem>>, vector<32x256xbf16>
    tpu.vector_store %arg14[%c192_504, %c0_505], %503 {strides = array<i32>} : memref<288x256xbf16, #tpu.memory_space<vmem>>, vector<32x256xbf16>,
    %505 = arith.truncf %470 : vector<32x256xf32> to vector<32x256xbf16>
    %c224_506 = arith.constant 224 : index
    %c0_507 = arith.constant 0 : index
    %506 = vector.load %arg14[%c224_506, %c0_507] : memref<288x256xbf16, #tpu.memory_space<vmem>>, vector<32x256xbf16>
    tpu.vector_store %arg14[%c224_506, %c0_507], %505 {strides = array<i32>} : memref<288x256xbf16, #tpu.memory_space<vmem>>, vector<32x256xbf16>,
    %c255_i32_508 = arith.constant 255 : i32
    %507 = tpu.dynamic_rotate %470 by %c255_i32_508 dim 1 : vector<32x256xf32>, i32 -> vector<32x256xf32>
    %c3_509 = arith.constant 3 : index
    %c0_510 = arith.constant 0 : index
    %c0_511 = arith.constant 0 : index
    %508 = vector.load %arg12[%c3_509, %c0_510, %c0_511] : memref<4x32x256xf32, #tpu.memory_space<vmem>>, vector<1x32x256xf32>
    %509 = vector.shape_cast %508 : vector<1x32x256xf32> to vector<32x256xf32>
    %510 = arith.mulf %507, %509 : vector<32x256xf32>
    %511 = arith.truncf %510 : vector<32x256xf32> to vector<32x256xbf16>
    %c256_512 = arith.constant 256 : index
    %c0_513 = arith.constant 0 : index
    %512 = vector.load %arg14[%c256_512, %c0_513] : memref<288x256xbf16, #tpu.memory_space<vmem>>, vector<32x256xbf16>
    tpu.vector_store %arg14[%c256_512, %c0_513], %511 {strides = array<i32>} : memref<288x256xbf16, #tpu.memory_space<vmem>>, vector<32x256xbf16>,
    %c3_514 = arith.constant 3 : index
    %c0_515 = arith.constant 0 : index
    %c0_516 = arith.constant 0 : index
    %513 = vector.load %arg6[%c3_514, %c0_515, %c0_516] : memref<4x32x288xbf16, #tpu.memory_space<vmem>>, vector<1x32x288xbf16>
    %514 = vector.shape_cast %513 : vector<1x32x288xbf16> to vector<32x288xbf16>
    %c3_517 = arith.constant 3 : index
    %c0_518 = arith.constant 0 : index
    %c0_519 = arith.constant 0 : index
    %515 = vector.load %arg7[%c3_517, %c0_518, %c0_519] : memref<4x32x1xf32, #tpu.memory_space<vmem>>, vector<1x32x1xf32>
    %516 = vector.shape_cast %515 : vector<1x32x1xf32> to vector<32x1xf32>
    %c0_520 = arith.constant 0 : index
    %c0_521 = arith.constant 0 : index
    %517 = vector.load %arg14[%c0_520, %c0_521] : memref<288x256xbf16, #tpu.memory_space<vmem>>, vector<288x256xbf16>
    %cst_522 = arith.constant dense<0.000000e+00> : vector<32x256xf32>
    %518 = tpu.matmul %514, %517, %cst_522 {dimension_numbers = #tpu.dot_dimension_numbers<[1], [0], [0], [1], [0, 0, 1, 1], [], []>} : vector<32x288xbf16>, vector<288x256xbf16>, vector<32x256xf32> -> vector<32x256xf32>
    %519 = vector.broadcast %516 : vector<32x1xf32> to vector<32x256xf32>
    %520 = arith.addf %518, %519 : vector<32x256xf32>
    %c0_523 = arith.constant 0 : index
    %c0_524 = arith.constant 0 : index
    %521 = vector.load %arg15[%c0_523, %c0_524] : memref<32x256xf32, #tpu.memory_space<vmem>>, vector<32x256xf32>
    %522 = arith.addf %520, %521 : vector<32x256xf32>
    %c0_525 = arith.constant 0 : index
    %c0_526 = arith.constant 0 : index
    %523 = vector.load %arg15[%c0_525, %c0_526] : memref<32x256xf32, #tpu.memory_space<vmem>>, vector<32x256xf32>
    tpu.vector_store %arg15[%c0_525, %c0_526], %522 {strides = array<i32>} : memref<32x256xf32, #tpu.memory_space<vmem>>, vector<32x256xf32>,
    %c0_527 = arith.constant 0 : index
    %c0_528 = arith.constant 0 : index
    %524 = vector.load %arg16[%c0_527, %c0_528] : memref<32x256xf32, #tpu.memory_space<vmem>>, vector<32x256xf32>
    %c3_529 = arith.constant 3 : index
    %c0_530 = arith.constant 0 : index
    %c0_531 = arith.constant 0 : index
    %525 = vector.load %arg8[%c3_529, %c0_530, %c0_531] : memref<4x32x32xbf16, #tpu.memory_space<vmem>>, vector<1x32x32xbf16>
    %526 = vector.shape_cast %525 : vector<1x32x32xbf16> to vector<32x32xbf16>
    %c0_532 = arith.constant 0 : index
    %c0_533 = arith.constant 0 : index
    %527 = vector.load %arg15[%c0_532, %c0_533] : memref<32x256xf32, #tpu.memory_space<vmem>>, vector<32x256xf32>
    %528 = arith.truncf %527 : vector<32x256xf32> to vector<32x256xbf16>
    %cst_534 = arith.constant dense<0.000000e+00> : vector<32x256xf32>
    %529 = tpu.matmul %526, %528, %cst_534 {dimension_numbers = #tpu.dot_dimension_numbers<[1], [0], [0], [1], [0, 0, 1, 1], [], []>} : vector<32x32xbf16>, vector<32x256xbf16>, vector<32x256xf32> -> vector<32x256xf32>
    %530 = arith.addf %524, %529 : vector<32x256xf32>
    %c0_535 = arith.constant 0 : index
    %c0_536 = arith.constant 0 : index
    %531 = vector.load %arg16[%c0_535, %c0_536] : memref<32x256xf32, #tpu.memory_space<vmem>>, vector<32x256xf32>
    tpu.vector_store %arg16[%c0_535, %c0_536], %530 {strides = array<i32>} : memref<32x256xf32, #tpu.memory_space<vmem>>, vector<32x256xf32>,
    %c0_537 = arith.constant 0 : index
    %c0_538 = arith.constant 0 : index
    %532 = vector.load %arg16[%c0_537, %c0_538] : memref<32x256xf32, #tpu.memory_space<vmem>>, vector<32x256xf32>
    %c16_i32_539 = arith.constant 16 : i32
    %533 = tpu.dynamic_rotate %532 by %c16_i32_539 dim 1 : vector<32x256xf32>, i32 -> vector<32x256xf32>
    %c0_540 = arith.constant 0 : index
    %c0_541 = arith.constant 0 : index
    %c0_542 = arith.constant 0 : index
    %534 = vector.load %arg12[%c0_540, %c0_541, %c0_542] : memref<4x32x256xf32, #tpu.memory_space<vmem>>, vector<1x32x256xf32>
    %535 = vector.shape_cast %534 : vector<1x32x256xf32> to vector<32x256xf32>
    %536 = arith.mulf %533, %535 : vector<32x256xf32>
    %c240_i32_543 = arith.constant 240 : i32
    %537 = tpu.dynamic_rotate %532 by %c240_i32_543 dim 1 : vector<32x256xf32>, i32 -> vector<32x256xf32>
    %c1_544 = arith.constant 1 : index
    %c0_545 = arith.constant 0 : index
    %c0_546 = arith.constant 0 : index
    %538 = vector.load %arg12[%c1_544, %c0_545, %c0_546] : memref<4x32x256xf32, #tpu.memory_space<vmem>>, vector<1x32x256xf32>
    %539 = vector.shape_cast %538 : vector<1x32x256xf32> to vector<32x256xf32>
    %540 = arith.mulf %537, %539 : vector<32x256xf32>
    %c1_i32_547 = arith.constant 1 : i32
    %541 = tpu.dynamic_rotate %536 by %c1_i32_547 dim 1 : vector<32x256xf32>, i32 -> vector<32x256xf32>
    %c2_548 = arith.constant 2 : index
    %c0_549 = arith.constant 0 : index
    %c0_550 = arith.constant 0 : index
    %542 = vector.load %arg12[%c2_548, %c0_549, %c0_550] : memref<4x32x256xf32, #tpu.memory_space<vmem>>, vector<1x32x256xf32>
    %543 = vector.shape_cast %542 : vector<1x32x256xf32> to vector<32x256xf32>
    %544 = arith.mulf %541, %543 : vector<32x256xf32>
    %545 = arith.truncf %544 : vector<32x256xf32> to vector<32x256xbf16>
    %c0_551 = arith.constant 0 : index
    %c0_552 = arith.constant 0 : index
    %546 = vector.load %arg14[%c0_551, %c0_552] : memref<288x256xbf16, #tpu.memory_space<vmem>>, vector<32x256xbf16>
    tpu.vector_store %arg14[%c0_551, %c0_552], %545 {strides = array<i32>} : memref<288x256xbf16, #tpu.memory_space<vmem>>, vector<32x256xbf16>,
    %547 = arith.truncf %536 : vector<32x256xf32> to vector<32x256xbf16>
    %c32_553 = arith.constant 32 : index
    %c0_554 = arith.constant 0 : index
    %548 = vector.load %arg14[%c32_553, %c0_554] : memref<288x256xbf16, #tpu.memory_space<vmem>>, vector<32x256xbf16>
    tpu.vector_store %arg14[%c32_553, %c0_554], %547 {strides = array<i32>} : memref<288x256xbf16, #tpu.memory_space<vmem>>, vector<32x256xbf16>,
    %c255_i32_555 = arith.constant 255 : i32
    %549 = tpu.dynamic_rotate %536 by %c255_i32_555 dim 1 : vector<32x256xf32>, i32 -> vector<32x256xf32>
    %c3_556 = arith.constant 3 : index
    %c0_557 = arith.constant 0 : index
    %c0_558 = arith.constant 0 : index
    %550 = vector.load %arg12[%c3_556, %c0_557, %c0_558] : memref<4x32x256xf32, #tpu.memory_space<vmem>>, vector<1x32x256xf32>
    %551 = vector.shape_cast %550 : vector<1x32x256xf32> to vector<32x256xf32>
    %552 = arith.mulf %549, %551 : vector<32x256xf32>
    %553 = arith.truncf %552 : vector<32x256xf32> to vector<32x256xbf16>
    %c64_559 = arith.constant 64 : index
    %c0_560 = arith.constant 0 : index
    %554 = vector.load %arg14[%c64_559, %c0_560] : memref<288x256xbf16, #tpu.memory_space<vmem>>, vector<32x256xbf16>
    tpu.vector_store %arg14[%c64_559, %c0_560], %553 {strides = array<i32>} : memref<288x256xbf16, #tpu.memory_space<vmem>>, vector<32x256xbf16>,
    %c1_i32_561 = arith.constant 1 : i32
    %555 = tpu.dynamic_rotate %532 by %c1_i32_561 dim 1 : vector<32x256xf32>, i32 -> vector<32x256xf32>
    %c2_562 = arith.constant 2 : index
    %c0_563 = arith.constant 0 : index
    %c0_564 = arith.constant 0 : index
    %556 = vector.load %arg12[%c2_562, %c0_563, %c0_564] : memref<4x32x256xf32, #tpu.memory_space<vmem>>, vector<1x32x256xf32>
    %557 = vector.shape_cast %556 : vector<1x32x256xf32> to vector<32x256xf32>
    %558 = arith.mulf %555, %557 : vector<32x256xf32>
    %559 = arith.truncf %558 : vector<32x256xf32> to vector<32x256xbf16>
    %c96_565 = arith.constant 96 : index
    %c0_566 = arith.constant 0 : index
    %560 = vector.load %arg14[%c96_565, %c0_566] : memref<288x256xbf16, #tpu.memory_space<vmem>>, vector<32x256xbf16>
    tpu.vector_store %arg14[%c96_565, %c0_566], %559 {strides = array<i32>} : memref<288x256xbf16, #tpu.memory_space<vmem>>, vector<32x256xbf16>,
    %561 = arith.truncf %532 : vector<32x256xf32> to vector<32x256xbf16>
    %c128_567 = arith.constant 128 : index
    %c0_568 = arith.constant 0 : index
    %562 = vector.load %arg14[%c128_567, %c0_568] : memref<288x256xbf16, #tpu.memory_space<vmem>>, vector<32x256xbf16>
    tpu.vector_store %arg14[%c128_567, %c0_568], %561 {strides = array<i32>} : memref<288x256xbf16, #tpu.memory_space<vmem>>, vector<32x256xbf16>,
    %c255_i32_569 = arith.constant 255 : i32
    %563 = tpu.dynamic_rotate %532 by %c255_i32_569 dim 1 : vector<32x256xf32>, i32 -> vector<32x256xf32>
    %c3_570 = arith.constant 3 : index
    %c0_571 = arith.constant 0 : index
    %c0_572 = arith.constant 0 : index
    %564 = vector.load %arg12[%c3_570, %c0_571, %c0_572] : memref<4x32x256xf32, #tpu.memory_space<vmem>>, vector<1x32x256xf32>
    %565 = vector.shape_cast %564 : vector<1x32x256xf32> to vector<32x256xf32>
    %566 = arith.mulf %563, %565 : vector<32x256xf32>
    %567 = arith.truncf %566 : vector<32x256xf32> to vector<32x256xbf16>
    %c160_573 = arith.constant 160 : index
    %c0_574 = arith.constant 0 : index
    %568 = vector.load %arg14[%c160_573, %c0_574] : memref<288x256xbf16, #tpu.memory_space<vmem>>, vector<32x256xbf16>
    tpu.vector_store %arg14[%c160_573, %c0_574], %567 {strides = array<i32>} : memref<288x256xbf16, #tpu.memory_space<vmem>>, vector<32x256xbf16>,
    %c1_i32_575 = arith.constant 1 : i32
    %569 = tpu.dynamic_rotate %540 by %c1_i32_575 dim 1 : vector<32x256xf32>, i32 -> vector<32x256xf32>
    %c2_576 = arith.constant 2 : index
    %c0_577 = arith.constant 0 : index
    %c0_578 = arith.constant 0 : index
    %570 = vector.load %arg12[%c2_576, %c0_577, %c0_578] : memref<4x32x256xf32, #tpu.memory_space<vmem>>, vector<1x32x256xf32>
    %571 = vector.shape_cast %570 : vector<1x32x256xf32> to vector<32x256xf32>
    %572 = arith.mulf %569, %571 : vector<32x256xf32>
    %573 = arith.truncf %572 : vector<32x256xf32> to vector<32x256xbf16>
    %c192_579 = arith.constant 192 : index
    %c0_580 = arith.constant 0 : index
    %574 = vector.load %arg14[%c192_579, %c0_580] : memref<288x256xbf16, #tpu.memory_space<vmem>>, vector<32x256xbf16>
    tpu.vector_store %arg14[%c192_579, %c0_580], %573 {strides = array<i32>} : memref<288x256xbf16, #tpu.memory_space<vmem>>, vector<32x256xbf16>,
    %575 = arith.truncf %540 : vector<32x256xf32> to vector<32x256xbf16>
    %c224_581 = arith.constant 224 : index
    %c0_582 = arith.constant 0 : index
    %576 = vector.load %arg14[%c224_581, %c0_582] : memref<288x256xbf16, #tpu.memory_space<vmem>>, vector<32x256xbf16>
    tpu.vector_store %arg14[%c224_581, %c0_582], %575 {strides = array<i32>} : memref<288x256xbf16, #tpu.memory_space<vmem>>, vector<32x256xbf16>,
    %c255_i32_583 = arith.constant 255 : i32
    %577 = tpu.dynamic_rotate %540 by %c255_i32_583 dim 1 : vector<32x256xf32>, i32 -> vector<32x256xf32>
    %c3_584 = arith.constant 3 : index
    %c0_585 = arith.constant 0 : index
    %c0_586 = arith.constant 0 : index
    %578 = vector.load %arg12[%c3_584, %c0_585, %c0_586] : memref<4x32x256xf32, #tpu.memory_space<vmem>>, vector<1x32x256xf32>
    %579 = vector.shape_cast %578 : vector<1x32x256xf32> to vector<32x256xf32>
    %580 = arith.mulf %577, %579 : vector<32x256xf32>
    %581 = arith.truncf %580 : vector<32x256xf32> to vector<32x256xbf16>
    %c256_587 = arith.constant 256 : index
    %c0_588 = arith.constant 0 : index
    %582 = vector.load %arg14[%c256_587, %c0_588] : memref<288x256xbf16, #tpu.memory_space<vmem>>, vector<32x256xbf16>
    tpu.vector_store %arg14[%c256_587, %c0_588], %581 {strides = array<i32>} : memref<288x256xbf16, #tpu.memory_space<vmem>>, vector<32x256xbf16>,
    %c0_589 = arith.constant 0 : index
    %c0_590 = arith.constant 0 : index
    %583 = vector.load %arg10[%c0_589, %c0_590] : memref<12x288xbf16, #tpu.memory_space<vmem>>, vector<12x288xbf16>
    %c0_591 = arith.constant 0 : index
    %c0_592 = arith.constant 0 : index
    %584 = vector.load %arg11[%c0_591, %c0_592] : memref<12x1xf32, #tpu.memory_space<vmem>>, vector<12x1xf32>
    %c0_593 = arith.constant 0 : index
    %c0_594 = arith.constant 0 : index
    %585 = vector.load %arg14[%c0_593, %c0_594] : memref<288x256xbf16, #tpu.memory_space<vmem>>, vector<288x256xbf16>
    %cst_595 = arith.constant dense<0.000000e+00> : vector<12x256xf32>
    %586 = tpu.matmul %583, %585, %cst_595 {dimension_numbers = #tpu.dot_dimension_numbers<[1], [0], [0], [1], [0, 0, 1, 1], [], []>} : vector<12x288xbf16>, vector<288x256xbf16>, vector<12x256xf32> -> vector<12x256xf32>
    %587 = vector.broadcast %584 : vector<12x1xf32> to vector<12x256xf32>
    %588 = arith.addf %586, %587 : vector<12x256xf32>
    %c0_596 = arith.constant 0 : index
    %c0_597 = arith.constant 0 : index
    %c0_598 = arith.constant 0 : index
    %589 = vector.load %arg13[%c0_596, %c0_597, %c0_598] : memref<1x12x256xf32, #tpu.memory_space<vmem>>, vector<1x12x256xf32>
    %590 = vector.shape_cast %589 : vector<1x12x256xf32> to vector<12x256xf32>
    %591 = vector.shape_cast %588 : vector<12x256xf32> to vector<1x12x256xf32>
    tpu.vector_store %arg13[%c0_596, %c0_597, %c0_598], %591 {strides = array<i32>} : memref<1x12x256xf32, #tpu.memory_space<vmem>>, vector<1x12x256xf32>,
    return
  }
  func.func @transform_0(%arg0: i32) -> (i32, i32, i32) {
    %c0_i32 = arith.constant 0 : i32
    %c0_i32_0 = arith.constant 0 : i32
    %c0_i32_1 = arith.constant 0 : i32
    return %arg0, %c0_i32, %c0_i32_0 : i32, i32, i32
  }
  func.func @transform_1(%arg0: i32) -> (i32, i32) {
    %c0_i32 = arith.constant 0 : i32
    %c0_i32_0 = arith.constant 0 : i32
    %c0_i32_1 = arith.constant 0 : i32
    return %c0_i32, %c0_i32_0 : i32, i32
  }
  func.func @transform_2(%arg0: i32) -> (i32, i32) {
    %c0_i32 = arith.constant 0 : i32
    %c0_i32_0 = arith.constant 0 : i32
    %c0_i32_1 = arith.constant 0 : i32
    return %c0_i32, %c0_i32_0 : i32, i32
  }
  func.func @transform_3(%arg0: i32) -> (i32, i32, i32) {
    %c0_i32 = arith.constant 0 : i32
    %c0_i32_0 = arith.constant 0 : i32
    %c0_i32_1 = arith.constant 0 : i32
    %c0_i32_2 = arith.constant 0 : i32
    return %c0_i32, %c0_i32_0, %c0_i32_1 : i32, i32, i32
  }
  func.func @transform_4(%arg0: i32) -> (i32, i32, i32) {
    %c0_i32 = arith.constant 0 : i32
    %c0_i32_0 = arith.constant 0 : i32
    %c0_i32_1 = arith.constant 0 : i32
    %c0_i32_2 = arith.constant 0 : i32
    return %c0_i32, %c0_i32_0, %c0_i32_1 : i32, i32, i32
  }
  func.func @transform_5(%arg0: i32) -> (i32, i32, i32) {
    %c0_i32 = arith.constant 0 : i32
    %c0_i32_0 = arith.constant 0 : i32
    %c0_i32_1 = arith.constant 0 : i32
    %c0_i32_2 = arith.constant 0 : i32
    return %c0_i32, %c0_i32_0, %c0_i32_1 : i32, i32, i32
  }
  func.func @transform_6(%arg0: i32) -> (i32, i32, i32) {
    %c0_i32 = arith.constant 0 : i32
    %c0_i32_0 = arith.constant 0 : i32
    %c0_i32_1 = arith.constant 0 : i32
    %c0_i32_2 = arith.constant 0 : i32
    return %c0_i32, %c0_i32_0, %c0_i32_1 : i32, i32, i32
  }
  func.func @transform_7(%arg0: i32) -> (i32, i32, i32) {
    %c0_i32 = arith.constant 0 : i32
    %c0_i32_0 = arith.constant 0 : i32
    %c0_i32_1 = arith.constant 0 : i32
    %c0_i32_2 = arith.constant 0 : i32
    return %c0_i32, %c0_i32_0, %c0_i32_1 : i32, i32, i32
  }
  func.func @transform_8(%arg0: i32) -> (i32, i32) {
    %c0_i32 = arith.constant 0 : i32
    %c0_i32_0 = arith.constant 0 : i32
    %c0_i32_1 = arith.constant 0 : i32
    return %c0_i32, %c0_i32_0 : i32, i32
  }
  func.func @transform_9(%arg0: i32) -> (i32, i32) {
    %c0_i32 = arith.constant 0 : i32
    %c0_i32_0 = arith.constant 0 : i32
    %c0_i32_1 = arith.constant 0 : i32
    return %c0_i32, %c0_i32_0 : i32, i32
  }
  func.func @transform_10(%arg0: i32) -> (i32, i32) {
    %c0_i32 = arith.constant 0 : i32
    %c0_i32_0 = arith.constant 0 : i32
    %c0_i32_1 = arith.constant 0 : i32
    return %c0_i32, %c0_i32_0 : i32, i32
  }
  func.func @transform_11(%arg0: i32) -> (i32, i32, i32) {
    %c0_i32 = arith.constant 0 : i32
    %c0_i32_0 = arith.constant 0 : i32
    %c0_i32_1 = arith.constant 0 : i32
    %c0_i32_2 = arith.constant 0 : i32
    return %c0_i32, %c0_i32_0, %c0_i32_1 : i32, i32, i32
  }
  func.func @transform_12(%arg0: i32) -> (i32, i32, i32) {
    %c0_i32 = arith.constant 0 : i32
    %c0_i32_0 = arith.constant 0 : i32
    %c0_i32_1 = arith.constant 0 : i32
    return %arg0, %c0_i32, %c0_i32_0 : i32, i32, i32
  }
}

</mosaic_0001>

<bundles_post_ra>
// kernel: trunk_struct_forward.1
= control target key start
LH: loop header
LB: loop body
LE: loop exit
PB: predicated region body
PF: predicated region fallthrough
CT: control target
= control target key end

     0   :  { %s7685_s21 = smov 0   ;;  %s12937_s0 = inlined_call_operand.vmem [shape: bf16[2,36,256], index: 0, kind: input, shape index: {}]   ;;  %s12938_s1 = inlined_call_operand.vmem [shape: bf16[32,36], index: 1, kind: input, shape index: {}]   ;;  %s12939_s2 = inlined_call_operand.vmem [shape: f32[32,1], index: 2, kind: input, shape index: {}]   ;;  %s12940_s3 = inlined_call_operand.vmem [shape: bf16[4,32,288], index: 3, kind: input, shape index: {}]   ;;  %s12941_s4 = inlined_call_operand.vmem [shape: f32[4,32,1], index: 4, kind: input, shape index: {}]   ;;  %s12942_s5 = inlined_call_operand.vmem [shape: bf16[4,32,288], index: 5, kind: input, shape index: {}]   ;;  %s12943_s6 = inlined_call_operand.vmem [shape: f32[4,32,1], index: 6, kind: input, shape index: {}]   ;;  %s12944_s7 = inlined_call_operand.vmem [shape: bf16[4,32,32], index: 7, kind: input, shape index: {}]   ;;  %s12945_s8 = inlined_call_operand.vmem [shape: f32[32,1], index: 8, kind: input, shape index: {}]   ;;  %s12946_s9 = inlined_call_operand.vmem [shape: bf16[12,288], index: 9, kind: input, shape index: {}]   ;;  %s12947_s10 = inlined_call_operand.vmem [shape: f32[12,1], index: 10, kind: input, shape index: {}]   ;;  %s12948_s11 = inlined_call_operand.vmem [shape: f32[4,32,256], index: 11, kind: input, shape index: {}]   ;;  %s12949_s12 = inlined_call_operand.vmem [shape: f32[2,12,256], index: 12, kind: output, shape index: {}]  }
   0x1 LB: > { %s6642_s22 = sadd.s32 4294967295, %s7613_s21   ;;  %p6646_p0 = scmp.ge.s32.totalorder %s7613_s21, 1  ;;  %s7613_s21 = sphi %s7685_s21, %s22_s21  }
   0x2   : > { %p362_p1 = scmp.lt.s32.totalorder %s7613_s21, 3 }
   0x4   : > { %p363_p2 = pnand %p6646_p0, %p362_p1 }
   0x6   : > { %366 = sbr.rel (%p363_p2) target bundleno = 5471 (0x155f), region = 68 }
   0xd   : > { %p404_p3 = scmp.lt.s32.totalorder %s6642_s22, 1  ;;  %v12950_v0 = vmov 0   ;;  %v424_v1 = vld [vmem:[%s12939_s2] sm:$0xff]  ;;  %v425_v2 = vld [vmem:[%s12939_s2 + $0x8] sm:$0xff]  ;;  %v426_v3 = vld [vmem:[%s12939_s2 + $0x10] sm:$0xff]  ;;  %vm490_vm0 = vcmask 1041408   ;;  %v614_v35 = vlaneseq }
   0xe   : > { %529 = vmatprep.mubr.bf16.mxu0 %v12950_v0  ;;  %7518 = vset.pattern.permute.xlu0 %v12950_v0  ;;  %v427_v4 = vld [vmem:[%s12939_s2 + $0x18] sm:$0xff]  ;;  %v7528_v13 = vld [vmem:[%s12938_s1] sm:$0xff]   ;;  %vm483_vm1 = vcmask 293888   ;;  %v7529_v14 = vld [vmem:[%s12938_s1 + $0x8] sm:$0xff]   ;;  %s7616_s23 = smov 16   ;;  %s7617_s24 = smov 112  }
   0xf   : > { %s13301_s22 = smov (!%p404_p3, %s6642_s22), 1  ;;  %7519 = vset.pattern.permute.xlu1 %v12950_v0  ;;  %430 = vperm.xlu0 %7518, %v424_v1   ;;  %s7618_s25 = smov 1   ;;  %v7777_v36 = vand.u32 127, %v614_v35  ;;  %v7783_v39 = vld [vmem:[%s12948_s11] sm:$0xff]  ;;  %v7792_v43 = vld [vmem:[%s12948_s11 + $0x10] sm:$0xff]  ;;  %v7797_v44 = vld [vmem:[%s12948_s11 + $0x8] sm:$0xff] }
  0x10   : > { %s7504_s13 = smul.u32 40, %s13301_s22  ;;  %440 = vperm.xlu1 %7519, %v426_v3   ;;  %v7802_v45 = vld [vmem:[%s12948_s11 + $0x18] sm:$0xff]  ;;  %v7831_v57 = vld [vmem:[%s12948_s11 + $0x20] sm:$0xff]  ;;  %v7836_v58 = vld [vmem:[%s12948_s11 + $0x28] sm:$0xff]  ;;  %s7619_s29 = smov 127   ;;  %vm1097_vm6 = vcmask 261120  }
  0x11   : > { %vm616_vm2 = vcmp.lt.s32.totalorder %v7777_v36, 16  ;;  %13053 = vst [vmem:[#allocation13_spill] sm:$0xff] %v7836_v58  ;;  %v7847_v62 = vld [vmem:[%s12948_s11 + $0x30] sm:$0xff]  ;;  %v7852_v63 = vld [vmem:[%s12948_s11 + $0x38] sm:$0xff]  ;;  %vm657_vm3 = vcmp.lt.s32.totalorder %v7777_v36, 112  ;;  %vm699_vm4 = vcmp.lt.s32.totalorder %v7777_v36, 1 }
  0x12   : > { %s408_s16 = scalar_lea.vmem %s12937_s0, %s7504_s13  ;;  %13054 = vst [vmem:[#allocation14_spill] sm:$0xff] %v7847_v62  ;;  %13055 = vst [vmem:[#allocation15_spill] sm:$0xff] %v7852_v63  ;;  %vm757_vm5 = vcmp.lt.s32.totalorder %v7777_v36, 127  ;;  %s7335_s28 = sshll.u32 %s13301_s22, 5 }
  0x13   : > { %v7520_v5 = vld [vmem:[%s408_s16 + $0x4] ss:$8 sps:$4 sm:$0xff]   ;;  %435 = vperm.xlu0 %7518, %v425_v2   ;;  %v7522_v6 = vld [vmem:[%s408_s16] ss:$8 sps:$4 sm:$0xff]   ;;  %v7523_v7 = vld [vmem:[%s408_s16 + $0x14] ss:$8 sps:$4 sm:$0xff]  }
  0x14   : > { %445 = vperm.xlu1 %7519, %v427_v4   ;;  %497 = vmatprep.subr.bf16.mxu0 %v7520_v5  ;;  %v7525_v8 = vld [vmem:[%s408_s16 + $0x10] ss:$8 sps:$4 sm:$0xff]   ;;  %v423_v9 = vld [vmem:[%s408_s16 + $0x20] sm:$0x33] }
  0x15   : > { %498 = vmatpush1.bf16.msra.mxu0 %v7522_v6  ;;  %v6656_v10 = vcombine.low %v423_v9, %v423_v9  ;;  %v6657_v11 = vcombine.high %v423_v9, %v423_v9 }
  0x16   : > { %499 = vmatprep.subr.bf16.mxu0 %v7523_v7 }
  0x17   : > { %v492_v12 = vsel %vm490_vm0, %v6656_v10, 0 }
  0x19   : > { %500 = vmatpush1.bf16.msra.mxu0 %v7525_v8 }
  0x1a   : > { %6658 = vmatprep.subr.msk.bf16.mxu0 %vm490_vm0, %v6657_v11 }
  0x1d   : > { %502 = vmatpush1.bf16.msra.mxu0 %v492_v12 }
  0x20   : > { %6659 = vmatmul.mubr.msk.bf16.vlgmr.msra.gmra.mrb[0].mxu0 %vm483_vm1, %v7528_v13  ;;  %v7886_v13 = vld [vmem:[%s12948_s11 + $0x40] sm:$0xff] }
  0x21   : > { %539 = vmatprep.mubr.bf16.mxu0 %v12950_v0  ;;  %13056 = vst [vmem:[#allocation16_spill] sm:$0xff] %v7886_v13 }
  0x28   : > { %6660 = vmatmul.mubr.msk.bf16.gmra.mrb[4].mxu0 %vm483_vm1, %v7529_v14 }
  0x8e   : > { %v431_v15 = vpop.permute.xlu0 %430 }
  0x8f   : > { %v441_v19 = vpop.permute.xlu1 %440 }
  0x92   : > { %v436_v20 = vpop.permute.xlu0 %435 }
  0x93   : > { %v446_v27 = vpop.permute.xlu1 %445 }
  0xf3   : > { %v531_v16 = vpop.f32.mrb[0].mxu0 }
  0xf4   : > { %v7721_v17 = vadd.f32 %v531_v16, %v431_v15  ;;  %v533_v18 = vpop.f32.mrb[1].mxu0  ;;  %v7895_v16 = vld [vmem:[%s12948_s11 + $0x50] sm:$0xff] }
  0xf5   : > { %v535_v21 = vpop.f32.mrb[2].mxu0  ;;  %v7727_v24 = vadd.f32 %v533_v18, %v431_v15  ;;  %13057 = vst [vmem:[#allocation17_spill] sm:$0xff] %v7895_v16  ;;  %v7900_v18 = vld [vmem:[%s12948_s11 + $0x48] sm:$0xff] }
  0xf6   : > { %13045 = vst [vmem:[#allocation5_spill] sm:$0xff] %v7721_v17  ;;  %v7723_v22 = vadd.f32 %v535_v21, %v436_v20  ;;  %v537_v23 = vpop.f32.mrb[3].mxu0  ;;  %598 = vrot.lane.b32.xlu0 %v7721_v17, %s7616_s23  ;;  %13058 = vst [vmem:[#allocation18_spill] sm:$0xff] %v7900_v18 }
  0xf7   : > { %13047 = vst [vmem:[#allocation7_spill] sm:$0xff] %v7727_v24  ;;  %v7731_v25 = vadd.f32 %v537_v23, %v436_v20 }
  0xf8   : > { %13046 = vst [vmem:[#allocation6_spill] sm:$0xff] %v7723_v22  ;;  %600 = vrot.lane.b32.xlu1 %v7723_v22, %s7616_s23 }
  0xf9   : > { %13048 = vst [vmem:[#allocation8_spill] sm:$0xff] %v7731_v25 }
  0xfa   : > { %606 = vrot.lane.b32.xlu0 %v7727_v24, %s7616_s23 }
  0xfb   : > { %v541_v26 = vpop.f32.mrb[4].mxu0 }
  0xfc   : > { %v7735_v28 = vadd.f32 %v541_v26, %v441_v19  ;;  %v543_v29 = vpop.f32.mrb[5].mxu0  ;;  %608 = vrot.lane.b32.xlu1 %v7731_v25, %s7616_s23 }
  0xfd   : > { %v545_v30 = vpop.f32.mrb[6].mxu0  ;;  %v7739_v31 = vadd.f32 %v543_v29, %v441_v19  ;;  %v7905_v19 = vld [vmem:[%s12948_s11 + $0x58] sm:$0xff] }
  0xfe   : > { %13049 = vst [vmem:[#allocation9_spill] sm:$0xff] %v7735_v28  ;;  %v7741_v32 = vadd.f32 %v545_v30, %v446_v27  ;;  %602 = vrot.lane.b32.xlu0 %v7735_v28, %s7616_s23  ;;  %v547_v33 = vpop.f32.mrb[7].mxu0  ;;  %13059 = vst [vmem:[#allocation19_spill] sm:$0xff] %v7905_v19 }
  0xff   : > { %13050 = vst [vmem:[#allocation10_spill] sm:$0xff] %v7739_v31  ;;  %v7747_v34 = vadd.f32 %v547_v33, %v446_v27 }
 0x100   : > { %13051 = vst [vmem:[#allocation11_spill] sm:$0xff] %v7741_v32  ;;  %604 = vrot.lane.b32.xlu1 %v7741_v32, %s7616_s23 }
 0x101   : > { %13052 = vst [vmem:[#allocation12_spill] sm:$0xff] %v7747_v34 }
 0x102   : > { %610 = vrot.lane.b32.xlu0 %v7739_v31, %s7616_s23 }
 0x104   : > { %612 = vrot.lane.b32.xlu1 %v7747_v34, %s7616_s23 }
 0x106   : > { %641 = vrot.lane.b32.xlu0 %v7721_v17, %s7617_s24 }
 0x108   : > { %643 = vrot.lane.b32.xlu1 %v7723_v22, %s7617_s24 }
 0x10a   : > { %649 = vrot.lane.b32.xlu0 %v7727_v24, %s7617_s24 }
 0x10c   : > { %651 = vrot.lane.b32.xlu1 %v7731_v25, %s7617_s24 }
 0x10e   : > { %645 = vrot.lane.b32.xlu0 %v7735_v28, %s7617_s24 }
 0x110   : > { %647 = vrot.lane.b32.xlu1 %v7741_v32, %s7617_s24 }
 0x112   : > { %653 = vrot.lane.b32.xlu0 %v7739_v31, %s7617_s24 }
 0x114   : > { %793 = vrot.lane.b32.xlu1 %v7723_v22, %s7618_s25 }
 0x116   : > { %791 = vrot.lane.b32.xlu0 %v7721_v17, %s7618_s25 }
 0x118   : > { %801 = vrot.lane.b32.xlu1 %v7731_v25, %s7618_s25 }
 0x11a   : > { %799 = vrot.lane.b32.xlu0 %v7727_v24, %s7618_s25 }
 0x11c   : > { %655 = vrot.lane.b32.xlu1 %v7747_v34, %s7617_s24 }
 0x168   : > { %v599_v37 = vpop.permute.xlu0 %598 }
 0x16a   : > { %v601_v38 = vpop.permute.xlu1 %600 }
 0x16c   : > { %v607_v40 = vpop.permute.xlu0 %606 }
 0x16d   : > { %v617_v41 = vsel %vm616_vm2, %v599_v37, %v607_v40  ;;  %v621_v42 = vsel %vm616_vm2, %v607_v40, %v599_v37 }
 0x16e   : > { %v609_v46 = vpop.permute.xlu1 %608  ;;  %v7805_v47 = vmul.f32 %v7783_v39, %v621_v42  ;;  %v7817_v52 = vmul.f32 %v7797_v44, %v617_v41 }
 0x16f   : > { %v618_v48 = vsel %vm616_vm2, %v601_v38, %v609_v46  ;;  %v622_v49 = vsel %vm616_vm2, %v609_v46, %v601_v38  ;;  %v7950_v46 = vld [vmem:[%s12948_s11 + $0x60] sm:$0xff] }
 0x170   : > { %683 = vrot.lane.b32.xlu0 %v7805_v47, %s7618_s25  ;;  %v603_v50 = vpop.permute.xlu0 %602  ;;  %v7814_v51 = vmul.f32 %v7792_v43, %v622_v49  ;;  %v7820_v53 = vmul.f32 %v7802_v45, %v618_v48  ;;  %13060 = vst [vmem:[#allocation20_spill] sm:$0xff] %v7950_v46 }
 0x172   : > { %685 = vrot.lane.b32.xlu1 %v7814_v51, %s7618_s25  ;;  %v605_v54 = vpop.permute.xlu1 %604 }
 0x174   : > { %691 = vrot.lane.b32.xlu0 %v7817_v52, %s7618_s25  ;;  %v611_v59 = vpop.permute.xlu0 %610 }
 0x175   : > { %v619_v60 = vsel %vm616_vm2, %v603_v50, %v611_v59  ;;  %v623_v61 = vsel %vm616_vm2, %v611_v59, %v603_v50  ;;  %v7959_v50 = vld [vmem:[%s12948_s11 + $0x70] sm:$0xff]  ;;  %v7969_v59 = vld [vmem:[%s12948_s11 + $0x78] sm:$0xff] }
 0x176   : > { %693 = vrot.lane.b32.xlu1 %v7820_v53, %s7618_s25  ;;  %v613_v1 = vpop.permute.xlu1 %612  ;;  %v7857_v2 = vmul.f32 %v7831_v57, %v623_v61  ;;  %v7860_v3 = vmul.f32 %v7836_v58, %v619_v60  ;;  %13061 = vst [vmem:[#allocation21_spill] sm:$0xff] %v7959_v50  ;;  %13063 = vst [vmem:[#allocation23_spill] sm:$0xff] %v7969_v59 }
 0x177   : > { %v620_v4 = vsel %vm616_vm2, %v605_v54, %v613_v1  ;;  %v624_v5 = vsel %vm616_vm2, %v613_v1, %v605_v54  ;;  %v7964_v54 = vld [vmem:[%s12948_s11 + $0x68] sm:$0xff] }
 0x178   : > { %741 = vrot.lane.b32.xlu0 %v7805_v47, %s7619_s29  ;;  %v642_v6 = vpop.permute.xlu0 %641  ;;  %v7869_v7 = vmul.f32 %v7847_v62, %v624_v5  ;;  %v7872_v8 = vmul.f32 %v7852_v63, %v620_v4  ;;  %13062 = vst [vmem:[#allocation22_spill] sm:$0xff] %v7964_v54 }
 0x17a   : > { %743 = vrot.lane.b32.xlu1 %v7814_v51, %s7619_s29  ;;  %v644_v9 = vpop.permute.xlu1 %643 }
 0x17c   : > { %749 = vrot.lane.b32.xlu0 %v7817_v52, %s7619_s29  ;;  %v650_v12 = vpop.permute.xlu0 %649 }
 0x17d   : > { %v658_v14 = vsel %vm657_vm3, %v642_v6, %v650_v12  ;;  %v662_v15 = vsel %vm657_vm3, %v650_v12, %v642_v6 }
 0x17e   : > { %751 = vrot.lane.b32.xlu1 %v7820_v53, %s7619_s29  ;;  %v652_v20 = vpop.permute.xlu1 %651  ;;  %v7916_v26 = vmul.f32 %v7886_v13, %v658_v14  ;;  %v7922_v29 = vmul.f32 %v7900_v18, %v662_v15  ;;  %v7532_v15 = vld [vmem:[%s12940_s3 + $0x4] ss:$12 sps:$4 sm:$0xff]  }
 0x17f   : > { %v659_v21 = vsel %vm657_vm3, %v644_v9, %v652_v20  ;;  %v663_v23 = vsel %vm657_vm3, %v652_v20, %v644_v9  ;;  %1136 = vmatprep.mubr.bf16.mxu1 %v7532_v15  ;;  %v1007_v20 = vld [vmem:[%s12941_s4] sm:$0xff]  ;;  %v8076_v15 = vld [vmem:[%s12948_s11 + $0x90] sm:$0xff] }
 0x180   : > { %687 = vrot.lane.b32.xlu0 %v7857_v2, %s7618_s25  ;;  %v7919_v27 = vmul.f32 %v7895_v16, %v659_v21  ;;  %v7925_v30 = vmul.f32 %v7905_v19, %v663_v23  ;;  %v646_v38 = vpop.permute.xlu0 %645  ;;  %v1008_v21 = vld [vmem:[%s12941_s4 + $0x8] sm:$0xff]  ;;  %v1009_v23 = vld [vmem:[%s12941_s4 + $0x10] sm:$0xff] }
 0x182   : > { %689 = vrot.lane.b32.xlu1 %v7869_v7, %s7618_s25  ;;  %v648_v33 = vpop.permute.xlu1 %647 }
 0x184   : > { %695 = vrot.lane.b32.xlu0 %v7860_v3, %s7618_s25  ;;  %v654_v41 = vpop.permute.xlu0 %653 }
 0x185   : > { %v660_v48 = vsel %vm657_vm3, %v646_v38, %v654_v41  ;;  %v664_v49 = vsel %vm657_vm3, %v654_v41, %v646_v38 }
 0x186   : > { %697 = vrot.lane.b32.xlu1 %v7872_v8, %s7618_s25  ;;  %v7937_v40 = vpop.permute.xlu1 %793  ;;  %v7980_v4 = vmul.f32 %v7950_v46, %v660_v48  ;;  %v7986_v6 = vmul.f32 %v7964_v54, %v664_v49 }
 0x188   : > { %795 = vrot.lane.b32.xlu0 %v7735_v28, %s7618_s25  ;;  %v8064_v38 = vpop.permute.xlu0 %791 }
 0x18a   : > { %797 = vrot.lane.b32.xlu1 %v7741_v32, %s7618_s25  ;;  %v7943_v42 = vpop.permute.xlu1 %801 }
 0x18c   : > { %745 = vrot.lane.b32.xlu0 %v7857_v2, %s7619_s29  ;;  %v8066_v41 = vpop.permute.xlu0 %799 }
 0x18e   : > { %805 = vrot.lane.b32.xlu1 %v7747_v34, %s7618_s25  ;;  %v656_v60 = vpop.permute.xlu1 %655 }
 0x18f   : > { %v661_v61 = vsel %vm657_vm3, %v648_v33, %v656_v60  ;;  %v665_v1 = vsel %vm657_vm3, %v656_v60, %v648_v33  ;;  %v1010_v33 = vld [vmem:[%s12941_s4 + $0x18] sm:$0xff] }
 0x190   : > { %753 = vrot.lane.b32.xlu0 %v7860_v3, %s7619_s29  ;;  %v7983_v5 = vmul.f32 %v7959_v50, %v661_v61  ;;  %v7989_v9 = vmul.f32 %v7969_v59, %v665_v1 }
 0x192   : > { %747 = vrot.lane.b32.xlu1 %v7869_v7, %s7619_s29 }
 0x194   : > { %803 = vrot.lane.b32.xlu0 %v7739_v31, %s7618_s25 }
 0x196   : > { %755 = vrot.lane.b32.xlu1 %v7872_v8, %s7619_s29 }
 0x198   : > { %847 = vrot.lane.b32.xlu0 %v7721_v17, %s7619_s29 }
 0x19a   : > { %849 = vrot.lane.b32.xlu1 %v7723_v22, %s7619_s29 }
 0x19c   : > { %855 = vrot.lane.b32.xlu0 %v7727_v24, %s7619_s29 }
 0x19e   : > { %857 = vrot.lane.b32.xlu1 %v7731_v25, %s7619_s29 }
 0x1a0   : > { %851 = vrot.lane.b32.xlu0 %v7735_v28, %s7619_s29 }
 0x1a2   : > { %853 = vrot.lane.b32.xlu1 %v7741_v32, %s7619_s29 }
 0x1a4   : > { %859 = vrot.lane.b32.xlu0 %v7739_v31, %s7619_s29 }
 0x1a6   : > { %861 = vrot.lane.b32.xlu1 %v7747_v34, %s7619_s29 }
 0x1a8   : > { %895 = vrot.lane.b32.xlu0 %v7916_v26, %s7618_s25 }
 0x1aa   : > { %897 = vrot.lane.b32.xlu1 %v7919_v27, %s7618_s25 }
 0x1ac   : > { %903 = vrot.lane.b32.xlu0 %v7922_v29, %s7618_s25 }
 0x1ae   : > { %905 = vrot.lane.b32.xlu1 %v7925_v30, %s7618_s25 }
 0x1b0   : > { %899 = vrot.lane.b32.xlu0 %v7980_v4, %s7618_s25 }
 0x1b2   : > { %901 = vrot.lane.b32.xlu1 %v7983_v5, %s7618_s25 }
 0x1b4   : > { %907 = vrot.lane.b32.xlu0 %v7986_v6, %s7618_s25 }
 0x1b6   : > { %909 = vrot.lane.b32.xlu1 %v7989_v9, %s7618_s25 }
 0x1b8   : > { %951 = vrot.lane.b32.xlu0 %v7916_v26, %s7619_s29 }
 0x1ba   : > { %953 = vrot.lane.b32.xlu1 %v7919_v27, %s7619_s29 }
 0x1bc   : > { %959 = vrot.lane.b32.xlu0 %v7922_v29, %s7619_s29 }
 0x1be   : > { %961 = vrot.lane.b32.xlu1 %v7925_v30, %s7619_s29 }
 0x1c0   : > { %955 = vrot.lane.b32.xlu0 %v7980_v4, %s7619_s29 }
 0x1c2   : > { %957 = vrot.lane.b32.xlu1 %v7983_v5, %s7619_s29 }
 0x1c4   : > { %963 = vrot.lane.b32.xlu0 %v7986_v6, %s7619_s29 }
 0x1c6   : > { %965 = vrot.lane.b32.xlu1 %v7989_v9, %s7619_s29 }
 0x1c8   : > { %1049 = vperm.xlu0 %7518, %v1007_v20  }
 0x1ca   : > { %1054 = vperm.xlu1 %7519, %v1008_v21   ;;  %v8081_v21 = vld [vmem:[%s12948_s11 + $0x98] sm:$0xff] }
 0x1cc   : > { %1059 = vperm.xlu0 %7518, %v1009_v23   ;;  %v8086_v23 = vld [vmem:[%s12948_s11 + $0x80] sm:$0xff] }
 0x1ce   : > { %1064 = vperm.xlu1 %7519, %v1010_v33   ;;  %v8091_v33 = vld [vmem:[%s12948_s11 + $0x88] sm:$0xff] }
 0x1e2   : > { %v684_v48 = vpop.permute.xlu0 %683 }
 0x1e4   : > { %v686_v49 = vpop.permute.xlu1 %685 }
 0x1e6   : > { %v692_v60 = vpop.permute.xlu0 %691 }
 0x1e7   : > { %v704_v61 = vsel %vm699_vm4, %v692_v60, %v684_v48  ;;  %v700_v1 = vsel %vm699_vm4, %v684_v48, %v692_v60 }
 0x1e8   : > { %v694_v20 = vpop.permute.xlu1 %693  ;;  %v718_v14 = vmul.f32 %v8091_v33, %v700_v1  ;;  %v717_v37 = vmul.f32 %v8086_v23, %v704_v61  ;;  %v8109_v61 = vld [vmem:[%s12948_s11 + $0xa8] sm:$0xff] }
 0x1e9   : > { %v705_v48 = vsel %vm699_vm4, %v694_v20, %v686_v49  ;;  %v701_v60 = vsel %vm699_vm4, %v686_v49, %v694_v20  ;;  %v8104_v49 = vld [vmem:[%s12948_s11 + $0xa0] sm:$0xff] }
 0x1ea   : > { %v742_v0 = vpop.permute.xlu0 %741  ;;  %v720_v12 = vmul.f32 %v8081_v21, %v701_v60  ;;  %v719_v35 = vmul.f32 %v8076_v15, %v705_v48 }
 0x1ec   : > { %v744_v11 = vpop.permute.xlu1 %743  ;;  %v726_v10 = vpack.c.bf16 %v720_v12, %v718_v14  ;;  %v725_v56 = vpack.c.bf16 %v719_v35, %v717_v37  ;;  %v8123_v37 = vld [vmem:[%s12948_s11 + $0xb8] sm:$0xff] }
 0x1ee   : > { %1104 = vmatprep.subr.bf16.mxu1 %v726_v10  ;;  %v750_v55 = vpop.permute.xlu0 %749  ;;  %v8118_v10 = vld [vmem:[%s12948_s11 + $0xb0] sm:$0xff] }
 0x1ef   : > { %1105 = vmatpush1.bf16.msra.mxu1 %v725_v56 }
 0x1f0   : > { %v752_v59 = vpop.permute.xlu1 %751 }
 0x1f2   : > { %v688_v50 = vpop.permute.xlu0 %687 }
 0x1f4   : > { %v690_v54 = vpop.permute.xlu1 %689 }
 0x1f6   : > { %v696_v1 = vpop.permute.xlu0 %695 }
 0x1f7   : > { %v702_v35 = vsel %vm699_vm4, %v688_v50, %v696_v1  ;;  %v706_v56 = vsel %vm699_vm4, %v696_v1, %v688_v50 }
 0x1f8   : > { %v698_v12 = vpop.permute.xlu1 %697  ;;  %v721_v48 = vmul.f32 %v8104_v49, %v706_v56  ;;  %v722_v50 = vmul.f32 %v8109_v61, %v702_v35  ;;  %v763_v35 = vsel %vm757_vm5, %v752_v59, %v744_v11 }
 0x1f9   : > { %v703_v14 = vsel %vm699_vm4, %v690_v54, %v698_v12  ;;  %v707_v20 = vsel %vm699_vm4, %v698_v12, %v690_v54  ;;  %v8139_v54 = vld [vmem:[%s12948_s11 + $0xd8] sm:$0xff]  ;;  %v13064_v12 = vpack.c.bf16 %v7820_v53, %v7817_v52  ;;  %v13065_v53 = vpack.c.bf16 %v7814_v51, %v7805_v47  ;;  %v8183_v51 = vld [vmem:[%s12948_s11 + $0xe0] sm:$0xff] }
 0x1fa   : > { %v723_v60 = vmul.f32 %v8118_v10, %v707_v20  ;;  %v724_v1 = vmul.f32 %v8123_v37, %v703_v14  ;;  %v796_v46 = vpop.permute.xlu0 %795  ;;  %v8149_v14 = vld [vmem:[%s12948_s11 + $0xc8] sm:$0xff]  ;;  %v8156_v20 = vld [vmem:[%s12948_s11 + $0xd0] sm:$0xff]  ;;  %v807_v47 = vsel %vm699_vm4, %v8064_v38, %v8066_v41 }
 0x1fc   : > { %v8133_v19 = vpop.permute.xlu1 %797  ;;  %v728_v16 = vpack.c.bf16 %v724_v1, %v722_v50  ;;  %v727_v18 = vpack.c.bf16 %v723_v60, %v721_v48  ;;  %v778_v48 = vmul.f32 %v8139_v54, %v763_v35  ;;  %v8167_v50 = vld [vmem:[%s12948_s11 + $0xc0] sm:$0xff]  ;;  %v758_v60 = vsel %vm757_vm5, %v742_v0, %v750_v55 }
 0x1fd   : > { %v775_v35 = vmul.f32 %v8167_v50, %v758_v60  ;;  %v808_v60 = vsel %vm699_vm4, %v7937_v40, %v7943_v42 }
 0x1fe   : > { %1106 = vmatprep.subr.bf16.mxu1 %v728_v16  ;;  %v746_v13 = vpop.permute.xlu0 %745  ;;  %v762_v16 = vsel %vm757_vm5, %v750_v55, %v742_v0 }
 0x1ff   : > { %1107 = vmatpush1.bf16.msra.mxu1 %v727_v18  ;;  %v759_v18 = vsel %vm757_vm5, %v744_v11, %v752_v59  ;;  %v776_v1 = vmul.f32 %v8149_v14, %v762_v16  ;;  %v13066_v11 = vpack.c.bf16 %v7872_v8, %v7860_v3  ;;  %v8189_v3 = vld [vmem:[%s12948_s11 + $0xe8] sm:$0xff] }
 0x200   : > { %v806_v56 = vpop.permute.xlu1 %805  ;;  %1108 = vmatprep.subr.bf16.mxu1 %v13064_v12  ;;  %v777_v59 = vmul.f32 %v8156_v20, %v759_v18  ;;  %v13067_v18 = vpack.c.bf16 %v7869_v7, %v7857_v2  ;;  %v811_v2 = vsel %vm699_vm4, %v8066_v41, %v8064_v38 }
 0x201   : > { %v784_v55 = vpack.c.bf16 %v778_v48, %v776_v1  ;;  %v8201_v48 = vld [vmem:[%s12948_s11 + $0xf0] sm:$0xff] }
 0x202   : > { %v754_v52 = vpop.permute.xlu0 %753 }
 0x203   : > { %1109 = vmatpush1.bf16.msra.mxu1 %v13065_v53  ;;  %v760_v8 = vsel %vm757_vm5, %v746_v13, %v754_v52  ;;  %v764_v16 = vsel %vm757_vm5, %v754_v52, %v746_v13  ;;  %v8206_v53 = vld [vmem:[%s12948_s11 + $0xf8] sm:$0xff]  ;;  %v824_v13 = vmul.f32 %v8091_v33, %v807_v47  ;;  %v812_v47 = vsel %vm699_vm4, %v7943_v42, %v7937_v40 }
 0x204   : > { %v748_v12 = vpop.permute.xlu1 %747  ;;  %1110 = vmatprep.subr.bf16.mxu1 %v13066_v11  ;;  %v783_v11 = vpack.c.bf16 %v777_v59, %v775_v35  ;;  %v780_v63 = vmul.f32 %v8189_v3, %v764_v16  ;;  %v810_v16 = vsel %vm699_vm4, %v8133_v19, %v806_v56  ;;  %v825_v40 = vmul.f32 %v8076_v15, %v812_v47 }
 0x205   : > { %v840_v47 = vpack.c.bf16 %v7731_v25, %v7727_v24 }
 0x206   : > { %v804_v0 = vpop.permute.xlu0 %803 }
 0x207   : > { %1111 = vmatpush1.bf16.msra.mxu1 %v13067_v18  ;;  %v779_v18 = vmul.f32 %v8183_v51, %v760_v8  ;;  %v809_v41 = vsel %vm699_vm4, %v796_v46, %v804_v0  ;;  %v823_v8 = vmul.f32 %v8086_v23, %v811_v2 }
 0x208   : > { %v756_v7 = vpop.permute.xlu1 %755  ;;  %1112 = vmatprep.subr.bf16.mxu1 %v784_v55 }
 0x209   : > { %v761_v52 = vsel %vm757_vm5, %v748_v12, %v756_v7  ;;  %v765_v1 = vsel %vm757_vm5, %v756_v7, %v748_v12  ;;  %v826_v12 = vmul.f32 %v8081_v21, %v808_v60  ;;  %v813_v7 = vsel %vm699_vm4, %v804_v0, %v796_v46 }
 0x20a   : > { %v781_v62 = vmul.f32 %v8201_v48, %v761_v52  ;;  %v782_v58 = vmul.f32 %v8206_v53, %v765_v1  ;;  %v848_v38 = vpop.permute.xlu0 %847  ;;  %v828_v52 = vmul.f32 %v8109_v61, %v809_v41  ;;  %v827_v42 = vmul.f32 %v8104_v49, %v813_v7 }
 0x20b   : > { %1113 = vmatpush1.bf16.msra.mxu1 %v783_v11  ;;  %v832_v11 = vpack.c.bf16 %v826_v12, %v824_v13  ;;  %v831_v60 = vpack.c.bf16 %v825_v40, %v823_v8  ;;  %v842_v7 = vpack.c.bf16 %v7747_v34, %v7739_v31 }
 0x20c   : > { %v850_v59 = vpop.permute.xlu1 %849  ;;  %v786_v55 = vpack.c.bf16 %v782_v58, %v780_v63  ;;  %v785_v35 = vpack.c.bf16 %v781_v62, %v779_v18  ;;  %v814_v58 = vsel %vm699_vm4, %v806_v56, %v8133_v19  ;;  %v830_v62 = vmul.f32 %v8123_v37, %v810_v16 }
 0x20d   : > { %v829_v2 = vmul.f32 %v8118_v10, %v814_v58 }
 0x20e   : > { %1114 = vmatprep.subr.bf16.mxu1 %v786_v55  ;;  %v856_v1 = vpop.permute.xlu0 %855  ;;  %v834_v0 = vpack.c.bf16 %v830_v62, %v828_v52  ;;  %v839_v55 = vpack.c.bf16 %v7723_v22, %v7721_v17 }
 0x20f   : > { %1115 = vmatpush1.bf16.msra.mxu1 %v785_v35  ;;  %v833_v18 = vpack.c.bf16 %v829_v2, %v827_v42  ;;  %v867_v12 = vsel %vm757_vm5, %v856_v1, %v848_v38 }
 0x210   : > { %v858_v63 = vpop.permute.xlu1 %857  ;;  %1116 = vmatprep.subr.bf16.mxu1 %v832_v11  ;;  %v863_v11 = vsel %vm757_vm5, %v848_v38, %v856_v1  ;;  %v880_v40 = vmul.f32 %v8149_v14, %v867_v12 }
 0x211   : > { %v868_v19 = vsel %vm757_vm5, %v858_v63, %v850_v59  ;;  %v864_v35 = vsel %vm757_vm5, %v850_v59, %v858_v63  ;;  %v841_v63 = vpack.c.bf16 %v7741_v32, %v7735_v28  ;;  %v879_v38 = vmul.f32 %v8167_v50, %v863_v11 }
 0x212   : > { %v852_v46 = vpop.permute.xlu0 %851  ;;  %v882_v8 = vmul.f32 %v8139_v54, %v868_v19  ;;  %v881_v62 = vmul.f32 %v8156_v20, %v864_v35 }
 0x213   : > { %1117 = vmatpush1.bf16.msra.mxu1 %v831_v60 }
 0x214   : > { %v854_v13 = vpop.permute.xlu1 %853  ;;  %1118 = vmatprep.subr.bf16.mxu1 %v834_v0  ;;  %v888_v2 = vpack.c.bf16 %v882_v8, %v880_v40 }
 0x216   : > { %v860_v41 = vpop.permute.xlu0 %859 }
 0x217   : > { %1119 = vmatpush1.bf16.msra.mxu1 %v833_v18  ;;  %v869_v59 = vsel %vm757_vm5, %v860_v41, %v852_v46  ;;  %v865_v1 = vsel %vm757_vm5, %v852_v46, %v860_v41 }
 0x218   : > { %v862_v56 = vpop.permute.xlu1 %861  ;;  %1120 = vmatprep.subr.bf16.mxu1 %v840_v47  ;;  %v884_v18 = vmul.f32 %v8189_v3, %v869_v59  ;;  %v883_v41 = vmul.f32 %v8183_v51, %v865_v1 }
 0x219   : > { %v870_v52 = vsel %vm757_vm5, %v862_v56, %v854_v13  ;;  %v866_v42 = vsel %vm757_vm5, %v854_v13, %v862_v56  ;;  %v887_v56 = vpack.c.bf16 %v881_v62, %v879_v38 }
 0x21a   : > { %v896_v16 = vpop.permute.xlu0 %895  ;;  %v886_v60 = vmul.f32 %v8206_v53, %v870_v52  ;;  %v885_v19 = vmul.f32 %v8201_v48, %v866_v42 }
 0x21b   : > { %1121 = vmatpush1.bf16.msra.mxu1 %v839_v55 }
 0x21c   : > { %v898_v58 = vpop.permute.xlu1 %897  ;;  %1122 = vmatprep.subr.bf16.mxu1 %v842_v7  ;;  %v890_v46 = vpack.c.bf16 %v886_v60, %v884_v18  ;;  %v889_v62 = vpack.c.bf16 %v885_v19, %v883_v41 }
 0x21e   : > { %v904_v0 = vpop.permute.xlu0 %903 }
 0x21f   : > { %1123 = vmatpush1.bf16.msra.mxu1 %v841_v63  ;;  %v911_v12 = vsel %vm699_vm4, %v896_v16, %v904_v0  ;;  %v915_v7 = vsel %vm699_vm4, %v904_v0, %v896_v16 }
 0x220   : > { %v906_v47 = vpop.permute.xlu1 %905  ;;  %1124 = vmatprep.subr.bf16.mxu1 %v888_v2  ;;  %v928_v52 = vmul.f32 %v8091_v33, %v911_v12 }
 0x221   : > { %v912_v13 = vsel %vm699_vm4, %v898_v58, %v906_v47  ;;  %v916_v55 = vsel %vm699_vm4, %v906_v47, %v898_v58  ;;  %v927_v58 = vmul.f32 %v8086_v23, %v915_v7 }
 0x222   : > { %v930_v35 = vmul.f32 %v8081_v21, %v912_v13  ;;  %v900_v8 = vpop.permute.xlu0 %899  ;;  %v929_v40 = vmul.f32 %v8076_v15, %v916_v55 }
 0x223   : > { %1125 = vmatpush1.bf16.msra.mxu1 %v887_v56 }
 0x224   : > { %v902_v11 = vpop.permute.xlu1 %901  ;;  %1126 = vmatprep.subr.bf16.mxu1 %v890_v46  ;;  %v936_v63 = vpack.c.bf16 %v930_v35, %v928_v52  ;;  %v935_v38 = vpack.c.bf16 %v929_v40, %v927_v58  ;;  %v13068_v46 = vpack.c.bf16 %v7925_v30, %v7922_v29 }
 0x226   : > { %v908_v59 = vpop.permute.xlu0 %907 }
 0x227   : > { %v913_v42 = vsel %vm699_vm4, %v900_v8, %v908_v59  ;;  %v917_v60 = vsel %vm699_vm4, %v908_v59, %v900_v8  ;;  %1127 = vmatpush1.bf16.msra.mxu1 %v889_v62  ;;  %v13069_v62 = vpack.c.bf16 %v7919_v27, %v7916_v26 }
 0x228   : > { %v910_v2 = vpop.permute.xlu1 %909  ;;  %1128 = vmatprep.subr.bf16.mxu1 %v936_v63  ;;  %v931_v1 = vmul.f32 %v8104_v49, %v917_v60  ;;  %v932_v18 = vmul.f32 %v8109_v61, %v913_v42  ;;  %v13070_v63 = vpack.c.bf16 %v7989_v9, %v7986_v6  ;;  %v13071_v6 = vpack.c.bf16 %v7983_v5, %v7980_v4  ;;  %v7533_v9 = vld [vmem:[%s12940_s3 + $0x1c] ss:$12 sps:$4 sm:$0xff]  }
 0x229   : > { %v914_v16 = vsel %vm699_vm4, %v902_v11, %v910_v2  ;;  %v918_v0 = vsel %vm699_vm4, %v910_v2, %v902_v11  ;;  %v7530_v2 = vld [vmem:[%s12940_s3] ss:$12 sps:$4 sm:$0xff]  }
 0x22a   : > { %v933_v47 = vmul.f32 %v8118_v10, %v918_v0  ;;  %v934_v19 = vmul.f32 %v8123_v37, %v914_v16  ;;  %v952_v12 = vpop.permute.xlu0 %951 }
 0x22b   : > { %1129 = vmatpush1.bf16.msra.mxu1 %v935_v38 }
 0x22c   : > { %v954_v13 = vpop.permute.xlu1 %953  ;;  %v938_v56 = vpack.c.bf16 %v934_v19, %v932_v18  ;;  %v937_v55 = vpack.c.bf16 %v933_v47, %v931_v1 }
 0x22e   : > { %v960_v35 = vpop.permute.xlu0 %959  ;;  %1130 = vmatprep.subr.bf16.mxu1 %v938_v56  ;;  %v7535_v56 = vld [vmem:[%s12940_s3 + $0x18] ss:$12 sps:$4 sm:$0xff]  }
 0x22f   : > { %1131 = vmatpush1.bf16.msra.mxu1 %v937_v55  ;;  %v971_v41 = vsel %vm757_vm5, %v960_v35, %v952_v12  ;;  %v967_v29 = vsel %vm757_vm5, %v952_v12, %v960_v35  ;;  %v13072_v55 = vmov 0   ;;  %v7536_v35 = vld [vmem:[%s12940_s3 + $0x8] ss:$12 sps:$4 sm:$0xff]  }
 0x230   : > { %v962_v8 = vpop.permute.xlu1 %961  ;;  %1132 = vmatprep.subr.bf16.mxu1 %v13068_v46  ;;  %v984_v30 = vmul.f32 %v8149_v14, %v971_v41  ;;  %v983_v26 = vmul.f32 %v8167_v50, %v967_v29 }
 0x231   : > { %v972_v7 = vsel %vm757_vm5, %v962_v8, %v954_v13  ;;  %v968_v52 = vsel %vm757_vm5, %v954_v13, %v962_v8  ;;  %v7537_v8 = vld [vmem:[%s12940_s3 + $0x20] ss:$12 sps:$4 sm:$0xff]  }
 0x232   : > { %v986_v11 = vmul.f32 %v8139_v54, %v972_v7  ;;  %v956_v40 = vpop.permute.xlu0 %955  ;;  %v985_v58 = vmul.f32 %v8156_v20, %v968_v52 }
 0x233   : > { %1133 = vmatpush1.bf16.msra.mxu1 %v13069_v62 }
 0x234   : > { %v958_v59 = vpop.permute.xlu1 %957  ;;  %1134 = vmatprep.subr.bf16.mxu1 %v13070_v63  ;;  %v992_v60 = vpack.c.bf16 %v986_v11, %v984_v30  ;;  %v991_v38 = vpack.c.bf16 %v985_v58, %v983_v26 }
 0x236   : > { %v964_v42 = vpop.permute.xlu0 %963 }
 0x237   : > { %v969_v27 = vsel %vm757_vm5, %v956_v40, %v964_v42  ;;  %v973_v16 = vsel %vm757_vm5, %v964_v42, %v956_v40  ;;  %1135 = vmatpush1.bf16.msra.mxu1 %v13071_v6 }
 0x238   : > { %v966_v0 = vpop.permute.xlu1 %965  ;;  %1157 = vmatprep.subr.bf16.mxu1 %v992_v60  ;;  %v987_v47 = vmul.f32 %v8183_v51, %v969_v27  ;;  %v988_v19 = vmul.f32 %v8189_v3, %v973_v16 }
 0x239   : > { %v970_v1 = vsel %vm757_vm5, %v958_v59, %v966_v0  ;;  %v974_v18 = vsel %vm757_vm5, %v966_v0, %v958_v59 }
 0x23a   : > { %v989_v4 = vmul.f32 %v8201_v48, %v970_v1  ;;  %v990_v5 = vmul.f32 %v8206_v53, %v974_v18  ;;  %1137 = vmatmul.mubr.bf16.vlgmr.msra.gmra.mrb[0].mxu1 %v7530_v2 }
 0x23b   : > { %1158 = vmatpush1.bf16.msra.mxu1 %v991_v38  ;;  %1146 = vmatprep.mubr.bf16.mxu1 %v7533_v9 }
 0x23c   : > { %v993_v12 = vpack.c.bf16 %v989_v4, %v987_v47  ;;  %v994_v13 = vpack.c.bf16 %v990_v5, %v988_v19 }
 0x23e   : > { %1159 = vmatprep.subr.bf16.mxu1 %v994_v13 }
 0x23f   : > { %1160 = vmatpush1.bf16.msra.mxu1 %v993_v12 }
 0x242   : > { %1147 = vmatmul.mubr.bf16.gmra.mrb[4].mxu1 %v7535_v56 }
 0x243   : > { %1189 = vmatprep.mubr.bf16.mxu1 %v13072_v55 }
 0x247   : > { %v1050_v46 = vpop.permute.xlu0 %1049 }
 0x249   : > { %v1055_v11 = vpop.permute.xlu1 %1054 }
 0x24a   : > { %6723 = vmatmul.mubr.msk.bf16.vlgmr.msra.gmra.mrb[0].mxu1 %vm1097_vm6, %v7536_v35 }
 0x24b   : > { %1199 = vmatprep.mubr.bf16.mxu1 %v13072_v55  ;;  %v1060_v60 = vpop.permute.xlu0 %1059 }
 0x24d   : > { %v1065_v6 = vpop.permute.xlu1 %1064 }
 0x252   : > { %6724 = vmatmul.mubr.msk.bf16.gmra.mrb[4].mxu1 %vm1097_vm6, %v7537_v8 }
 0x253   : > { %1916 = vmatprep.mubr.bf16.mxu1 %v13072_v55 }
 0x31d   : > { %v1191_v41 = vpop.f32.mrb[0].mxu1 }
 0x31e   : > { %v7336_v7 = vadd.f32 %v1191_v41, %v1050_v46  ;;  %v1193_v52 = vpop.f32.mrb[1].mxu1 }
 0x31f   : > { %v1195_v40 = vpop.f32.mrb[2].mxu1  ;;  %v7337_v29 = vadd.f32 %v1193_v52, %v1050_v46 }
 0x320   : > { %v8358_v62 = vmax.f32 %v7336_v7, 0.0  ;;  %v7338_v30 = vadd.f32 %v1195_v40, %v1055_v11  ;;  %v1197_v59 = vpop.f32.mrb[3].mxu1 }
 0x321   : > { %v7339_v58 = vadd.f32 %v1197_v59, %v1055_v11  ;;  %v8364_v42 = vmax.f32 %v7337_v29, 0.0 }
 0x322   : > { %v8360_v63 = vmax.f32 %v7338_v30, 0.0  ;;  %1218 = vrot.lane.b32.xlu0 %v8358_v62, %s7616_s23 }
 0x323   : > { %v8368_v26 = vmax.f32 %v7339_v58, 0.0  ;;  %v8643_v58 = vld [vmem:[%s12948_s11 + $0x98] sm:$0xff] }
 0x324   : > { %1220 = vrot.lane.b32.xlu1 %v8360_v63, %s7616_s23 }
 0x325   : > { %v1201_v2 = vpop.f32.mrb[4].mxu1 }
 0x326   : > { %v7340_v27 = vadd.f32 %v1201_v2, %v1060_v60  ;;  %v1203_v16 = vpop.f32.mrb[5].mxu1  ;;  %1226 = vrot.lane.b32.xlu0 %v8364_v42, %s7616_s23 }
 0x327   : > { %v1205_v9 = vpop.f32.mrb[6].mxu1  ;;  %v7341_v38 = vadd.f32 %v1203_v16, %v1060_v60 }
 0x328   : > { %v8372_v0 = vmax.f32 %v7340_v27, 0.0  ;;  %v7342_v1 = vadd.f32 %v1205_v9, %v1065_v6  ;;  %v1207_v18 = vpop.f32.mrb[7].mxu1  ;;  %1228 = vrot.lane.b32.xlu1 %v8368_v26, %s7616_s23 }
 0x329   : > { %v7343_v19 = vadd.f32 %v1207_v18, %v1065_v6  ;;  %v8380_v4 = vmax.f32 %v7341_v38, 0.0  ;;  %v13073_v6 = vld [vmem:[#allocation13_spill] sm:$0xff]  ;;  %v13074_v38 = vld [vmem:[#allocation14_spill] sm:$0xff]  ;;  %v13075_v18 = vld [vmem:[#allocation15_spill] sm:$0xff] }
 0x32a   : > { %v8376_v47 = vmax.f32 %v7342_v1, 0.0  ;;  %1222 = vrot.lane.b32.xlu0 %v8372_v0, %s7616_s23 }
 0x32b   : > { %v8384_v5 = vmax.f32 %v7343_v19, 0.0 }
 0x32c   : > { %1224 = vrot.lane.b32.xlu1 %v8376_v47, %s7616_s23 }
 0x32e   : > { %1230 = vrot.lane.b32.xlu0 %v8380_v4, %s7616_s23 }
 0x330   : > { %1232 = vrot.lane.b32.xlu1 %v8384_v5, %s7616_s23 }
 0x332   : > { %1258 = vrot.lane.b32.xlu0 %v8358_v62, %s7617_s24 }
 0x334   : > { %1260 = vrot.lane.b32.xlu1 %v8360_v63, %s7617_s24 }
 0x336   : > { %1266 = vrot.lane.b32.xlu0 %v8364_v42, %s7617_s24 }
 0x338   : > { %1268 = vrot.lane.b32.xlu1 %v8368_v26, %s7617_s24 }
 0x33a   : > { %1262 = vrot.lane.b32.xlu0 %v8372_v0, %s7617_s24 }
 0x33c   : > { %1264 = vrot.lane.b32.xlu1 %v8376_v47, %s7617_s24 }
 0x33e   : > { %1270 = vrot.lane.b32.xlu0 %v8380_v4, %s7617_s24 }
 0x340   : > { %1404 = vrot.lane.b32.xlu1 %v8360_v63, %s7618_s25 }
 0x342   : > { %1402 = vrot.lane.b32.xlu0 %v8358_v62, %s7618_s25 }
 0x344   : > { %1412 = vrot.lane.b32.xlu1 %v8368_v26, %s7618_s25 }
 0x346   : > { %1410 = vrot.lane.b32.xlu0 %v8364_v42, %s7618_s25 }
 0x348   : > { %1272 = vrot.lane.b32.xlu1 %v8384_v5, %s7617_s24 }
 0x394   : > { %v1219_v12 = vpop.permute.xlu0 %1218 }
 0x396   : > { %v1221_v13 = vpop.permute.xlu1 %1220 }
 0x398   : > { %v1227_v56 = vpop.permute.xlu0 %1226 }
 0x399   : > { %v1234_v35 = vsel %vm616_vm2, %v1219_v12, %v1227_v56  ;;  %v1238_v8 = vsel %vm616_vm2, %v1227_v56, %v1219_v12  ;;  %v13086_v56 = vld [vmem:[#allocation21_spill] sm:$0xff] }
 0x39a   : > { %v1229_v46 = vpop.permute.xlu1 %1228  ;;  %v8419_v41 = vmul.f32 %v1238_v8, %v7783_v39  ;;  %v8431_v29 = vmul.f32 %v1234_v35, %v7797_v44 }
 0x39b   : > { %v1235_v7 = vsel %vm616_vm2, %v1221_v13, %v1229_v46  ;;  %v1239_v52 = vsel %vm616_vm2, %v1229_v46, %v1221_v13 }
 0x39c   : > { %1298 = vrot.lane.b32.xlu0 %v8419_v41, %s7618_s25  ;;  %v1223_v11 = vpop.permute.xlu0 %1222  ;;  %v8428_v40 = vmul.f32 %v1239_v52, %v7792_v43  ;;  %v8434_v30 = vmul.f32 %v1235_v7, %v7802_v45 }
 0x39e   : > { %1300 = vrot.lane.b32.xlu1 %v8428_v40, %s7618_s25  ;;  %v1225_v39 = vpop.permute.xlu1 %1224 }
 0x3a0   : > { %1306 = vrot.lane.b32.xlu0 %v8431_v29, %s7618_s25  ;;  %v1231_v43 = vpop.permute.xlu0 %1230 }
 0x3a1   : > { %v1236_v44 = vsel %vm616_vm2, %v1223_v11, %v1231_v43  ;;  %v1240_v45 = vsel %vm616_vm2, %v1231_v43, %v1223_v11 }
 0x3a2   : > { %1308 = vrot.lane.b32.xlu1 %v8434_v30, %s7618_s25  ;;  %v1233_v60 = vpop.permute.xlu1 %1232  ;;  %v8455_v16 = vmul.f32 %v1240_v45, %v7831_v57  ;;  %v8458_v9 = vmul.f32 %v1236_v44, %v13073_v6  ;;  %v13078_v44 = vld [vmem:[#allocation18_spill] sm:$0xff] }
 0x3a3   : > { %v1237_v2 = vsel %vm616_vm2, %v1225_v39, %v1233_v60  ;;  %v1241_v27 = vsel %vm616_vm2, %v1233_v60, %v1225_v39  ;;  %v13076_v39 = vld [vmem:[#allocation16_spill] sm:$0xff]  ;;  %v13079_v60 = vld [vmem:[#allocation17_spill] sm:$0xff] }
 0x3a4   : > { %v8461_v1 = vmul.f32 %v1241_v27, %v13074_v38  ;;  %v8464_v19 = vmul.f32 %v1237_v2, %v13075_v18  ;;  %1354 = vrot.lane.b32.xlu0 %v8419_v41, %s7619_s29  ;;  %v1259_v12 = vpop.permute.xlu0 %1258  ;;  %v13081_v27 = vld [vmem:[#allocation19_spill] sm:$0xff] }
 0x3a6   : > { %1356 = vrot.lane.b32.xlu1 %v8428_v40, %s7619_s29  ;;  %v1261_v13 = vpop.permute.xlu1 %1260 }
 0x3a8   : > { %1362 = vrot.lane.b32.xlu0 %v8431_v29, %s7619_s29  ;;  %v1267_v35 = vpop.permute.xlu0 %1266 }
 0x3a9   : > { %v1274_v8 = vsel %vm657_vm3, %v1259_v12, %v1267_v35  ;;  %v1278_v46 = vsel %vm657_vm3, %v1267_v35, %v1259_v12  ;;  %v13084_v12 = vld [vmem:[#allocation22_spill] sm:$0xff] }
 0x3aa   : > { %1364 = vrot.lane.b32.xlu1 %v8434_v30, %s7619_s29  ;;  %v1269_v7 = vpop.permute.xlu1 %1268  ;;  %v8487_v43 = vmul.f32 %v13076_v39, %v1274_v8  ;;  %v8490_v45 = vmul.f32 %v13078_v44, %v1278_v46 }
 0x3ab   : > { %v1275_v52 = vsel %vm657_vm3, %v1261_v13, %v1269_v7  ;;  %v1279_v11 = vsel %vm657_vm3, %v1269_v7, %v1261_v13 }
 0x3ac   : > { %13077 = vst [vmem:[#allocation13_spill] sm:$0xff] %v8487_v43  ;;  %v8493_v2 = vmul.f32 %v13079_v60, %v1275_v52  ;;  %v8496_v6 = vmul.f32 %v13081_v27, %v1279_v11  ;;  %1302 = vrot.lane.b32.xlu0 %v8455_v16, %s7618_s25  ;;  %v1263_v13 = vpop.permute.xlu0 %1262  ;;  %v13082_v60 = vld [vmem:[#allocation20_spill] sm:$0xff] }
 0x3ae   : > { %13080 = vst [vmem:[#allocation14_spill] sm:$0xff] %v8493_v2  ;;  %1304 = vrot.lane.b32.xlu1 %v8461_v1, %s7618_s25  ;;  %v1265_v38 = vpop.permute.xlu1 %1264 }
 0x3b0   : > { %1310 = vrot.lane.b32.xlu0 %v8458_v9, %s7618_s25  ;;  %v1271_v8 = vpop.permute.xlu0 %1270 }
 0x3b1   : > { %v1276_v7 = vsel %vm657_vm3, %v1263_v13, %v1271_v8  ;;  %v1280_v52 = vsel %vm657_vm3, %v1271_v8, %v1263_v13  ;;  %v13088_v13 = vld [vmem:[#allocation23_spill] sm:$0xff] }
 0x3b2   : > { %1312 = vrot.lane.b32.xlu1 %v8464_v19, %s7618_s25  ;;  %v8510_v35 = vpop.permute.xlu1 %1404  ;;  %v8531_v27 = vmul.f32 %v13082_v60, %v1276_v7  ;;  %v8534_v18 = vmul.f32 %v13084_v12, %v1280_v52  ;;  %v1618_v12 = vld [vmem:[%s12943_s6] sm:$0xff]  ;;  %v1619_v52 = vld [vmem:[%s12943_s6 + $0x8] sm:$0xff] }
 0x3b4   : > { %1406 = vrot.lane.b32.xlu0 %v8372_v0, %s7618_s25  ;;  %13083 = vst [vmem:[#allocation15_spill] sm:$0xff] %v8531_v27  ;;  %13085 = vst [vmem:[#allocation16_spill] sm:$0xff] %v8534_v18 }
 0x3b6   : > { %1408 = vrot.lane.b32.xlu1 %v8376_v47, %s7618_s25  ;;  %v8516_v46 = vpop.permute.xlu1 %1412 }
 0x3b8   : > { %1358 = vrot.lane.b32.xlu0 %v8455_v16, %s7619_s29 }
 0x3ba   : > { %1416 = vrot.lane.b32.xlu1 %v8384_v5, %s7618_s25  ;;  %v1273_v11 = vpop.permute.xlu1 %1272 }
 0x3bb   : > { %v1277_v39 = vsel %vm657_vm3, %v1265_v38, %v1273_v11  ;;  %v1281_v44 = vsel %vm657_vm3, %v1273_v11, %v1265_v38  ;;  %v1620_v11 = vld [vmem:[%s12943_s6 + $0x10] sm:$0xff] }
 0x3bc   : > { %v8537_v57 = vmul.f32 %v13086_v56, %v1277_v39  ;;  %v8540_v8 = vmul.f32 %v13088_v13, %v1281_v44  ;;  %1366 = vrot.lane.b32.xlu0 %v8458_v9, %s7619_s29  ;;  %v7540_v56 = vld [vmem:[%s12942_s5 + $0x4] ss:$12 sps:$4 sm:$0xff]   ;;  %v1621_v39 = vld [vmem:[%s12943_s6 + $0x18] sm:$0xff]  ;;  %v8617_v44 = vpop.permute.xlu0 %1402 }
 0x3bd   : > { %1746 = vmatprep.mubr.bf16.mxu0 %v7540_v56  ;;  %v8638_v38 = vld [vmem:[%s12948_s11 + $0x90] sm:$0xff] }
 0x3be   : > { %13087 = vst [vmem:[#allocation18_spill] sm:$0xff] %v8537_v57  ;;  %13089 = vst [vmem:[#allocation17_spill] sm:$0xff] %v8540_v8  ;;  %1360 = vrot.lane.b32.xlu1 %v8461_v1, %s7619_s29 }
 0x3c0   : > { %1414 = vrot.lane.b32.xlu0 %v8380_v4, %s7618_s25  ;;  %v8619_v60 = vpop.permute.xlu0 %1410 }
 0x3c2   : > { %1368 = vrot.lane.b32.xlu1 %v8464_v19, %s7619_s29 }
 0x3c4   : > { %1458 = vrot.lane.b32.xlu0 %v8358_v62, %s7619_s29 }
 0x3c6   : > { %1460 = vrot.lane.b32.xlu1 %v8360_v63, %s7619_s29 }
 0x3c8   : > { %1466 = vrot.lane.b32.xlu0 %v8364_v42, %s7619_s29 }
 0x3ca   : > { %1468 = vrot.lane.b32.xlu1 %v8368_v26, %s7619_s29 }
 0x3cc   : > { %1462 = vrot.lane.b32.xlu0 %v8372_v0, %s7619_s29 }
 0x3ce   : > { %1464 = vrot.lane.b32.xlu1 %v8376_v47, %s7619_s29 }
 0x3d0   : > { %1470 = vrot.lane.b32.xlu0 %v8380_v4, %s7619_s29 }
 0x3d2   : > { %1472 = vrot.lane.b32.xlu1 %v8384_v5, %s7619_s29 }
 0x3d4   : > { %1506 = vrot.lane.b32.xlu0 %v8487_v43, %s7618_s25 }
 0x3d6   : > { %1508 = vrot.lane.b32.xlu1 %v8493_v2, %s7618_s25 }
 0x3d8   : > { %1514 = vrot.lane.b32.xlu0 %v8490_v45, %s7618_s25 }
 0x3da   : > { %1516 = vrot.lane.b32.xlu1 %v8496_v6, %s7618_s25 }
 0x3dc   : > { %1510 = vrot.lane.b32.xlu0 %v8531_v27, %s7618_s25 }
 0x3de   : > { %1512 = vrot.lane.b32.xlu1 %v8537_v57, %s7618_s25 }
 0x3e0   : > { %1518 = vrot.lane.b32.xlu0 %v8534_v18, %s7618_s25 }
 0x3e2   : > { %1520 = vrot.lane.b32.xlu1 %v8540_v8, %s7618_s25 }
 0x3e4   : > { %1562 = vrot.lane.b32.xlu0 %v8487_v43, %s7619_s29 }
 0x3e6   : > { %1564 = vrot.lane.b32.xlu1 %v8493_v2, %s7619_s29 }
 0x3e8   : > { %1570 = vrot.lane.b32.xlu0 %v8490_v45, %s7619_s29 }
 0x3ea   : > { %1572 = vrot.lane.b32.xlu1 %v8496_v6, %s7619_s29 }
 0x3ec   : > { %1566 = vrot.lane.b32.xlu0 %v8531_v27, %s7619_s29 }
 0x3ee   : > { %1568 = vrot.lane.b32.xlu1 %v8537_v57, %s7619_s29 }
 0x3f0   : > { %1574 = vrot.lane.b32.xlu0 %v8534_v18, %s7619_s29 }
 0x3f2   : > { %1576 = vrot.lane.b32.xlu1 %v8540_v8, %s7619_s29 }
 0x3f4   : > { %1660 = vperm.xlu0 %7518, %v1618_v12   ;;  %v8624_v12 = vld [vmem:[%s12948_s11 + $0x80] sm:$0xff] }
 0x3f6   : > { %1665 = vperm.xlu1 %7519, %v1619_v52   ;;  %v8629_v52 = vld [vmem:[%s12948_s11 + $0x88] sm:$0xff] }
 0x3f8   : > { %1670 = vperm.xlu0 %7518, %v1620_v11  }
 0x3fa   : > { %1675 = vperm.xlu1 %7519, %v1621_v39  }
 0x40e   : > { %v1299_v13 = vpop.permute.xlu0 %1298 }
 0x410   : > { %v1301_v56 = vpop.permute.xlu1 %1300 }
 0x412   : > { %v1307_v7 = vpop.permute.xlu0 %1306 }
 0x413   : > { %v1314_v11 = vsel %vm699_vm4, %v1299_v13, %v1307_v7  ;;  %v1318_v39 = vsel %vm699_vm4, %v1307_v7, %v1299_v13 }
 0x414   : > { %v1309_v59 = vpop.permute.xlu1 %1308  ;;  %v1330_v32 = vmul.f32 %v8624_v12, %v1318_v39  ;;  %v1331_v7 = vmul.f32 %v8629_v52, %v1314_v11 }
 0x415   : > { %v1315_v34 = vsel %vm699_vm4, %v1301_v56, %v1309_v59  ;;  %v1319_v31 = vsel %vm699_vm4, %v1309_v59, %v1301_v56 }
 0x416   : > { %v1332_v13 = vmul.f32 %v8638_v38, %v1319_v31  ;;  %v1333_v28 = vmul.f32 %v8643_v58, %v1315_v34  ;;  %v1355_v25 = vpop.permute.xlu0 %1354 }
 0x418   : > { %v1338_v24 = vpack.c.bf16 %v1332_v13, %v1330_v32  ;;  %v1357_v22 = vpop.permute.xlu1 %1356  ;;  %v1339_v17 = vpack.c.bf16 %v1333_v28, %v1331_v7 }
 0x41a   : > { %1714 = vmatprep.subr.bf16.mxu0 %v1339_v17  ;;  %v1363_v55 = vpop.permute.xlu0 %1362 }
 0x41b   : > { %1715 = vmatpush1.bf16.msra.mxu0 %v1338_v24 }
 0x41c   : > { %v1365_v27 = vpop.permute.xlu1 %1364 }
 0x41e   : > { %v1303_v57 = vpop.permute.xlu0 %1302 }
 0x420   : > { %v1305_v18 = vpop.permute.xlu1 %1304 }
 0x422   : > { %v1311_v8 = vpop.permute.xlu0 %1310 }
 0x423   : > { %v1316_v59 = vsel %vm699_vm4, %v1303_v57, %v1311_v8  ;;  %v1320_v56 = vsel %vm699_vm4, %v1311_v8, %v1303_v57  ;;  %v1375_v8 = vsel %vm757_vm5, %v1365_v27, %v1357_v22 }
 0x424   : > { %v1313_v31 = vpop.permute.xlu1 %1312  ;;  %v1334_v17 = vmul.f32 %v8104_v49, %v1320_v56  ;;  %v1335_v24 = vmul.f32 %v8109_v61, %v1316_v59  ;;  %v1374_v59 = vsel %vm757_vm5, %v1363_v55, %v1355_v25  ;;  %v1371_v56 = vsel %vm757_vm5, %v1357_v22, %v1365_v27 }
 0x425   : > { %v1317_v34 = vsel %vm699_vm4, %v1305_v18, %v1313_v31  ;;  %v1321_v28 = vsel %vm699_vm4, %v1313_v31, %v1305_v18  ;;  %v13090_v18 = vpack.c.bf16 %v8434_v30, %v8431_v29  ;;  %v1389_v31 = vmul.f32 %v8139_v54, %v1375_v8 }
 0x426   : > { %v1336_v32 = vmul.f32 %v8118_v10, %v1321_v28  ;;  %v1337_v11 = vmul.f32 %v8123_v37, %v1317_v34  ;;  %v1407_v39 = vpop.permute.xlu0 %1406  ;;  %v1370_v28 = vsel %vm757_vm5, %v1355_v25, %v1363_v55  ;;  %v13092_v30 = vpack.c.bf16 %v8464_v19, %v8458_v9 }
 0x427   : > { %v1418_v22 = vsel %vm699_vm4, %v8617_v44, %v8619_v60  ;;  %v13093_v55 = vpack.c.bf16 %v8461_v1, %v8455_v16 }
 0x428   : > { %v1340_v7 = vpack.c.bf16 %v1336_v32, %v1334_v17  ;;  %v1409_v13 = vpop.permute.xlu1 %1408  ;;  %v1341_v43 = vpack.c.bf16 %v1337_v11, %v1335_v24  ;;  %v1387_v17 = vmul.f32 %v8149_v14, %v1374_v59  ;;  %v1388_v24 = vmul.f32 %v8156_v20, %v1371_v56 }
 0x429   : > { %v1419_v20 = vsel %vm699_vm4, %v8510_v35, %v8516_v46  ;;  %v1435_v19 = vmul.f32 %v8091_v33, %v1418_v22  ;;  %v1423_v33 = vsel %vm699_vm4, %v8516_v46, %v8510_v35 }
 0x42a   : > { %1716 = vmatprep.subr.bf16.mxu0 %v1341_v43  ;;  %v1359_v57 = vpop.permute.xlu0 %1358  ;;  %v13091_v43 = vpack.c.bf16 %v8428_v40, %v8419_v41  ;;  %v1395_v41 = vpack.c.bf16 %v1389_v31, %v1387_v17  ;;  %v1386_v40 = vmul.f32 %v8167_v50, %v1370_v28  ;;  %v1422_v50 = vsel %vm699_vm4, %v8619_v60, %v8617_v44 }
 0x42b   : > { %1717 = vmatpush1.bf16.msra.mxu0 %v1340_v7  ;;  %v1437_v8 = vmul.f32 %v8081_v21, %v1419_v20  ;;  %v1436_v35 = vmul.f32 %v8076_v15, %v1423_v33 }
 0x42c   : > { %v1417_v2 = vpop.permute.xlu1 %1416  ;;  %1718 = vmatprep.subr.bf16.mxu0 %v13090_v18  ;;  %v1394_v27 = vpack.c.bf16 %v1388_v24, %v1386_v40 }
 0x42d   : > { %v1421_v56 = vsel %vm699_vm4, %v1409_v13, %v1417_v2  ;;  %v1443_v28 = vpack.c.bf16 %v1437_v8, %v1435_v19  ;;  %v1425_v21 = vsel %vm699_vm4, %v1417_v2, %v1409_v13  ;;  %v1452_v19 = vpack.c.bf16 %v8376_v47, %v8372_v0 }
 0x42e   : > { %v1367_v34 = vpop.permute.xlu0 %1366  ;;  %v1441_v46 = vmul.f32 %v8123_v37, %v1421_v56  ;;  %v8738_v37 = vld [vmem:[%s12948_s11 + $0xd8] sm:$0xff] }
 0x42f   : > { %1719 = vmatpush1.bf16.msra.mxu0 %v13091_v43  ;;  %v1372_v25 = vsel %vm757_vm5, %v1359_v57, %v1367_v34  ;;  %v1376_v14 = vsel %vm757_vm5, %v1367_v34, %v1359_v57 }
 0x430   : > { %v1361_v29 = vpop.permute.xlu1 %1360  ;;  %1720 = vmatprep.subr.bf16.mxu0 %v13092_v30  ;;  %v1390_v1 = vmul.f32 %v8183_v51, %v1372_v25  ;;  %v1391_v11 = vmul.f32 %v8189_v3, %v1376_v14  ;;  %v1434_v3 = vmul.f32 %v8086_v23, %v1422_v50  ;;  %v1453_v14 = vpack.c.bf16 %v8384_v5, %v8380_v4  ;;  %v8775_v4 = vld [vmem:[%s12948_s11 + $0xe8] sm:$0xff] }
 0x432   : > { %v1415_v54 = vpop.permute.xlu0 %1414  ;;  %v1442_v17 = vpack.c.bf16 %v1436_v35, %v1434_v3 }
 0x433   : > { %1721 = vmatpush1.bf16.msra.mxu0 %v13093_v55  ;;  %v1420_v60 = vsel %vm699_vm4, %v1407_v39, %v1415_v54  ;;  %v1424_v31 = vsel %vm699_vm4, %v1415_v54, %v1407_v39  ;;  %v1451_v54 = vpack.c.bf16 %v8368_v26, %v8364_v42  ;;  %v1450_v42 = vpack.c.bf16 %v8360_v63, %v8358_v62  ;;  %v8754_v26 = vld [vmem:[%s12948_s11 + $0xd0] sm:$0xff]  ;;  %v8766_v62 = vld [vmem:[%s12948_s11 + $0xc0] sm:$0xff] }
 0x434   : > { %v1369_v9 = vpop.permute.xlu1 %1368  ;;  %1722 = vmatprep.subr.bf16.mxu0 %v1395_v41  ;;  %v1439_v34 = vmul.f32 %v8109_v61, %v1420_v60  ;;  %v1440_v61 = vmul.f32 %v8118_v10, %v1425_v21  ;;  %v8745_v10 = vld [vmem:[%s12948_s11 + $0xc8] sm:$0xff] }
 0x435   : > { %v1373_v32 = vsel %vm757_vm5, %v1361_v29, %v1369_v9  ;;  %v1377_v16 = vsel %vm757_vm5, %v1369_v9, %v1361_v29  ;;  %v1438_v29 = vmul.f32 %v8104_v49, %v1424_v31 }
 0x436   : > { %v1392_v7 = vmul.f32 %v8201_v48, %v1373_v32  ;;  %v1393_v57 = vmul.f32 %v8206_v53, %v1377_v16  ;;  %v1459_v44 = vpop.permute.xlu0 %1458  ;;  %v1445_v39 = vpack.c.bf16 %v1441_v46, %v1439_v34 }
 0x437   : > { %1723 = vmatpush1.bf16.msra.mxu0 %v1394_v27  ;;  %v1444_v22 = vpack.c.bf16 %v1440_v61, %v1438_v29 }
 0x438   : > { %v1396_v18 = vpack.c.bf16 %v1392_v7, %v1390_v1  ;;  %v1461_v51 = vpop.permute.xlu1 %1460  ;;  %v1397_v59 = vpack.c.bf16 %v1393_v57, %v1391_v11  ;;  %v8788_v7 = vld [vmem:[%s12948_s11 + $0xe0] sm:$0xff] }
 0x43a   : > { %1724 = vmatprep.subr.bf16.mxu0 %v1397_v59  ;;  %v1467_v43 = vpop.permute.xlu0 %1466 }
 0x43b   : > { %1725 = vmatpush1.bf16.msra.mxu0 %v1396_v18  ;;  %v1478_v13 = vsel %vm757_vm5, %v1467_v43, %v1459_v44  ;;  %v1474_v63 = vsel %vm757_vm5, %v1459_v44, %v1467_v43 }
 0x43c   : > { %v1469_v23 = vpop.permute.xlu1 %1468  ;;  %1726 = vmatprep.subr.bf16.mxu0 %v1443_v28  ;;  %v1491_v20 = vmul.f32 %v8745_v10, %v1478_v13  ;;  %v1490_v11 = vmul.f32 %v8766_v62, %v1474_v63  ;;  %v8809_v28 = vld [vmem:[%s12948_s11 + $0xa0] sm:$0xff]  ;;  %v13094_v63 = vpack.c.bf16 %v8496_v6, %v8490_v45 }
 0x43d   : > { %v1479_v49 = vsel %vm757_vm5, %v1469_v23, %v1461_v51  ;;  %v1475_v41 = vsel %vm757_vm5, %v1461_v51, %v1469_v23  ;;  %v8815_v23 = vld [vmem:[%s12948_s11 + $0xa8] sm:$0xff] }
 0x43e   : > { %v1463_v30 = vpop.permute.xlu0 %1462  ;;  %v1493_v40 = vmul.f32 %v8738_v37, %v1479_v49  ;;  %v1492_v9 = vmul.f32 %v8754_v26, %v1475_v41 }
 0x43f   : > { %1727 = vmatpush1.bf16.msra.mxu0 %v1442_v17 }
 0x440   : > { %v1465_v24 = vpop.permute.xlu1 %1464  ;;  %1728 = vmatprep.subr.bf16.mxu0 %v1445_v39  ;;  %v1499_v1 = vpack.c.bf16 %v1493_v40, %v1491_v20  ;;  %v1498_v44 = vpack.c.bf16 %v1492_v9, %v1490_v11  ;;  %v8829_v39 = vld [vmem:[%s12948_s11 + $0xb8] sm:$0xff]  ;;  %v13098_v11 = vld [vmem:[#allocation17_spill] sm:$0xff] }
 0x442   : > { %v1471_v15 = vpop.permute.xlu0 %1470 }
 0x443   : > { %1729 = vmatpush1.bf16.msra.mxu0 %v1444_v22  ;;  %v1480_v5 = vsel %vm757_vm5, %v1471_v15, %v1463_v30  ;;  %v1476_v57 = vsel %vm757_vm5, %v1463_v30, %v1471_v15  ;;  %v8824_v30 = vld [vmem:[%s12948_s11 + $0xb0] sm:$0xff] }
 0x444   : > { %v1473_v2 = vpop.permute.xlu1 %1472  ;;  %1730 = vmatprep.subr.bf16.mxu0 %v1451_v54  ;;  %v1495_v0 = vmul.f32 %v8775_v4, %v1480_v5  ;;  %v1494_v3 = vmul.f32 %v8788_v7, %v1476_v57  ;;  %v13099_v57 = vld [vmem:[#allocation16_spill] sm:$0xff] }
 0x445   : > { %v1481_v55 = vsel %vm757_vm5, %v1473_v2, %v1465_v24  ;;  %v1477_v27 = vsel %vm757_vm5, %v1465_v24, %v1473_v2 }
 0x446   : > { %v1507_v25 = vpop.permute.xlu0 %1506  ;;  %v1497_v32 = vmul.f32 %v8206_v53, %v1481_v55  ;;  %v1496_v53 = vmul.f32 %v8201_v48, %v1477_v27  ;;  %v13095_v27 = vld [vmem:[#allocation14_spill] sm:$0xff] }
 0x447   : > { %1731 = vmatpush1.bf16.msra.mxu0 %v1450_v42 }
 0x448   : > { %v1509_v50 = vpop.permute.xlu1 %1508  ;;  %1732 = vmatprep.subr.bf16.mxu0 %v1453_v14  ;;  %v1501_v59 = vpack.c.bf16 %v1497_v32, %v1495_v0  ;;  %v1500_v34 = vpack.c.bf16 %v1496_v53, %v1494_v3  ;;  %v13096_v32 = vld [vmem:[#allocation13_spill] sm:$0xff]  ;;  %v13100_v0 = vpack.c.bf16 %v13098_v11, %v13099_v57 }
 0x44a   : > { %v1515_v16 = vpop.permute.xlu0 %1514 }
 0x44b   : > { %1733 = vmatpush1.bf16.msra.mxu0 %v1452_v19  ;;  %v1522_v60 = vsel %vm699_vm4, %v1507_v25, %v1515_v16  ;;  %v1526_v56 = vsel %vm699_vm4, %v1515_v16, %v1507_v25  ;;  %v13097_v16 = vpack.c.bf16 %v13095_v27, %v13096_v32  ;;  %v13109_v32 = vld [vmem:[#allocation7_spill] sm:$0xff] }
 0x44c   : > { %v1517_v47 = vpop.permute.xlu1 %1516  ;;  %1734 = vmatprep.subr.bf16.mxu0 %v1499_v1  ;;  %v1539_v48 = vmul.f32 %v8629_v52, %v1522_v60  ;;  %v1538_v46 = vmul.f32 %v8624_v12, %v1526_v56  ;;  %v7538_v60 = vld [vmem:[%s12942_s5] ss:$12 sps:$4 sm:$0xff]   ;;  %v8873_v56 = vld [vmem:[%s12948_s11 + $0xf0] sm:$0xff] }
 0x44d   : > { %v1523_v33 = vsel %vm699_vm4, %v1509_v50, %v1517_v47  ;;  %v1527_v8 = vsel %vm699_vm4, %v1517_v47, %v1509_v50 }
 0x44e   : > { %v1541_v18 = vmul.f32 %v8643_v58, %v1523_v33  ;;  %v1511_v51 = vpop.permute.xlu0 %1510  ;;  %v1540_v43 = vmul.f32 %v8638_v38, %v1527_v8 }
 0x44f   : > { %1735 = vmatpush1.bf16.msra.mxu0 %v1498_v44 }
 0x450   : > { %v1513_v31 = vpop.permute.xlu1 %1512  ;;  %1736 = vmatprep.subr.bf16.mxu0 %v1501_v59  ;;  %v1547_v21 = vpack.c.bf16 %v1541_v18, %v1539_v48  ;;  %v1546_v24 = vpack.c.bf16 %v1540_v43, %v1538_v46  ;;  %v13102_v59 = vld [vmem:[#allocation15_spill] sm:$0xff]  ;;  %v8878_v48 = vld [vmem:[%s12948_s11 + $0xf8] sm:$0xff] }
 0x452   : > { %v1519_v35 = vpop.permute.xlu0 %1518 }
 0x453   : > { %v1524_v17 = vsel %vm699_vm4, %v1511_v51, %v1519_v35  ;;  %v1528_v29 = vsel %vm699_vm4, %v1519_v35, %v1511_v51  ;;  %1737 = vmatpush1.bf16.msra.mxu0 %v1500_v34  ;;  %v13101_v51 = vld [vmem:[#allocation18_spill] sm:$0xff] }
 0x454   : > { %v1521_v61 = vpop.permute.xlu1 %1520  ;;  %1738 = vmatprep.subr.bf16.mxu0 %v1547_v21  ;;  %v1542_v54 = vmul.f32 %v8809_v28, %v1528_v29  ;;  %v1543_v49 = vmul.f32 %v8815_v23, %v1524_v17  ;;  %v13103_v3 = vpack.c.bf16 %v13101_v51, %v13102_v59 }
 0x455   : > { %v1525_v22 = vsel %vm699_vm4, %v1513_v31, %v1521_v61  ;;  %v1529_v15 = vsel %vm699_vm4, %v1521_v61, %v1513_v31  ;;  %v7541_v31 = vld [vmem:[%s12942_s5 + $0x1c] ss:$12 sps:$4 sm:$0xff]  }
 0x456   : > { %v1544_v2 = vmul.f32 %v8824_v30, %v1529_v15  ;;  %v1545_v13 = vmul.f32 %v8829_v39, %v1525_v22  ;;  %v1563_v42 = vpop.permute.xlu0 %1562  ;;  %v7543_v15 = vld [vmem:[%s12942_s5 + $0x18] ss:$12 sps:$4 sm:$0xff]  }
 0x457   : > { %1739 = vmatpush1.bf16.msra.mxu0 %v1546_v24 }
 0x458   : > { %v1548_v41 = vpack.c.bf16 %v1544_v2, %v1542_v54  ;;  %v1565_v40 = vpop.permute.xlu1 %1564  ;;  %v1549_v25 = vpack.c.bf16 %v1545_v13, %v1543_v49  ;;  %v13104_v54 = vmov 0   ;;  %v7544_v49 = vld [vmem:[%s12942_s5 + $0x8] ss:$12 sps:$4 sm:$0xff]   ;;  %v7545_v2 = vld [vmem:[%s12942_s5 + $0x20] ss:$12 sps:$4 sm:$0xff]  }
 0x45a   : > { %v1571_v14 = vpop.permute.xlu0 %1570  ;;  %1740 = vmatprep.subr.bf16.mxu0 %v1549_v25 }
 0x45b   : > { %1741 = vmatpush1.bf16.msra.mxu0 %v1548_v41  ;;  %v1582_v20 = vsel %vm757_vm5, %v1571_v14, %v1563_v42  ;;  %v1578_v45 = vsel %vm757_vm5, %v1563_v42, %v1571_v14 }
 0x45c   : > { %v1573_v55 = vpop.permute.xlu1 %1572  ;;  %1742 = vmatprep.subr.bf16.mxu0 %v13094_v63  ;;  %v1595_v6 = vmul.f32 %v8745_v10, %v1582_v20  ;;  %v1594_v33 = vmul.f32 %v8766_v62, %v1578_v45  ;;  %v13105_v63 = vld [vmem:[#allocation5_spill] sm:$0xff]  ;;  %v13111_v45 = vld [vmem:[#allocation8_spill] sm:$0xff] }
 0x45d   : > { %v1583_v50 = vsel %vm757_vm5, %v1573_v55, %v1565_v40  ;;  %v1579_v9 = vsel %vm757_vm5, %v1565_v40, %v1573_v55 }
 0x45e   : > { %v1597_v5 = vmul.f32 %v8738_v37, %v1583_v50  ;;  %v1567_v19 = vpop.permute.xlu0 %1566  ;;  %v1596_v47 = vmul.f32 %v8754_v26, %v1579_v9 }
 0x45f   : > { %1743 = vmatpush1.bf16.msra.mxu0 %v13097_v16 }
 0x460   : > { %v1569_v1 = vpop.permute.xlu1 %1568  ;;  %1744 = vmatprep.subr.bf16.mxu0 %v13100_v0  ;;  %v1603_v53 = vpack.c.bf16 %v1597_v5, %v1595_v6  ;;  %v1602_v43 = vpack.c.bf16 %v1596_v47, %v1594_v33 }
 0x462   : > { %v1575_v44 = vpop.permute.xlu0 %1574 }
 0x463   : > { %v1580_v8 = vsel %vm757_vm5, %v1567_v19, %v1575_v44  ;;  %v1584_v18 = vsel %vm757_vm5, %v1575_v44, %v1567_v19  ;;  %1745 = vmatpush1.bf16.msra.mxu0 %v13103_v3  ;;  %v13107_v19 = vld [vmem:[#allocation6_spill] sm:$0xff] }
 0x464   : > { %v1577_v34 = vpop.permute.xlu1 %1576  ;;  %1767 = vmatprep.subr.bf16.mxu0 %v1603_v53  ;;  %v1598_v46 = vmul.f32 %v8788_v7, %v1580_v8  ;;  %v1599_v17 = vmul.f32 %v8775_v4, %v1584_v18  ;;  %v13113_v8 = vld [vmem:[#allocation9_spill] sm:$0xff] }
 0x465   : > { %v1581_v35 = vsel %vm757_vm5, %v1569_v1, %v1577_v34  ;;  %v1585_v21 = vsel %vm757_vm5, %v1577_v34, %v1569_v1 }
 0x466   : > { %v1600_v29 = vmul.f32 %v8873_v56, %v1581_v35  ;;  %v1601_v61 = vmul.f32 %v8878_v48, %v1585_v21  ;;  %1747 = vmatmul.mubr.bf16.vlgmr.msra.gmra.mrb[8].mxu0 %v7538_v60  ;;  %v13119_v21 = vld [vmem:[#allocation12_spill] sm:$0xff] }
 0x467   : > { %1768 = vmatpush1.bf16.msra.mxu0 %v1602_v43  ;;  %1756 = vmatprep.mubr.bf16.mxu0 %v7541_v31  ;;  %v13115_v31 = vld [vmem:[#allocation11_spill] sm:$0xff]  ;;  %v13117_v43 = vld [vmem:[#allocation10_spill] sm:$0xff] }
 0x468   : > { %v1604_v24 = vpack.c.bf16 %v1600_v29, %v1598_v46  ;;  %v1605_v22 = vpack.c.bf16 %v1601_v61, %v1599_v17 }
 0x46a   : > { %1769 = vmatprep.subr.bf16.mxu0 %v1605_v22  ;;  %v8991_v22 = vld [vmem:[%s12948_s11] sm:$0xff] }
 0x46b   : > { %1770 = vmatpush1.bf16.msra.mxu0 %v1604_v24 }
 0x46e   : > { %1757 = vmatmul.mubr.bf16.gmra.mrb[12].mxu0 %v7543_v15 }
 0x46f   : > { %1799 = vmatprep.mubr.bf16.mxu0 %v13104_v54 }
 0x473   : > { %v1661_v13 = vpop.permute.xlu0 %1660 }
 0x475   : > { %v1666_v25 = vpop.permute.xlu1 %1665 }
 0x476   : > { %6787 = vmatmul.mubr.msk.bf16.vlgmr.msra.gmra.mrb[8].mxu0 %vm1097_vm6, %v7544_v49  ;;  %v8996_v49 = vld [vmem:[%s12948_s11 + $0x8] sm:$0xff] }
 0x477   : > { %1809 = vmatprep.mubr.bf16.mxu0 %v13104_v54  ;;  %v1671_v1 = vpop.permute.xlu0 %1670  ;;  %13121 = vst [vmem:[#allocation16_spill] sm:$0xff] %v8996_v49 }
 0x479   : > { %v1676_v53 = vpop.permute.xlu1 %1675 }
 0x47e   : > { %6788 = vmatmul.mubr.msk.bf16.gmra.mrb[12].mxu0 %vm1097_vm6, %v7545_v2 }
 0x549   : > { %v1801_v42 = vpop.f32.mrb[8].mxu0 }
 0x54a   : > { %v7344_v41 = vadd.f32 %v1801_v42, %v1661_v13  ;;  %v1803_v40 = vpop.f32.mrb[9].mxu0  ;;  %v9005_v42 = vld [vmem:[%s12948_s11 + $0x10] sm:$0xff] }
 0x54b   : > { %v7345_v14 = vadd.f32 %v1803_v40, %v1661_v13  ;;  %v1805_v55 = vpop.f32.mrb[10].mxu0  ;;  %13122 = vst [vmem:[#allocation18_spill] sm:$0xff] %v9005_v42 }
 0x54c   : > { %v8905_v20 = vadd.f32 %v7344_v41, %v13105_v63  ;;  %v7346_v50 = vadd.f32 %v1805_v55, %v1666_v25  ;;  %v1807_v9 = vpop.f32.mrb[11].mxu0  ;;  %v9010_v41 = vld [vmem:[%s12948_s11 + $0x18] sm:$0xff] }
 0x54d   : > { %v7347_v5 = vadd.f32 %v1807_v9, %v1666_v25  ;;  %v8913_v16 = vadd.f32 %v7345_v14, %v13109_v32  ;;  %13123 = vst [vmem:[#allocation15_spill] sm:$0xff] %v9010_v41  ;;  %v9171_v32 = vld [vmem:[%s12948_s11 + $0x70] sm:$0xff] }
 0x54e   : > { %13106 = vst [vmem:[#allocation19_spill] sm:$0xff] %v8905_v20  ;;  %v8908_v27 = vadd.f32 %v7346_v50, %v13107_v19  ;;  %1961 = vrot.lane.b32.xlu0 %v8905_v20, %s7616_s23  ;;  %13134 = vst [vmem:[#allocation26_spill] sm:$0xff] %v9171_v32 }
 0x54f   : > { %13110 = vst [vmem:[#allocation22_spill] sm:$0xff] %v8913_v16  ;;  %v8916_v6 = vadd.f32 %v7347_v5, %v13111_v45 }
 0x550   : > { %13108 = vst [vmem:[#allocation20_spill] sm:$0xff] %v8908_v27  ;;  %1963 = vrot.lane.b32.xlu1 %v8908_v27, %s7616_s23  ;;  %v8928_v44 = vpack.c.bf16 %v8908_v27, %v8905_v20 }
 0x551   : > { %13112 = vst [vmem:[#allocation21_spill] sm:$0xff] %v8916_v6  ;;  %v1811_v11 = vpop.f32.mrb[12].mxu0  ;;  %v8922_v57 = vpack.c.bf16 %v8916_v6, %v8913_v16 }
 0x552   : > { %v7348_v0 = vadd.f32 %v1811_v11, %v1671_v1  ;;  %v1813_v47 = vpop.f32.mrb[13].mxu0  ;;  %1969 = vrot.lane.b32.xlu0 %v8913_v16, %s7616_s23 }
 0x553   : > { %v7349_v60 = vadd.f32 %v1813_v47, %v1671_v1  ;;  %v1815_v33 = vpop.f32.mrb[14].mxu0  ;;  %1884 = vmatprep.subr.bf16.mxu1 %v8922_v57  ;;  %v9041_v1 = vld [vmem:[%s12948_s11 + $0x20] sm:$0xff] }
 0x554   : > { %v8932_v18 = vadd.f32 %v7348_v0, %v13113_v8  ;;  %v7350_v51 = vadd.f32 %v1815_v33, %v1676_v53  ;;  %v1817_v59 = vpop.f32.mrb[15].mxu0  ;;  %1971 = vrot.lane.b32.xlu1 %v8916_v6, %s7616_s23  ;;  %1885 = vmatpush1.bf16.msra.mxu1 %v8928_v44  ;;  %13124 = vst [vmem:[#allocation5_spill] sm:$0xff] %v9041_v1  ;;  %v9046_v0 = vld [vmem:[%s12948_s11 + $0x28] sm:$0xff]  ;;  %v9060_v33 = vld [vmem:[%s12948_s11 + $0x38] sm:$0xff] }
 0x555   : > { %v7351_v3 = vadd.f32 %v1817_v59, %v1676_v53  ;;  %v8943_v35 = vadd.f32 %v7349_v60, %v13117_v43  ;;  %13125 = vst [vmem:[#allocation6_spill] sm:$0xff] %v9046_v0  ;;  %v9055_v60 = vld [vmem:[%s12948_s11 + $0x30] sm:$0xff]  ;;  %13127 = vst [vmem:[#allocation8_spill] sm:$0xff] %v9060_v33 }
 0x556   : > { %13114 = vst [vmem:[#allocation23_spill] sm:$0xff] %v8932_v18  ;;  %v8938_v34 = vadd.f32 %v7350_v51, %v13115_v31  ;;  %1965 = vrot.lane.b32.xlu0 %v8932_v18, %s7616_s23  ;;  %13126 = vst [vmem:[#allocation7_spill] sm:$0xff] %v9055_v60 }
 0x557   : > { %13118 = vst [vmem:[#allocation13_spill] sm:$0xff] %v8943_v35  ;;  %v8946_v46 = vadd.f32 %v7351_v3, %v13119_v21 }
 0x558   : > { %13116 = vst [vmem:[#allocation14_spill] sm:$0xff] %v8938_v34  ;;  %1967 = vrot.lane.b32.xlu1 %v8938_v34, %s7616_s23  ;;  %v8958_v29 = vpack.c.bf16 %v8938_v34, %v8932_v18 }
 0x559   : > { %13120 = vst [vmem:[#allocation17_spill] sm:$0xff] %v8946_v46  ;;  %v8952_v17 = vpack.c.bf16 %v8946_v46, %v8943_v35 }
 0x55a   : > { %1973 = vrot.lane.b32.xlu0 %v8943_v35, %s7616_s23 }
 0x55b   : > { %1886 = vmatprep.subr.bf16.mxu1 %v8952_v17 }
 0x55c   : > { %1975 = vrot.lane.b32.xlu1 %v8946_v46, %s7616_s23  ;;  %1887 = vmatpush1.bf16.msra.mxu1 %v8958_v29 }
 0x55e   : > { %2001 = vrot.lane.b32.xlu0 %v8905_v20, %s7617_s24 }
 0x560   : > { %2003 = vrot.lane.b32.xlu1 %v8908_v27, %s7617_s24 }
 0x562   : > { %2009 = vrot.lane.b32.xlu0 %v8913_v16, %s7617_s24 }
 0x564   : > { %2011 = vrot.lane.b32.xlu1 %v8916_v6, %s7617_s24 }
 0x566   : > { %2005 = vrot.lane.b32.xlu0 %v8932_v18, %s7617_s24 }
 0x568   : > { %2007 = vrot.lane.b32.xlu1 %v8938_v34, %s7617_s24 }
 0x56a   : > { %2013 = vrot.lane.b32.xlu0 %v8943_v35, %s7617_s24 }
 0x56c   : > { %2147 = vrot.lane.b32.xlu1 %v8908_v27, %s7618_s25 }
 0x56e   : > { %2145 = vrot.lane.b32.xlu0 %v8905_v20, %s7618_s25 }
 0x570   : > { %2155 = vrot.lane.b32.xlu1 %v8916_v6, %s7618_s25 }
 0x572   : > { %2153 = vrot.lane.b32.xlu0 %v8913_v16, %s7618_s25 }
 0x574   : > { %2015 = vrot.lane.b32.xlu1 %v8946_v46, %s7617_s24 }
 0x5c0   : > { %v1962_v61 = vpop.permute.xlu0 %1961 }
 0x5c2   : > { %v1964_v24 = vpop.permute.xlu1 %1963 }
 0x5c4   : > { %v1970_v15 = vpop.permute.xlu0 %1969 }
 0x5c5   : > { %v1977_v2 = vsel %vm616_vm2, %v1962_v61, %v1970_v15  ;;  %v1981_v13 = vsel %vm616_vm2, %v1970_v15, %v1962_v61 }
 0x5c6   : > { %v9013_v40 = vmul.f32 %v8991_v22, %v1981_v13  ;;  %v1972_v25 = vpop.permute.xlu1 %1971  ;;  %v9020_v63 = vmul.f32 %v8996_v49, %v1977_v2  ;;  %v9093_v13 = vld [vmem:[%s12948_s11 + $0x40] sm:$0xff] }
 0x5c7   : > { %v1978_v14 = vsel %vm616_vm2, %v1964_v24, %v1972_v25  ;;  %v1982_v55 = vsel %vm616_vm2, %v1972_v25, %v1964_v24  ;;  %13128 = vst [vmem:[#allocation9_spill] sm:$0xff] %v9093_v13 }
 0x5c8   : > { %v9023_v50 = vmul.f32 %v9005_v42, %v1982_v55  ;;  %v9026_v9 = vmul.f32 %v9010_v41, %v1978_v14  ;;  %2041 = vrot.lane.b32.xlu0 %v9013_v40, %s7618_s25  ;;  %v1966_v5 = vpop.permute.xlu0 %1965  ;;  %v9098_v14 = vld [vmem:[%s12948_s11 + $0x48] sm:$0xff] }
 0x5c9   : > { %13129 = vst [vmem:[#allocation11_spill] sm:$0xff] %v9098_v14 }
 0x5ca   : > { %2043 = vrot.lane.b32.xlu1 %v9023_v50, %s7618_s25  ;;  %v1968_v19 = vpop.permute.xlu1 %1967 }
 0x5cc   : > { %2049 = vrot.lane.b32.xlu0 %v9020_v63, %s7618_s25  ;;  %v1974_v11 = vpop.permute.xlu0 %1973 }
 0x5cd   : > { %v1979_v47 = vsel %vm616_vm2, %v1966_v5, %v1974_v11  ;;  %v1983_v53 = vsel %vm616_vm2, %v1974_v11, %v1966_v5  ;;  %v9112_v11 = vld [vmem:[%s12948_s11 + $0x58] sm:$0xff] }
 0x5ce   : > { %2051 = vrot.lane.b32.xlu1 %v9026_v9, %s7618_s25  ;;  %v1976_v8 = vpop.permute.xlu1 %1975  ;;  %v9069_v3 = vmul.f32 %v9041_v1, %v1983_v53  ;;  %v9072_v31 = vmul.f32 %v9046_v0, %v1979_v47  ;;  %13131 = vst [vmem:[#allocation12_spill] sm:$0xff] %v9112_v11 }
 0x5cf   : > { %v1980_v51 = vsel %vm616_vm2, %v1968_v19, %v1976_v8  ;;  %v1984_v59 = vsel %vm616_vm2, %v1976_v8, %v1968_v19  ;;  %v9107_v19 = vld [vmem:[%s12948_s11 + $0x50] sm:$0xff] }
 0x5d0   : > { %v9075_v43 = vmul.f32 %v9055_v60, %v1984_v59  ;;  %v9078_v21 = vmul.f32 %v9060_v33, %v1980_v51  ;;  %2097 = vrot.lane.b32.xlu0 %v9013_v40, %s7619_s29  ;;  %v2002_v61 = vpop.permute.xlu0 %2001  ;;  %13130 = vst [vmem:[#allocation10_spill] sm:$0xff] %v9107_v19 }
 0x5d2   : > { %2099 = vrot.lane.b32.xlu1 %v9023_v50, %s7619_s29  ;;  %v2004_v24 = vpop.permute.xlu1 %2003 }
 0x5d4   : > { %2105 = vrot.lane.b32.xlu0 %v9020_v63, %s7619_s29  ;;  %v2010_v25 = vpop.permute.xlu0 %2009 }
 0x5d5   : > { %v2017_v55 = vsel %vm657_vm3, %v2002_v61, %v2010_v25  ;;  %v2021_v5 = vsel %vm657_vm3, %v2010_v25, %v2002_v61 }
 0x5d6   : > { %2107 = vrot.lane.b32.xlu1 %v9026_v9, %s7619_s29  ;;  %v2012_v47 = vpop.permute.xlu1 %2011  ;;  %v9121_v51 = vmul.f32 %v9093_v13, %v2017_v55  ;;  %v9124_v59 = vmul.f32 %v9098_v14, %v2021_v5  ;;  %v9155_v55 = vld [vmem:[%s12948_s11 + $0x60] sm:$0xff] }
 0x5d7   : > { %v2018_v53 = vsel %vm657_vm3, %v2004_v24, %v2012_v47  ;;  %v2022_v8 = vsel %vm657_vm3, %v2012_v47, %v2004_v24  ;;  %13132 = vst [vmem:[#allocation24_spill] sm:$0xff] %v9155_v55  ;;  %v9162_v24 = vld [vmem:[%s12948_s11 + $0x68] sm:$0xff] }
 0x5d8   : > { %v9127_v61 = vmul.f32 %v9107_v19, %v2018_v53  ;;  %v9130_v25 = vmul.f32 %v9112_v11, %v2022_v8  ;;  %2045 = vrot.lane.b32.xlu0 %v9069_v3, %s7618_s25  ;;  %v2006_v5 = vpop.permute.xlu0 %2005  ;;  %13133 = vst [vmem:[#allocation25_spill] sm:$0xff] %v9162_v24  ;;  %v9176_v11 = vld [vmem:[%s12948_s11 + $0x78] sm:$0xff] }
 0x5d9   : > { %13135 = vst [vmem:[#allocation27_spill] sm:$0xff] %v9176_v11 }
 0x5da   : > { %2047 = vrot.lane.b32.xlu1 %v9075_v43, %s7618_s25  ;;  %v2008_v2 = vpop.permute.xlu1 %2007 }
 0x5dc   : > { %2053 = vrot.lane.b32.xlu0 %v9072_v31, %s7618_s25  ;;  %v2014_v53 = vpop.permute.xlu0 %2013 }
 0x5dd   : > { %v2019_v15 = vsel %vm657_vm3, %v2006_v5, %v2014_v53  ;;  %v2023_v45 = vsel %vm657_vm3, %v2014_v53, %v2006_v5 }
 0x5de   : > { %2055 = vrot.lane.b32.xlu1 %v9078_v21, %s7618_s25  ;;  %v9144_v47 = vpop.permute.xlu1 %2147  ;;  %v9185_v53 = vmul.f32 %v9155_v55, %v2019_v15  ;;  %v9188_v13 = vmul.f32 %v9162_v24, %v2023_v45  ;;  %v7548_v45 = vld [vmem:[%s12940_s3 + $0x34] ss:$12 sps:$4 sm:$0xff]  }
 0x5df   : > { %2491 = vmatprep.mubr.bf16.mxu0 %v7548_v45  ;;  %v6860_v45 = vld [vmem:[%s12941_s4 + $0x38] sm:$0xff] }
 0x5e0   : > { %2149 = vrot.lane.b32.xlu0 %v8932_v18, %s7618_s25  ;;  %v9271_v15 = vpop.permute.xlu0 %2145 }
 0x5e2   : > { %2151 = vrot.lane.b32.xlu1 %v8938_v34, %s7618_s25  ;;  %v9150_v8 = vpop.permute.xlu1 %2155 }
 0x5e4   : > { %2101 = vrot.lane.b32.xlu0 %v9069_v3, %s7619_s29 }
 0x5e6   : > { %2159 = vrot.lane.b32.xlu1 %v8946_v46, %s7618_s25  ;;  %v2016_v19 = vpop.permute.xlu1 %2015 }
 0x5e7   : > { %v2020_v14 = vsel %vm657_vm3, %v2008_v2, %v2016_v19  ;;  %v2024_v5 = vsel %vm657_vm3, %v2016_v19, %v2008_v2  ;;  %v6858_v19 = vld [vmem:[%s12941_s4 + $0x28] sm:$0xff]  ;;  %v2154_v2 = vpop.permute.xlu0 %2153 }
 0x5e8   : > { %v9191_v33 = vmul.f32 %v9171_v32, %v2020_v14  ;;  %v9194_v60 = vmul.f32 %v9176_v11, %v2024_v5  ;;  %2109 = vrot.lane.b32.xlu0 %v9072_v31, %s7619_s29  ;;  %v6857_v14 = vld [vmem:[%s12941_s4 + $0x20] sm:$0xff]  ;;  %v6859_v5 = vld [vmem:[%s12941_s4 + $0x30] sm:$0xff] }
 0x5ea   : > { %2103 = vrot.lane.b32.xlu1 %v9075_v43, %s7619_s29 }
 0x5ec   : > { %2157 = vrot.lane.b32.xlu0 %v8943_v35, %s7618_s25 }
 0x5ee   : > { %2111 = vrot.lane.b32.xlu1 %v9078_v21, %s7619_s29 }
 0x5f0   : > { %2201 = vrot.lane.b32.xlu0 %v8905_v20, %s7619_s29 }
 0x5f2   : > { %2203 = vrot.lane.b32.xlu1 %v8908_v27, %s7619_s29 }
 0x5f4   : > { %2209 = vrot.lane.b32.xlu0 %v8913_v16, %s7619_s29 }
 0x5f6   : > { %2211 = vrot.lane.b32.xlu1 %v8916_v6, %s7619_s29 }
 0x5f8   : > { %2205 = vrot.lane.b32.xlu0 %v8932_v18, %s7619_s29 }
 0x5fa   : > { %2207 = vrot.lane.b32.xlu1 %v8938_v34, %s7619_s29 }
 0x5fc   : > { %2213 = vrot.lane.b32.xlu0 %v8943_v35, %s7619_s29 }
 0x5fe   : > { %2215 = vrot.lane.b32.xlu1 %v8946_v46, %s7619_s29 }
 0x600   : > { %2249 = vrot.lane.b32.xlu0 %v9121_v51, %s7618_s25 }
 0x602   : > { %2251 = vrot.lane.b32.xlu1 %v9127_v61, %s7618_s25 }
 0x604   : > { %2257 = vrot.lane.b32.xlu0 %v9124_v59, %s7618_s25 }
 0x606   : > { %2259 = vrot.lane.b32.xlu1 %v9130_v25, %s7618_s25 }
 0x608   : > { %2253 = vrot.lane.b32.xlu0 %v9185_v53, %s7618_s25 }
 0x60a   : > { %2255 = vrot.lane.b32.xlu1 %v9191_v33, %s7618_s25 }
 0x60c   : > { %2261 = vrot.lane.b32.xlu0 %v9188_v13, %s7618_s25 }
 0x60e   : > { %2263 = vrot.lane.b32.xlu1 %v9194_v60, %s7618_s25 }
 0x610   : > { %2305 = vrot.lane.b32.xlu0 %v9121_v51, %s7619_s29 }
 0x612   : > { %2307 = vrot.lane.b32.xlu1 %v9127_v61, %s7619_s29 }
 0x614   : > { %2313 = vrot.lane.b32.xlu0 %v9124_v59, %s7619_s29 }
 0x616   : > { %2315 = vrot.lane.b32.xlu1 %v9130_v25, %s7619_s29 }
 0x618   : > { %2309 = vrot.lane.b32.xlu0 %v9185_v53, %s7619_s29 }
 0x61a   : > { %2311 = vrot.lane.b32.xlu1 %v9191_v33, %s7619_s29 }
 0x61c   : > { %2317 = vrot.lane.b32.xlu0 %v9188_v13, %s7619_s29 }
 0x61e   : > { %2319 = vrot.lane.b32.xlu1 %v9194_v60, %s7619_s29 }
 0x620   : > { %2405 = vperm.xlu0 %7518, %v6857_v14  }
 0x622   : > { %2410 = vperm.xlu1 %7519, %v6858_v19  }
 0x624   : > { %2415 = vperm.xlu0 %7518, %v6859_v5  }
 0x626   : > { %2420 = vperm.xlu1 %7519, %v6860_v45  }
 0x63a   : > { %v2042_v46 = vpop.permute.xlu0 %2041 }
 0x63c   : > { %v2044_v35 = vpop.permute.xlu1 %2043 }
 0x63e   : > { %v2050_v34 = vpop.permute.xlu0 %2049 }
 0x63f   : > { %v2057_v14 = vsel %vm699_vm4, %v2042_v46, %v2050_v34  ;;  %v2061_v18 = vsel %vm699_vm4, %v2050_v34, %v2042_v46 }
 0x640   : > { %v2052_v6 = vpop.permute.xlu1 %2051  ;;  %v2073_v45 = vmul.f32 %v8624_v12, %v2061_v18  ;;  %v2074_v16 = vmul.f32 %v8629_v52, %v2057_v14 }
 0x641   : > { %v2058_v19 = vsel %vm699_vm4, %v2044_v35, %v2052_v6  ;;  %v2062_v5 = vsel %vm699_vm4, %v2052_v6, %v2044_v35 }
 0x642   : > { %v2075_v27 = vmul.f32 %v8638_v38, %v2062_v5  ;;  %v2076_v20 = vmul.f32 %v8643_v58, %v2058_v19  ;;  %v2098_v11 = vpop.permute.xlu0 %2097 }
 0x644   : > { %v2081_v32 = vpack.c.bf16 %v2075_v27, %v2073_v45  ;;  %v2100_v24 = vpop.permute.xlu1 %2099  ;;  %v2082_v55 = vpack.c.bf16 %v2076_v20, %v2074_v16 }
 0x646   : > { %2459 = vmatprep.subr.bf16.mxu0 %v2082_v55  ;;  %v2106_v34 = vpop.permute.xlu0 %2105 }
 0x647   : > { %2460 = vmatpush1.bf16.msra.mxu0 %v2081_v32 }
 0x648   : > { %v2108_v46 = vpop.permute.xlu1 %2107 }
 0x64a   : > { %v2046_v0 = vpop.permute.xlu0 %2045 }
 0x64c   : > { %v2048_v1 = vpop.permute.xlu1 %2047 }
 0x64e   : > { %v2054_v41 = vpop.permute.xlu0 %2053 }
 0x64f   : > { %v2059_v6 = vsel %vm699_vm4, %v2046_v0, %v2054_v41  ;;  %v2063_v18 = vsel %vm699_vm4, %v2054_v41, %v2046_v0  ;;  %v2118_v0 = vsel %vm757_vm5, %v2108_v46, %v2100_v24 }
 0x650   : > { %v2056_v35 = vpop.permute.xlu1 %2055  ;;  %v2077_v27 = vmul.f32 %v8809_v28, %v2063_v18  ;;  %v2078_v16 = vmul.f32 %v8815_v23, %v2059_v6  ;;  %v2117_v6 = vsel %vm757_vm5, %v2106_v34, %v2098_v11  ;;  %v2114_v18 = vsel %vm757_vm5, %v2100_v24, %v2108_v46 }
 0x651   : > { %v2060_v14 = vsel %vm699_vm4, %v2048_v1, %v2056_v35  ;;  %v2064_v20 = vsel %vm699_vm4, %v2056_v35, %v2048_v1  ;;  %v13136_v1 = vpack.c.bf16 %v9026_v9, %v9020_v63  ;;  %v2132_v35 = vmul.f32 %v8738_v37, %v2118_v0 }
 0x652   : > { %v2079_v32 = vmul.f32 %v8824_v30, %v2064_v20  ;;  %v2080_v55 = vmul.f32 %v8829_v39, %v2060_v14  ;;  %v2150_v19 = vpop.permute.xlu0 %2149  ;;  %v2113_v20 = vsel %vm757_vm5, %v2098_v11, %v2106_v34  ;;  %v13138_v9 = vpack.c.bf16 %v9078_v21, %v9072_v31 }
 0x653   : > { %v2161_v24 = vsel %vm699_vm4, %v9271_v15, %v2154_v2  ;;  %v13139_v31 = vpack.c.bf16 %v9075_v43, %v9069_v3  ;;  %v2162_v21 = vsel %vm699_vm4, %v9144_v47, %v9150_v8  ;;  %v2165_v34 = vsel %vm699_vm4, %v2154_v2, %v9271_v15 }
 0x654   : > { %v2083_v5 = vpack.c.bf16 %v2079_v32, %v2077_v27  ;;  %v2152_v45 = vpop.permute.xlu1 %2151  ;;  %v2084_v42 = vpack.c.bf16 %v2080_v55, %v2078_v16  ;;  %v2130_v27 = vmul.f32 %v8745_v10, %v2117_v6  ;;  %v2131_v16 = vmul.f32 %v8754_v26, %v2114_v18 }
 0x656   : > { %2461 = vmatprep.subr.bf16.mxu0 %v2084_v42  ;;  %v2102_v41 = vpop.permute.xlu0 %2101  ;;  %v13137_v42 = vpack.c.bf16 %v9023_v50, %v9013_v40  ;;  %v2138_v32 = vpack.c.bf16 %v2132_v35, %v2130_v27  ;;  %v2129_v40 = vmul.f32 %v8766_v62, %v2113_v20  ;;  %v2180_v35 = vmul.f32 %v8643_v58, %v2162_v21 }
 0x657   : > { %2462 = vmatpush1.bf16.msra.mxu0 %v2083_v5  ;;  %v2178_v5 = vmul.f32 %v8629_v52, %v2161_v24  ;;  %v2166_v52 = vsel %vm699_vm4, %v9150_v8, %v9144_v47  ;;  %v2177_v27 = vmul.f32 %v8624_v12, %v2165_v34 }
 0x658   : > { %v2160_v49 = vpop.permute.xlu1 %2159  ;;  %2463 = vmatprep.subr.bf16.mxu0 %v13136_v1  ;;  %v2137_v0 = vpack.c.bf16 %v2131_v16, %v2129_v40  ;;  %v2179_v47 = vmul.f32 %v8638_v38, %v2166_v52 }
 0x659   : > { %v2168_v58 = vsel %vm699_vm4, %v2160_v49, %v2152_v45 }
 0x65a   : > { %v2110_v14 = vpop.permute.xlu0 %2109  ;;  %v2185_v40 = vpack.c.bf16 %v2179_v47, %v2177_v27 }
 0x65b   : > { %2464 = vmatpush1.bf16.msra.mxu0 %v13137_v42  ;;  %v2115_v50 = vsel %vm757_vm5, %v2102_v41, %v2110_v14  ;;  %v2119_v11 = vsel %vm757_vm5, %v2110_v14, %v2102_v41 }
 0x65c   : > { %v2104_v63 = vpop.permute.xlu1 %2103  ;;  %2465 = vmatprep.subr.bf16.mxu0 %v13138_v9  ;;  %v2133_v43 = vmul.f32 %v8788_v7, %v2115_v50  ;;  %v2134_v1 = vmul.f32 %v8775_v4, %v2119_v11 }
 0x65e   : > { %v2158_v46 = vpop.permute.xlu0 %2157 }
 0x65f   : > { %2466 = vmatpush1.bf16.msra.mxu0 %v13139_v31  ;;  %v2163_v15 = vsel %vm699_vm4, %v2150_v19, %v2158_v46  ;;  %v2167_v9 = vsel %vm699_vm4, %v2158_v46, %v2150_v19  ;;  %v2183_v46 = vmul.f32 %v8824_v30, %v2168_v58 }
 0x660   : > { %v2112_v55 = vpop.permute.xlu1 %2111  ;;  %2467 = vmatprep.subr.bf16.mxu0 %v2138_v32  ;;  %v2182_v16 = vmul.f32 %v8815_v23, %v2163_v15  ;;  %v2186_v32 = vpack.c.bf16 %v2180_v35, %v2178_v5  ;;  %v2181_v50 = vmul.f32 %v8809_v28, %v2167_v9 }
 0x661   : > { %v2116_v41 = vsel %vm757_vm5, %v2104_v63, %v2112_v55  ;;  %v2120_v3 = vsel %vm757_vm5, %v2112_v55, %v2104_v63  ;;  %v2164_v63 = vsel %vm699_vm4, %v2152_v45, %v2160_v49 }
 0x662   : > { %v2135_v6 = vmul.f32 %v8873_v56, %v2116_v41  ;;  %v2136_v18 = vmul.f32 %v8878_v48, %v2120_v3  ;;  %v2202_v2 = vpop.permute.xlu0 %2201  ;;  %v2184_v8 = vmul.f32 %v8829_v39, %v2164_v63  ;;  %v2187_v21 = vpack.c.bf16 %v2183_v46, %v2181_v50 }
 0x663   : > { %2468 = vmatpush1.bf16.msra.mxu0 %v2137_v0 }
 0x664   : > { %v2139_v14 = vpack.c.bf16 %v2135_v6, %v2133_v43  ;;  %v2204_v42 = vpop.permute.xlu1 %2203  ;;  %v2140_v20 = vpack.c.bf16 %v2136_v18, %v2134_v1  ;;  %v2188_v19 = vpack.c.bf16 %v2184_v8, %v2182_v16 }
 0x666   : > { %2469 = vmatprep.subr.bf16.mxu0 %v2140_v20  ;;  %v2210_v24 = vpop.permute.xlu0 %2209 }
 0x667   : > { %2470 = vmatpush1.bf16.msra.mxu0 %v2139_v14  ;;  %v2221_v45 = vsel %vm757_vm5, %v2210_v24, %v2202_v2  ;;  %v2217_v3 = vsel %vm757_vm5, %v2202_v2, %v2210_v24  ;;  %v9416_v24 = vld [vmem:[%s12948_s11 + $0x80] sm:$0xff] }
 0x668   : > { %v2212_v12 = vpop.permute.xlu1 %2211  ;;  %2471 = vmatprep.subr.bf16.mxu0 %v2186_v32  ;;  %v2234_v43 = vmul.f32 %v8745_v10, %v2221_v45  ;;  %v2233_v52 = vmul.f32 %v8766_v62, %v2217_v3  ;;  %v9389_v10 = vld [vmem:[%s12948_s11 + $0x98] sm:$0xff]  ;;  %v9398_v62 = vld [vmem:[%s12948_s11 + $0x88] sm:$0xff] }
 0x669   : > { %v2222_v34 = vsel %vm757_vm5, %v2212_v12, %v2204_v42  ;;  %v2218_v55 = vsel %vm757_vm5, %v2204_v42, %v2212_v12 }
 0x66a   : > { %v2206_v11 = vpop.permute.xlu0 %2205  ;;  %v2236_v5 = vmul.f32 %v8738_v37, %v2222_v34  ;;  %v2235_v1 = vmul.f32 %v8754_v26, %v2218_v55 }
 0x66b   : > { %2472 = vmatpush1.bf16.msra.mxu0 %v2185_v40 }
 0x66c   : > { %v2208_v31 = vpop.permute.xlu1 %2207  ;;  %2473 = vmatprep.subr.bf16.mxu0 %v2188_v19  ;;  %v2241_v35 = vpack.c.bf16 %v2235_v1, %v2233_v52 }
 0x66e   : > { %v2214_v38 = vpop.permute.xlu0 %2213 }
 0x66f   : > { %2474 = vmatpush1.bf16.msra.mxu0 %v2187_v21  ;;  %v2223_v6 = vsel %vm757_vm5, %v2214_v38, %v2206_v11  ;;  %v2219_v26 = vsel %vm757_vm5, %v2206_v11, %v2214_v38 }
 0x670   : > { %v2216_v49 = vpop.permute.xlu1 %2215  ;;  %2475 = vmatprep.subr.bf16.mxu0 %v8922_v57  ;;  %v2237_v16 = vmul.f32 %v8788_v7, %v2219_v26 }
 0x671   : > { %v2224_v41 = vsel %vm757_vm5, %v2216_v49, %v2208_v31  ;;  %v2220_v37 = vsel %vm757_vm5, %v2208_v31, %v2216_v49 }
 0x672   : > { %v2250_v0 = vpop.permute.xlu0 %2249  ;;  %v2240_v18 = vmul.f32 %v8878_v48, %v2224_v41  ;;  %v2239_v14 = vmul.f32 %v8873_v56, %v2220_v37 }
 0x673   : > { %2476 = vmatpush1.bf16.msra.mxu0 %v8928_v44  ;;  %v2242_v44 = vpack.c.bf16 %v2236_v5, %v2234_v43 }
 0x674   : > { %v2252_v57 = vpop.permute.xlu1 %2251  ;;  %2477 = vmatprep.subr.bf16.mxu0 %v8952_v17  ;;  %v2238_v17 = vmul.f32 %v8775_v4, %v2223_v6  ;;  %v9407_v4 = vld [vmem:[%s12948_s11 + $0x90] sm:$0xff]  ;;  %v2243_v8 = vpack.c.bf16 %v2239_v14, %v2237_v16 }
 0x675   : > { %v9455_v6 = vld [vmem:[%s12948_s11 + $0xd0] sm:$0xff] }
 0x676   : > { %v2258_v15 = vpop.permute.xlu0 %2257  ;;  %v2244_v9 = vpack.c.bf16 %v2240_v18, %v2238_v17  ;;  %v13141_v18 = vpack.c.bf16 %v9127_v61, %v9121_v51  ;;  %v13142_v17 = vpack.c.bf16 %v9194_v60, %v9188_v13  ;;  %v7546_v61 = vld [vmem:[%s12940_s3 + $0x30] ss:$12 sps:$4 sm:$0xff]   ;;  %v9487_v60 = vld [vmem:[%s12948_s11 + $0xe8] sm:$0xff] }
 0x677   : > { %2478 = vmatpush1.bf16.msra.mxu0 %v8958_v29  ;;  %v2265_v29 = vsel %vm699_vm4, %v2250_v0, %v2258_v15  ;;  %v2269_v32 = vsel %vm699_vm4, %v2258_v15, %v2250_v0  ;;  %v9466_v15 = vld [vmem:[%s12948_s11 + $0xc0] sm:$0xff] }
 0x678   : > { %v2260_v2 = vpop.permute.xlu1 %2259  ;;  %2479 = vmatprep.subr.bf16.mxu0 %v2242_v44  ;;  %v2282_v47 = vmul.f32 %v9398_v62, %v2265_v29  ;;  %v2281_v7 = vmul.f32 %v9416_v24, %v2269_v32  ;;  %v9482_v29 = vld [vmem:[%s12948_s11 + $0xe0] sm:$0xff] }
 0x679   : > { %v2266_v42 = vsel %vm699_vm4, %v2252_v57, %v2260_v2  ;;  %v2270_v20 = vsel %vm699_vm4, %v2260_v2, %v2252_v57  ;;  %v9438_v57 = vld [vmem:[%s12948_s11 + $0xd8] sm:$0xff] }
 0x67a   : > { %v2284_v27 = vmul.f32 %v9389_v10, %v2266_v42  ;;  %v2254_v63 = vpop.permute.xlu0 %2253  ;;  %v2283_v12 = vmul.f32 %v9407_v4, %v2270_v20  ;;  %v13143_v20 = vpack.c.bf16 %v9191_v33, %v9185_v53 }
 0x67b   : > { %2480 = vmatpush1.bf16.msra.mxu0 %v2241_v35 }
 0x67c   : > { %v2256_v58 = vpop.permute.xlu1 %2255  ;;  %2481 = vmatprep.subr.bf16.mxu0 %v2244_v9  ;;  %v2290_v50 = vpack.c.bf16 %v2284_v27, %v2282_v47  ;;  %v2289_v31 = vpack.c.bf16 %v2283_v12, %v2281_v7  ;;  %v7549_v27 = vld [vmem:[%s12940_s3 + $0x4c] ss:$12 sps:$4 sm:$0xff]  }
 0x67e   : > { %v2262_v40 = vpop.permute.xlu0 %2261 }
 0x67f   : > { %v2267_v11 = vsel %vm699_vm4, %v2254_v63, %v2262_v40  ;;  %v2271_v19 = vsel %vm699_vm4, %v2262_v40, %v2254_v63  ;;  %2482 = vmatpush1.bf16.msra.mxu0 %v2243_v8  ;;  %v7551_v40 = vld [vmem:[%s12940_s3 + $0x48] ss:$12 sps:$4 sm:$0xff]  }
 0x680   : > { %v2264_v46 = vpop.permute.xlu1 %2263  ;;  %2483 = vmatprep.subr.bf16.mxu0 %v2290_v50  ;;  %v2285_v34 = vmul.f32 %v8809_v28, %v2271_v19  ;;  %v2286_v49 = vmul.f32 %v8815_v23, %v2267_v11  ;;  %v13140_v23 = vpack.c.bf16 %v9130_v25, %v9124_v59 }
 0x681   : > { %v2268_v21 = vsel %vm699_vm4, %v2256_v58, %v2264_v46  ;;  %v2272_v38 = vsel %vm699_vm4, %v2264_v46, %v2256_v58 }
 0x682   : > { %v2287_v45 = vmul.f32 %v8824_v30, %v2272_v38  ;;  %v2288_v55 = vmul.f32 %v8829_v39, %v2268_v21  ;;  %v2306_v5 = vpop.permute.xlu0 %2305  ;;  %v9446_v30 = vld [vmem:[%s12948_s11 + $0xc8] sm:$0xff] }
 0x683   : > { %2484 = vmatpush1.bf16.msra.mxu0 %v2289_v31 }
 0x684   : > { %v2291_v0 = vpack.c.bf16 %v2287_v45, %v2285_v34  ;;  %v2308_v41 = vpop.permute.xlu1 %2307  ;;  %v2292_v3 = vpack.c.bf16 %v2288_v55, %v2286_v49 }
 0x686   : > { %v2314_v43 = vpop.permute.xlu0 %2313  ;;  %2485 = vmatprep.subr.bf16.mxu0 %v2292_v3 }
 0x687   : > { %2486 = vmatpush1.bf16.msra.mxu0 %v2291_v0  ;;  %v2325_v39 = vsel %vm757_vm5, %v2314_v43, %v2306_v5  ;;  %v2321_v44 = vsel %vm757_vm5, %v2306_v5, %v2314_v43 }
 0x688   : > { %v2316_v28 = vpop.permute.xlu1 %2315  ;;  %2487 = vmatprep.subr.bf16.mxu0 %v13140_v23  ;;  %v2338_v52 = vmul.f32 %v9446_v30, %v2325_v39  ;;  %v2337_v14 = vmul.f32 %v9466_v15, %v2321_v44 }
 0x689   : > { %v2326_v1 = vsel %vm757_vm5, %v2316_v28, %v2308_v41  ;;  %v2322_v59 = vsel %vm757_vm5, %v2308_v41, %v2316_v28 }
 0x68a   : > { %v2340_v25 = vmul.f32 %v9438_v57, %v2326_v1  ;;  %v2310_v37 = vpop.permute.xlu0 %2309  ;;  %v2339_v2 = vmul.f32 %v9455_v6, %v2322_v59 }
 0x68b   : > { %2488 = vmatpush1.bf16.msra.mxu0 %v13141_v18 }
 0x68c   : > { %v2312_v26 = vpop.permute.xlu1 %2311  ;;  %2489 = vmatprep.subr.bf16.mxu0 %v13142_v17  ;;  %v2346_v51 = vpack.c.bf16 %v2340_v25, %v2338_v52  ;;  %v2345_v9 = vpack.c.bf16 %v2339_v2, %v2337_v14  ;;  %v7554_v14 = vld [vmem:[%s12944_s7] sm:$0xff]  }
 0x68d   : > { %6791 = vmatmul.mubr.msk.bf16.vlgmr.msra.gmra.mrb[8].mxu1 %vm1097_vm6, %v7554_v14 }
 0x68e   : > { %v2318_v35 = vpop.permute.xlu0 %2317  ;;  %1926 = vmatprep.mubr.bf16.mxu1 %v13104_v54 }
 0x68f   : > { %v2323_v13 = vsel %vm757_vm5, %v2310_v37, %v2318_v35  ;;  %v2327_v42 = vsel %vm757_vm5, %v2318_v35, %v2310_v37  ;;  %2490 = vmatpush1.bf16.msra.mxu0 %v13143_v20 }
 0x690   : > { %v2320_v63 = vpop.permute.xlu1 %2319  ;;  %2512 = vmatprep.subr.bf16.mxu0 %v2346_v51  ;;  %v2341_v47 = vmul.f32 %v9482_v29, %v2323_v13  ;;  %v2342_v58 = vmul.f32 %v9487_v60, %v2327_v42 }
 0x691   : > { %v2324_v16 = vsel %vm757_vm5, %v2312_v26, %v2320_v63  ;;  %v2328_v32 = vsel %vm757_vm5, %v2320_v63, %v2312_v26  ;;  %v13144_v63 = vld [vmem:[#allocation16_spill] sm:$0xff] }
 0x692   : > { %v2343_v33 = vmul.f32 %v8873_v56, %v2324_v16  ;;  %v2344_v53 = vmul.f32 %v8878_v48, %v2328_v32  ;;  %2492 = vmatmul.mubr.bf16.vlgmr.msra.gmra.mrb[16].mxu0 %v7546_v61  ;;  %v7552_v56 = vld [vmem:[%s12940_s3 + $0x38] ss:$12 sps:$4 sm:$0xff]   ;;  %v7553_v48 = vld [vmem:[%s12940_s3 + $0x50] ss:$12 sps:$4 sm:$0xff]   ;;  %v13145_v16 = vld [vmem:[#allocation18_spill] sm:$0xff] }
 0x693   : > { %2513 = vmatpush1.bf16.msra.mxu0 %v2345_v9  ;;  %2501 = vmatprep.mubr.bf16.mxu0 %v7549_v27 }
 0x694   : > { %v2347_v8 = vpack.c.bf16 %v2343_v33, %v2341_v47  ;;  %v2348_v12 = vpack.c.bf16 %v2344_v53, %v2342_v58  ;;  %v13146_v47 = vld [vmem:[#allocation15_spill] sm:$0xff] }
 0x696   : > { %2514 = vmatprep.subr.bf16.mxu0 %v2348_v12 }
 0x697   : > { %2515 = vmatpush1.bf16.msra.mxu0 %v2347_v8 }
 0x69a   : > { %2502 = vmatmul.mubr.bf16.gmra.mrb[20].mxu0 %v7551_v40 }
 0x69b   : > { %2544 = vmatprep.mubr.bf16.mxu0 %v13104_v54 }
 0x69f   : > { %v2406_v50 = vpop.permute.xlu0 %2405 }
 0x6a1   : > { %v2411_v46 = vpop.permute.xlu1 %2410 }
 0x6a2   : > { %6867 = vmatmul.mubr.msk.bf16.vlgmr.msra.gmra.mrb[16].mxu0 %vm1097_vm6, %v7552_v56 }
 0x6a3   : > { %2554 = vmatprep.mubr.bf16.mxu0 %v13104_v54  ;;  %v2416_v0 = vpop.permute.xlu0 %2415 }
 0x6a5   : > { %v2421_v23 = vpop.permute.xlu1 %2420 }
 0x6aa   : > { %6868 = vmatmul.mubr.msk.bf16.gmra.mrb[20].mxu0 %vm1097_vm6, %v7553_v48 }
 0x775   : > { %v2546_v7 = vpop.f32.mrb[16].mxu0 }
 0x776   : > { %v7360_v11 = vadd.f32 %v2546_v7, %v2406_v50  ;;  %v2548_v19 = vpop.f32.mrb[17].mxu0 }
 0x777   : > { %v2550_v31 = vpop.f32.mrb[18].mxu0  ;;  %v7361_v38 = vadd.f32 %v2548_v19, %v2406_v50 }
 0x778   : > { %v9520_v21 = vmax.f32 %v7360_v11, 0.0  ;;  %v7362_v34 = vadd.f32 %v2550_v31, %v2411_v46  ;;  %v2552_v49 = vpop.f32.mrb[19].mxu0  ;;  %v13147_v11 = vld [vmem:[#allocation5_spill] sm:$0xff] }
 0x779   : > { %v7363_v55 = vadd.f32 %v2552_v49, %v2411_v46  ;;  %v9526_v5 = vmax.f32 %v7361_v38, 0.0  ;;  %v13148_v46 = vld [vmem:[#allocation6_spill] sm:$0xff]  ;;  %v13149_v38 = vld [vmem:[#allocation7_spill] sm:$0xff]  ;;  %v13150_v49 = vld [vmem:[#allocation8_spill] sm:$0xff] }
 0x77a   : > { %v9522_v45 = vmax.f32 %v7362_v34, 0.0  ;;  %2573 = vrot.lane.b32.xlu0 %v9520_v21, %s7616_s23 }
 0x77b   : > { %v9530_v3 = vmax.f32 %v7363_v55, 0.0 }
 0x77c   : > { %2575 = vrot.lane.b32.xlu1 %v9522_v45, %s7616_s23 }
 0x77d   : > { %v2556_v41 = vpop.f32.mrb[20].mxu0 }
 0x77e   : > { %v7364_v43 = vadd.f32 %v2556_v41, %v2416_v0  ;;  %v2558_v28 = vpop.f32.mrb[21].mxu0  ;;  %2581 = vrot.lane.b32.xlu0 %v9526_v5, %s7616_s23 }
 0x77f   : > { %v2560_v39 = vpop.f32.mrb[22].mxu0  ;;  %v7365_v59 = vadd.f32 %v2558_v28, %v2416_v0 }
 0x780   : > { %v9534_v1 = vmax.f32 %v7364_v43, 0.0  ;;  %v7366_v25 = vadd.f32 %v2560_v39, %v2421_v23  ;;  %v2562_v37 = vpop.f32.mrb[23].mxu0  ;;  %2583 = vrot.lane.b32.xlu1 %v9530_v3, %s7616_s23 }
 0x781   : > { %v7367_v44 = vadd.f32 %v2562_v37, %v2421_v23  ;;  %v9542_v52 = vmax.f32 %v7365_v59, 0.0 }
 0x782   : > { %v9538_v18 = vmax.f32 %v7366_v25, 0.0  ;;  %2577 = vrot.lane.b32.xlu0 %v9534_v1, %s7616_s23 }
 0x783   : > { %v9546_v26 = vmax.f32 %v7367_v44, 0.0 }
 0x784   : > { %2579 = vrot.lane.b32.xlu1 %v9538_v18, %s7616_s23 }
 0x786   : > { %2585 = vrot.lane.b32.xlu0 %v9542_v52, %s7616_s23 }
 0x788   : > { %2587 = vrot.lane.b32.xlu1 %v9546_v26, %s7616_s23 }
 0x78a   : > { %2613 = vrot.lane.b32.xlu0 %v9520_v21, %s7617_s24 }
 0x78c   : > { %2615 = vrot.lane.b32.xlu1 %v9522_v45, %s7617_s24 }
 0x78e   : > { %2621 = vrot.lane.b32.xlu0 %v9526_v5, %s7617_s24 }
 0x790   : > { %2623 = vrot.lane.b32.xlu1 %v9530_v3, %s7617_s24 }
 0x792   : > { %2617 = vrot.lane.b32.xlu0 %v9534_v1, %s7617_s24 }
 0x794   : > { %2619 = vrot.lane.b32.xlu1 %v9538_v18, %s7617_s24 }
 0x796   : > { %2625 = vrot.lane.b32.xlu0 %v9542_v52, %s7617_s24 }
 0x798   : > { %2759 = vrot.lane.b32.xlu1 %v9522_v45, %s7618_s25 }
 0x79a   : > { %2757 = vrot.lane.b32.xlu0 %v9520_v21, %s7618_s25 }
 0x79c   : > { %2767 = vrot.lane.b32.xlu1 %v9530_v3, %s7618_s25 }
 0x79e   : > { %2765 = vrot.lane.b32.xlu0 %v9526_v5, %s7618_s25 }
 0x7a0   : > { %2627 = vrot.lane.b32.xlu1 %v9546_v26, %s7617_s24 }
 0x7ec   : > { %v2574_v17 = vpop.permute.xlu0 %2573 }
 0x7ee   : > { %v2576_v2 = vpop.permute.xlu1 %2575 }
 0x7f0   : > { %v2582_v35 = vpop.permute.xlu0 %2581 }
 0x7f1   : > { %v2589_v51 = vsel %vm616_vm2, %v2574_v17, %v2582_v35  ;;  %v2593_v61 = vsel %vm616_vm2, %v2582_v35, %v2574_v17  ;;  %v13151_v17 = vld [vmem:[#allocation9_spill] sm:$0xff]  ;;  %v13152_v35 = vld [vmem:[#allocation11_spill] sm:$0xff] }
 0x7f2   : > { %v9584_v13 = vmul.f32 %v2593_v61, %v8991_v22  ;;  %v2584_v42 = vpop.permute.xlu1 %2583  ;;  %v9592_v9 = vmul.f32 %v2589_v51, %v13144_v63  ;;  %v13153_v61 = vld [vmem:[#allocation10_spill] sm:$0xff] }
 0x7f3   : > { %v2590_v20 = vsel %vm616_vm2, %v2576_v2, %v2584_v42  ;;  %v2594_v27 = vsel %vm616_vm2, %v2584_v42, %v2576_v2  ;;  %v13154_v42 = vld [vmem:[#allocation12_spill] sm:$0xff] }
 0x7f4   : > { %v9595_v32 = vmul.f32 %v2594_v27, %v13145_v16  ;;  %v9598_v58 = vmul.f32 %v2590_v20, %v13146_v47  ;;  %2653 = vrot.lane.b32.xlu0 %v9584_v13, %s7618_s25  ;;  %v2578_v22 = vpop.permute.xlu0 %2577 }
 0x7f6   : > { %2655 = vrot.lane.b32.xlu1 %v9595_v32, %s7618_s25  ;;  %v2580_v33 = vpop.permute.xlu1 %2579 }
 0x7f8   : > { %2661 = vrot.lane.b32.xlu0 %v9592_v9, %s7618_s25  ;;  %v2586_v12 = vpop.permute.xlu0 %2585 }
 0x7f9   : > { %v2591_v40 = vsel %vm616_vm2, %v2578_v22, %v2586_v12  ;;  %v2595_v56 = vsel %vm616_vm2, %v2586_v12, %v2578_v22 }
 0x7fa   : > { %2663 = vrot.lane.b32.xlu1 %v9598_v58, %s7618_s25  ;;  %v2588_v48 = vpop.permute.xlu1 %2587  ;;  %v9622_v19 = vmul.f32 %v2595_v56, %v13147_v11  ;;  %v9625_v31 = vmul.f32 %v2591_v40, %v13148_v46  ;;  %v13155_v11 = vld [vmem:[#allocation24_spill] sm:$0xff] }
 0x7fb   : > { %v2592_v50 = vsel %vm616_vm2, %v2580_v33, %v2588_v48  ;;  %v2596_v7 = vsel %vm616_vm2, %v2588_v48, %v2580_v33 }
 0x7fc   : > { %v9628_v34 = vmul.f32 %v2596_v7, %v13149_v38  ;;  %v9631_v55 = vmul.f32 %v2592_v50, %v13150_v49  ;;  %2709 = vrot.lane.b32.xlu0 %v9584_v13, %s7619_s29  ;;  %v2614_v0 = vpop.permute.xlu0 %2613  ;;  %v13156_v38 = vld [vmem:[#allocation25_spill] sm:$0xff] }
 0x7fe   : > { %2711 = vrot.lane.b32.xlu1 %v9595_v32, %s7619_s29  ;;  %v2616_v41 = vpop.permute.xlu1 %2615 }
 0x800   : > { %2717 = vrot.lane.b32.xlu0 %v9592_v9, %s7619_s29  ;;  %v2622_v23 = vpop.permute.xlu0 %2621 }
 0x801   : > { %v2629_v39 = vsel %vm657_vm3, %v2614_v0, %v2622_v23  ;;  %v2633_v59 = vsel %vm657_vm3, %v2622_v23, %v2614_v0  ;;  %v13157_v0 = vld [vmem:[#allocation26_spill] sm:$0xff]  ;;  %v13158_v23 = vld [vmem:[#allocation27_spill] sm:$0xff] }
 0x802   : > { %2719 = vrot.lane.b32.xlu1 %v9598_v58, %s7619_s29  ;;  %v2624_v25 = vpop.permute.xlu1 %2623  ;;  %v9654_v2 = vmul.f32 %v13151_v17, %v2629_v39  ;;  %v9657_v51 = vmul.f32 %v13152_v35, %v2633_v59  ;;  %v6933_v17 = vld [vmem:[%s12943_s6 + $0x20] sm:$0xff]  ;;  %v6934_v35 = vld [vmem:[%s12943_s6 + $0x28] sm:$0xff] }
 0x803   : > { %v2630_v37 = vsel %vm657_vm3, %v2616_v41, %v2624_v25  ;;  %v2634_v44 = vsel %vm657_vm3, %v2624_v25, %v2616_v41 }
 0x804   : > { %v9660_v14 = vmul.f32 %v13153_v61, %v2630_v37  ;;  %v9663_v20 = vmul.f32 %v13154_v42, %v2634_v44  ;;  %2657 = vrot.lane.b32.xlu0 %v9622_v19, %s7618_s25  ;;  %v2618_v47 = vpop.permute.xlu0 %2617  ;;  %v7555_v37 = vld [vmem:[%s12944_s7 + $0x8] sm:$0xff]   ;;  %v7558_v44 = vld [vmem:[%s12942_s5 + $0x34] ss:$12 sps:$4 sm:$0xff]   ;;  %v6936_v42 = vld [vmem:[%s12943_s6 + $0x38] sm:$0xff] }
 0x805   : > { %6792 = vmatmul.mubr.msk.bf16.gmra.mrb[12].mxu1 %vm1097_vm6, %v7555_v37  ;;  %v6935_v61 = vld [vmem:[%s12943_s6 + $0x30] sm:$0xff] }
 0x806   : > { %2659 = vrot.lane.b32.xlu1 %v9628_v34, %s7618_s25  ;;  %v2620_v27 = vpop.permute.xlu1 %2619  ;;  %3103 = vmatprep.mubr.bf16.mxu1 %v7558_v44 }
 0x808   : > { %2665 = vrot.lane.b32.xlu0 %v9625_v31, %s7618_s25  ;;  %v2626_v33 = vpop.permute.xlu0 %2625 }
 0x809   : > { %v2631_v40 = vsel %vm657_vm3, %v2618_v47, %v2626_v33  ;;  %v2635_v56 = vsel %vm657_vm3, %v2626_v33, %v2618_v47 }
 0x80a   : > { %2667 = vrot.lane.b32.xlu1 %v9631_v55, %s7618_s25  ;;  %v9677_v22 = vpop.permute.xlu1 %2759  ;;  %v9698_v46 = vmul.f32 %v13155_v11, %v2631_v40  ;;  %v9701_v49 = vmul.f32 %v13156_v38, %v2635_v56 }
 0x80c   : > { %2761 = vrot.lane.b32.xlu0 %v9534_v1, %s7618_s25 }
 0x80e   : > { %2763 = vrot.lane.b32.xlu1 %v9538_v18, %s7618_s25  ;;  %v9683_v12 = vpop.permute.xlu1 %2767 }
 0x810   : > { %2713 = vrot.lane.b32.xlu0 %v9622_v19, %s7619_s29 }
 0x812   : > { %2771 = vrot.lane.b32.xlu1 %v9546_v26, %s7618_s25  ;;  %v2628_v48 = vpop.permute.xlu1 %2627 }
 0x813   : > { %v2632_v50 = vsel %vm657_vm3, %v2620_v27, %v2628_v48  ;;  %v2636_v7 = vsel %vm657_vm3, %v2628_v48, %v2620_v27  ;;  %v9788_v27 = vpop.permute.xlu0 %2757 }
 0x814   : > { %v9704_v41 = vmul.f32 %v13157_v0, %v2632_v50  ;;  %v9707_v39 = vmul.f32 %v13158_v23, %v2636_v7  ;;  %2721 = vrot.lane.b32.xlu0 %v9625_v31, %s7619_s29 }
 0x816   : > { %2715 = vrot.lane.b32.xlu1 %v9628_v34, %s7619_s29 }
 0x817   : > { %v9790_v47 = vpop.permute.xlu0 %2765 }
 0x818   : > { %2769 = vrot.lane.b32.xlu0 %v9542_v52, %s7618_s25 }
 0x81a   : > { %2723 = vrot.lane.b32.xlu1 %v9631_v55, %s7619_s29 }
 0x81c   : > { %2813 = vrot.lane.b32.xlu0 %v9520_v21, %s7619_s29 }
 0x81e   : > { %2815 = vrot.lane.b32.xlu1 %v9522_v45, %s7619_s29 }
 0x820   : > { %2821 = vrot.lane.b32.xlu0 %v9526_v5, %s7619_s29 }
 0x822   : > { %2823 = vrot.lane.b32.xlu1 %v9530_v3, %s7619_s29 }
 0x824   : > { %2817 = vrot.lane.b32.xlu0 %v9534_v1, %s7619_s29 }
 0x826   : > { %2819 = vrot.lane.b32.xlu1 %v9538_v18, %s7619_s29 }
 0x828   : > { %2825 = vrot.lane.b32.xlu0 %v9542_v52, %s7619_s29 }
 0x82a   : > { %2827 = vrot.lane.b32.xlu1 %v9546_v26, %s7619_s29 }
 0x82c   : > { %2861 = vrot.lane.b32.xlu0 %v9654_v2, %s7618_s25 }
 0x82e   : > { %2863 = vrot.lane.b32.xlu1 %v9660_v14, %s7618_s25 }
 0x830   : > { %2869 = vrot.lane.b32.xlu0 %v9657_v51, %s7618_s25 }
 0x832   : > { %2871 = vrot.lane.b32.xlu1 %v9663_v20, %s7618_s25 }
 0x834   : > { %2865 = vrot.lane.b32.xlu0 %v9698_v46, %s7618_s25 }
 0x836   : > { %2867 = vrot.lane.b32.xlu1 %v9704_v41, %s7618_s25 }
 0x838   : > { %2873 = vrot.lane.b32.xlu0 %v9701_v49, %s7618_s25 }
 0x83a   : > { %2875 = vrot.lane.b32.xlu1 %v9707_v39, %s7618_s25 }
 0x83c   : > { %2917 = vrot.lane.b32.xlu0 %v9654_v2, %s7619_s29 }
 0x83e   : > { %2919 = vrot.lane.b32.xlu1 %v9660_v14, %s7619_s29 }
 0x840   : > { %2925 = vrot.lane.b32.xlu0 %v9657_v51, %s7619_s29 }
 0x842   : > { %2927 = vrot.lane.b32.xlu1 %v9663_v20, %s7619_s29 }
 0x844   : > { %2921 = vrot.lane.b32.xlu0 %v9698_v46, %s7619_s29 }
 0x846   : > { %2923 = vrot.lane.b32.xlu1 %v9704_v41, %s7619_s29 }
 0x848   : > { %2929 = vrot.lane.b32.xlu0 %v9701_v49, %s7619_s29 }
 0x84a   : > { %2931 = vrot.lane.b32.xlu1 %v9707_v39, %s7619_s29 }
 0x84c   : > { %3017 = vperm.xlu0 %7518, %v6933_v17  }
 0x84e   : > { %3022 = vperm.xlu1 %7519, %v6934_v35  }
 0x850   : > { %3027 = vperm.xlu0 %7518, %v6935_v61  }
 0x852   : > { %3032 = vperm.xlu1 %7519, %v6936_v42  }
 0x866   : > { %v2654_v33 = vpop.permute.xlu0 %2653 }
 0x868   : > { %v2656_v40 = vpop.permute.xlu1 %2655 }
 0x86a   : > { %v2662_v56 = vpop.permute.xlu0 %2661 }
 0x86b   : > { %v2669_v48 = vsel %vm699_vm4, %v2654_v33, %v2662_v56  ;;  %v2673_v50 = vsel %vm699_vm4, %v2662_v56, %v2654_v33 }
 0x86c   : > { %v2664_v7 = vpop.permute.xlu1 %2663  ;;  %v2685_v0 = vmul.f32 %v9416_v24, %v2673_v50  ;;  %v2686_v23 = vmul.f32 %v9398_v62, %v2669_v48  ;;  %v9812_v50 = vld [vmem:[%s12948_s11 + $0xa8] sm:$0xff] }
 0x86d   : > { %v2670_v11 = vsel %vm699_vm4, %v2656_v40, %v2664_v7  ;;  %v2674_v38 = vsel %vm699_vm4, %v2664_v7, %v2656_v40  ;;  %v9807_v40 = vld [vmem:[%s12948_s11 + $0xa0] sm:$0xff] }
 0x86e   : > { %v2687_v37 = vmul.f32 %v9407_v4, %v2674_v38  ;;  %v2688_v44 = vmul.f32 %v9389_v10, %v2670_v11  ;;  %v2710_v17 = vpop.permute.xlu0 %2709  ;;  %v9821_v38 = vld [vmem:[%s12948_s11 + $0xb0] sm:$0xff] }
 0x870   : > { %v2693_v35 = vpack.c.bf16 %v2687_v37, %v2685_v0  ;;  %v2712_v61 = vpop.permute.xlu1 %2711  ;;  %v2694_v42 = vpack.c.bf16 %v2688_v44, %v2686_v23  ;;  %v9826_v0 = vld [vmem:[%s12948_s11 + $0xb8] sm:$0xff] }
 0x872   : > { %v2718_v33 = vpop.permute.xlu0 %2717  ;;  %3071 = vmatprep.subr.bf16.mxu1 %v2694_v42 }
 0x873   : > { %3072 = vmatpush1.bf16.msra.mxu1 %v2693_v35 }
 0x874   : > { %v2720_v56 = vpop.permute.xlu1 %2719 }
 0x875   : > { %v2730_v53 = vsel %vm757_vm5, %v2720_v56, %v2712_v61 }
 0x876   : > { %v2658_v25 = vpop.permute.xlu0 %2657 }
 0x878   : > { %v2660_v59 = vpop.permute.xlu1 %2659 }
 0x87a   : > { %v2666_v48 = vpop.permute.xlu0 %2665 }
 0x87b   : > { %v2671_v7 = vsel %vm699_vm4, %v2658_v25, %v2666_v48  ;;  %v2675_v11 = vsel %vm699_vm4, %v2666_v48, %v2658_v25 }
 0x87c   : > { %v2668_v23 = vpop.permute.xlu1 %2667  ;;  %v2689_v35 = vmul.f32 %v9807_v40, %v2675_v11  ;;  %v2690_v25 = vmul.f32 %v9812_v50, %v2671_v7  ;;  %v2729_v7 = vsel %vm757_vm5, %v2718_v33, %v2710_v17  ;;  %v2726_v11 = vsel %vm757_vm5, %v2712_v61, %v2720_v56  ;;  %v9876_v56 = vld [vmem:[%s12948_s11 + $0xf8] sm:$0xff] }
 0x87d   : > { %v2672_v37 = vsel %vm699_vm4, %v2660_v59, %v2668_v23  ;;  %v2676_v44 = vsel %vm699_vm4, %v2668_v23, %v2660_v59  ;;  %v13159_v59 = vpack.c.bf16 %v9598_v58, %v9592_v9  ;;  %v2744_v23 = vmul.f32 %v9438_v57, %v2730_v53 }
 0x87e   : > { %v2691_v42 = vmul.f32 %v9821_v38, %v2676_v44  ;;  %v2692_v48 = vmul.f32 %v9826_v0, %v2672_v37  ;;  %v2762_v16 = vpop.permute.xlu0 %2761  ;;  %v2742_v44 = vmul.f32 %v9446_v30, %v2729_v7  ;;  %v13161_v58 = vpack.c.bf16 %v9631_v55, %v9625_v31  ;;  %v9871_v55 = vld [vmem:[%s12948_s11 + $0xf0] sm:$0xff] }
 0x87f   : > { %v2773_v53 = vsel %vm699_vm4, %v9788_v27, %v9790_v47  ;;  %v13162_v31 = vpack.c.bf16 %v9628_v34, %v9622_v19 }
 0x880   : > { %v2695_v63 = vpack.c.bf16 %v2691_v42, %v2689_v35  ;;  %v2764_v28 = vpop.permute.xlu1 %2763  ;;  %v2696_v43 = vpack.c.bf16 %v2692_v48, %v2690_v25  ;;  %v2743_v35 = vmul.f32 %v9455_v6, %v2726_v11  ;;  %v2774_v25 = vsel %vm699_vm4, %v9677_v22, %v9683_v12 }
 0x881   : > { %v2790_v34 = vmul.f32 %v9398_v62, %v2773_v53 }
 0x882   : > { %v2714_v8 = vpop.permute.xlu0 %2713  ;;  %3073 = vmatprep.subr.bf16.mxu1 %v2696_v43  ;;  %v13160_v43 = vpack.c.bf16 %v9595_v32, %v9584_v13  ;;  %v2750_v13 = vpack.c.bf16 %v2744_v23, %v2742_v44 }
 0x883   : > { %3074 = vmatpush1.bf16.msra.mxu1 %v2695_v63  ;;  %v2725_v63 = vsel %vm757_vm5, %v2710_v17, %v2718_v33 }
 0x884   : > { %v2772_v54 = vpop.permute.xlu1 %2771  ;;  %3075 = vmatprep.subr.bf16.mxu1 %v13159_v59  ;;  %v2741_v32 = vmul.f32 %v9466_v15, %v2725_v63  ;;  %v2792_v63 = vmul.f32 %v9389_v10, %v2774_v25 }
 0x885   : > { %v2776_v53 = vsel %vm699_vm4, %v2764_v28, %v2772_v54 }
 0x886   : > { %v2722_v37 = vpop.permute.xlu0 %2721  ;;  %v2749_v42 = vpack.c.bf16 %v2743_v35, %v2741_v32 }
 0x887   : > { %3076 = vmatpush1.bf16.msra.mxu1 %v13160_v43  ;;  %v2727_v17 = vsel %vm757_vm5, %v2714_v8, %v2722_v37  ;;  %v2731_v33 = vsel %vm757_vm5, %v2722_v37, %v2714_v8  ;;  %v2777_v8 = vsel %vm699_vm4, %v9790_v47, %v9788_v27  ;;  %v2778_v43 = vsel %vm699_vm4, %v9683_v12, %v9677_v22 }
 0x888   : > { %v2716_v9 = vpop.permute.xlu1 %2715  ;;  %3077 = vmatprep.subr.bf16.mxu1 %v13161_v58  ;;  %v2745_v7 = vmul.f32 %v9482_v29, %v2727_v17  ;;  %v2746_v11 = vmul.f32 %v9487_v60, %v2731_v33  ;;  %v2789_v35 = vmul.f32 %v9416_v24, %v2777_v8  ;;  %v2798_v33 = vpack.c.bf16 %v2792_v63, %v2790_v34 }
 0x889   : > { %v2791_v22 = vmul.f32 %v9407_v4, %v2778_v43  ;;  %v2780_v12 = vsel %vm699_vm4, %v2772_v54, %v2764_v28 }
 0x88a   : > { %v2770_v61 = vpop.permute.xlu0 %2769 }
 0x88b   : > { %3078 = vmatpush1.bf16.msra.mxu1 %v13162_v31  ;;  %v2775_v47 = vsel %vm699_vm4, %v2762_v16, %v2770_v61  ;;  %v2796_v31 = vmul.f32 %v9826_v0, %v2776_v53  ;;  %v2797_v8 = vpack.c.bf16 %v2791_v22, %v2789_v35 }
 0x88c   : > { %v2724_v19 = vpop.permute.xlu1 %2723  ;;  %3079 = vmatprep.subr.bf16.mxu1 %v2750_v13  ;;  %v2779_v13 = vsel %vm699_vm4, %v2770_v61, %v2762_v16  ;;  %v2794_v32 = vmul.f32 %v9812_v50, %v2775_v47  ;;  %v2795_v61 = vmul.f32 %v9821_v38, %v2780_v12 }
 0x88d   : > { %v2728_v48 = vsel %vm757_vm5, %v2716_v9, %v2724_v19  ;;  %v2732_v59 = vsel %vm757_vm5, %v2724_v19, %v2716_v9  ;;  %v2793_v19 = vmul.f32 %v9807_v40, %v2779_v13 }
 0x88e   : > { %v2747_v23 = vmul.f32 %v9871_v55, %v2728_v48  ;;  %v2748_v37 = vmul.f32 %v9876_v56, %v2732_v59  ;;  %v2814_v27 = vpop.permute.xlu0 %2813  ;;  %v2800_v16 = vpack.c.bf16 %v2796_v31, %v2794_v32 }
 0x88f   : > { %3080 = vmatpush1.bf16.msra.mxu1 %v2749_v42  ;;  %v2799_v34 = vpack.c.bf16 %v2795_v61, %v2793_v19 }
 0x890   : > { %v2751_v44 = vpack.c.bf16 %v2747_v23, %v2745_v7  ;;  %v2816_v9 = vpop.permute.xlu1 %2815  ;;  %v2752_v58 = vpack.c.bf16 %v2748_v37, %v2746_v11  ;;  %v2806_v7 = vpack.c.bf16 %v9530_v3, %v9526_v5  ;;  %v2805_v23 = vpack.c.bf16 %v9522_v45, %v9520_v21 }
 0x891   : > { %v2808_v5 = vpack.c.bf16 %v9546_v26, %v9542_v52 }
 0x892   : > { %v2822_v17 = vpop.permute.xlu0 %2821  ;;  %3081 = vmatprep.subr.bf16.mxu1 %v2752_v58 }
 0x893   : > { %3082 = vmatpush1.bf16.msra.mxu1 %v2751_v44  ;;  %v2833_v11 = vsel %vm757_vm5, %v2822_v17, %v2814_v27  ;;  %v2829_v63 = vsel %vm757_vm5, %v2814_v27, %v2822_v17 }
 0x894   : > { %v2824_v25 = vpop.permute.xlu1 %2823  ;;  %3083 = vmatprep.subr.bf16.mxu1 %v2798_v33  ;;  %v2846_v44 = vmul.f32 %v9446_v30, %v2833_v11  ;;  %v2845_v27 = vmul.f32 %v9466_v15, %v2829_v63 }
 0x895   : > { %v2834_v54 = vsel %vm757_vm5, %v2824_v25, %v2816_v9  ;;  %v2830_v37 = vsel %vm757_vm5, %v2816_v9, %v2824_v25  ;;  %v2807_v9 = vpack.c.bf16 %v9538_v18, %v9534_v1 }
 0x896   : > { %v2818_v42 = vpop.permute.xlu0 %2817  ;;  %v2848_v47 = vmul.f32 %v9438_v57, %v2834_v54  ;;  %v2847_v21 = vmul.f32 %v9455_v6, %v2830_v37 }
 0x897   : > { %3084 = vmatpush1.bf16.msra.mxu1 %v2797_v8 }
 0x898   : > { %v2820_v48 = vpop.permute.xlu1 %2819  ;;  %3085 = vmatprep.subr.bf16.mxu1 %v2800_v16  ;;  %v2854_v53 = vpack.c.bf16 %v2848_v47, %v2846_v44  ;;  %v2853_v33 = vpack.c.bf16 %v2847_v21, %v2845_v27  ;;  %v13164_v27 = vpack.c.bf16 %v9660_v14, %v9654_v2 }
 0x89a   : > { %v2826_v59 = vpop.permute.xlu0 %2825 }
 0x89b   : > { %3086 = vmatpush1.bf16.msra.mxu1 %v2799_v34  ;;  %v2835_v45 = vsel %vm757_vm5, %v2826_v59, %v2818_v42  ;;  %v2831_v13 = vsel %vm757_vm5, %v2818_v42, %v2826_v59 }
 0x89c   : > { %v2828_v28 = vpop.permute.xlu1 %2827  ;;  %3087 = vmatprep.subr.bf16.mxu1 %v2806_v7  ;;  %v2850_v32 = vmul.f32 %v9487_v60, %v2835_v45  ;;  %v2849_v19 = vmul.f32 %v9482_v29, %v2831_v13  ;;  %v13163_v45 = vpack.c.bf16 %v9663_v20, %v9657_v51 }
 0x89d   : > { %v2836_v3 = vsel %vm757_vm5, %v2828_v28, %v2820_v48  ;;  %v2832_v52 = vsel %vm757_vm5, %v2820_v48, %v2828_v28 }
 0x89e   : > { %v2862_v43 = vpop.permute.xlu0 %2861  ;;  %v2852_v26 = vmul.f32 %v9876_v56, %v2836_v3  ;;  %v2851_v1 = vmul.f32 %v9871_v55, %v2832_v52 }
 0x89f   : > { %3088 = vmatpush1.bf16.msra.mxu1 %v2805_v23 }
 0x8a0   : > { %v2864_v58 = vpop.permute.xlu1 %2863  ;;  %3089 = vmatprep.subr.bf16.mxu1 %v2808_v5  ;;  %v2856_v8 = vpack.c.bf16 %v2852_v26, %v2850_v32  ;;  %v2855_v48 = vpack.c.bf16 %v2851_v1, %v2849_v19  ;;  %v13165_v32 = vpack.c.bf16 %v9707_v39, %v9701_v49  ;;  %v13166_v49 = vpack.c.bf16 %v9704_v41, %v9698_v46  ;;  %v7561_v19 = vld [vmem:[%s12942_s5 + $0x48] ss:$12 sps:$4 sm:$0xff]  }
 0x8a2   : > { %v2870_v35 = vpop.permute.xlu0 %2869 }
 0x8a3   : > { %3090 = vmatpush1.bf16.msra.mxu1 %v2807_v9  ;;  %v2877_v18 = vsel %vm699_vm4, %v2862_v43, %v2870_v35  ;;  %v2881_v42 = vsel %vm699_vm4, %v2870_v35, %v2862_v43 }
 0x8a4   : > { %v2872_v17 = vpop.permute.xlu1 %2871  ;;  %3091 = vmatprep.subr.bf16.mxu1 %v2854_v53  ;;  %v2894_v16 = vmul.f32 %v9398_v62, %v2877_v18  ;;  %v2893_v54 = vmul.f32 %v9416_v24, %v2881_v42  ;;  %v13167_v42 = vmov 0  }
 0x8a5   : > { %v2878_v22 = vsel %vm699_vm4, %v2864_v58, %v2872_v17  ;;  %v2882_v12 = vsel %vm699_vm4, %v2872_v17, %v2864_v58 }
 0x8a6   : > { %v2896_v31 = vmul.f32 %v9389_v10, %v2878_v22  ;;  %v2866_v25 = vpop.permute.xlu0 %2865  ;;  %v2895_v34 = vmul.f32 %v9407_v4, %v2882_v12 }
 0x8a7   : > { %3092 = vmatpush1.bf16.msra.mxu1 %v2853_v33 }
 0x8a8   : > { %v2868_v61 = vpop.permute.xlu1 %2867  ;;  %3093 = vmatprep.subr.bf16.mxu1 %v2856_v8  ;;  %v2902_v7 = vpack.c.bf16 %v2896_v31, %v2894_v16  ;;  %v2901_v23 = vpack.c.bf16 %v2895_v34, %v2893_v54 }
 0x8aa   : > { %v2874_v59 = vpop.permute.xlu0 %2873 }
 0x8ab   : > { %v2879_v10 = vsel %vm699_vm4, %v2866_v25, %v2874_v59  ;;  %v2883_v28 = vsel %vm699_vm4, %v2874_v59, %v2866_v25  ;;  %3094 = vmatpush1.bf16.msra.mxu1 %v2855_v48 }
 0x8ac   : > { %v2876_v11 = vpop.permute.xlu1 %2875  ;;  %3095 = vmatprep.subr.bf16.mxu1 %v2902_v7  ;;  %v2897_v37 = vmul.f32 %v9807_v40, %v2883_v28  ;;  %v2898_v24 = vmul.f32 %v9812_v50, %v2879_v10  ;;  %v13168_v10 = vld [vmem:[#allocation19_spill] sm:$0xff] }
 0x8ad   : > { %v2880_v62 = vsel %vm699_vm4, %v2868_v61, %v2876_v11  ;;  %v2884_v4 = vsel %vm699_vm4, %v2876_v11, %v2868_v61 }
 0x8ae   : > { %v2899_v47 = vmul.f32 %v9821_v38, %v2884_v4  ;;  %v2900_v43 = vmul.f32 %v9826_v0, %v2880_v62  ;;  %v2918_v5 = vpop.permute.xlu0 %2917  ;;  %v13170_v4 = vld [vmem:[#allocation20_spill] sm:$0xff] }
 0x8af   : > { %3096 = vmatpush1.bf16.msra.mxu1 %v2901_v23 }
 0x8b0   : > { %v2903_v3 = vpack.c.bf16 %v2899_v47, %v2897_v37  ;;  %v2920_v63 = vpop.permute.xlu1 %2919  ;;  %v2904_v44 = vpack.c.bf16 %v2900_v43, %v2898_v24  ;;  %v13172_v24 = vld [vmem:[#allocation22_spill] sm:$0xff]  ;;  %v13174_v43 = vld [vmem:[#allocation21_spill] sm:$0xff] }
 0x8b2   : > { %v2926_v58 = vpop.permute.xlu0 %2925  ;;  %3097 = vmatprep.subr.bf16.mxu1 %v2904_v44 }
 0x8b3   : > { %3098 = vmatpush1.bf16.msra.mxu1 %v2903_v3  ;;  %v2937_v9 = vsel %vm757_vm5, %v2926_v58, %v2918_v5  ;;  %v2933_v51 = vsel %vm757_vm5, %v2918_v5, %v2926_v58 }
 0x8b4   : > { %v2928_v21 = vpop.permute.xlu1 %2927  ;;  %3099 = vmatprep.subr.bf16.mxu1 %v13163_v45  ;;  %v2950_v20 = vmul.f32 %v9446_v30, %v2937_v9  ;;  %v2949_v2 = vmul.f32 %v9466_v15, %v2933_v51 }
 0x8b5   : > { %v2938_v52 = vsel %vm757_vm5, %v2928_v21, %v2920_v63  ;;  %v2934_v26 = vsel %vm757_vm5, %v2920_v63, %v2928_v21 }
 0x8b6   : > { %v2952_v35 = vmul.f32 %v9438_v57, %v2938_v52  ;;  %v2922_v53 = vpop.permute.xlu0 %2921  ;;  %v2951_v17 = vmul.f32 %v9455_v6, %v2934_v26  ;;  %v7556_v57 = vld [vmem:[%s12942_s5 + $0x30] ss:$12 sps:$4 sm:$0xff]   ;;  %v7559_v6 = vld [vmem:[%s12942_s5 + $0x4c] ss:$12 sps:$4 sm:$0xff]  }
 0x8b7   : > { %3100 = vmatpush1.bf16.msra.mxu1 %v13164_v27 }
 0x8b8   : > { %v2924_v13 = vpop.permute.xlu1 %2923  ;;  %3101 = vmatprep.subr.bf16.mxu1 %v13165_v32  ;;  %v2958_v1 = vpack.c.bf16 %v2952_v35, %v2950_v20  ;;  %v2957_v18 = vpack.c.bf16 %v2951_v17, %v2949_v2  ;;  %v13176_v35 = vld [vmem:[#allocation23_spill] sm:$0xff]  ;;  %v13180_v17 = vld [vmem:[#allocation13_spill] sm:$0xff] }
 0x8ba   : > { %v2930_v33 = vpop.permute.xlu0 %2929 }
 0x8bb   : > { %v2935_v14 = vsel %vm757_vm5, %v2922_v53, %v2930_v33  ;;  %v2939_v30 = vsel %vm757_vm5, %v2930_v33, %v2922_v53  ;;  %3102 = vmatpush1.bf16.msra.mxu1 %v13166_v49 }
 0x8bc   : > { %v2932_v39 = vpop.permute.xlu1 %2931  ;;  %3124 = vmatprep.subr.bf16.mxu1 %v2958_v1  ;;  %v2953_v12 = vmul.f32 %v9482_v29, %v2935_v14  ;;  %v2954_v31 = vmul.f32 %v9487_v60, %v2939_v30  ;;  %v7562_v29 = vld [vmem:[%s12942_s5 + $0x38] ss:$12 sps:$4 sm:$0xff]   ;;  %v7563_v60 = vld [vmem:[%s12942_s5 + $0x50] ss:$12 sps:$4 sm:$0xff]  }
 0x8bd   : > { %v2936_v15 = vsel %vm757_vm5, %v2924_v13, %v2932_v39  ;;  %v2940_v22 = vsel %vm757_vm5, %v2932_v39, %v2924_v13  ;;  %v13178_v13 = vld [vmem:[#allocation14_spill] sm:$0xff]  ;;  %v13182_v1 = vld [vmem:[#allocation17_spill] sm:$0xff] }
 0x8be   : > { %v2955_v46 = vmul.f32 %v9871_v55, %v2936_v15  ;;  %v2956_v41 = vmul.f32 %v9876_v56, %v2940_v22  ;;  %3104 = vmatmul.mubr.bf16.vlgmr.msra.gmra.mrb[16].mxu1 %v7556_v57 }
 0x8bf   : > { %3125 = vmatpush1.bf16.msra.mxu1 %v2957_v18  ;;  %3113 = vmatprep.mubr.bf16.mxu1 %v7559_v6  ;;  %v10113_v6 = vld [vmem:[%s12948_s11] sm:$0xff]  ;;  %v10118_v18 = vld [vmem:[%s12948_s11 + $0x8] sm:$0xff] }
 0x8c0   : > { %v2959_v25 = vpack.c.bf16 %v2955_v46, %v2953_v12  ;;  %v2960_v8 = vpack.c.bf16 %v2956_v41, %v2954_v31  ;;  %v10127_v12 = vld [vmem:[%s12948_s11 + $0x10] sm:$0xff]  ;;  %v10132_v31 = vld [vmem:[%s12948_s11 + $0x18] sm:$0xff] }
 0x8c2   : > { %3126 = vmatprep.subr.bf16.mxu1 %v2960_v8 }
 0x8c3   : > { %3127 = vmatpush1.bf16.msra.mxu1 %v2959_v25 }
 0x8c6   : > { %3114 = vmatmul.mubr.bf16.gmra.mrb[20].mxu1 %v7561_v19 }
 0x8c7   : > { %3156 = vmatprep.mubr.bf16.mxu1 %v13167_v42 }
 0x8cb   : > { %v3018_v16 = vpop.permute.xlu0 %3017 }
 0x8cd   : > { %v3023_v59 = vpop.permute.xlu1 %3022 }
 0x8ce   : > { %6943 = vmatmul.mubr.msk.bf16.vlgmr.msra.gmra.mrb[16].mxu1 %vm1097_vm6, %v7562_v29 }
 0x8cf   : > { %3166 = vmatprep.mubr.bf16.mxu1 %v13167_v42  ;;  %v3028_v3 = vpop.permute.xlu0 %3027 }
 0x8d1   : > { %v3033_v9 = vpop.permute.xlu1 %3032 }
 0x8d6   : > { %6944 = vmatmul.mubr.msk.bf16.gmra.mrb[20].mxu1 %vm1097_vm6, %v7563_v60 }
 0x8d7   : > { %3274 = vmatprep.mubr.bf16.mxu1 %v13167_v42 }
 0x9a1   : > { %v3158_v61 = vpop.f32.mrb[16].mxu1 }
 0x9a2   : > { %v7368_v48 = vadd.f32 %v3158_v61, %v3018_v16  ;;  %v3160_v34 = vpop.f32.mrb[17].mxu1 }
 0x9a3   : > { %v7369_v7 = vadd.f32 %v3160_v34, %v3018_v16  ;;  %v3162_v54 = vpop.f32.mrb[18].mxu1 }
 0x9a4   : > { %v10027_v28 = vadd.f32 %v7368_v48, %v13168_v10  ;;  %v7370_v11 = vadd.f32 %v3162_v54, %v3023_v59  ;;  %v3164_v23 = vpop.f32.mrb[19].mxu1  ;;  %v10168_v54 = vld [vmem:[%s12948_s11 + $0x28] sm:$0xff] }
 0x9a5   : > { %v7371_v62 = vadd.f32 %v3164_v23, %v3023_v59  ;;  %v10035_v47 = vadd.f32 %v7369_v7, %v13172_v24  ;;  %v10163_v59 = vld [vmem:[%s12948_s11 + $0x20] sm:$0xff]  ;;  %v10177_v23 = vld [vmem:[%s12948_s11 + $0x30] sm:$0xff] }
 0x9a6   : > { %13169 = vst [vmem:[#allocation16_spill] sm:$0xff] %v10027_v28  ;;  %v10030_v37 = vadd.f32 %v7370_v11, %v13170_v4  ;;  %3319 = vrot.lane.b32.xlu0 %v10027_v28, %s7616_s23 }
 0x9a7   : > { %13173 = vst [vmem:[#allocation15_spill] sm:$0xff] %v10035_v47  ;;  %v10038_v5 = vadd.f32 %v7371_v62, %v13174_v43  ;;  %v10182_v62 = vld [vmem:[%s12948_s11 + $0x38] sm:$0xff] }
 0x9a8   : > { %13171 = vst [vmem:[#allocation18_spill] sm:$0xff] %v10030_v37  ;;  %3321 = vrot.lane.b32.xlu1 %v10030_v37, %s7616_s23  ;;  %v10050_v45 = vpack.c.bf16 %v10030_v37, %v10027_v28 }
 0x9a9   : > { %13175 = vst [vmem:[#allocation5_spill] sm:$0xff] %v10038_v5  ;;  %v3168_v63 = vpop.f32.mrb[20].mxu1  ;;  %v10044_v44 = vpack.c.bf16 %v10038_v5, %v10035_v47 }
 0x9aa   : > { %v7372_v58 = vadd.f32 %v3168_v63, %v3028_v3  ;;  %v3170_v21 = vpop.f32.mrb[21].mxu1  ;;  %3327 = vrot.lane.b32.xlu0 %v10035_v47, %s7616_s23 }
 0x9ab   : > { %v7373_v52 = vadd.f32 %v3170_v21, %v3028_v3  ;;  %v3172_v26 = vpop.f32.mrb[22].mxu1  ;;  %3242 = vmatprep.subr.bf16.mxu1 %v10044_v44 }
 0x9ac   : > { %v10054_v53 = vadd.f32 %v7372_v58, %v13176_v35  ;;  %v7374_v27 = vadd.f32 %v3172_v26, %v3033_v9  ;;  %v3174_v51 = vpop.f32.mrb[23].mxu1  ;;  %3329 = vrot.lane.b32.xlu1 %v10038_v5, %s7616_s23  ;;  %3243 = vmatpush1.bf16.msra.mxu1 %v10050_v45 }
 0x9ad   : > { %v7375_v20 = vadd.f32 %v3174_v51, %v3033_v9  ;;  %v10065_v33 = vadd.f32 %v7373_v52, %v13180_v17 }
 0x9ae   : > { %13177 = vst [vmem:[#allocation6_spill] sm:$0xff] %v10054_v53  ;;  %v10060_v32 = vadd.f32 %v7374_v27, %v13178_v13  ;;  %3323 = vrot.lane.b32.xlu0 %v10054_v53, %s7616_s23  ;;  %v10215_v27 = vld [vmem:[%s12948_s11 + $0x40] sm:$0xff] }
 0x9af   : > { %13181 = vst [vmem:[#allocation8_spill] sm:$0xff] %v10065_v33  ;;  %v10068_v57 = vadd.f32 %v7375_v20, %v13182_v1  ;;  %13184 = vst [vmem:[#allocation11_spill] sm:$0xff] %v10215_v27  ;;  %v10220_v20 = vld [vmem:[%s12948_s11 + $0x48] sm:$0xff]  ;;  %v10229_v1 = vld [vmem:[%s12948_s11 + $0x50] sm:$0xff] }
 0x9b0   : > { %13179 = vst [vmem:[#allocation7_spill] sm:$0xff] %v10060_v32  ;;  %3325 = vrot.lane.b32.xlu1 %v10060_v32, %s7616_s23  ;;  %v10080_v14 = vpack.c.bf16 %v10060_v32, %v10054_v53  ;;  %13185 = vst [vmem:[#allocation10_spill] sm:$0xff] %v10220_v20 }
 0x9b1   : > { %13183 = vst [vmem:[#allocation9_spill] sm:$0xff] %v10068_v57  ;;  %v10074_v2 = vpack.c.bf16 %v10068_v57, %v10065_v33  ;;  %13186 = vst [vmem:[#allocation12_spill] sm:$0xff] %v10229_v1 }
 0x9b2   : > { %3331 = vrot.lane.b32.xlu0 %v10065_v33, %s7616_s23 }
 0x9b3   : > { %3244 = vmatprep.subr.bf16.mxu1 %v10074_v2 }
 0x9b4   : > { %3333 = vrot.lane.b32.xlu1 %v10068_v57, %s7616_s23  ;;  %3245 = vmatpush1.bf16.msra.mxu1 %v10080_v14 }
 0x9b6   : > { %3359 = vrot.lane.b32.xlu0 %v10027_v28, %s7617_s24 }
 0x9b8   : > { %3361 = vrot.lane.b32.xlu1 %v10030_v37, %s7617_s24 }
 0x9ba   : > { %3367 = vrot.lane.b32.xlu0 %v10035_v47, %s7617_s24 }
 0x9bc   : > { %3369 = vrot.lane.b32.xlu1 %v10038_v5, %s7617_s24 }
 0x9be   : > { %3363 = vrot.lane.b32.xlu0 %v10054_v53, %s7617_s24 }
 0x9c0   : > { %3365 = vrot.lane.b32.xlu1 %v10060_v32, %s7617_s24 }
 0x9c2   : > { %3371 = vrot.lane.b32.xlu0 %v10065_v33, %s7617_s24 }
 0x9c4   : > { %3505 = vrot.lane.b32.xlu1 %v10030_v37, %s7618_s25 }
 0x9c6   : > { %3503 = vrot.lane.b32.xlu0 %v10027_v28, %s7618_s25 }
 0x9c8   : > { %3513 = vrot.lane.b32.xlu1 %v10038_v5, %s7618_s25 }
 0x9ca   : > { %3511 = vrot.lane.b32.xlu0 %v10035_v47, %s7618_s25 }
 0x9cc   : > { %3373 = vrot.lane.b32.xlu1 %v10068_v57, %s7617_s24 }
 0xa18   : > { %v3320_v30 = vpop.permute.xlu0 %3319 }
 0xa1a   : > { %v3322_v49 = vpop.permute.xlu1 %3321 }
 0xa1c   : > { %v3328_v39 = vpop.permute.xlu0 %3327 }
 0xa1d   : > { %v3335_v15 = vsel %vm616_vm2, %v3320_v30, %v3328_v39  ;;  %v3339_v22 = vsel %vm616_vm2, %v3328_v39, %v3320_v30  ;;  %v10234_v30 = vld [vmem:[%s12948_s11 + $0x58] sm:$0xff] }
 0xa1e   : > { %v10135_v46 = vmul.f32 %v10113_v6, %v3339_v22  ;;  %v3330_v41 = vpop.permute.xlu1 %3329  ;;  %v10142_v19 = vmul.f32 %v10118_v18, %v3335_v15  ;;  %13187 = vst [vmem:[#allocation24_spill] sm:$0xff] %v10234_v30 }
 0xa1f   : > { %v3336_v25 = vsel %vm616_vm2, %v3322_v49, %v3330_v41  ;;  %v3340_v8 = vsel %vm616_vm2, %v3330_v41, %v3322_v49 }
 0xa20   : > { %v10145_v29 = vmul.f32 %v10127_v12, %v3340_v8  ;;  %v10148_v60 = vmul.f32 %v10132_v31, %v3336_v25  ;;  %3399 = vrot.lane.b32.xlu0 %v10135_v46, %s7618_s25  ;;  %v3324_v16 = vpop.permute.xlu0 %3323 }
 0xa22   : > { %3401 = vrot.lane.b32.xlu1 %v10145_v29, %s7618_s25  ;;  %v3326_v61 = vpop.permute.xlu1 %3325 }
 0xa24   : > { %3407 = vrot.lane.b32.xlu0 %v10142_v19, %s7618_s25  ;;  %v3332_v7 = vpop.permute.xlu0 %3331 }
 0xa25   : > { %v3337_v10 = vsel %vm616_vm2, %v3324_v16, %v3332_v7  ;;  %v3341_v11 = vsel %vm616_vm2, %v3332_v7, %v3324_v16 }
 0xa26   : > { %3409 = vrot.lane.b32.xlu1 %v10148_v60, %s7618_s25  ;;  %v3334_v4 = vpop.permute.xlu1 %3333  ;;  %v10191_v3 = vmul.f32 %v10163_v59, %v3341_v11  ;;  %v10194_v63 = vmul.f32 %v10168_v54, %v3337_v10 }
 0xa27   : > { %v3338_v24 = vsel %vm616_vm2, %v3326_v61, %v3334_v4  ;;  %v3342_v43 = vsel %vm616_vm2, %v3334_v4, %v3326_v61 }
 0xa28   : > { %v10197_v58 = vmul.f32 %v10177_v23, %v3342_v43  ;;  %v10200_v21 = vmul.f32 %v10182_v62, %v3338_v24  ;;  %3455 = vrot.lane.b32.xlu0 %v10135_v46, %s7619_s29  ;;  %v3360_v9 = vpop.permute.xlu0 %3359  ;;  %v10277_v43 = vld [vmem:[%s12948_s11 + $0x60] sm:$0xff] }
 0xa29   : > { %13188 = vst [vmem:[#allocation25_spill] sm:$0xff] %v10277_v43 }
 0xa2a   : > { %3457 = vrot.lane.b32.xlu1 %v10145_v29, %s7619_s29  ;;  %v3362_v52 = vpop.permute.xlu1 %3361 }
 0xa2c   : > { %3463 = vrot.lane.b32.xlu0 %v10142_v19, %s7619_s29  ;;  %v3368_v51 = vpop.permute.xlu0 %3367 }
 0xa2d   : > { %v3375_v13 = vsel %vm657_vm3, %v3360_v9, %v3368_v51  ;;  %v3379_v17 = vsel %vm657_vm3, %v3368_v51, %v3360_v9  ;;  %v10284_v9 = vld [vmem:[%s12948_s11 + $0x68] sm:$0xff] }
 0xa2e   : > { %3465 = vrot.lane.b32.xlu1 %v10148_v60, %s7619_s29  ;;  %v3370_v49 = vpop.permute.xlu1 %3369  ;;  %v10243_v22 = vmul.f32 %v10215_v27, %v3375_v13  ;;  %v10246_v41 = vmul.f32 %v10220_v20, %v3379_v17  ;;  %13189 = vst [vmem:[#allocation26_spill] sm:$0xff] %v10284_v9  ;;  %v10293_v13 = vld [vmem:[%s12948_s11 + $0x70] sm:$0xff]  ;;  %v10298_v17 = vld [vmem:[%s12948_s11 + $0x78] sm:$0xff] }
 0xa2f   : > { %v3376_v39 = vsel %vm657_vm3, %v3362_v52, %v3370_v49  ;;  %v3380_v15 = vsel %vm657_vm3, %v3370_v49, %v3362_v52  ;;  %13190 = vst [vmem:[#allocation27_spill] sm:$0xff] %v10293_v13  ;;  %13191 = vst [vmem:[#allocation19_spill] sm:$0xff] %v10298_v17 }
 0xa30   : > { %v10249_v25 = vmul.f32 %v10229_v1, %v3376_v39  ;;  %v10252_v8 = vmul.f32 %v10234_v30, %v3380_v15  ;;  %3403 = vrot.lane.b32.xlu0 %v10191_v3, %s7618_s25  ;;  %v3364_v10 = vpop.permute.xlu0 %3363 }
 0xa32   : > { %3405 = vrot.lane.b32.xlu1 %v10197_v58, %s7618_s25  ;;  %v3366_v16 = vpop.permute.xlu1 %3365 }
 0xa34   : > { %3411 = vrot.lane.b32.xlu0 %v10194_v63, %s7618_s25  ;;  %v3372_v4 = vpop.permute.xlu0 %3371 }
 0xa35   : > { %v3377_v52 = vsel %vm657_vm3, %v3364_v10, %v3372_v4  ;;  %v3381_v51 = vsel %vm657_vm3, %v3372_v4, %v3364_v10 }
 0xa36   : > { %3413 = vrot.lane.b32.xlu1 %v10200_v21, %s7618_s25  ;;  %v10266_v11 = vpop.permute.xlu1 %3505  ;;  %v10307_v10 = vmul.f32 %v10277_v43, %v3377_v52  ;;  %v10310_v4 = vmul.f32 %v10284_v9, %v3381_v51  ;;  %v7566_v51 = vld [vmem:[%s12940_s3 + $0x64] ss:$12 sps:$4 sm:$0xff]  }
 0xa37   : > { %3849 = vmatprep.mubr.bf16.mxu0 %v7566_v51  ;;  %v7020_v51 = vld [vmem:[%s12941_s4 + $0x58] sm:$0xff] }
 0xa38   : > { %3507 = vrot.lane.b32.xlu0 %v10054_v53, %s7618_s25  ;;  %v10393_v52 = vpop.permute.xlu0 %3503 }
 0xa3a   : > { %3509 = vrot.lane.b32.xlu1 %v10060_v32, %s7618_s25  ;;  %v10272_v24 = vpop.permute.xlu1 %3513 }
 0xa3c   : > { %3459 = vrot.lane.b32.xlu0 %v10191_v3, %s7619_s29 }
 0xa3e   : > { %3517 = vrot.lane.b32.xlu1 %v10068_v57, %s7618_s25  ;;  %v3374_v49 = vpop.permute.xlu1 %3373 }
 0xa3f   : > { %v3378_v39 = vsel %vm657_vm3, %v3366_v16, %v3374_v49  ;;  %v3382_v15 = vsel %vm657_vm3, %v3374_v49, %v3366_v16  ;;  %v7017_v49 = vld [vmem:[%s12941_s4 + $0x40] sm:$0xff]  ;;  %v10395_v16 = vpop.permute.xlu0 %3511 }
 0xa40   : > { %v10313_v7 = vmul.f32 %v10293_v13, %v3378_v39  ;;  %v10316_v61 = vmul.f32 %v10298_v17, %v3382_v15  ;;  %3467 = vrot.lane.b32.xlu0 %v10194_v63, %s7619_s29  ;;  %v7018_v39 = vld [vmem:[%s12941_s4 + $0x48] sm:$0xff]  ;;  %v7019_v15 = vld [vmem:[%s12941_s4 + $0x50] sm:$0xff] }
 0xa42   : > { %3461 = vrot.lane.b32.xlu1 %v10197_v58, %s7619_s29 }
 0xa44   : > { %3515 = vrot.lane.b32.xlu0 %v10065_v33, %s7618_s25 }
 0xa46   : > { %3469 = vrot.lane.b32.xlu1 %v10200_v21, %s7619_s29 }
 0xa48   : > { %3559 = vrot.lane.b32.xlu0 %v10027_v28, %s7619_s29 }
 0xa4a   : > { %3561 = vrot.lane.b32.xlu1 %v10030_v37, %s7619_s29 }
 0xa4c   : > { %3567 = vrot.lane.b32.xlu0 %v10035_v47, %s7619_s29 }
 0xa4e   : > { %3569 = vrot.lane.b32.xlu1 %v10038_v5, %s7619_s29 }
 0xa50   : > { %3563 = vrot.lane.b32.xlu0 %v10054_v53, %s7619_s29 }
 0xa52   : > { %3565 = vrot.lane.b32.xlu1 %v10060_v32, %s7619_s29 }
 0xa54   : > { %3571 = vrot.lane.b32.xlu0 %v10065_v33, %s7619_s29 }
 0xa56   : > { %3573 = vrot.lane.b32.xlu1 %v10068_v57, %s7619_s29  ;;  %v10414_v57 = vld [vmem:[%s12948_s11 + $0x80] sm:$0xff] }
 0xa58   : > { %3607 = vrot.lane.b32.xlu0 %v10243_v22, %s7618_s25 }
 0xa5a   : > { %3609 = vrot.lane.b32.xlu1 %v10249_v25, %s7618_s25 }
 0xa5c   : > { %3615 = vrot.lane.b32.xlu0 %v10246_v41, %s7618_s25 }
 0xa5e   : > { %3617 = vrot.lane.b32.xlu1 %v10252_v8, %s7618_s25 }
 0xa60   : > { %3611 = vrot.lane.b32.xlu0 %v10307_v10, %s7618_s25 }
 0xa62   : > { %3613 = vrot.lane.b32.xlu1 %v10313_v7, %s7618_s25 }
 0xa64   : > { %3619 = vrot.lane.b32.xlu0 %v10310_v4, %s7618_s25 }
 0xa66   : > { %3621 = vrot.lane.b32.xlu1 %v10316_v61, %s7618_s25 }
 0xa68   : > { %3663 = vrot.lane.b32.xlu0 %v10243_v22, %s7619_s29 }
 0xa6a   : > { %3665 = vrot.lane.b32.xlu1 %v10249_v25, %s7619_s29 }
 0xa6c   : > { %3671 = vrot.lane.b32.xlu0 %v10246_v41, %s7619_s29 }
 0xa6e   : > { %3673 = vrot.lane.b32.xlu1 %v10252_v8, %s7619_s29 }
 0xa70   : > { %3667 = vrot.lane.b32.xlu0 %v10307_v10, %s7619_s29 }
 0xa72   : > { %3669 = vrot.lane.b32.xlu1 %v10313_v7, %s7619_s29 }
 0xa74   : > { %3675 = vrot.lane.b32.xlu0 %v10310_v4, %s7619_s29 }
 0xa76   : > { %3677 = vrot.lane.b32.xlu1 %v10316_v61, %s7619_s29 }
 0xa78   : > { %3763 = vperm.xlu0 %7518, %v7017_v49  }
 0xa7a   : > { %3768 = vperm.xlu1 %7519, %v7018_v39   ;;  %v10404_v39 = vld [vmem:[%s12948_s11 + $0x90] sm:$0xff] }
 0xa7c   : > { %3773 = vperm.xlu0 %7518, %v7019_v15  }
 0xa7e   : > { %3778 = vperm.xlu1 %7519, %v7020_v51   ;;  %v10409_v51 = vld [vmem:[%s12948_s11 + $0x98] sm:$0xff] }
 0xa92   : > { %v3400_v35 = vpop.permute.xlu0 %3399 }
 0xa94   : > { %v3402_v26 = vpop.permute.xlu1 %3401 }
 0xa96   : > { %v3408_v34 = vpop.permute.xlu0 %3407 }
 0xa97   : > { %v3415_v49 = vsel %vm699_vm4, %v3400_v35, %v3408_v34  ;;  %v3419_v48 = vsel %vm699_vm4, %v3408_v34, %v3400_v35  ;;  %v10419_v34 = vld [vmem:[%s12948_s11 + $0x88] sm:$0xff] }
 0xa98   : > { %v3410_v15 = vpop.permute.xlu1 %3409  ;;  %v3431_v32 = vmul.f32 %v10414_v57, %v3419_v48  ;;  %v3432_v53 = vmul.f32 %v10419_v34, %v3415_v49 }
 0xa99   : > { %v3416_v35 = vsel %vm699_vm4, %v3402_v26, %v3410_v15  ;;  %v3420_v33 = vsel %vm699_vm4, %v3410_v15, %v3402_v26 }
 0xa9a   : > { %v3433_v5 = vmul.f32 %v10404_v39, %v3420_v33  ;;  %v3434_v47 = vmul.f32 %v10409_v51, %v3416_v35  ;;  %v3456_v37 = vpop.permute.xlu0 %3455 }
 0xa9c   : > { %v3439_v28 = vpack.c.bf16 %v3433_v5, %v3431_v32  ;;  %v3458_v17 = vpop.permute.xlu1 %3457  ;;  %v3440_v13 = vpack.c.bf16 %v3434_v47, %v3432_v53 }
 0xa9e   : > { %3817 = vmatprep.subr.bf16.mxu0 %v3440_v13  ;;  %v3464_v9 = vpop.permute.xlu0 %3463 }
 0xa9f   : > { %3818 = vmatpush1.bf16.msra.mxu0 %v3439_v28 }
 0xaa0   : > { %v3466_v43 = vpop.permute.xlu1 %3465 }
 0xaa2   : > { %v3404_v30 = vpop.permute.xlu0 %3403 }
 0xaa4   : > { %v3406_v1 = vpop.permute.xlu1 %3405 }
 0xaa6   : > { %v3412_v20 = vpop.permute.xlu0 %3411 }
 0xaa7   : > { %v3417_v48 = vsel %vm699_vm4, %v3404_v30, %v3412_v20  ;;  %v3421_v26 = vsel %vm699_vm4, %v3412_v20, %v3404_v30  ;;  %v10444_v30 = vld [vmem:[%s12948_s11 + $0xd8] sm:$0xff] }
 0xaa8   : > { %v3414_v33 = vpop.permute.xlu1 %3413  ;;  %v3435_v5 = vmul.f32 %v9807_v40, %v3421_v26  ;;  %v3436_v28 = vmul.f32 %v9812_v50, %v3417_v48  ;;  %v13192_v26 = vpack.c.bf16 %v10148_v60, %v10142_v19  ;;  %v13193_v60 = vpack.c.bf16 %v10145_v29, %v10135_v46 }
 0xaa9   : > { %v3418_v49 = vsel %vm699_vm4, %v3406_v1, %v3414_v33  ;;  %v3422_v47 = vsel %vm699_vm4, %v3414_v33, %v3406_v1  ;;  %v3476_v1 = vsel %vm757_vm5, %v3466_v43, %v3458_v17  ;;  %v10454_v33 = vld [vmem:[%s12948_s11 + $0xc8] sm:$0xff]  ;;  %v3519_v46 = vsel %vm699_vm4, %v10393_v52, %v10395_v16 }
 0xaaa   : > { %v3437_v53 = vmul.f32 %v9821_v38, %v3422_v47  ;;  %v3438_v32 = vmul.f32 %v9826_v0, %v3418_v49  ;;  %v3508_v13 = vpop.permute.xlu0 %3507  ;;  %v10461_v49 = vld [vmem:[%s12948_s11 + $0xd0] sm:$0xff]  ;;  %v3472_v47 = vsel %vm757_vm5, %v3458_v17, %v3466_v43  ;;  %v13194_v43 = vpack.c.bf16 %v10200_v21, %v10194_v63  ;;  %v10494_v63 = vld [vmem:[%s12948_s11 + $0xe8] sm:$0xff] }
 0xaab   : > { %v3489_v17 = vmul.f32 %v10461_v49, %v3472_v47  ;;  %v3520_v47 = vsel %vm699_vm4, %v10266_v11, %v10272_v24 }
 0xaac   : > { %v3441_v15 = vpack.c.bf16 %v3437_v53, %v3435_v5  ;;  %v3510_v35 = vpop.permute.xlu1 %3509  ;;  %v3442_v27 = vpack.c.bf16 %v3438_v32, %v3436_v28  ;;  %v3490_v5 = vmul.f32 %v10444_v30, %v3476_v1  ;;  %v10472_v28 = vld [vmem:[%s12948_s11 + $0xc0] sm:$0xff]  ;;  %v3471_v53 = vsel %vm757_vm5, %v3456_v37, %v3464_v9 }
 0xaae   : > { %3819 = vmatprep.subr.bf16.mxu0 %v3442_v27  ;;  %v3460_v20 = vpop.permute.xlu0 %3459  ;;  %v3475_v27 = vsel %vm757_vm5, %v3464_v9, %v3456_v37  ;;  %v10489_v37 = vld [vmem:[%s12948_s11 + $0xe0] sm:$0xff] }
 0xaaf   : > { %3820 = vmatpush1.bf16.msra.mxu0 %v3441_v15  ;;  %v3488_v32 = vmul.f32 %v10454_v33, %v3475_v27  ;;  %v13195_v27 = vpack.c.bf16 %v10197_v58, %v10191_v3 }
 0xab0   : > { %v3518_v48 = vpop.permute.xlu1 %3517  ;;  %3821 = vmatprep.subr.bf16.mxu0 %v13192_v26  ;;  %v3487_v26 = vmul.f32 %v10472_v28, %v3471_v53  ;;  %v3536_v53 = vmul.f32 %v10419_v34, %v3519_v46 }
 0xab1   : > { %v3496_v1 = vpack.c.bf16 %v3490_v5, %v3488_v32  ;;  %v3523_v5 = vsel %vm699_vm4, %v10395_v16, %v10393_v52 }
 0xab2   : > { %v3468_v19 = vpop.permute.xlu0 %3467  ;;  %v3495_v32 = vpack.c.bf16 %v3489_v17, %v3487_v26  ;;  %v3524_v17 = vsel %vm699_vm4, %v10272_v24, %v10266_v11  ;;  %v3526_v24 = vsel %vm699_vm4, %v3518_v48, %v3510_v35 }
 0xab3   : > { %3822 = vmatpush1.bf16.msra.mxu0 %v13193_v60  ;;  %v3473_v21 = vsel %vm757_vm5, %v3460_v20, %v3468_v19  ;;  %v3477_v9 = vsel %vm757_vm5, %v3468_v19, %v3460_v20  ;;  %v3537_v11 = vmul.f32 %v10404_v39, %v3524_v17 }
 0xab4   : > { %v3462_v15 = vpop.permute.xlu1 %3461  ;;  %3823 = vmatprep.subr.bf16.mxu0 %v13194_v43  ;;  %v3491_v58 = vmul.f32 %v10489_v37, %v3473_v21  ;;  %v3492_v19 = vmul.f32 %v10494_v63, %v3477_v9  ;;  %v3535_v21 = vmul.f32 %v10414_v57, %v3523_v5  ;;  %v3522_v9 = vsel %vm699_vm4, %v3510_v35, %v3518_v48 }
 0xab6   : > { %v3516_v29 = vpop.permute.xlu0 %3515 }
 0xab7   : > { %3824 = vmatpush1.bf16.msra.mxu0 %v13195_v27  ;;  %v3521_v52 = vsel %vm699_vm4, %v3508_v13, %v3516_v29 }
 0xab8   : > { %v3470_v60 = vpop.permute.xlu1 %3469  ;;  %3825 = vmatprep.subr.bf16.mxu0 %v3496_v1 }
 0xab9   : > { %v3474_v20 = vsel %vm757_vm5, %v3462_v15, %v3470_v60  ;;  %v3478_v3 = vsel %vm757_vm5, %v3470_v60, %v3462_v15  ;;  %v3538_v15 = vmul.f32 %v10409_v51, %v3520_v47  ;;  %v3525_v60 = vsel %vm699_vm4, %v3516_v29, %v3508_v13 }
 0xaba   : > { %v3493_v43 = vmul.f32 %v9871_v55, %v3474_v20  ;;  %v3494_v27 = vmul.f32 %v9876_v56, %v3478_v3  ;;  %v3560_v16 = vpop.permute.xlu0 %3559  ;;  %v3542_v47 = vmul.f32 %v9826_v0, %v3522_v9 }
 0xabb   : > { %3826 = vmatpush1.bf16.msra.mxu0 %v3495_v32  ;;  %v3540_v32 = vmul.f32 %v9812_v50, %v3521_v52  ;;  %v3544_v3 = vpack.c.bf16 %v3538_v15, %v3536_v53  ;;  %v3541_v50 = vmul.f32 %v9821_v38, %v3526_v24 }
 0xabc   : > { %v3497_v46 = vpack.c.bf16 %v3493_v43, %v3491_v58  ;;  %v3562_v1 = vpop.permute.xlu1 %3561  ;;  %v3498_v26 = vpack.c.bf16 %v3494_v27, %v3492_v19  ;;  %v3543_v58 = vpack.c.bf16 %v3537_v11, %v3535_v21  ;;  %v3539_v19 = vmul.f32 %v9807_v40, %v3525_v60 }
 0xabd   : > { %v3546_v13 = vpack.c.bf16 %v3542_v47, %v3540_v32 }
 0xabe   : > { %3827 = vmatprep.subr.bf16.mxu0 %v3498_v26  ;;  %v3568_v20 = vpop.permute.xlu0 %3567  ;;  %v3545_v53 = vpack.c.bf16 %v3541_v50, %v3539_v19 }
 0xabf   : > { %3828 = vmatpush1.bf16.msra.mxu0 %v3497_v46  ;;  %v3579_v0 = vsel %vm757_vm5, %v3568_v20, %v3560_v16  ;;  %v3575_v15 = vsel %vm757_vm5, %v3560_v16, %v3568_v20 }
 0xac0   : > { %v3570_v5 = vpop.permute.xlu1 %3569  ;;  %3829 = vmatprep.subr.bf16.mxu0 %v3544_v3  ;;  %v3592_v46 = vmul.f32 %v10454_v33, %v3579_v0  ;;  %v3591_v32 = vmul.f32 %v10472_v28, %v3575_v15  ;;  %v10587_v0 = vld [vmem:[%s12948_s11 + $0xa8] sm:$0xff] }
 0xac1   : > { %v3580_v52 = vsel %vm757_vm5, %v3570_v5, %v3562_v1  ;;  %v3576_v40 = vsel %vm757_vm5, %v3562_v1, %v3570_v5 }
 0xac2   : > { %v3564_v43 = vpop.permute.xlu0 %3563  ;;  %v3594_v38 = vmul.f32 %v10444_v30, %v3580_v52  ;;  %v3593_v26 = vmul.f32 %v10461_v49, %v3576_v40 }
 0xac3   : > { %3830 = vmatpush1.bf16.msra.mxu0 %v3543_v58 }
 0xac4   : > { %v3566_v29 = vpop.permute.xlu1 %3565  ;;  %3831 = vmatprep.subr.bf16.mxu0 %v3546_v13  ;;  %v3599_v3 = vpack.c.bf16 %v3593_v26, %v3591_v32 }
 0xac6   : > { %v3572_v27 = vpop.permute.xlu0 %3571 }
 0xac7   : > { %3832 = vmatpush1.bf16.msra.mxu0 %v3545_v53  ;;  %v3581_v1 = vsel %vm757_vm5, %v3572_v27, %v3564_v43  ;;  %v3577_v16 = vsel %vm757_vm5, %v3564_v43, %v3572_v27  ;;  %v10581_v53 = vld [vmem:[%s12948_s11 + $0xa0] sm:$0xff] }
 0xac8   : > { %v3574_v35 = vpop.permute.xlu1 %3573  ;;  %3833 = vmatprep.subr.bf16.mxu0 %v10044_v44  ;;  %v3595_v19 = vmul.f32 %v10489_v37, %v3577_v16 }
 0xac9   : > { %v3582_v17 = vsel %vm757_vm5, %v3574_v35, %v3566_v29  ;;  %v3578_v21 = vsel %vm757_vm5, %v3566_v29, %v3574_v35 }
 0xaca   : > { %v3608_v48 = vpop.permute.xlu0 %3607  ;;  %v3598_v9 = vmul.f32 %v9876_v56, %v3582_v17  ;;  %v3597_v11 = vmul.f32 %v9871_v55, %v3578_v21  ;;  %v10601_v17 = vld [vmem:[%s12948_s11 + $0xb8] sm:$0xff] }
 0xacb   : > { %3834 = vmatpush1.bf16.msra.mxu0 %v10050_v45  ;;  %v3600_v45 = vpack.c.bf16 %v3594_v38, %v3592_v46 }
 0xacc   : > { %v3610_v44 = vpop.permute.xlu1 %3609  ;;  %3835 = vmatprep.subr.bf16.mxu0 %v10074_v2  ;;  %v3596_v2 = vmul.f32 %v10494_v63, %v3581_v1  ;;  %v3601_v50 = vpack.c.bf16 %v3597_v11, %v3595_v19  ;;  %v13196_v11 = vpack.c.bf16 %v10252_v8, %v10246_v41 }
 0xace   : > { %v3616_v60 = vpop.permute.xlu0 %3615  ;;  %v3602_v58 = vpack.c.bf16 %v3598_v9, %v3596_v2 }
 0xacf   : > { %3836 = vmatpush1.bf16.msra.mxu0 %v10080_v14  ;;  %v3623_v24 = vsel %vm699_vm4, %v3608_v48, %v3616_v60  ;;  %v3627_v43 = vsel %vm699_vm4, %v3616_v60, %v3608_v48  ;;  %v10596_v48 = vld [vmem:[%s12948_s11 + $0xb0] sm:$0xff] }
 0xad0   : > { %v3618_v20 = vpop.permute.xlu1 %3617  ;;  %3837 = vmatprep.subr.bf16.mxu0 %v3600_v45  ;;  %v3640_v55 = vmul.f32 %v10419_v34, %v3623_v24  ;;  %v3639_v35 = vmul.f32 %v10414_v57, %v3627_v43  ;;  %v13198_v43 = vpack.c.bf16 %v10316_v61, %v10310_v4  ;;  %v13199_v61 = vpack.c.bf16 %v10313_v7, %v10307_v10  ;;  %v10645_v4 = vld [vmem:[%s12948_s11 + $0xf0] sm:$0xff] }
 0xad1   : > { %v3624_v56 = vsel %vm699_vm4, %v3610_v44, %v3618_v20  ;;  %v3628_v47 = vsel %vm699_vm4, %v3618_v20, %v3610_v44 }
 0xad2   : > { %v3642_v14 = vmul.f32 %v10409_v51, %v3624_v56  ;;  %v3612_v5 = vpop.permute.xlu0 %3611  ;;  %v3641_v29 = vmul.f32 %v10404_v39, %v3628_v47 }
 0xad3   : > { %3838 = vmatpush1.bf16.msra.mxu0 %v3599_v3 }
 0xad4   : > { %v3614_v13 = vpop.permute.xlu1 %3613  ;;  %3839 = vmatprep.subr.bf16.mxu0 %v3602_v58  ;;  %v3648_v52 = vpack.c.bf16 %v3642_v14, %v3640_v55  ;;  %v3647_v46 = vpack.c.bf16 %v3641_v29, %v3639_v35  ;;  %v13197_v58 = vpack.c.bf16 %v10249_v25, %v10243_v22  ;;  %v7564_v29 = vld [vmem:[%s12940_s3 + $0x60] ss:$12 sps:$4 sm:$0xff]   ;;  %v7567_v35 = vld [vmem:[%s12940_s3 + $0x7c] ss:$12 sps:$4 sm:$0xff]  }
 0xad6   : > { %v3620_v27 = vpop.permute.xlu0 %3619 }
 0xad7   : > { %v3625_v40 = vsel %vm699_vm4, %v3612_v5, %v3620_v27  ;;  %v3629_v38 = vsel %vm699_vm4, %v3620_v27, %v3612_v5  ;;  %3840 = vmatpush1.bf16.msra.mxu0 %v3601_v50 }
 0xad8   : > { %v3622_v15 = vpop.permute.xlu1 %3621  ;;  %3841 = vmatprep.subr.bf16.mxu0 %v3648_v52  ;;  %v3643_v1 = vmul.f32 %v10581_v53, %v3629_v38  ;;  %v3644_v21 = vmul.f32 %v10587_v0, %v3625_v40  ;;  %v10650_v52 = vld [vmem:[%s12948_s11 + $0xf8] sm:$0xff] }
 0xad9   : > { %v3626_v44 = vsel %vm699_vm4, %v3614_v13, %v3622_v15  ;;  %v3630_v26 = vsel %vm699_vm4, %v3622_v15, %v3614_v13 }
 0xada   : > { %v3645_v9 = vmul.f32 %v10596_v48, %v3630_v26  ;;  %v3646_v60 = vmul.f32 %v10601_v17, %v3626_v44  ;;  %v3664_v45 = vpop.permute.xlu0 %3663 }
 0xadb   : > { %3842 = vmatpush1.bf16.msra.mxu0 %v3647_v46 }
 0xadc   : > { %v3649_v32 = vpack.c.bf16 %v3645_v9, %v3643_v1  ;;  %v3666_v16 = vpop.permute.xlu1 %3665  ;;  %v3650_v2 = vpack.c.bf16 %v3646_v60, %v3644_v21  ;;  %v7569_v9 = vld [vmem:[%s12940_s3 + $0x78] ss:$12 sps:$4 sm:$0xff]   ;;  %v7570_v60 = vld [vmem:[%s12940_s3 + $0x68] ss:$12 sps:$4 sm:$0xff]  }
 0xade   : > { %v3672_v20 = vpop.permute.xlu0 %3671  ;;  %3843 = vmatprep.subr.bf16.mxu0 %v3650_v2 }
 0xadf   : > { %3844 = vmatpush1.bf16.msra.mxu0 %v3649_v32  ;;  %v3683_v24 = vsel %vm757_vm5, %v3672_v20, %v3664_v45  ;;  %v3679_v41 = vsel %vm757_vm5, %v3664_v45, %v3672_v20  ;;  %v7571_v45 = vld [vmem:[%s12940_s3 + $0x80] ss:$12 sps:$4 sm:$0xff]  }
 0xae0   : > { %v3674_v3 = vpop.permute.xlu1 %3673  ;;  %3845 = vmatprep.subr.bf16.mxu0 %v13196_v11  ;;  %v3696_v8 = vmul.f32 %v10454_v33, %v3683_v24  ;;  %v3695_v22 = vmul.f32 %v10472_v28, %v3679_v41 }
 0xae1   : > { %v3684_v56 = vsel %vm757_vm5, %v3674_v3, %v3666_v16  ;;  %v3680_v47 = vsel %vm757_vm5, %v3666_v16, %v3674_v3 }
 0xae2   : > { %v3698_v14 = vmul.f32 %v10444_v30, %v3684_v56  ;;  %v3668_v5 = vpop.permute.xlu0 %3667  ;;  %v3697_v55 = vmul.f32 %v10461_v49, %v3680_v47 }
 0xae3   : > { %3846 = vmatpush1.bf16.msra.mxu0 %v13197_v58 }
 0xae4   : > { %v3670_v19 = vpop.permute.xlu1 %3669  ;;  %3847 = vmatprep.subr.bf16.mxu0 %v13198_v43  ;;  %v3704_v50 = vpack.c.bf16 %v3698_v14, %v3696_v8  ;;  %v3703_v38 = vpack.c.bf16 %v3697_v55, %v3695_v22 }
 0xae6   : > { %v3676_v13 = vpop.permute.xlu0 %3675 }
 0xae7   : > { %v3681_v25 = vsel %vm757_vm5, %v3668_v5, %v3676_v13  ;;  %v3685_v27 = vsel %vm757_vm5, %v3676_v13, %v3668_v5  ;;  %3848 = vmatpush1.bf16.msra.mxu0 %v13199_v61 }
 0xae8   : > { %v3678_v40 = vpop.permute.xlu1 %3677  ;;  %3870 = vmatprep.subr.bf16.mxu0 %v3704_v50  ;;  %v3699_v15 = vmul.f32 %v10489_v37, %v3681_v25  ;;  %v3700_v46 = vmul.f32 %v10494_v63, %v3685_v27 }
 0xae9   : > { %v3682_v7 = vsel %vm757_vm5, %v3670_v19, %v3678_v40  ;;  %v3686_v10 = vsel %vm757_vm5, %v3678_v40, %v3670_v19 }
 0xaea   : > { %v3701_v44 = vmul.f32 %v10645_v4, %v3682_v7  ;;  %v3702_v26 = vmul.f32 %v10650_v52, %v3686_v10  ;;  %3850 = vmatmul.mubr.bf16.vlgmr.msra.gmra.mrb[24].mxu0 %v7564_v29 }
 0xaeb   : > { %3871 = vmatpush1.bf16.msra.mxu0 %v3703_v38  ;;  %3859 = vmatprep.mubr.bf16.mxu0 %v7567_v35 }
 0xaec   : > { %v3705_v1 = vpack.c.bf16 %v3701_v44, %v3699_v15  ;;  %v3706_v21 = vpack.c.bf16 %v3702_v26, %v3700_v46 }
 0xaee   : > { %3872 = vmatprep.subr.bf16.mxu0 %v3706_v21 }
 0xaef   : > { %3873 = vmatpush1.bf16.msra.mxu0 %v3705_v1  ;;  %v7572_v1 = vld [vmem:[%s12944_s7 + $0x10] sm:$0xff]  }
 0xaf0   : > { %6951 = vmatmul.mubr.msk.bf16.vlgmr.msra.gmra.mrb[8].mxu1 %vm1097_vm6, %v7572_v1  ;;  %v13203_v1 = vld [vmem:[#allocation24_spill] sm:$0xff] }
 0xaf1   : > { %3284 = vmatprep.mubr.bf16.mxu1 %v13167_v42 }
 0xaf2   : > { %3860 = vmatmul.mubr.bf16.gmra.mrb[28].mxu0 %v7569_v9 }
 0xaf3   : > { %3902 = vmatprep.mubr.bf16.mxu0 %v13167_v42 }
 0xaf7   : > { %v3764_v32 = vpop.permute.xlu0 %3763 }
 0xaf9   : > { %v3769_v3 = vpop.permute.xlu1 %3768 }
 0xafa   : > { %7027 = vmatmul.mubr.msk.bf16.vlgmr.msra.gmra.mrb[24].mxu0 %vm1097_vm6, %v7570_v60 }
 0xafb   : > { %3912 = vmatprep.mubr.bf16.mxu0 %v13167_v42  ;;  %v3774_v8 = vpop.permute.xlu0 %3773 }
 0xafd   : > { %v3779_v50 = vpop.permute.xlu1 %3778 }
 0xb02   : > { %7028 = vmatmul.mubr.msk.bf16.gmra.mrb[28].mxu0 %vm1097_vm6, %v7571_v45 }
 0xbcd   : > { %v3904_v16 = vpop.f32.mrb[24].mxu0 }
 0xbce   : > { %v7376_v2 = vadd.f32 %v3904_v16, %v3764_v32  ;;  %v3906_v20 = vpop.f32.mrb[25].mxu0 }
 0xbcf   : > { %v3908_v11 = vpop.f32.mrb[26].mxu0  ;;  %v7377_v56 = vadd.f32 %v3906_v20, %v3764_v32 }
 0xbd0   : > { %v10676_v24 = vmax.f32 %v7376_v2, 0.0  ;;  %v7378_v47 = vadd.f32 %v3908_v11, %v3769_v3  ;;  %v3910_v14 = vpop.f32.mrb[27].mxu0 }
 0xbd1   : > { %v7379_v58 = vadd.f32 %v3910_v14, %v3769_v3  ;;  %v10682_v41 = vmax.f32 %v7377_v56, 0.0 }
 0xbd2   : > { %v10678_v5 = vmax.f32 %v7378_v47, 0.0  ;;  %3931 = vrot.lane.b32.xlu0 %v10676_v24, %s7616_s23 }
 0xbd3   : > { %v10686_v43 = vmax.f32 %v7379_v58, 0.0 }
 0xbd4   : > { %3933 = vrot.lane.b32.xlu1 %v10678_v5, %s7616_s23 }
 0xbd5   : > { %v3914_v19 = vpop.f32.mrb[28].mxu0 }
 0xbd6   : > { %v7380_v55 = vadd.f32 %v3914_v19, %v3774_v8  ;;  %v3916_v13 = vpop.f32.mrb[29].mxu0  ;;  %3939 = vrot.lane.b32.xlu0 %v10682_v41, %s7616_s23 }
 0xbd7   : > { %v3918_v29 = vpop.f32.mrb[30].mxu0  ;;  %v7381_v25 = vadd.f32 %v3916_v13, %v3774_v8 }
 0xbd8   : > { %v10690_v22 = vmax.f32 %v7380_v55, 0.0  ;;  %v7382_v27 = vadd.f32 %v3918_v29, %v3779_v50  ;;  %v3920_v61 = vpop.f32.mrb[31].mxu0  ;;  %3941 = vrot.lane.b32.xlu1 %v10686_v43, %s7616_s23 }
 0xbd9   : > { %v7383_v40 = vadd.f32 %v3920_v61, %v3779_v50  ;;  %v10698_v38 = vmax.f32 %v7381_v25, 0.0 }
 0xbda   : > { %v10694_v35 = vmax.f32 %v7382_v27, 0.0  ;;  %3935 = vrot.lane.b32.xlu0 %v10690_v22, %s7616_s23 }
 0xbdb   : > { %v10702_v7 = vmax.f32 %v7383_v40, 0.0  ;;  %v13200_v40 = vld [vmem:[#allocation11_spill] sm:$0xff] }
 0xbdc   : > { %3937 = vrot.lane.b32.xlu1 %v10694_v35, %s7616_s23 }
 0xbde   : > { %3943 = vrot.lane.b32.xlu0 %v10698_v38, %s7616_s23 }
 0xbe0   : > { %3945 = vrot.lane.b32.xlu1 %v10702_v7, %s7616_s23 }
 0xbe2   : > { %3971 = vrot.lane.b32.xlu0 %v10676_v24, %s7617_s24 }
 0xbe4   : > { %3973 = vrot.lane.b32.xlu1 %v10678_v5, %s7617_s24 }
 0xbe6   : > { %3979 = vrot.lane.b32.xlu0 %v10682_v41, %s7617_s24 }
 0xbe8   : > { %3981 = vrot.lane.b32.xlu1 %v10686_v43, %s7617_s24 }
 0xbea   : > { %3975 = vrot.lane.b32.xlu0 %v10690_v22, %s7617_s24 }
 0xbec   : > { %3977 = vrot.lane.b32.xlu1 %v10694_v35, %s7617_s24 }
 0xbee   : > { %3983 = vrot.lane.b32.xlu0 %v10698_v38, %s7617_s24 }
 0xbf0   : > { %4117 = vrot.lane.b32.xlu1 %v10678_v5, %s7618_s25 }
 0xbf2   : > { %4115 = vrot.lane.b32.xlu0 %v10676_v24, %s7618_s25 }
 0xbf4   : > { %4125 = vrot.lane.b32.xlu1 %v10686_v43, %s7618_s25 }
 0xbf6   : > { %4123 = vrot.lane.b32.xlu0 %v10682_v41, %s7618_s25 }
 0xbf8   : > { %3985 = vrot.lane.b32.xlu1 %v10702_v7, %s7617_s24 }
 0xc44   : > { %v3932_v10 = vpop.permute.xlu0 %3931 }
 0xc46   : > { %v3934_v15 = vpop.permute.xlu1 %3933 }
 0xc48   : > { %v3940_v46 = vpop.permute.xlu0 %3939 }
 0xc49   : > { %v3947_v44 = vsel %vm616_vm2, %v3932_v10, %v3940_v46  ;;  %v3951_v26 = vsel %vm616_vm2, %v3940_v46, %v3932_v10 }
 0xc4a   : > { %v10740_v21 = vmul.f32 %v3951_v26, %v10113_v6  ;;  %v3942_v9 = vpop.permute.xlu1 %3941  ;;  %v10748_v32 = vmul.f32 %v3947_v44, %v10118_v18  ;;  %v13202_v44 = vld [vmem:[#allocation12_spill] sm:$0xff] }
 0xc4b   : > { %v3948_v60 = vsel %vm616_vm2, %v3934_v15, %v3942_v9  ;;  %v3952_v45 = vsel %vm616_vm2, %v3942_v9, %v3934_v15  ;;  %v13201_v15 = vld [vmem:[#allocation10_spill] sm:$0xff] }
 0xc4c   : > { %v10751_v16 = vmul.f32 %v3952_v45, %v10127_v12  ;;  %v10754_v2 = vmul.f32 %v3948_v60, %v10132_v31  ;;  %4011 = vrot.lane.b32.xlu0 %v10740_v21, %s7618_s25  ;;  %v3936_v6 = vpop.permute.xlu0 %3935 }
 0xc4e   : > { %4013 = vrot.lane.b32.xlu1 %v10751_v16, %s7618_s25  ;;  %v3938_v20 = vpop.permute.xlu1 %3937 }
 0xc50   : > { %4019 = vrot.lane.b32.xlu0 %v10748_v32, %s7618_s25  ;;  %v3944_v31 = vpop.permute.xlu0 %3943 }
 0xc51   : > { %v3949_v3 = vsel %vm616_vm2, %v3936_v6, %v3944_v31  ;;  %v3953_v11 = vsel %vm616_vm2, %v3944_v31, %v3936_v6 }
 0xc52   : > { %4021 = vrot.lane.b32.xlu1 %v10754_v2, %s7618_s25  ;;  %v3946_v56 = vpop.permute.xlu1 %3945  ;;  %v10778_v58 = vmul.f32 %v3953_v11, %v10163_v59  ;;  %v10781_v8 = vmul.f32 %v3949_v3, %v10168_v54 }
 0xc53   : > { %v3950_v47 = vsel %vm616_vm2, %v3938_v20, %v3946_v56  ;;  %v3954_v14 = vsel %vm616_vm2, %v3946_v56, %v3938_v20 }
 0xc54   : > { %v10784_v19 = vmul.f32 %v3954_v14, %v10177_v23  ;;  %v10787_v55 = vmul.f32 %v3950_v47, %v10182_v62  ;;  %4067 = vrot.lane.b32.xlu0 %v10740_v21, %s7619_s29  ;;  %v3972_v13 = vpop.permute.xlu0 %3971 }
 0xc56   : > { %4069 = vrot.lane.b32.xlu1 %v10751_v16, %s7619_s29  ;;  %v3974_v50 = vpop.permute.xlu1 %3973 }
 0xc58   : > { %4075 = vrot.lane.b32.xlu0 %v10748_v32, %s7619_s29  ;;  %v3980_v23 = vpop.permute.xlu0 %3979 }
 0xc59   : > { %v3987_v62 = vsel %vm657_vm3, %v3972_v13, %v3980_v23  ;;  %v3991_v29 = vsel %vm657_vm3, %v3980_v23, %v3972_v13  ;;  %v13204_v23 = vld [vmem:[#allocation25_spill] sm:$0xff] }
 0xc5a   : > { %4077 = vrot.lane.b32.xlu1 %v10754_v2, %s7619_s29  ;;  %v3982_v25 = vpop.permute.xlu1 %3981  ;;  %v10810_v10 = vmul.f32 %v13200_v40, %v3987_v62  ;;  %v10813_v46 = vmul.f32 %v13201_v15, %v3991_v29  ;;  %v13206_v29 = vld [vmem:[#allocation26_spill] sm:$0xff]  ;;  %v13210_v40 = vld [vmem:[#allocation19_spill] sm:$0xff] }
 0xc5b   : > { %v3988_v27 = vsel %vm657_vm3, %v3974_v50, %v3982_v25  ;;  %v3992_v61 = vsel %vm657_vm3, %v3982_v25, %v3974_v50 }
 0xc5c   : > { %v10816_v26 = vmul.f32 %v13202_v44, %v3988_v27  ;;  %v10819_v9 = vmul.f32 %v13203_v1, %v3992_v61  ;;  %4015 = vrot.lane.b32.xlu0 %v10778_v58, %s7618_s25  ;;  %v3976_v20 = vpop.permute.xlu0 %3975  ;;  %v13208_v27 = vld [vmem:[#allocation27_spill] sm:$0xff] }
 0xc5e   : > { %4017 = vrot.lane.b32.xlu1 %v10784_v19, %s7618_s25  ;;  %v3978_v60 = vpop.permute.xlu1 %3977 }
 0xc60   : > { %4023 = vrot.lane.b32.xlu0 %v10781_v8, %s7618_s25  ;;  %v3984_v3 = vpop.permute.xlu0 %3983 }
 0xc61   : > { %v3989_v56 = vsel %vm657_vm3, %v3976_v20, %v3984_v3  ;;  %v3993_v47 = vsel %vm657_vm3, %v3984_v3, %v3976_v20  ;;  %v7576_v20 = vld [vmem:[%s12942_s5 + $0x64] ss:$12 sps:$4 sm:$0xff]  }
 0xc62   : > { %4025 = vrot.lane.b32.xlu1 %v10787_v55, %s7618_s25  ;;  %v10833_v31 = vpop.permute.xlu1 %4117  ;;  %v10854_v62 = vmul.f32 %v13204_v23, %v3989_v56  ;;  %v10857_v25 = vmul.f32 %v13206_v29, %v3993_v47  ;;  %v7093_v3 = vld [vmem:[%s12943_s6 + $0x40] sm:$0xff]  ;;  %v7094_v56 = vld [vmem:[%s12943_s6 + $0x48] sm:$0xff]  ;;  %v7095_v47 = vld [vmem:[%s12943_s6 + $0x50] sm:$0xff] }
 0xc64   : > { %4119 = vrot.lane.b32.xlu0 %v10690_v22, %s7618_s25  ;;  %13205 = vst [vmem:[#allocation20_spill] sm:$0xff] %v10854_v62  ;;  %13207 = vst [vmem:[#allocation22_spill] sm:$0xff] %v10857_v25 }
 0xc66   : > { %4121 = vrot.lane.b32.xlu1 %v10694_v35, %s7618_s25  ;;  %v10839_v11 = vpop.permute.xlu1 %4125 }
 0xc68   : > { %4071 = vrot.lane.b32.xlu0 %v10778_v58, %s7619_s29 }
 0xc6a   : > { %4129 = vrot.lane.b32.xlu1 %v10702_v7, %s7618_s25  ;;  %v3986_v14 = vpop.permute.xlu1 %3985 }
 0xc6b   : > { %v3990_v13 = vsel %vm657_vm3, %v3978_v60, %v3986_v14  ;;  %v3994_v50 = vsel %vm657_vm3, %v3986_v14, %v3978_v60  ;;  %v7573_v60 = vld [vmem:[%s12944_s7 + $0x18] sm:$0xff]  }
 0xc6c   : > { %v10860_v61 = vmul.f32 %v13208_v27, %v3990_v13  ;;  %v10863_v15 = vmul.f32 %v13210_v40, %v3994_v50  ;;  %4079 = vrot.lane.b32.xlu0 %v10781_v8, %s7619_s29  ;;  %6952 = vmatmul.mubr.msk.bf16.gmra.mrb[12].mxu1 %vm1097_vm6, %v7573_v60  ;;  %v7096_v14 = vld [vmem:[%s12943_s6 + $0x58] sm:$0xff]  ;;  %v10944_v13 = vpop.permute.xlu0 %4115 }
 0xc6d   : > { %4461 = vmatprep.mubr.bf16.mxu1 %v7576_v20  ;;  %v10955_v20 = vld [vmem:[%s12948_s11 + $0x90] sm:$0xff] }
 0xc6e   : > { %13209 = vst [vmem:[#allocation21_spill] sm:$0xff] %v10860_v61  ;;  %13211 = vst [vmem:[#allocation23_spill] sm:$0xff] %v10863_v15  ;;  %4073 = vrot.lane.b32.xlu1 %v10784_v19, %s7619_s29 }
 0xc70   : > { %4127 = vrot.lane.b32.xlu0 %v10698_v38, %s7618_s25  ;;  %v10946_v50 = vpop.permute.xlu0 %4123 }
 0xc72   : > { %4081 = vrot.lane.b32.xlu1 %v10787_v55, %s7619_s29 }
 0xc74   : > { %4171 = vrot.lane.b32.xlu0 %v10676_v24, %s7619_s29 }
 0xc76   : > { %4173 = vrot.lane.b32.xlu1 %v10678_v5, %s7619_s29 }
 0xc78   : > { %4179 = vrot.lane.b32.xlu0 %v10682_v41, %s7619_s29 }
 0xc7a   : > { %4181 = vrot.lane.b32.xlu1 %v10686_v43, %s7619_s29 }
 0xc7c   : > { %4175 = vrot.lane.b32.xlu0 %v10690_v22, %s7619_s29 }
 0xc7e   : > { %4177 = vrot.lane.b32.xlu1 %v10694_v35, %s7619_s29 }
 0xc80   : > { %4183 = vrot.lane.b32.xlu0 %v10698_v38, %s7619_s29 }
 0xc82   : > { %4185 = vrot.lane.b32.xlu1 %v10702_v7, %s7619_s29 }
 0xc84   : > { %4219 = vrot.lane.b32.xlu0 %v10810_v10, %s7618_s25 }
 0xc86   : > { %4221 = vrot.lane.b32.xlu1 %v10816_v26, %s7618_s25 }
 0xc88   : > { %4227 = vrot.lane.b32.xlu0 %v10813_v46, %s7618_s25 }
 0xc8a   : > { %4229 = vrot.lane.b32.xlu1 %v10819_v9, %s7618_s25 }
 0xc8c   : > { %4223 = vrot.lane.b32.xlu0 %v10854_v62, %s7618_s25 }
 0xc8e   : > { %4225 = vrot.lane.b32.xlu1 %v10860_v61, %s7618_s25 }
 0xc90   : > { %4231 = vrot.lane.b32.xlu0 %v10857_v25, %s7618_s25 }
 0xc92   : > { %4233 = vrot.lane.b32.xlu1 %v10863_v15, %s7618_s25 }
 0xc94   : > { %4275 = vrot.lane.b32.xlu0 %v10810_v10, %s7619_s29 }
 0xc96   : > { %4277 = vrot.lane.b32.xlu1 %v10816_v26, %s7619_s29 }
 0xc98   : > { %4283 = vrot.lane.b32.xlu0 %v10813_v46, %s7619_s29 }
 0xc9a   : > { %4285 = vrot.lane.b32.xlu1 %v10819_v9, %s7619_s29 }
 0xc9c   : > { %4279 = vrot.lane.b32.xlu0 %v10854_v62, %s7619_s29 }
 0xc9e   : > { %4281 = vrot.lane.b32.xlu1 %v10860_v61, %s7619_s29 }
 0xca0   : > { %4287 = vrot.lane.b32.xlu0 %v10857_v25, %s7619_s29 }
 0xca2   : > { %4289 = vrot.lane.b32.xlu1 %v10863_v15, %s7619_s29 }
 0xca4   : > { %4375 = vperm.xlu0 %7518, %v7093_v3   ;;  %v10960_v3 = vld [vmem:[%s12948_s11 + $0x98] sm:$0xff] }
 0xca6   : > { %4380 = vperm.xlu1 %7519, %v7094_v56  }
 0xca8   : > { %4385 = vperm.xlu0 %7518, %v7095_v47  }
 0xcaa   : > { %4390 = vperm.xlu1 %7519, %v7096_v14  }
 0xcbe   : > { %v4012_v23 = vpop.permute.xlu0 %4011 }
 0xcc0   : > { %v4014_v29 = vpop.permute.xlu1 %4013 }
 0xcc2   : > { %v4020_v27 = vpop.permute.xlu0 %4019 }
 0xcc3   : > { %v4027_v40 = vsel %vm699_vm4, %v4012_v23, %v4020_v27  ;;  %v4031_v60 = vsel %vm699_vm4, %v4020_v27, %v4012_v23 }
 0xcc4   : > { %v4022_v56 = vpop.permute.xlu1 %4021  ;;  %v4043_v1 = vmul.f32 %v10414_v57, %v4031_v60  ;;  %v4044_v23 = vmul.f32 %v10419_v34, %v4027_v40 }
 0xcc5   : > { %v4028_v47 = vsel %vm699_vm4, %v4014_v29, %v4022_v56  ;;  %v4032_v14 = vsel %vm699_vm4, %v4022_v56, %v4014_v29 }
 0xcc6   : > { %v4045_v27 = vmul.f32 %v10955_v20, %v4032_v14  ;;  %v4046_v44 = vmul.f32 %v10960_v3, %v4028_v47  ;;  %v4068_v6 = vpop.permute.xlu0 %4067 }
 0xcc8   : > { %v4051_v45 = vpack.c.bf16 %v4045_v27, %v4043_v1  ;;  %v4070_v54 = vpop.permute.xlu1 %4069  ;;  %v4052_v59 = vpack.c.bf16 %v4046_v44, %v4044_v23 }
 0xcca   : > { %v4076_v12 = vpop.permute.xlu0 %4075  ;;  %4429 = vmatprep.subr.bf16.mxu1 %v4052_v59 }
 0xccb   : > { %4430 = vmatpush1.bf16.msra.mxu1 %v4051_v45 }
 0xccc   : > { %v4078_v18 = vpop.permute.xlu1 %4077 }
 0xcce   : > { %v4016_v42 = vpop.permute.xlu0 %4015 }
 0xcd0   : > { %v4018_v62 = vpop.permute.xlu1 %4017 }
 0xcd2   : > { %v4024_v61 = vpop.permute.xlu0 %4023 }
 0xcd3   : > { %v4029_v29 = vsel %vm699_vm4, %v4016_v42, %v4024_v61  ;;  %v4033_v40 = vsel %vm699_vm4, %v4024_v61, %v4016_v42  ;;  %v4088_v61 = vsel %vm757_vm5, %v4078_v18, %v4070_v54 }
 0xcd4   : > { %v4026_v60 = vpop.permute.xlu1 %4025  ;;  %v4047_v59 = vmul.f32 %v10581_v53, %v4033_v40  ;;  %v4048_v45 = vmul.f32 %v10587_v0, %v4029_v29  ;;  %v4087_v29 = vsel %vm757_vm5, %v4076_v12, %v4068_v6  ;;  %v4084_v40 = vsel %vm757_vm5, %v4070_v54, %v4078_v18 }
 0xcd5   : > { %v4030_v56 = vsel %vm699_vm4, %v4018_v62, %v4026_v60  ;;  %v4034_v44 = vsel %vm699_vm4, %v4026_v60, %v4018_v62  ;;  %v13212_v62 = vpack.c.bf16 %v10754_v2, %v10748_v32  ;;  %v4102_v60 = vmul.f32 %v10444_v30, %v4088_v61 }
 0xcd6   : > { %v4049_v1 = vmul.f32 %v10596_v48, %v4034_v44  ;;  %v4050_v47 = vmul.f32 %v10601_v17, %v4030_v56  ;;  %v4120_v14 = vpop.permute.xlu0 %4119  ;;  %v4083_v44 = vsel %vm757_vm5, %v4068_v6, %v4076_v12  ;;  %v13214_v2 = vpack.c.bf16 %v10787_v55, %v10781_v8 }
 0xcd7   : > { %v4131_v30 = vsel %vm699_vm4, %v10944_v13, %v10946_v50  ;;  %v13215_v8 = vpack.c.bf16 %v10784_v19, %v10778_v58 }
 0xcd8   : > { %v4053_v23 = vpack.c.bf16 %v4049_v1, %v4047_v59  ;;  %v4122_v27 = vpop.permute.xlu1 %4121  ;;  %v4054_v25 = vpack.c.bf16 %v4050_v47, %v4048_v45  ;;  %v4100_v59 = vmul.f32 %v10454_v33, %v4087_v29  ;;  %v4101_v45 = vmul.f32 %v10461_v49, %v4084_v40 }
 0xcd9   : > { %v4132_v49 = vsel %vm699_vm4, %v10833_v31, %v10839_v11  ;;  %v4148_v54 = vmul.f32 %v10419_v34, %v4131_v30  ;;  %v4136_v34 = vsel %vm699_vm4, %v10839_v11, %v10833_v31 }
 0xcda   : > { %v4072_v42 = vpop.permute.xlu0 %4071  ;;  %4431 = vmatprep.subr.bf16.mxu1 %v4054_v25  ;;  %v13213_v25 = vpack.c.bf16 %v10751_v16, %v10740_v21  ;;  %v4108_v21 = vpack.c.bf16 %v4102_v60, %v4100_v59  ;;  %v4099_v16 = vmul.f32 %v10472_v28, %v4083_v44  ;;  %v4135_v28 = vsel %vm699_vm4, %v10946_v50, %v10944_v13 }
 0xcdb   : > { %4432 = vmatpush1.bf16.msra.mxu1 %v4053_v23  ;;  %v4150_v61 = vmul.f32 %v10409_v51, %v4132_v49  ;;  %v4147_v60 = vmul.f32 %v10414_v57, %v4135_v28  ;;  %v4149_v31 = vmul.f32 %v10404_v39, %v4136_v34 }
 0xcdc   : > { %v4130_v15 = vpop.permute.xlu1 %4129  ;;  %4433 = vmatprep.subr.bf16.mxu1 %v13212_v62  ;;  %v4107_v6 = vpack.c.bf16 %v4101_v45, %v4099_v16 }
 0xcdd   : > { %v4138_v51 = vsel %vm699_vm4, %v4130_v15, %v4122_v27 }
 0xcde   : > { %v4080_v56 = vpop.permute.xlu0 %4079 }
 0xcdf   : > { %4434 = vmatpush1.bf16.msra.mxu1 %v13213_v25  ;;  %v4085_v12 = vsel %vm757_vm5, %v4072_v42, %v4080_v56  ;;  %v4089_v33 = vsel %vm757_vm5, %v4080_v56, %v4072_v42  ;;  %v4134_v56 = vsel %vm699_vm4, %v4122_v27, %v4130_v15  ;;  %v11055_v15 = vld [vmem:[%s12948_s11 + $0xd8] sm:$0xff] }
 0xce0   : > { %v4074_v32 = vpop.permute.xlu1 %4073  ;;  %4435 = vmatprep.subr.bf16.mxu1 %v13214_v2  ;;  %v4103_v19 = vmul.f32 %v10489_v37, %v4085_v12  ;;  %v4104_v47 = vmul.f32 %v10494_v63, %v4089_v33  ;;  %v4154_v11 = vmul.f32 %v10601_v17, %v4134_v56  ;;  %v4155_v2 = vpack.c.bf16 %v4149_v31, %v4147_v60  ;;  %v11117_v31 = vld [vmem:[%s12948_s11 + $0x80] sm:$0xff] }
 0xce1   : > { %v4164_v12 = vpack.c.bf16 %v10686_v43, %v10682_v41  ;;  %v4163_v41 = vpack.c.bf16 %v10678_v5, %v10676_v24  ;;  %v11071_v43 = vld [vmem:[%s12948_s11 + $0xd0] sm:$0xff]  ;;  %v11083_v24 = vld [vmem:[%s12948_s11 + $0xc0] sm:$0xff] }
 0xce2   : > { %v4128_v18 = vpop.permute.xlu0 %4127 }
 0xce3   : > { %4436 = vmatpush1.bf16.msra.mxu1 %v13215_v8  ;;  %v4133_v50 = vsel %vm699_vm4, %v4120_v14, %v4128_v18  ;;  %v4137_v25 = vsel %vm699_vm4, %v4128_v18, %v4120_v14  ;;  %v4153_v18 = vmul.f32 %v10596_v48, %v4138_v51  ;;  %v11062_v8 = vld [vmem:[%s12948_s11 + $0xc8] sm:$0xff] }
 0xce4   : > { %v4082_v55 = vpop.permute.xlu1 %4081  ;;  %4437 = vmatprep.subr.bf16.mxu1 %v4108_v21  ;;  %v4152_v44 = vmul.f32 %v10587_v0, %v4133_v50  ;;  %v4151_v45 = vmul.f32 %v10581_v53, %v4137_v25 }
 0xce5   : > { %v4086_v1 = vsel %vm757_vm5, %v4074_v32, %v4082_v55  ;;  %v4090_v58 = vsel %vm757_vm5, %v4082_v55, %v4074_v32  ;;  %v4156_v32 = vpack.c.bf16 %v4150_v61, %v4148_v54 }
 0xce6   : > { %v4105_v23 = vmul.f32 %v10645_v4, %v4086_v1  ;;  %v4106_v42 = vmul.f32 %v10650_v52, %v4090_v58  ;;  %v4172_v13 = vpop.permute.xlu0 %4171  ;;  %v4158_v14 = vpack.c.bf16 %v4154_v11, %v4152_v44  ;;  %v4157_v16 = vpack.c.bf16 %v4153_v18, %v4151_v45 }
 0xce7   : > { %4438 = vmatpush1.bf16.msra.mxu1 %v4107_v6  ;;  %v4166_v6 = vpack.c.bf16 %v10702_v7, %v10698_v38  ;;  %v4165_v7 = vpack.c.bf16 %v10694_v35, %v10690_v22  ;;  %v11104_v35 = vld [vmem:[%s12948_s11 + $0x88] sm:$0xff] }
 0xce8   : > { %v4109_v62 = vpack.c.bf16 %v4105_v23, %v4103_v19  ;;  %v4174_v29 = vpop.permute.xlu1 %4173  ;;  %v4110_v40 = vpack.c.bf16 %v4106_v42, %v4104_v47 }
 0xcea   : > { %v4180_v59 = vpop.permute.xlu0 %4179  ;;  %4439 = vmatprep.subr.bf16.mxu1 %v4110_v40 }
 0xceb   : > { %4440 = vmatpush1.bf16.msra.mxu1 %v4109_v62  ;;  %v4191_v49 = vsel %vm757_vm5, %v4180_v59, %v4172_v13  ;;  %v4187_v5 = vsel %vm757_vm5, %v4172_v13, %v4180_v59 }
 0xcec   : > { %v4182_v57 = vpop.permute.xlu1 %4181  ;;  %4441 = vmatprep.subr.bf16.mxu1 %v4156_v32  ;;  %v4204_v58 = vmul.f32 %v11062_v8, %v4191_v49  ;;  %v4203_v13 = vmul.f32 %v11083_v24, %v4187_v5 }
 0xced   : > { %v4192_v27 = vsel %vm757_vm5, %v4182_v57, %v4174_v29  ;;  %v4188_v28 = vsel %vm757_vm5, %v4174_v29, %v4182_v57 }
 0xcee   : > { %v4176_v30 = vpop.permute.xlu0 %4175  ;;  %v4206_v55 = vmul.f32 %v11055_v15, %v4192_v27  ;;  %v4205_v47 = vmul.f32 %v11071_v43, %v4188_v28 }
 0xcef   : > { %4442 = vmatpush1.bf16.msra.mxu1 %v4155_v2 }
 0xcf0   : > { %v4178_v21 = vpop.permute.xlu1 %4177  ;;  %4443 = vmatprep.subr.bf16.mxu1 %v4158_v14  ;;  %v4212_v34 = vpack.c.bf16 %v4206_v55, %v4204_v58  ;;  %v4211_v40 = vpack.c.bf16 %v4205_v47, %v4203_v13 }
 0xcf2   : > { %v4184_v39 = vpop.permute.xlu0 %4183 }
 0xcf3   : > { %4444 = vmatpush1.bf16.msra.mxu1 %v4157_v16  ;;  %v4193_v38 = vsel %vm757_vm5, %v4184_v39, %v4176_v30  ;;  %v4189_v61 = vsel %vm757_vm5, %v4176_v30, %v4184_v39 }
 0xcf4   : > { %v4186_v33 = vpop.permute.xlu1 %4185  ;;  %4445 = vmatprep.subr.bf16.mxu1 %v4164_v12  ;;  %v4208_v62 = vmul.f32 %v10494_v63, %v4193_v38  ;;  %v4207_v32 = vmul.f32 %v10489_v37, %v4189_v61  ;;  %v13217_v38 = vpack.c.bf16 %v10816_v26, %v10810_v10  ;;  %v11163_v26 = vld [vmem:[%s12948_s11 + $0xe0] sm:$0xff] }
 0xcf5   : > { %v4194_v1 = vsel %vm757_vm5, %v4186_v33, %v4178_v21  ;;  %v4190_v23 = vsel %vm757_vm5, %v4178_v21, %v4186_v33 }
 0xcf6   : > { %v4220_v54 = vpop.permute.xlu0 %4219  ;;  %v4210_v42 = vmul.f32 %v10650_v52, %v4194_v1  ;;  %v4209_v22 = vmul.f32 %v10645_v4, %v4190_v23  ;;  %v13218_v23 = vld [vmem:[#allocation23_spill] sm:$0xff] }
 0xcf7   : > { %4446 = vmatpush1.bf16.msra.mxu1 %v4163_v41 }
 0xcf8   : > { %v4222_v19 = vpop.permute.xlu1 %4221  ;;  %4447 = vmatprep.subr.bf16.mxu1 %v4166_v6  ;;  %v4214_v59 = vpack.c.bf16 %v4210_v42, %v4208_v62  ;;  %v4213_v2 = vpack.c.bf16 %v4209_v22, %v4207_v32  ;;  %v13219_v42 = vld [vmem:[#allocation22_spill] sm:$0xff] }
 0xcf9   : > { %v7574_v62 = vld [vmem:[%s12942_s5 + $0x60] ss:$12 sps:$4 sm:$0xff]  }
 0xcfa   : > { %v4228_v50 = vpop.permute.xlu0 %4227 }
 0xcfb   : > { %4448 = vmatpush1.bf16.msra.mxu1 %v4165_v7  ;;  %v4235_v60 = vsel %vm699_vm4, %v4220_v54, %v4228_v50  ;;  %v4239_v51 = vsel %vm699_vm4, %v4228_v50, %v4220_v54  ;;  %v13220_v50 = vpack.c.bf16 %v13218_v23, %v13219_v42 }
 0xcfc   : > { %v4230_v29 = vpop.permute.xlu1 %4229  ;;  %4449 = vmatprep.subr.bf16.mxu1 %v4212_v34  ;;  %v4252_v11 = vmul.f32 %v11104_v35, %v4235_v60  ;;  %v4251_v37 = vmul.f32 %v11117_v31, %v4239_v51  ;;  %v13221_v60 = vld [vmem:[#allocation21_spill] sm:$0xff] }
 0xcfd   : > { %v4236_v56 = vsel %vm699_vm4, %v4222_v19, %v4230_v29  ;;  %v4240_v25 = vsel %vm699_vm4, %v4230_v29, %v4222_v19  ;;  %v13216_v19 = vpack.c.bf16 %v10819_v9, %v10813_v46  ;;  %v11168_v29 = vld [vmem:[%s12948_s11 + $0xe8] sm:$0xff] }
 0xcfe   : > { %v4254_v63 = vmul.f32 %v10960_v3, %v4236_v56  ;;  %v4224_v44 = vpop.permute.xlu0 %4223  ;;  %v4253_v45 = vmul.f32 %v10955_v20, %v4240_v25  ;;  %v13222_v56 = vld [vmem:[#allocation20_spill] sm:$0xff] }
 0xcff   : > { %4450 = vmatpush1.bf16.msra.mxu1 %v4211_v40  ;;  %v13223_v25 = vpack.c.bf16 %v13221_v60, %v13222_v56  ;;  %v13239_v56 = vld [vmem:[#allocation9_spill] sm:$0xff] }
 0xd00   : > { %v4226_v57 = vpop.permute.xlu1 %4225  ;;  %4451 = vmatprep.subr.bf16.mxu1 %v4214_v59  ;;  %v4260_v14 = vpack.c.bf16 %v4254_v63, %v4252_v11  ;;  %v4259_v39 = vpack.c.bf16 %v4253_v45, %v4251_v37  ;;  %v7577_v63 = vld [vmem:[%s12942_s5 + $0x7c] ss:$12 sps:$4 sm:$0xff]   ;;  %v7579_v37 = vld [vmem:[%s12942_s5 + $0x78] ss:$12 sps:$4 sm:$0xff]  }
 0xd02   : > { %v4232_v30 = vpop.permute.xlu0 %4231 }
 0xd03   : > { %v4237_v18 = vsel %vm699_vm4, %v4224_v44, %v4232_v30  ;;  %v4241_v21 = vsel %vm699_vm4, %v4232_v30, %v4224_v44  ;;  %4452 = vmatpush1.bf16.msra.mxu1 %v4213_v2 }
 0xd04   : > { %v4234_v16 = vpop.permute.xlu1 %4233  ;;  %4453 = vmatprep.subr.bf16.mxu1 %v4260_v14  ;;  %v4255_v33 = vmul.f32 %v10581_v53, %v4241_v21  ;;  %v4256_v49 = vmul.f32 %v10587_v0, %v4237_v18  ;;  %v13224_v18 = vmov 0  }
 0xd05   : > { %v4238_v12 = vsel %vm699_vm4, %v4226_v57, %v4234_v16  ;;  %v4242_v27 = vsel %vm699_vm4, %v4234_v16, %v4226_v57 }
 0xd06   : > { %v4257_v41 = vmul.f32 %v10596_v48, %v4242_v27  ;;  %v4258_v28 = vmul.f32 %v10601_v17, %v4238_v12  ;;  %v4276_v55 = vpop.permute.xlu0 %4275 }
 0xd07   : > { %4454 = vmatpush1.bf16.msra.mxu1 %v4259_v39 }
 0xd08   : > { %v4261_v54 = vpack.c.bf16 %v4257_v41, %v4255_v33  ;;  %v4278_v6 = vpop.permute.xlu1 %4277  ;;  %v4262_v1 = vpack.c.bf16 %v4258_v28, %v4256_v49  ;;  %v13225_v41 = vld [vmem:[#allocation16_spill] sm:$0xff] }
 0xd0a   : > { %v4284_v5 = vpop.permute.xlu0 %4283  ;;  %4455 = vmatprep.subr.bf16.mxu1 %v4262_v1  ;;  %v13227_v1 = vld [vmem:[#allocation18_spill] sm:$0xff] }
 0xd0b   : > { %4456 = vmatpush1.bf16.msra.mxu1 %v4261_v54  ;;  %v4295_v53 = vsel %vm757_vm5, %v4284_v5, %v4276_v55  ;;  %v4291_v46 = vsel %vm757_vm5, %v4276_v55, %v4284_v5 }
 0xd0c   : > { %v4286_v58 = vpop.permute.xlu1 %4285  ;;  %4457 = vmatprep.subr.bf16.mxu1 %v13216_v19  ;;  %v4308_v9 = vmul.f32 %v11062_v8, %v4295_v53  ;;  %v4307_v10 = vmul.f32 %v11083_v24, %v4291_v46  ;;  %v13231_v53 = vld [vmem:[#allocation5_spill] sm:$0xff] }
 0xd0d   : > { %v4296_v0 = vsel %vm757_vm5, %v4286_v58, %v4278_v6  ;;  %v4292_v48 = vsel %vm757_vm5, %v4278_v6, %v4286_v58  ;;  %v13229_v58 = vld [vmem:[#allocation15_spill] sm:$0xff] }
 0xd0e   : > { %v4310_v17 = vmul.f32 %v11055_v15, %v4296_v0  ;;  %v4280_v47 = vpop.permute.xlu0 %4279  ;;  %v4309_v34 = vmul.f32 %v11071_v43, %v4292_v48 }
 0xd0f   : > { %4458 = vmatpush1.bf16.msra.mxu1 %v13217_v38 }
 0xd10   : > { %v4282_v7 = vpop.permute.xlu1 %4281  ;;  %4459 = vmatprep.subr.bf16.mxu1 %v13220_v50  ;;  %v4316_v61 = vpack.c.bf16 %v4310_v17, %v4308_v9  ;;  %v4315_v59 = vpack.c.bf16 %v4309_v34, %v4307_v10  ;;  %v13233_v50 = vld [vmem:[#allocation6_spill] sm:$0xff]  ;;  %v13235_v10 = vld [vmem:[#allocation7_spill] sm:$0xff] }
 0xd12   : > { %v4288_v13 = vpop.permute.xlu0 %4287 }
 0xd13   : > { %v4293_v40 = vsel %vm757_vm5, %v4280_v47, %v4288_v13  ;;  %v4297_v22 = vsel %vm757_vm5, %v4288_v13, %v4280_v47  ;;  %4460 = vmatpush1.bf16.msra.mxu1 %v13223_v25 }
 0xd14   : > { %v4290_v44 = vpop.permute.xlu1 %4289  ;;  %4482 = vmatprep.subr.bf16.mxu1 %v4316_v61  ;;  %v4311_v11 = vmul.f32 %v11163_v26, %v4293_v40  ;;  %v4312_v57 = vmul.f32 %v11168_v29, %v4297_v22  ;;  %v13237_v22 = vld [vmem:[#allocation8_spill] sm:$0xff] }
 0xd15   : > { %v4294_v32 = vsel %vm757_vm5, %v4282_v7, %v4290_v44  ;;  %v4298_v51 = vsel %vm757_vm5, %v4290_v44, %v4282_v7 }
 0xd16   : > { %v4313_v2 = vmul.f32 %v10645_v4, %v4294_v32  ;;  %v4314_v45 = vmul.f32 %v10650_v52, %v4298_v51  ;;  %4462 = vmatmul.mubr.bf16.vlgmr.msra.gmra.mrb[24].mxu1 %v7574_v62  ;;  %v7580_v4 = vld [vmem:[%s12942_s5 + $0x68] ss:$12 sps:$4 sm:$0xff]   ;;  %v7581_v52 = vld [vmem:[%s12942_s5 + $0x80] ss:$12 sps:$4 sm:$0xff]  }
 0xd17   : > { %4483 = vmatpush1.bf16.msra.mxu1 %v4315_v59  ;;  %4471 = vmatprep.mubr.bf16.mxu1 %v7577_v63  ;;  %v11289_v51 = vld [vmem:[%s12948_s11] sm:$0xff] }
 0xd18   : > { %v4317_v30 = vpack.c.bf16 %v4313_v2, %v4311_v11  ;;  %v4318_v14 = vpack.c.bf16 %v4314_v45, %v4312_v57  ;;  %v11294_v57 = vld [vmem:[%s12948_s11 + $0x8] sm:$0xff] }
 0xd1a   : > { %4484 = vmatprep.subr.bf16.mxu1 %v4318_v14  ;;  %v11308_v14 = vld [vmem:[%s12948_s11 + $0x18] sm:$0xff] }
 0xd1b   : > { %4485 = vmatpush1.bf16.msra.mxu1 %v4317_v30  ;;  %v11303_v30 = vld [vmem:[%s12948_s11 + $0x10] sm:$0xff]  ;;  %13241 = vst [vmem:[#allocation26_spill] sm:$0xff] %v11308_v14 }
 0xd1e   : > { %4472 = vmatmul.mubr.bf16.gmra.mrb[28].mxu1 %v7579_v37 }
 0xd1f   : > { %4514 = vmatprep.mubr.bf16.mxu1 %v13224_v18 }
 0xd23   : > { %v4376_v21 = vpop.permute.xlu0 %4375 }
 0xd25   : > { %v4381_v27 = vpop.permute.xlu1 %4380 }
 0xd26   : > { %7103 = vmatmul.mubr.msk.bf16.vlgmr.msra.gmra.mrb[24].mxu1 %vm1097_vm6, %v7580_v4 }
 0xd27   : > { %4524 = vmatprep.mubr.bf16.mxu1 %v13224_v18  ;;  %v4386_v48 = vpop.permute.xlu0 %4385 }
 0xd29   : > { %v4391_v7 = vpop.permute.xlu1 %4390 }
 0xd2e   : > { %7104 = vmatmul.mubr.msk.bf16.gmra.mrb[28].mxu1 %vm1097_vm6, %v7581_v52 }
 0xd2f   : > { %4632 = vmatprep.mubr.bf16.mxu1 %v13224_v18 }
 0xdf9   : > { %v4516_v16 = vpop.f32.mrb[24].mxu1 }
 0xdfa   : > { %v7384_v39 = vadd.f32 %v4516_v16, %v4376_v21  ;;  %v4518_v12 = vpop.f32.mrb[25].mxu1 }
 0xdfb   : > { %v7385_v33 = vadd.f32 %v4518_v12, %v4376_v21  ;;  %v4520_v49 = vpop.f32.mrb[26].mxu1 }
 0xdfc   : > { %v11203_v28 = vadd.f32 %v7384_v39, %v13225_v41  ;;  %v7386_v55 = vadd.f32 %v4520_v49, %v4381_v27  ;;  %v4522_v54 = vpop.f32.mrb[27].mxu1 }
 0xdfd   : > { %v7387_v6 = vadd.f32 %v4522_v54, %v4381_v27  ;;  %v11211_v19 = vadd.f32 %v7385_v33, %v13229_v58 }
 0xdfe   : > { %13226 = vst [vmem:[#allocation14_spill] sm:$0xff] %v11203_v28  ;;  %v11206_v5 = vadd.f32 %v7386_v55, %v13227_v1  ;;  %4677 = vrot.lane.b32.xlu0 %v11203_v28, %s7616_s23  ;;  %v11339_v55 = vld [vmem:[%s12948_s11 + $0x20] sm:$0xff] }
 0xdff   : > { %13230 = vst [vmem:[#allocation17_spill] sm:$0xff] %v11211_v19  ;;  %v11214_v0 = vadd.f32 %v7387_v6, %v13231_v53  ;;  %13242 = vst [vmem:[#allocation27_spill] sm:$0xff] %v11339_v55  ;;  %v11344_v6 = vld [vmem:[%s12948_s11 + $0x28] sm:$0xff]  ;;  %v11353_v53 = vld [vmem:[%s12948_s11 + $0x30] sm:$0xff] }
 0xe00   : > { %13228 = vst [vmem:[#allocation13_spill] sm:$0xff] %v11206_v5  ;;  %4679 = vrot.lane.b32.xlu1 %v11206_v5, %s7616_s23  ;;  %v11226_v9 = vpack.c.bf16 %v11206_v5, %v11203_v28  ;;  %13243 = vst [vmem:[#allocation19_spill] sm:$0xff] %v11344_v6 }
 0xe01   : > { %13232 = vst [vmem:[#allocation11_spill] sm:$0xff] %v11214_v0  ;;  %v4526_v17 = vpop.f32.mrb[28].mxu1  ;;  %v11220_v47 = vpack.c.bf16 %v11214_v0, %v11211_v19  ;;  %13244 = vst [vmem:[#allocation23_spill] sm:$0xff] %v11353_v53 }
 0xe02   : > { %v7388_v38 = vadd.f32 %v4526_v17, %v4386_v48  ;;  %v4528_v46 = vpop.f32.mrb[29].mxu1  ;;  %4685 = vrot.lane.b32.xlu0 %v11211_v19, %s7616_s23 }
 0xe03   : > { %v7389_v23 = vadd.f32 %v4528_v46, %v4386_v48  ;;  %v4530_v42 = vpop.f32.mrb[30].mxu1  ;;  %4600 = vmatprep.subr.bf16.mxu1 %v11220_v47  ;;  %v11358_v48 = vld [vmem:[%s12948_s11 + $0x38] sm:$0xff] }
 0xe04   : > { %v11230_v34 = vadd.f32 %v7388_v38, %v13233_v50  ;;  %v7390_v13 = vadd.f32 %v4530_v42, %v4391_v7  ;;  %v4532_v61 = vpop.f32.mrb[31].mxu1  ;;  %4687 = vrot.lane.b32.xlu1 %v11214_v0, %s7616_s23  ;;  %4601 = vmatpush1.bf16.msra.mxu1 %v11226_v9  ;;  %13245 = vst [vmem:[#allocation22_spill] sm:$0xff] %v11358_v48 }
 0xe05   : > { %v7391_v62 = vadd.f32 %v4532_v61, %v4391_v7  ;;  %v11241_v60 = vadd.f32 %v7389_v23, %v13237_v22  ;;  %v11391_v22 = vld [vmem:[%s12948_s11 + $0x40] sm:$0xff] }
 0xe06   : > { %13234 = vst [vmem:[#allocation10_spill] sm:$0xff] %v11230_v34  ;;  %v11236_v40 = vadd.f32 %v7390_v13, %v13235_v10  ;;  %4681 = vrot.lane.b32.xlu0 %v11230_v34, %s7616_s23  ;;  %13246 = vst [vmem:[#allocation21_spill] sm:$0xff] %v11391_v22 }
 0xe07   : > { %13238 = vst [vmem:[#allocation24_spill] sm:$0xff] %v11241_v60  ;;  %v11244_v25 = vadd.f32 %v7391_v62, %v13239_v56 }
 0xe08   : > { %13236 = vst [vmem:[#allocation12_spill] sm:$0xff] %v11236_v40  ;;  %4683 = vrot.lane.b32.xlu1 %v11236_v40, %s7616_s23  ;;  %v11256_v44 = vpack.c.bf16 %v11236_v40, %v11230_v34 }
 0xe09   : > { %13240 = vst [vmem:[#allocation25_spill] sm:$0xff] %v11244_v25  ;;  %v11250_v63 = vpack.c.bf16 %v11244_v25, %v11241_v60 }
 0xe0a   : > { %4689 = vrot.lane.b32.xlu0 %v11241_v60, %s7616_s23 }
 0xe0b   : > { %4602 = vmatprep.subr.bf16.mxu1 %v11250_v63 }
 0xe0c   : > { %4691 = vrot.lane.b32.xlu1 %v11244_v25, %s7616_s23  ;;  %4603 = vmatpush1.bf16.msra.mxu1 %v11256_v44 }
 0xe0e   : > { %4717 = vrot.lane.b32.xlu0 %v11203_v28, %s7617_s24 }
 0xe10   : > { %4719 = vrot.lane.b32.xlu1 %v11206_v5, %s7617_s24 }
 0xe12   : > { %4725 = vrot.lane.b32.xlu0 %v11211_v19, %s7617_s24 }
 0xe14   : > { %4727 = vrot.lane.b32.xlu1 %v11214_v0, %s7617_s24 }
 0xe16   : > { %4721 = vrot.lane.b32.xlu0 %v11230_v34, %s7617_s24 }
 0xe18   : > { %4723 = vrot.lane.b32.xlu1 %v11236_v40, %s7617_s24 }
 0xe1a   : > { %4729 = vrot.lane.b32.xlu0 %v11241_v60, %s7617_s24 }
 0xe1c   : > { %4863 = vrot.lane.b32.xlu1 %v11206_v5, %s7618_s25 }
 0xe1e   : > { %4861 = vrot.lane.b32.xlu0 %v11203_v28, %s7618_s25 }
 0xe20   : > { %4871 = vrot.lane.b32.xlu1 %v11214_v0, %s7618_s25 }
 0xe22   : > { %4869 = vrot.lane.b32.xlu0 %v11211_v19, %s7618_s25 }
 0xe24   : > { %4731 = vrot.lane.b32.xlu1 %v11244_v25, %s7617_s24 }
 0xe70   : > { %v4678_v59 = vpop.permute.xlu0 %4677 }
 0xe72   : > { %v4680_v32 = vpop.permute.xlu1 %4679 }
 0xe74   : > { %v4686_v11 = vpop.permute.xlu0 %4685 }
 0xe75   : > { %v4693_v2 = vsel %vm616_vm2, %v4678_v59, %v4686_v11  ;;  %v4697_v45 = vsel %vm616_vm2, %v4686_v11, %v4678_v59  ;;  %v11396_v59 = vld [vmem:[%s12948_s11 + $0x48] sm:$0xff] }
 0xe76   : > { %v11311_v37 = vmul.f32 %v11289_v51, %v4697_v45  ;;  %v4688_v4 = vpop.permute.xlu1 %4687  ;;  %v11318_v16 = vmul.f32 %v11294_v57, %v4693_v2  ;;  %13247 = vst [vmem:[#allocation20_spill] sm:$0xff] %v11396_v59  ;;  %v11405_v2 = vld [vmem:[%s12948_s11 + $0x50] sm:$0xff]  ;;  %v11410_v45 = vld [vmem:[%s12948_s11 + $0x58] sm:$0xff] }
 0xe77   : > { %v4694_v52 = vsel %vm616_vm2, %v4680_v32, %v4688_v4  ;;  %v4698_v21 = vsel %vm616_vm2, %v4688_v4, %v4680_v32  ;;  %13248 = vst [vmem:[#allocation16_spill] sm:$0xff] %v11405_v2  ;;  %13249 = vst [vmem:[#allocation18_spill] sm:$0xff] %v11410_v45 }
 0xe78   : > { %v11321_v39 = vmul.f32 %v11303_v30, %v4698_v21  ;;  %v11324_v12 = vmul.f32 %v11308_v14, %v4694_v52  ;;  %4757 = vrot.lane.b32.xlu0 %v11311_v37, %s7618_s25  ;;  %v4682_v27 = vpop.permute.xlu0 %4681 }
 0xe7a   : > { %4759 = vrot.lane.b32.xlu1 %v11321_v39, %s7618_s25  ;;  %v4684_v33 = vpop.permute.xlu1 %4683 }
 0xe7c   : > { %4765 = vrot.lane.b32.xlu0 %v11318_v16, %s7618_s25  ;;  %v4690_v54 = vpop.permute.xlu0 %4689 }
 0xe7d   : > { %v4695_v1 = vsel %vm616_vm2, %v4682_v27, %v4690_v54  ;;  %v4699_v58 = vsel %vm616_vm2, %v4690_v54, %v4682_v27 }
 0xe7e   : > { %4767 = vrot.lane.b32.xlu1 %v11324_v12, %s7618_s25  ;;  %v4692_v17 = vpop.permute.xlu1 %4691  ;;  %v11367_v7 = vmul.f32 %v11339_v55, %v4699_v58  ;;  %v11370_v23 = vmul.f32 %v11344_v6, %v4695_v1 }
 0xe7f   : > { %v4696_v38 = vsel %vm616_vm2, %v4684_v33, %v4692_v17  ;;  %v4700_v46 = vsel %vm616_vm2, %v4692_v17, %v4684_v33 }
 0xe80   : > { %v11373_v42 = vmul.f32 %v11353_v53, %v4700_v46  ;;  %v11376_v50 = vmul.f32 %v11358_v48, %v4696_v38  ;;  %4813 = vrot.lane.b32.xlu0 %v11311_v37, %s7619_s29  ;;  %v4718_v13 = vpop.permute.xlu0 %4717  ;;  %v11474_v38 = vld [vmem:[%s12948_s11 + $0x78] sm:$0xff] }
 0xe81   : > { %13253 = vst [vmem:[#allocation7_spill] sm:$0xff] %v11474_v38 }
 0xe82   : > { %4815 = vrot.lane.b32.xlu1 %v11321_v39, %s7619_s29  ;;  %v4720_v61 = vpop.permute.xlu1 %4719 }
 0xe84   : > { %4821 = vrot.lane.b32.xlu0 %v11318_v16, %s7619_s29  ;;  %v4726_v56 = vpop.permute.xlu0 %4725 }
 0xe85   : > { %v4733_v32 = vsel %vm657_vm3, %v4718_v13, %v4726_v56  ;;  %v4737_v11 = vsel %vm657_vm3, %v4726_v56, %v4718_v13 }
 0xe86   : > { %4823 = vrot.lane.b32.xlu1 %v11324_v12, %s7619_s29  ;;  %v4728_v4 = vpop.permute.xlu1 %4727  ;;  %v11419_v27 = vmul.f32 %v11391_v22, %v4733_v32  ;;  %v11422_v33 = vmul.f32 %v11396_v59, %v4737_v11  ;;  %v11453_v32 = vld [vmem:[%s12948_s11 + $0x60] sm:$0xff]  ;;  %v11460_v11 = vld [vmem:[%s12948_s11 + $0x68] sm:$0xff] }
 0xe87   : > { %v4734_v52 = vsel %vm657_vm3, %v4720_v61, %v4728_v4  ;;  %v4738_v21 = vsel %vm657_vm3, %v4728_v4, %v4720_v61  ;;  %13250 = vst [vmem:[#allocation15_spill] sm:$0xff] %v11453_v32  ;;  %13251 = vst [vmem:[#allocation5_spill] sm:$0xff] %v11460_v11 }
 0xe88   : > { %v11425_v54 = vmul.f32 %v11405_v2, %v4734_v52  ;;  %v11428_v1 = vmul.f32 %v11410_v45, %v4738_v21  ;;  %4761 = vrot.lane.b32.xlu0 %v11367_v7, %s7618_s25  ;;  %v4722_v46 = vpop.permute.xlu0 %4721  ;;  %v11469_v21 = vld [vmem:[%s12948_s11 + $0x70] sm:$0xff] }
 0xe89   : > { %13252 = vst [vmem:[#allocation6_spill] sm:$0xff] %v11469_v21 }
 0xe8a   : > { %4763 = vrot.lane.b32.xlu1 %v11373_v42, %s7618_s25  ;;  %v4724_v58 = vpop.permute.xlu1 %4723 }
 0xe8c   : > { %4769 = vrot.lane.b32.xlu0 %v11370_v23, %s7618_s25  ;;  %v4730_v61 = vpop.permute.xlu0 %4729 }
 0xe8d   : > { %v4735_v4 = vsel %vm657_vm3, %v4722_v46, %v4730_v61  ;;  %v4739_v52 = vsel %vm657_vm3, %v4730_v61, %v4722_v46 }
 0xe8e   : > { %4771 = vrot.lane.b32.xlu1 %v11376_v50, %s7618_s25  ;;  %v11442_v13 = vpop.permute.xlu1 %4863  ;;  %v11483_v61 = vmul.f32 %v11453_v32, %v4735_v4  ;;  %v11486_v62 = vmul.f32 %v11460_v11, %v4739_v52  ;;  %v7177_v4 = vld [vmem:[%s12941_s4 + $0x60] sm:$0xff]  ;;  %v7178_v52 = vld [vmem:[%s12941_s4 + $0x68] sm:$0xff] }
 0xe90   : > { %4865 = vrot.lane.b32.xlu0 %v11230_v34, %s7618_s25 }
 0xe92   : > { %4867 = vrot.lane.b32.xlu1 %v11236_v40, %s7618_s25  ;;  %v11448_v56 = vpop.permute.xlu1 %4871 }
 0xe94   : > { %4817 = vrot.lane.b32.xlu0 %v11367_v7, %s7619_s29 }
 0xe96   : > { %4875 = vrot.lane.b32.xlu1 %v11244_v25, %s7618_s25  ;;  %v4732_v17 = vpop.permute.xlu1 %4731 }
 0xe97   : > { %v4736_v10 = vsel %vm657_vm3, %v4724_v58, %v4732_v17  ;;  %v4740_v46 = vsel %vm657_vm3, %v4732_v17, %v4724_v58  ;;  %v11569_v17 = vpop.permute.xlu0 %4861 }
 0xe98   : > { %v11489_v41 = vmul.f32 %v11469_v21, %v4736_v10  ;;  %v11492_v49 = vmul.f32 %v11474_v38, %v4740_v46  ;;  %4825 = vrot.lane.b32.xlu0 %v11370_v23, %s7619_s29  ;;  %v7584_v10 = vld [vmem:[%s12940_s3 + $0x94] ss:$12 sps:$4 sm:$0xff]  }
 0xe99   : > { %5207 = vmatprep.mubr.bf16.mxu0 %v7584_v10  ;;  %v7179_v46 = vld [vmem:[%s12941_s4 + $0x70] sm:$0xff]  ;;  %v7180_v10 = vld [vmem:[%s12941_s4 + $0x78] sm:$0xff] }
 0xe9a   : > { %4819 = vrot.lane.b32.xlu1 %v11373_v42, %s7619_s29 }
 0xe9b   : > { %v11571_v58 = vpop.permute.xlu0 %4869 }
 0xe9c   : > { %4873 = vrot.lane.b32.xlu0 %v11241_v60, %s7618_s25 }
 0xe9e   : > { %4827 = vrot.lane.b32.xlu1 %v11376_v50, %s7619_s29 }
 0xea0   : > { %4917 = vrot.lane.b32.xlu0 %v11203_v28, %s7619_s29 }
 0xea2   : > { %4919 = vrot.lane.b32.xlu1 %v11206_v5, %s7619_s29 }
 0xea4   : > { %4925 = vrot.lane.b32.xlu0 %v11211_v19, %s7619_s29 }
 0xea6   : > { %4927 = vrot.lane.b32.xlu1 %v11214_v0, %s7619_s29 }
 0xea8   : > { %4921 = vrot.lane.b32.xlu0 %v11230_v34, %s7619_s29 }
 0xeaa   : > { %4923 = vrot.lane.b32.xlu1 %v11236_v40, %s7619_s29 }
 0xeac   : > { %4929 = vrot.lane.b32.xlu0 %v11241_v60, %s7619_s29 }
 0xeae   : > { %4931 = vrot.lane.b32.xlu1 %v11244_v25, %s7619_s29 }
 0xeb0   : > { %4965 = vrot.lane.b32.xlu0 %v11419_v27, %s7618_s25 }
 0xeb2   : > { %4967 = vrot.lane.b32.xlu1 %v11425_v54, %s7618_s25 }
 0xeb4   : > { %4973 = vrot.lane.b32.xlu0 %v11422_v33, %s7618_s25 }
 0xeb6   : > { %4975 = vrot.lane.b32.xlu1 %v11428_v1, %s7618_s25 }
 0xeb8   : > { %4969 = vrot.lane.b32.xlu0 %v11483_v61, %s7618_s25 }
 0xeba   : > { %4971 = vrot.lane.b32.xlu1 %v11489_v41, %s7618_s25 }
 0xebc   : > { %4977 = vrot.lane.b32.xlu0 %v11486_v62, %s7618_s25 }
 0xebe   : > { %4979 = vrot.lane.b32.xlu1 %v11492_v49, %s7618_s25 }
 0xec0   : > { %5021 = vrot.lane.b32.xlu0 %v11419_v27, %s7619_s29 }
 0xec2   : > { %5023 = vrot.lane.b32.xlu1 %v11425_v54, %s7619_s29 }
 0xec4   : > { %5029 = vrot.lane.b32.xlu0 %v11422_v33, %s7619_s29 }
 0xec6   : > { %5031 = vrot.lane.b32.xlu1 %v11428_v1, %s7619_s29 }
 0xec8   : > { %5025 = vrot.lane.b32.xlu0 %v11483_v61, %s7619_s29 }
 0xeca   : > { %5027 = vrot.lane.b32.xlu1 %v11489_v41, %s7619_s29 }
 0xecc   : > { %5033 = vrot.lane.b32.xlu0 %v11486_v62, %s7619_s29 }
 0xece   : > { %5035 = vrot.lane.b32.xlu1 %v11492_v49, %s7619_s29 }
 0xed0   : > { %5121 = vperm.xlu0 %7518, %v7177_v4  }
 0xed2   : > { %5126 = vperm.xlu1 %7519, %v7178_v52  }
 0xed4   : > { %5131 = vperm.xlu0 %7518, %v7179_v46  }
 0xed6   : > { %5136 = vperm.xlu1 %7519, %v7180_v10  }
 0xeea   : > { %v4758_v25 = vpop.permute.xlu0 %4757 }
 0xeec   : > { %v4760_v60 = vpop.permute.xlu1 %4759 }
 0xeee   : > { %v4766_v40 = vpop.permute.xlu0 %4765 }
 0xeef   : > { %v4773_v4 = vsel %vm699_vm4, %v4758_v25, %v4766_v40  ;;  %v4777_v34 = vsel %vm699_vm4, %v4766_v40, %v4758_v25 }
 0xef0   : > { %v4768_v52 = vpop.permute.xlu1 %4767  ;;  %v4789_v10 = vmul.f32 %v11117_v31, %v4777_v34  ;;  %v4790_v19 = vmul.f32 %v11104_v35, %v4773_v4  ;;  %v11588_v34 = vld [vmem:[%s12948_s11 + $0xa0] sm:$0xff] }
 0xef1   : > { %v4774_v0 = vsel %vm699_vm4, %v4760_v60, %v4768_v52  ;;  %v4778_v46 = vsel %vm699_vm4, %v4768_v52, %v4760_v60 }
 0xef2   : > { %v4791_v5 = vmul.f32 %v10955_v20, %v4778_v46  ;;  %v4792_v28 = vmul.f32 %v10960_v3, %v4774_v0  ;;  %v4814_v38 = vpop.permute.xlu0 %4813  ;;  %v11593_v0 = vld [vmem:[%s12948_s11 + $0xa8] sm:$0xff] }
 0xef4   : > { %v4797_v21 = vpack.c.bf16 %v4791_v5, %v4789_v10  ;;  %v4816_v11 = vpop.permute.xlu1 %4815  ;;  %v4798_v32 = vpack.c.bf16 %v4792_v28, %v4790_v19  ;;  %v11602_v19 = vld [vmem:[%s12948_s11 + $0xb0] sm:$0xff] }
 0xef6   : > { %5175 = vmatprep.subr.bf16.mxu0 %v4798_v32  ;;  %v4822_v40 = vpop.permute.xlu0 %4821  ;;  %v11607_v32 = vld [vmem:[%s12948_s11 + $0xb8] sm:$0xff] }
 0xef7   : > { %5176 = vmatpush1.bf16.msra.mxu0 %v4797_v21 }
 0xef8   : > { %v4824_v25 = vpop.permute.xlu1 %4823 }
 0xef9   : > { %v4834_v55 = vsel %vm757_vm5, %v4824_v25, %v4816_v11 }
 0xefa   : > { %v4762_v45 = vpop.permute.xlu0 %4761 }
 0xefc   : > { %v4764_v2 = vpop.permute.xlu1 %4763 }
 0xefe   : > { %v4770_v60 = vpop.permute.xlu0 %4769 }
 0xeff   : > { %v4775_v28 = vsel %vm699_vm4, %v4762_v45, %v4770_v60  ;;  %v4779_v5 = vsel %vm699_vm4, %v4770_v60, %v4762_v45 }
 0xf00   : > { %v4772_v21 = vpop.permute.xlu1 %4771  ;;  %v4793_v46 = vmul.f32 %v11588_v34, %v4779_v5  ;;  %v4794_v45 = vmul.f32 %v11593_v0, %v4775_v28  ;;  %v4833_v28 = vsel %vm757_vm5, %v4822_v40, %v4814_v38  ;;  %v4830_v5 = vsel %vm757_vm5, %v4816_v11, %v4824_v25  ;;  %v11657_v25 = vld [vmem:[%s12948_s11 + $0xf8] sm:$0xff] }
 0xf01   : > { %v4776_v4 = vsel %vm699_vm4, %v4764_v2, %v4772_v21  ;;  %v4780_v52 = vsel %vm699_vm4, %v4772_v21, %v4764_v2  ;;  %v13254_v2 = vpack.c.bf16 %v11324_v12, %v11318_v16  ;;  %v4848_v21 = vmul.f32 %v11055_v15, %v4834_v55 }
 0xf02   : > { %v4795_v10 = vmul.f32 %v11602_v19, %v4780_v52  ;;  %v4796_v60 = vmul.f32 %v11607_v32, %v4776_v4  ;;  %v4866_v59 = vpop.permute.xlu0 %4865  ;;  %v4846_v52 = vmul.f32 %v11062_v8, %v4833_v28  ;;  %v13256_v12 = vpack.c.bf16 %v11376_v50, %v11370_v23  ;;  %v11652_v50 = vld [vmem:[%s12948_s11 + $0xf0] sm:$0xff] }
 0xf03   : > { %v4877_v55 = vsel %vm699_vm4, %v11569_v17, %v11571_v58  ;;  %v13257_v23 = vpack.c.bf16 %v11373_v42, %v11367_v7 }
 0xf04   : > { %v4799_v22 = vpack.c.bf16 %v4795_v10, %v4793_v46  ;;  %v4868_v48 = vpop.permute.xlu1 %4867  ;;  %v4800_v53 = vpack.c.bf16 %v4796_v60, %v4794_v45  ;;  %v4847_v46 = vmul.f32 %v11071_v43, %v4830_v5  ;;  %v4878_v45 = vsel %vm699_vm4, %v11442_v13, %v11448_v56 }
 0xf05   : > { %v4894_v42 = vmul.f32 %v11104_v35, %v4877_v55 }
 0xf06   : > { %5177 = vmatprep.subr.bf16.mxu0 %v4800_v53  ;;  %v4818_v6 = vpop.permute.xlu0 %4817  ;;  %v13255_v53 = vpack.c.bf16 %v11321_v39, %v11311_v37  ;;  %v4854_v37 = vpack.c.bf16 %v4848_v21, %v4846_v52 }
 0xf07   : > { %5178 = vmatpush1.bf16.msra.mxu0 %v4799_v22  ;;  %v4829_v22 = vsel %vm757_vm5, %v4814_v38, %v4822_v40 }
 0xf08   : > { %v4876_v14 = vpop.permute.xlu1 %4875  ;;  %5179 = vmatprep.subr.bf16.mxu0 %v13254_v2  ;;  %v4845_v39 = vmul.f32 %v11083_v24, %v4829_v22  ;;  %v4896_v22 = vmul.f32 %v10960_v3, %v4878_v45 }
 0xf09   : > { %v4880_v55 = vsel %vm699_vm4, %v4868_v48, %v4876_v14  ;;  %v4884_v3 = vsel %vm699_vm4, %v4876_v14, %v4868_v48 }
 0xf0a   : > { %v4826_v4 = vpop.permute.xlu0 %4825  ;;  %v4853_v10 = vpack.c.bf16 %v4847_v46, %v4845_v39 }
 0xf0b   : > { %5180 = vmatpush1.bf16.msra.mxu0 %v13255_v53  ;;  %v4831_v38 = vsel %vm757_vm5, %v4818_v6, %v4826_v4  ;;  %v4835_v40 = vsel %vm757_vm5, %v4826_v4, %v4818_v6  ;;  %v4881_v6 = vsel %vm699_vm4, %v11571_v58, %v11569_v17  ;;  %v4882_v53 = vsel %vm699_vm4, %v11448_v56, %v11442_v13 }
 0xf0c   : > { %v4820_v16 = vpop.permute.xlu1 %4819  ;;  %5181 = vmatprep.subr.bf16.mxu0 %v13256_v12  ;;  %v4849_v28 = vmul.f32 %v11163_v26, %v4831_v38  ;;  %v4850_v5 = vmul.f32 %v11168_v29, %v4835_v40  ;;  %v4893_v46 = vmul.f32 %v11117_v31, %v4881_v6  ;;  %v4902_v40 = vpack.c.bf16 %v4896_v22, %v4894_v42 }
 0xf0d   : > { %v4895_v13 = vmul.f32 %v10955_v20, %v4882_v53  ;;  %v4900_v56 = vmul.f32 %v11607_v32, %v4880_v55 }
 0xf0e   : > { %v4874_v11 = vpop.permute.xlu0 %4873 }
 0xf0f   : > { %5182 = vmatpush1.bf16.msra.mxu0 %v13257_v23  ;;  %v4879_v17 = vsel %vm699_vm4, %v4866_v59, %v4874_v11  ;;  %v4901_v45 = vpack.c.bf16 %v4895_v13, %v4893_v46 }
 0xf10   : > { %v4828_v7 = vpop.permute.xlu1 %4827  ;;  %5183 = vmatprep.subr.bf16.mxu0 %v4854_v37  ;;  %v4883_v37 = vsel %vm699_vm4, %v4874_v11, %v4866_v59  ;;  %v4898_v39 = vmul.f32 %v11593_v0, %v4879_v17  ;;  %v4899_v11 = vmul.f32 %v11602_v19, %v4884_v3 }
 0xf11   : > { %v4832_v60 = vsel %vm757_vm5, %v4820_v16, %v4828_v7  ;;  %v4836_v2 = vsel %vm757_vm5, %v4828_v7, %v4820_v16  ;;  %v4897_v6 = vmul.f32 %v11588_v34, %v4883_v37  ;;  %v11734_v37 = vld [vmem:[%s12948_s11 + $0x90] sm:$0xff] }
 0xf12   : > { %v4851_v21 = vmul.f32 %v11652_v50, %v4832_v60  ;;  %v4852_v4 = vmul.f32 %v11657_v25, %v4836_v2  ;;  %v4918_v58 = vpop.permute.xlu0 %4917  ;;  %v4904_v59 = vpack.c.bf16 %v4900_v56, %v4898_v39 }
 0xf13   : > { %5184 = vmatpush1.bf16.msra.mxu0 %v4853_v10  ;;  %v4903_v42 = vpack.c.bf16 %v4899_v11, %v4897_v6 }
 0xf14   : > { %v4855_v52 = vpack.c.bf16 %v4851_v21, %v4849_v28  ;;  %v4920_v16 = vpop.permute.xlu1 %4919  ;;  %v4856_v12 = vpack.c.bf16 %v4852_v4, %v4850_v5 }
 0xf16   : > { %5185 = vmatprep.subr.bf16.mxu0 %v4856_v12  ;;  %v4926_v38 = vpop.permute.xlu0 %4925 }
 0xf17   : > { %5186 = vmatpush1.bf16.msra.mxu0 %v4855_v52  ;;  %v4937_v48 = vsel %vm757_vm5, %v4926_v38, %v4918_v58  ;;  %v4933_v4 = vsel %vm757_vm5, %v4918_v58, %v4926_v38 }
 0xf18   : > { %v4928_v23 = vpop.permute.xlu1 %4927  ;;  %5187 = vmatprep.subr.bf16.mxu0 %v4902_v40  ;;  %v4950_v17 = vmul.f32 %v11062_v8, %v4937_v48  ;;  %v4949_v12 = vmul.f32 %v11083_v24, %v4933_v4  ;;  %v11721_v8 = vld [vmem:[%s12948_s11 + $0x98] sm:$0xff] }
 0xf19   : > { %v4938_v60 = vsel %vm757_vm5, %v4928_v23, %v4920_v16  ;;  %v4934_v2 = vsel %vm757_vm5, %v4920_v16, %v4928_v23 }
 0xf1a   : > { %v4922_v7 = vpop.permute.xlu0 %4921  ;;  %v4952_v28 = vmul.f32 %v11055_v15, %v4938_v60  ;;  %v4951_v53 = vmul.f32 %v11071_v43, %v4934_v2 }
 0xf1b   : > { %5188 = vmatpush1.bf16.msra.mxu0 %v4901_v45 }
 0xf1c   : > { %v4924_v10 = vpop.permute.xlu1 %4923  ;;  %5189 = vmatprep.subr.bf16.mxu0 %v4904_v59  ;;  %v4957_v46 = vpack.c.bf16 %v4951_v53, %v4949_v12 }
 0xf1e   : > { %v4930_v20 = vpop.permute.xlu0 %4929 }
 0xf1f   : > { %5190 = vmatpush1.bf16.msra.mxu0 %v4903_v42  ;;  %v4939_v22 = vsel %vm757_vm5, %v4930_v20, %v4922_v7  ;;  %v4935_v43 = vsel %vm757_vm5, %v4922_v7, %v4930_v20 }
 0xf20   : > { %v4932_v14 = vpop.permute.xlu1 %4931  ;;  %5191 = vmatprep.subr.bf16.mxu0 %v11220_v47  ;;  %v4953_v3 = vmul.f32 %v11163_v26, %v4935_v43  ;;  %v11777_v43 = vld [vmem:[%s12948_s11 + $0xd0] sm:$0xff] }
 0xf21   : > { %v4940_v21 = vsel %vm757_vm5, %v4932_v14, %v4924_v10  ;;  %v4936_v15 = vsel %vm757_vm5, %v4924_v10, %v4932_v14 }
 0xf22   : > { %v4966_v5 = vpop.permute.xlu0 %4965  ;;  %v4956_v52 = vmul.f32 %v11657_v25, %v4940_v21  ;;  %v4955_v55 = vmul.f32 %v11652_v50, %v4936_v15 }
 0xf23   : > { %5192 = vmatpush1.bf16.msra.mxu0 %v11226_v9  ;;  %v4958_v9 = vpack.c.bf16 %v4952_v28, %v4950_v17 }
 0xf24   : > { %v4968_v47 = vpop.permute.xlu1 %4967  ;;  %5193 = vmatprep.subr.bf16.mxu0 %v11250_v63  ;;  %v4954_v63 = vmul.f32 %v11168_v29, %v4939_v22  ;;  %v4959_v6 = vpack.c.bf16 %v4955_v55, %v4953_v3  ;;  %v11760_v22 = vld [vmem:[%s12948_s11 + $0xd8] sm:$0xff] }
 0xf26   : > { %v4974_v16 = vpop.permute.xlu0 %4973  ;;  %v4960_v13 = vpack.c.bf16 %v4956_v52, %v4954_v63  ;;  %v13258_v52 = vpack.c.bf16 %v11428_v1, %v11422_v33 }
 0xf27   : > { %5194 = vmatpush1.bf16.msra.mxu0 %v11256_v44  ;;  %v4981_v24 = vsel %vm699_vm4, %v4966_v5, %v4974_v16  ;;  %v4985_v56 = vsel %vm699_vm4, %v4974_v16, %v4966_v5  ;;  %v11768_v16 = vld [vmem:[%s12948_s11 + $0xc8] sm:$0xff] }
 0xf28   : > { %v4976_v58 = vpop.permute.xlu1 %4975  ;;  %5195 = vmatprep.subr.bf16.mxu0 %v4958_v9  ;;  %v4998_v23 = vmul.f32 %v11104_v35, %v4981_v24  ;;  %v4997_v10 = vmul.f32 %v11117_v31, %v4985_v56 }
 0xf29   : > { %v4982_v44 = vsel %vm699_vm4, %v4968_v47, %v4976_v58  ;;  %v4986_v39 = vsel %vm699_vm4, %v4976_v58, %v4968_v47  ;;  %v13259_v58 = vpack.c.bf16 %v11425_v54, %v11419_v27  ;;  %v7582_v54 = vld [vmem:[%s12940_s3 + $0x90] ss:$12 sps:$4 sm:$0xff]  }
 0xf2a   : > { %v5000_v38 = vmul.f32 %v11721_v8, %v4982_v44  ;;  %v4970_v40 = vpop.permute.xlu0 %4969  ;;  %v4999_v7 = vmul.f32 %v11734_v37, %v4986_v39  ;;  %v13260_v39 = vpack.c.bf16 %v11492_v49, %v11486_v62  ;;  %v13261_v49 = vpack.c.bf16 %v11489_v41, %v11483_v61  ;;  %v7585_v62 = vld [vmem:[%s12940_s3 + $0xac] ss:$12 sps:$4 sm:$0xff]  }
 0xf2b   : > { %5196 = vmatpush1.bf16.msra.mxu0 %v4957_v46  ;;  %v11788_v46 = vld [vmem:[%s12948_s11 + $0xc0] sm:$0xff] }
 0xf2c   : > { %v4972_v45 = vpop.permute.xlu1 %4971  ;;  %5197 = vmatprep.subr.bf16.mxu0 %v4960_v13  ;;  %v5006_v11 = vpack.c.bf16 %v5000_v38, %v4998_v23  ;;  %v5005_v14 = vpack.c.bf16 %v4999_v7, %v4997_v10 }
 0xf2e   : > { %v4978_v59 = vpop.permute.xlu0 %4977 }
 0xf2f   : > { %v4983_v42 = vsel %vm699_vm4, %v4970_v40, %v4978_v59  ;;  %v4987_v20 = vsel %vm699_vm4, %v4978_v59, %v4970_v40  ;;  %5198 = vmatpush1.bf16.msra.mxu0 %v4959_v6 }
 0xf30   : > { %v4980_v60 = vpop.permute.xlu1 %4979  ;;  %5199 = vmatprep.subr.bf16.mxu0 %v5006_v11  ;;  %v5001_v2 = vmul.f32 %v11588_v34, %v4987_v20  ;;  %v5002_v31 = vmul.f32 %v11593_v0, %v4983_v42  ;;  %v7587_v20 = vld [vmem:[%s12940_s3 + $0xa8] ss:$12 sps:$4 sm:$0xff]  }
 0xf31   : > { %v4984_v35 = vsel %vm699_vm4, %v4972_v45, %v4980_v60  ;;  %v4988_v48 = vsel %vm699_vm4, %v4980_v60, %v4972_v45 }
 0xf32   : > { %v5003_v28 = vmul.f32 %v11602_v19, %v4988_v48  ;;  %v5004_v5 = vmul.f32 %v11607_v32, %v4984_v35  ;;  %v5022_v21 = vpop.permute.xlu0 %5021 }
 0xf33   : > { %5200 = vmatpush1.bf16.msra.mxu0 %v5005_v14 }
 0xf34   : > { %v5007_v4 = vpack.c.bf16 %v5003_v28, %v5001_v2  ;;  %v5024_v17 = vpop.permute.xlu1 %5023  ;;  %v5008_v47 = vpack.c.bf16 %v5004_v5, %v5002_v31 }
 0xf36   : > { %v5030_v53 = vpop.permute.xlu0 %5029  ;;  %5201 = vmatprep.subr.bf16.mxu0 %v5008_v47 }
 0xf37   : > { %5202 = vmatpush1.bf16.msra.mxu0 %v5007_v4  ;;  %v5041_v9 = vsel %vm757_vm5, %v5030_v53, %v5022_v21  ;;  %v5037_v55 = vsel %vm757_vm5, %v5022_v21, %v5030_v53 }
 0xf38   : > { %v5032_v15 = vpop.permute.xlu1 %5031  ;;  %5203 = vmatprep.subr.bf16.mxu0 %v13258_v52  ;;  %v5054_v24 = vmul.f32 %v11768_v16, %v5041_v9  ;;  %v5053_v13 = vmul.f32 %v11788_v46, %v5037_v55 }
 0xf39   : > { %v5042_v12 = vsel %vm757_vm5, %v5032_v15, %v5024_v17  ;;  %v5038_v33 = vsel %vm757_vm5, %v5024_v17, %v5032_v15 }
 0xf3a   : > { %v5056_v1 = vmul.f32 %v11760_v22, %v5042_v12  ;;  %v5026_v63 = vpop.permute.xlu0 %5025  ;;  %v5055_v38 = vmul.f32 %v11777_v43, %v5038_v33 }
 0xf3b   : > { %5204 = vmatpush1.bf16.msra.mxu0 %v13259_v58 }
 0xf3c   : > { %v5028_v44 = vpop.permute.xlu1 %5027  ;;  %5205 = vmatprep.subr.bf16.mxu0 %v13260_v39  ;;  %v5062_v27 = vpack.c.bf16 %v5056_v1, %v5054_v24  ;;  %v5061_v45 = vpack.c.bf16 %v5055_v38, %v5053_v13 }
 0xf3e   : > { %v5034_v40 = vpop.permute.xlu0 %5033 }
 0xf3f   : > { %v5039_v3 = vsel %vm757_vm5, %v5026_v63, %v5034_v40  ;;  %v5043_v56 = vsel %vm757_vm5, %v5034_v40, %v5026_v63  ;;  %5206 = vmatpush1.bf16.msra.mxu0 %v13261_v49 }
 0xf40   : > { %v5036_v23 = vpop.permute.xlu1 %5035  ;;  %5228 = vmatprep.subr.bf16.mxu0 %v5062_v27  ;;  %v5057_v59 = vmul.f32 %v11163_v26, %v5039_v3  ;;  %v5058_v11 = vmul.f32 %v11168_v29, %v5043_v56  ;;  %v7588_v26 = vld [vmem:[%s12940_s3 + $0x98] ss:$12 sps:$4 sm:$0xff]   ;;  %v7589_v29 = vld [vmem:[%s12940_s3 + $0xb0] ss:$12 sps:$4 sm:$0xff]  }
 0xf41   : > { %v5040_v6 = vsel %vm757_vm5, %v5028_v44, %v5036_v23  ;;  %v5044_v7 = vsel %vm757_vm5, %v5036_v23, %v5028_v44 }
 0xf42   : > { %v5059_v41 = vmul.f32 %v11652_v50, %v5040_v6  ;;  %v5060_v61 = vmul.f32 %v11657_v25, %v5044_v7  ;;  %5208 = vmatmul.mubr.bf16.vlgmr.msra.gmra.mrb[32].mxu0 %v7582_v54 }
 0xf43   : > { %5229 = vmatpush1.bf16.msra.mxu0 %v5061_v45  ;;  %5217 = vmatprep.mubr.bf16.mxu0 %v7585_v62  ;;  %v7590_v62 = vld [vmem:[%s12944_s7 + $0x20] sm:$0xff]  }
 0xf44   : > { %v5063_v10 = vpack.c.bf16 %v5059_v41, %v5057_v59  ;;  %v5064_v42 = vpack.c.bf16 %v5060_v61, %v5058_v11  ;;  %7111 = vmatmul.mubr.msk.bf16.vlgmr.msra.gmra.mrb[8].mxu1 %vm1097_vm6, %v7590_v62  ;;  %v13262_v41 = vld [vmem:[#allocation26_spill] sm:$0xff] }
 0xf45   : > { %4642 = vmatprep.mubr.bf16.mxu1 %v13224_v18 }
 0xf46   : > { %5230 = vmatprep.subr.bf16.mxu0 %v5064_v42 }
 0xf47   : > { %5231 = vmatpush1.bf16.msra.mxu0 %v5063_v10 }
 0xf4a   : > { %5218 = vmatmul.mubr.bf16.gmra.mrb[36].mxu0 %v7587_v20 }
 0xf4b   : > { %5260 = vmatprep.mubr.bf16.mxu0 %v13224_v18 }
 0xf4f   : > { %v5122_v60 = vpop.permute.xlu0 %5121 }
 0xf51   : > { %v5127_v2 = vpop.permute.xlu1 %5126 }
 0xf52   : > { %7187 = vmatmul.mubr.msk.bf16.vlgmr.msra.gmra.mrb[32].mxu0 %vm1097_vm6, %v7588_v26 }
 0xf53   : > { %5270 = vmatprep.mubr.bf16.mxu0 %v13224_v18  ;;  %v5132_v15 = vpop.permute.xlu0 %5131 }
 0xf55   : > { %v5137_v1 = vpop.permute.xlu1 %5136 }
 0xf5a   : > { %7188 = vmatmul.mubr.msk.bf16.gmra.mrb[36].mxu0 %vm1097_vm6, %v7589_v29 }
0x1025   : > { %v5262_v14 = vpop.f32.mrb[32].mxu0 }
0x1026   : > { %v7392_v35 = vadd.f32 %v5262_v14, %v5122_v60  ;;  %v5264_v48 = vpop.f32.mrb[33].mxu0 }
0x1027   : > { %v5266_v31 = vpop.f32.mrb[34].mxu0  ;;  %v7393_v5 = vadd.f32 %v5264_v48, %v5122_v60 }
0x1028   : > { %v11832_v28 = vmax.f32 %v7392_v35, 0.0  ;;  %v7394_v21 = vadd.f32 %v5266_v31, %v5127_v2  ;;  %v5268_v4 = vpop.f32.mrb[35].mxu0  ;;  %v13263_v35 = vld [vmem:[#allocation27_spill] sm:$0xff] }
0x1029   : > { %v7395_v47 = vadd.f32 %v5268_v4, %v5127_v2  ;;  %v11838_v53 = vmax.f32 %v7393_v5, 0.0  ;;  %v13264_v2 = vld [vmem:[#allocation19_spill] sm:$0xff]  ;;  %v13266_v4 = vld [vmem:[#allocation22_spill] sm:$0xff] }
0x102a   : > { %v11834_v17 = vmax.f32 %v7394_v21, 0.0  ;;  %5289 = vrot.lane.b32.xlu0 %v11832_v28, %s7616_s23  ;;  %v13265_v5 = vld [vmem:[#allocation23_spill] sm:$0xff] }
0x102b   : > { %v11842_v9 = vmax.f32 %v7395_v47, 0.0 }
0x102c   : > { %5291 = vrot.lane.b32.xlu1 %v11834_v17, %s7616_s23 }
0x102d   : > { %v5272_v52 = vpop.f32.mrb[36].mxu0 }
0x102e   : > { %v7396_v12 = vadd.f32 %v5272_v52, %v5132_v15  ;;  %v5274_v33 = vpop.f32.mrb[37].mxu0  ;;  %5297 = vrot.lane.b32.xlu0 %v11838_v53, %s7616_s23 }
0x102f   : > { %v5276_v63 = vpop.f32.mrb[38].mxu0  ;;  %v7397_v55 = vadd.f32 %v5274_v33, %v5132_v15 }
0x1030   : > { %v11846_v58 = vmax.f32 %v7396_v12, 0.0  ;;  %v7398_v24 = vadd.f32 %v5276_v63, %v5137_v1  ;;  %v5278_v44 = vpop.f32.mrb[39].mxu0  ;;  %5299 = vrot.lane.b32.xlu1 %v11842_v9, %s7616_s23 }
0x1031   : > { %v7399_v38 = vadd.f32 %v5278_v44, %v5137_v1  ;;  %v11854_v40 = vmax.f32 %v7397_v55, 0.0 }
0x1032   : > { %v11850_v39 = vmax.f32 %v7398_v24, 0.0  ;;  %5293 = vrot.lane.b32.xlu0 %v11846_v58, %s7616_s23 }
0x1033   : > { %v11858_v27 = vmax.f32 %v7399_v38, 0.0 }
0x1034   : > { %5295 = vrot.lane.b32.xlu1 %v11850_v39, %s7616_s23 }
0x1036   : > { %5301 = vrot.lane.b32.xlu0 %v11854_v40, %s7616_s23 }
0x1038   : > { %5303 = vrot.lane.b32.xlu1 %v11858_v27, %s7616_s23 }
0x103a   : > { %5329 = vrot.lane.b32.xlu0 %v11832_v28, %s7617_s24 }
0x103c   : > { %5331 = vrot.lane.b32.xlu1 %v11834_v17, %s7617_s24 }
0x103e   : > { %5337 = vrot.lane.b32.xlu0 %v11838_v53, %s7617_s24 }
0x1040   : > { %5339 = vrot.lane.b32.xlu1 %v11842_v9, %s7617_s24 }
0x1042   : > { %5333 = vrot.lane.b32.xlu0 %v11846_v58, %s7617_s24 }
0x1044   : > { %5335 = vrot.lane.b32.xlu1 %v11850_v39, %s7617_s24 }
0x1046   : > { %5341 = vrot.lane.b32.xlu0 %v11854_v40, %s7617_s24 }
0x1048   : > { %5475 = vrot.lane.b32.xlu1 %v11834_v17, %s7618_s25 }
0x104a   : > { %5473 = vrot.lane.b32.xlu0 %v11832_v28, %s7618_s25 }
0x104c   : > { %5483 = vrot.lane.b32.xlu1 %v11842_v9, %s7618_s25 }
0x104e   : > { %5481 = vrot.lane.b32.xlu0 %v11838_v53, %s7618_s25 }
0x1050   : > { %5343 = vrot.lane.b32.xlu1 %v11858_v27, %s7617_s24 }
0x109c   : > { %v5290_v54 = vpop.permute.xlu0 %5289 }
0x109e   : > { %v5292_v13 = vpop.permute.xlu1 %5291 }
0x10a0   : > { %v5298_v3 = vpop.permute.xlu0 %5297 }
0x10a1   : > { %v5305_v56 = vsel %vm616_vm2, %v5290_v54, %v5298_v3  ;;  %v5309_v49 = vsel %vm616_vm2, %v5298_v3, %v5290_v54  ;;  %v13267_v54 = vld [vmem:[#allocation21_spill] sm:$0xff]  ;;  %v13268_v3 = vld [vmem:[#allocation20_spill] sm:$0xff] }
0x10a2   : > { %v11896_v23 = vmul.f32 %v5309_v49, %v11289_v51  ;;  %v5300_v45 = vpop.permute.xlu1 %5299  ;;  %v11904_v59 = vmul.f32 %v5305_v56, %v11294_v57  ;;  %v13269_v49 = vld [vmem:[#allocation16_spill] sm:$0xff] }
0x10a3   : > { %v5306_v6 = vsel %vm616_vm2, %v5292_v13, %v5300_v45  ;;  %v5310_v7 = vsel %vm616_vm2, %v5300_v45, %v5292_v13  ;;  %v13270_v45 = vld [vmem:[#allocation18_spill] sm:$0xff] }
0x10a4   : > { %v11907_v11 = vmul.f32 %v5310_v7, %v11303_v30  ;;  %v11910_v61 = vmul.f32 %v5306_v6, %v13262_v41  ;;  %5369 = vrot.lane.b32.xlu0 %v11896_v23, %s7618_s25  ;;  %v5294_v51 = vpop.permute.xlu0 %5293 }
0x10a6   : > { %5371 = vrot.lane.b32.xlu1 %v11907_v11, %s7618_s25  ;;  %v5296_v10 = vpop.permute.xlu1 %5295 }
0x10a8   : > { %5377 = vrot.lane.b32.xlu0 %v11904_v59, %s7618_s25  ;;  %v5302_v42 = vpop.permute.xlu0 %5301 }
0x10a9   : > { %v5307_v20 = vsel %vm616_vm2, %v5294_v51, %v5302_v42  ;;  %v5311_v26 = vsel %vm616_vm2, %v5302_v42, %v5294_v51 }
0x10aa   : > { %5379 = vrot.lane.b32.xlu1 %v11910_v61, %s7618_s25  ;;  %v5304_v29 = vpop.permute.xlu1 %5303  ;;  %v11934_v48 = vmul.f32 %v5311_v26, %v13263_v35  ;;  %v11937_v31 = vmul.f32 %v5307_v20, %v13264_v2 }
0x10ab   : > { %v5308_v60 = vsel %vm616_vm2, %v5296_v10, %v5304_v29  ;;  %v5312_v14 = vsel %vm616_vm2, %v5304_v29, %v5296_v10 }
0x10ac   : > { %v11940_v21 = vmul.f32 %v5312_v14, %v13265_v5  ;;  %v11943_v47 = vmul.f32 %v5308_v60, %v13266_v4  ;;  %5425 = vrot.lane.b32.xlu0 %v11896_v23, %s7619_s29  ;;  %v5330_v15 = vpop.permute.xlu0 %5329  ;;  %v13271_v5 = vld [vmem:[#allocation15_spill] sm:$0xff] }
0x10ae   : > { %5427 = vrot.lane.b32.xlu1 %v11907_v11, %s7619_s29  ;;  %v5332_v52 = vpop.permute.xlu1 %5331 }
0x10b0   : > { %5433 = vrot.lane.b32.xlu0 %v11904_v59, %s7619_s29  ;;  %v5338_v1 = vpop.permute.xlu0 %5337 }
0x10b1   : > { %v5345_v63 = vsel %vm657_vm3, %v5330_v15, %v5338_v1  ;;  %v5349_v55 = vsel %vm657_vm3, %v5338_v1, %v5330_v15  ;;  %v13272_v15 = vld [vmem:[#allocation5_spill] sm:$0xff]  ;;  %v13273_v1 = vld [vmem:[#allocation6_spill] sm:$0xff] }
0x10b2   : > { %5435 = vrot.lane.b32.xlu1 %v11910_v61, %s7619_s29  ;;  %v5340_v24 = vpop.permute.xlu1 %5339  ;;  %v11966_v13 = vmul.f32 %v13267_v54, %v5345_v63  ;;  %v11969_v56 = vmul.f32 %v13268_v3, %v5349_v55  ;;  %v13274_v55 = vld [vmem:[#allocation7_spill] sm:$0xff]  ;;  %v7591_v54 = vld [vmem:[%s12944_s7 + $0x28] sm:$0xff]  }
0x10b3   : > { %v5346_v44 = vsel %vm657_vm3, %v5332_v52, %v5340_v24  ;;  %v5350_v38 = vsel %vm657_vm3, %v5340_v24, %v5332_v52  ;;  %7112 = vmatmul.mubr.msk.bf16.gmra.mrb[12].mxu1 %vm1097_vm6, %v7591_v54  ;;  %v7594_v3 = vld [vmem:[%s12942_s5 + $0x94] ss:$12 sps:$4 sm:$0xff]  }
0x10b4   : > { %v11972_v62 = vmul.f32 %v13269_v49, %v5346_v44  ;;  %v11975_v6 = vmul.f32 %v13270_v45, %v5350_v38  ;;  %5373 = vrot.lane.b32.xlu0 %v11934_v48, %s7618_s25  ;;  %v5334_v10 = vpop.permute.xlu0 %5333  ;;  %5819 = vmatprep.mubr.bf16.mxu1 %v7594_v3  ;;  %v7253_v49 = vld [vmem:[%s12943_s6 + $0x60] sm:$0xff]  ;;  %v7254_v45 = vld [vmem:[%s12943_s6 + $0x68] sm:$0xff] }
0x10b6   : > { %5375 = vrot.lane.b32.xlu1 %v11940_v21, %s7618_s25  ;;  %v5336_v7 = vpop.permute.xlu1 %5335 }
0x10b8   : > { %5381 = vrot.lane.b32.xlu0 %v11937_v31, %s7618_s25  ;;  %v5342_v20 = vpop.permute.xlu0 %5341 }
0x10b9   : > { %v5347_v29 = vsel %vm657_vm3, %v5334_v10, %v5342_v20  ;;  %v5351_v60 = vsel %vm657_vm3, %v5342_v20, %v5334_v10  ;;  %v7256_v10 = vld [vmem:[%s12943_s6 + $0x78] sm:$0xff]  ;;  %v558_v20 = vld [vmem:[%s12945_s8] sm:$0xff] }
0x10ba   : > { %5383 = vrot.lane.b32.xlu1 %v11943_v47, %s7618_s25  ;;  %v11989_v42 = vpop.permute.xlu1 %5475  ;;  %v12010_v4 = vmul.f32 %v13271_v5, %v5347_v29  ;;  %v12013_v52 = vmul.f32 %v13272_v15, %v5351_v60  ;;  %v559_v29 = vld [vmem:[%s12945_s8 + $0x8] sm:$0xff]  ;;  %v560_v60 = vld [vmem:[%s12945_s8 + $0x10] sm:$0xff] }
0x10bc   : > { %5477 = vrot.lane.b32.xlu0 %v11846_v58, %s7618_s25 }
0x10be   : > { %5479 = vrot.lane.b32.xlu1 %v11850_v39, %s7618_s25  ;;  %v11995_v26 = vpop.permute.xlu1 %5483 }
0x10c0   : > { %5429 = vrot.lane.b32.xlu0 %v11934_v48, %s7619_s29 }
0x10c2   : > { %5487 = vrot.lane.b32.xlu1 %v11858_v27, %s7618_s25  ;;  %v5344_v14 = vpop.permute.xlu1 %5343 }
0x10c3   : > { %v5348_v35 = vsel %vm657_vm3, %v5336_v7, %v5344_v14  ;;  %v5352_v2 = vsel %vm657_vm3, %v5344_v14, %v5336_v7  ;;  %v7255_v7 = vld [vmem:[%s12943_s6 + $0x70] sm:$0xff]  ;;  %v561_v14 = vld [vmem:[%s12945_s8 + $0x18] sm:$0xff] }
0x10c4   : > { %v12016_v63 = vmul.f32 %v13273_v1, %v5348_v35  ;;  %v12019_v24 = vmul.f32 %v13274_v55, %v5352_v2  ;;  %5437 = vrot.lane.b32.xlu0 %v11937_v31, %s7619_s29  ;;  %v12112_v35 = vpop.permute.xlu0 %5473 }
0x10c6   : > { %5431 = vrot.lane.b32.xlu1 %v11940_v21, %s7619_s29 }
0x10c8   : > { %5485 = vrot.lane.b32.xlu0 %v11854_v40, %s7618_s25  ;;  %v12114_v2 = vpop.permute.xlu0 %5481 }
0x10ca   : > { %5439 = vrot.lane.b32.xlu1 %v11943_v47, %s7619_s29 }
0x10cc   : > { %5529 = vrot.lane.b32.xlu0 %v11832_v28, %s7619_s29 }
0x10ce   : > { %5531 = vrot.lane.b32.xlu1 %v11834_v17, %s7619_s29 }
0x10d0   : > { %5537 = vrot.lane.b32.xlu0 %v11838_v53, %s7619_s29 }
0x10d2   : > { %5539 = vrot.lane.b32.xlu1 %v11842_v9, %s7619_s29 }
0x10d4   : > { %5533 = vrot.lane.b32.xlu0 %v11846_v58, %s7619_s29 }
0x10d6   : > { %5535 = vrot.lane.b32.xlu1 %v11850_v39, %s7619_s29 }
0x10d8   : > { %5541 = vrot.lane.b32.xlu0 %v11854_v40, %s7619_s29 }
0x10da   : > { %5543 = vrot.lane.b32.xlu1 %v11858_v27, %s7619_s29 }
0x10dc   : > { %5577 = vrot.lane.b32.xlu0 %v11966_v13, %s7618_s25 }
0x10de   : > { %5579 = vrot.lane.b32.xlu1 %v11972_v62, %s7618_s25 }
0x10e0   : > { %5585 = vrot.lane.b32.xlu0 %v11969_v56, %s7618_s25 }
0x10e2   : > { %5587 = vrot.lane.b32.xlu1 %v11975_v6, %s7618_s25 }
0x10e4   : > { %5581 = vrot.lane.b32.xlu0 %v12010_v4, %s7618_s25 }
0x10e6   : > { %5583 = vrot.lane.b32.xlu1 %v12016_v63, %s7618_s25 }
0x10e8   : > { %5589 = vrot.lane.b32.xlu0 %v12013_v52, %s7618_s25 }
0x10ea   : > { %5591 = vrot.lane.b32.xlu1 %v12019_v24, %s7618_s25 }
0x10ec   : > { %5633 = vrot.lane.b32.xlu0 %v11966_v13, %s7619_s29 }
0x10ee   : > { %5635 = vrot.lane.b32.xlu1 %v11972_v62, %s7619_s29 }
0x10f0   : > { %5641 = vrot.lane.b32.xlu0 %v11969_v56, %s7619_s29 }
0x10f2   : > { %5643 = vrot.lane.b32.xlu1 %v11975_v6, %s7619_s29 }
0x10f4   : > { %5637 = vrot.lane.b32.xlu0 %v12010_v4, %s7619_s29 }
0x10f6   : > { %5639 = vrot.lane.b32.xlu1 %v12016_v63, %s7619_s29 }
0x10f8   : > { %5645 = vrot.lane.b32.xlu0 %v12013_v52, %s7619_s29 }
0x10fa   : > { %5647 = vrot.lane.b32.xlu1 %v12019_v24, %s7619_s29 }
0x10fc   : > { %5733 = vperm.xlu0 %7518, %v7253_v49   ;;  %v12123_v49 = vld [vmem:[%s12948_s11 + $0x80] sm:$0xff] }
0x10fe   : > { %5738 = vperm.xlu1 %7519, %v7254_v45   ;;  %v12128_v45 = vld [vmem:[%s12948_s11 + $0x88] sm:$0xff] }
0x1100   : > { %5743 = vperm.xlu0 %7518, %v7255_v7  }
0x1102   : > { %5748 = vperm.xlu1 %7519, %v7256_v10  }
0x1104   : > { %564 = vperm.xlu0 %7518, %v558_v20  }
0x1106   : > { %569 = vperm.xlu1 %7519, %v559_v29  }
0x1108   : > { %574 = vperm.xlu0 %7518, %v560_v60  }
0x110a   : > { %579 = vperm.xlu1 %7519, %v561_v14  }
0x1116   : > { %v5370_v5 = vpop.permute.xlu0 %5369 }
0x1118   : > { %v5372_v15 = vpop.permute.xlu1 %5371 }
0x111a   : > { %v5378_v1 = vpop.permute.xlu0 %5377 }
0x111b   : > { %v5385_v55 = vsel %vm699_vm4, %v5370_v5, %v5378_v1  ;;  %v5389_v54 = vsel %vm699_vm4, %v5378_v1, %v5370_v5 }
0x111c   : > { %v5380_v3 = vpop.permute.xlu1 %5379  ;;  %v5401_v20 = vmul.f32 %v12123_v49, %v5389_v54  ;;  %v5402_v29 = vmul.f32 %v12128_v45, %v5385_v55 }
0x111d   : > { %v5386_v7 = vsel %vm699_vm4, %v5372_v15, %v5380_v3  ;;  %v5390_v10 = vsel %vm699_vm4, %v5380_v3, %v5372_v15 }
0x111e   : > { %v5403_v60 = vmul.f32 %v11734_v37, %v5390_v10  ;;  %v5404_v14 = vmul.f32 %v11721_v8, %v5386_v7  ;;  %v5426_v5 = vpop.permute.xlu0 %5425 }
0x1120   : > { %v5409_v1 = vpack.c.bf16 %v5403_v60, %v5401_v20  ;;  %v5428_v38 = vpop.permute.xlu1 %5427  ;;  %v5410_v44 = vpack.c.bf16 %v5404_v14, %v5402_v29 }
0x1122   : > { %v5434_v51 = vpop.permute.xlu0 %5433  ;;  %5787 = vmatprep.subr.bf16.mxu1 %v5410_v44 }
0x1123   : > { %5788 = vmatpush1.bf16.msra.mxu1 %v5409_v1 }
0x1124   : > { %v5436_v41 = vpop.permute.xlu1 %5435 }
0x1126   : > { %v5374_v33 = vpop.permute.xlu0 %5373 }
0x1128   : > { %v5376_v12 = vpop.permute.xlu1 %5375 }
0x112a   : > { %v5382_v30 = vpop.permute.xlu0 %5381 }
0x112b   : > { %v5387_v15 = vsel %vm699_vm4, %v5374_v33, %v5382_v30  ;;  %v5391_v55 = vsel %vm699_vm4, %v5382_v30, %v5374_v33  ;;  %v5446_v33 = vsel %vm757_vm5, %v5436_v41, %v5428_v38 }
0x112c   : > { %v5384_v54 = vpop.permute.xlu1 %5383  ;;  %v5405_v44 = vmul.f32 %v11588_v34, %v5391_v55  ;;  %v5406_v10 = vmul.f32 %v11593_v0, %v5387_v15  ;;  %v5445_v15 = vsel %vm757_vm5, %v5434_v51, %v5426_v5  ;;  %v5442_v55 = vsel %vm757_vm5, %v5428_v38, %v5436_v41 }
0x112d   : > { %v5388_v3 = vsel %vm699_vm4, %v5376_v12, %v5384_v54  ;;  %v5392_v7 = vsel %vm699_vm4, %v5384_v54, %v5376_v12  ;;  %v13275_v12 = vpack.c.bf16 %v11910_v61, %v11904_v59  ;;  %v5460_v54 = vmul.f32 %v11760_v22, %v5446_v33 }
0x112e   : > { %v5407_v20 = vmul.f32 %v11602_v19, %v5392_v7  ;;  %v5408_v29 = vmul.f32 %v11607_v32, %v5388_v3  ;;  %v5478_v60 = vpop.permute.xlu0 %5477  ;;  %v5441_v7 = vsel %vm757_vm5, %v5426_v5, %v5434_v51  ;;  %v13277_v61 = vpack.c.bf16 %v11943_v47, %v11937_v31  ;;  %v12178_v51 = vld [vmem:[%s12948_s11 + $0xe0] sm:$0xff]  ;;  %v12183_v31 = vld [vmem:[%s12948_s11 + $0xe8] sm:$0xff] }
0x112f   : > { %v5489_v41 = vsel %vm699_vm4, %v12112_v35, %v12114_v2 }
0x1130   : > { %v5411_v14 = vpack.c.bf16 %v5407_v20, %v5405_v44  ;;  %v5480_v1 = vpop.permute.xlu1 %5479  ;;  %v5412_v57 = vpack.c.bf16 %v5408_v29, %v5406_v10  ;;  %v5458_v44 = vmul.f32 %v11768_v16, %v5445_v15  ;;  %v5459_v10 = vmul.f32 %v11777_v43, %v5442_v55 }
0x1131   : > { %v13278_v20 = vpack.c.bf16 %v11940_v21, %v11934_v48  ;;  %v5490_v29 = vsel %vm699_vm4, %v11989_v42, %v11995_v26 }
0x1132   : > { %v5430_v30 = vpop.permute.xlu0 %5429  ;;  %5789 = vmatprep.subr.bf16.mxu1 %v5412_v57  ;;  %v13276_v57 = vpack.c.bf16 %v11907_v11, %v11896_v23  ;;  %v5466_v23 = vpack.c.bf16 %v5460_v54, %v5458_v44  ;;  %v5457_v11 = vmul.f32 %v11788_v46, %v5441_v7  ;;  %v5508_v7 = vmul.f32 %v11721_v8, %v5490_v29 }
0x1133   : > { %5790 = vmatpush1.bf16.msra.mxu1 %v5411_v14  ;;  %v5493_v14 = vsel %vm699_vm4, %v12114_v2, %v12112_v35 }
0x1134   : > { %v5488_v18 = vpop.permute.xlu1 %5487  ;;  %5791 = vmatprep.subr.bf16.mxu1 %v13275_v12  ;;  %v5506_v12 = vmul.f32 %v12128_v45, %v5489_v41  ;;  %v5465_v15 = vpack.c.bf16 %v5459_v10, %v5457_v11  ;;  %v5505_v10 = vmul.f32 %v12123_v49, %v5493_v14 }
0x1135   : > { %v5492_v41 = vsel %vm699_vm4, %v5480_v1, %v5488_v18 }
0x1136   : > { %v5438_v3 = vpop.permute.xlu0 %5437 }
0x1137   : > { %5792 = vmatpush1.bf16.msra.mxu1 %v13276_v57  ;;  %v5443_v47 = vsel %vm757_vm5, %v5430_v30, %v5438_v3  ;;  %v5447_v5 = vsel %vm757_vm5, %v5438_v3, %v5430_v30  ;;  %v5494_v57 = vsel %vm699_vm4, %v11995_v26, %v11989_v42  ;;  %v5496_v26 = vsel %vm699_vm4, %v5488_v18, %v5480_v1 }
0x1138   : > { %v5432_v59 = vpop.permute.xlu1 %5431  ;;  %5793 = vmatprep.subr.bf16.mxu1 %v13277_v61  ;;  %v5461_v21 = vmul.f32 %v12178_v51, %v5443_v47  ;;  %v5462_v55 = vmul.f32 %v12183_v31, %v5447_v5  ;;  %v5514_v5 = vpack.c.bf16 %v5508_v7, %v5506_v12  ;;  %v5507_v42 = vmul.f32 %v11734_v37, %v5494_v57 }
0x1139   : > { %v5523_v57 = vpack.c.bf16 %v11850_v39, %v11846_v58 }
0x113a   : > { %v5486_v38 = vpop.permute.xlu0 %5485  ;;  %v5513_v14 = vpack.c.bf16 %v5507_v42, %v5505_v10 }
0x113b   : > { %5794 = vmatpush1.bf16.msra.mxu1 %v13278_v20  ;;  %v5491_v2 = vsel %vm699_vm4, %v5478_v60, %v5486_v38  ;;  %v5512_v20 = vmul.f32 %v11607_v32, %v5492_v41 }
0x113c   : > { %v5440_v33 = vpop.permute.xlu1 %5439  ;;  %5795 = vmatprep.subr.bf16.mxu1 %v5466_v23  ;;  %v5495_v23 = vsel %vm699_vm4, %v5486_v38, %v5478_v60  ;;  %v5510_v11 = vmul.f32 %v11593_v0, %v5491_v2  ;;  %v5511_v0 = vmul.f32 %v11602_v19, %v5496_v26  ;;  %v5521_v19 = vpack.c.bf16 %v11834_v17, %v11832_v28 }
0x113d   : > { %v5444_v30 = vsel %vm757_vm5, %v5432_v59, %v5440_v33  ;;  %v5448_v48 = vsel %vm757_vm5, %v5440_v33, %v5432_v59  ;;  %v5509_v33 = vmul.f32 %v11588_v34, %v5495_v23 }
0x113e   : > { %v5463_v54 = vmul.f32 %v11652_v50, %v5444_v30  ;;  %v5464_v3 = vmul.f32 %v11657_v25, %v5448_v48  ;;  %v5530_v35 = vpop.permute.xlu0 %5529  ;;  %v5516_v60 = vpack.c.bf16 %v5512_v20, %v5510_v11  ;;  %v5522_v48 = vpack.c.bf16 %v11842_v9, %v11838_v53 }
0x113f   : > { %5796 = vmatpush1.bf16.msra.mxu1 %v5465_v15  ;;  %v5515_v12 = vpack.c.bf16 %v5511_v0, %v5509_v33  ;;  %v5524_v53 = vpack.c.bf16 %v11858_v27, %v11854_v40  ;;  %v12274_v33 = vld [vmem:[%s12948_s11 + $0xa0] sm:$0xff]  ;;  %v12280_v0 = vld [vmem:[%s12948_s11 + $0xa8] sm:$0xff] }
0x1140   : > { %v5467_v44 = vpack.c.bf16 %v5463_v54, %v5461_v21  ;;  %v5532_v59 = vpop.permute.xlu1 %5531  ;;  %v5468_v61 = vpack.c.bf16 %v5464_v3, %v5462_v55 }
0x1142   : > { %v5538_v47 = vpop.permute.xlu0 %5537  ;;  %5797 = vmatprep.subr.bf16.mxu1 %v5468_v61 }
0x1143   : > { %5798 = vmatpush1.bf16.msra.mxu1 %v5467_v44  ;;  %v5549_v34 = vsel %vm757_vm5, %v5538_v47, %v5530_v35  ;;  %v5545_v54 = vsel %vm757_vm5, %v5530_v35, %v5538_v47 }
0x1144   : > { %v5540_v29 = vpop.permute.xlu1 %5539  ;;  %5799 = vmatprep.subr.bf16.mxu1 %v5514_v5  ;;  %v5562_v3 = vmul.f32 %v11768_v16, %v5549_v34  ;;  %v5561_v35 = vmul.f32 %v11788_v46, %v5545_v54 }
0x1145   : > { %v5550_v18 = vsel %vm757_vm5, %v5540_v29, %v5532_v59  ;;  %v5546_v1 = vsel %vm757_vm5, %v5532_v59, %v5540_v29 }
0x1146   : > { %v5534_v15 = vpop.permute.xlu0 %5533  ;;  %v5564_v21 = vmul.f32 %v11760_v22, %v5550_v18  ;;  %v5563_v28 = vmul.f32 %v11777_v43, %v5546_v1 }
0x1147   : > { %5800 = vmatpush1.bf16.msra.mxu1 %v5513_v14 }
0x1148   : > { %v5536_v38 = vpop.permute.xlu1 %5535  ;;  %5801 = vmatprep.subr.bf16.mxu1 %v5516_v60  ;;  %v5570_v44 = vpack.c.bf16 %v5564_v21, %v5562_v3  ;;  %v5569_v41 = vpack.c.bf16 %v5563_v28, %v5561_v35  ;;  %v13279_v28 = vpack.c.bf16 %v11975_v6, %v11969_v56 }
0x114a   : > { %v5542_v30 = vpop.permute.xlu0 %5541 }
0x114b   : > { %5802 = vmatpush1.bf16.msra.mxu1 %v5515_v12  ;;  %v5551_v17 = vsel %vm757_vm5, %v5542_v30, %v5534_v15  ;;  %v5547_v59 = vsel %vm757_vm5, %v5534_v15, %v5542_v30  ;;  %v12289_v12 = vld [vmem:[%s12948_s11 + $0xb0] sm:$0xff] }
0x114c   : > { %v5544_v32 = vpop.permute.xlu1 %5543  ;;  %5803 = vmatprep.subr.bf16.mxu1 %v5522_v48  ;;  %v5566_v61 = vmul.f32 %v12183_v31, %v5551_v17  ;;  %v5565_v42 = vmul.f32 %v12178_v51, %v5547_v59  ;;  %v13281_v59 = vpack.c.bf16 %v12019_v24, %v12013_v52  ;;  %v13282_v52 = vpack.c.bf16 %v12016_v63, %v12010_v4  ;;  %v12343_v24 = vld [vmem:[%s12948_s11 + $0xf8] sm:$0xff] }
0x114d   : > { %v5552_v9 = vsel %vm757_vm5, %v5544_v32, %v5536_v38  ;;  %v5548_v40 = vsel %vm757_vm5, %v5536_v38, %v5544_v32 }
0x114e   : > { %v5578_v55 = vpop.permute.xlu0 %5577  ;;  %v5568_v27 = vmul.f32 %v11657_v25, %v5552_v9  ;;  %v5567_v58 = vmul.f32 %v11652_v50, %v5548_v40 }
0x114f   : > { %5804 = vmatpush1.bf16.msra.mxu1 %v5521_v19 }
0x1150   : > { %v5580_v2 = vpop.permute.xlu1 %5579  ;;  %5805 = vmatprep.subr.bf16.mxu1 %v5524_v53  ;;  %v5572_v5 = vpack.c.bf16 %v5568_v27, %v5566_v61  ;;  %v5571_v29 = vpack.c.bf16 %v5567_v58, %v5565_v42 }
0x1152   : > { %v5586_v7 = vpop.permute.xlu0 %5585 }
0x1153   : > { %5806 = vmatpush1.bf16.msra.mxu1 %v5523_v57  ;;  %v5593_v39 = vsel %vm699_vm4, %v5578_v55, %v5586_v7  ;;  %v5597_v26 = vsel %vm699_vm4, %v5586_v7, %v5578_v55 }
0x1154   : > { %v5588_v10 = vpop.permute.xlu1 %5587  ;;  %5807 = vmatprep.subr.bf16.mxu1 %v5570_v44  ;;  %v5610_v50 = vmul.f32 %v12128_v45, %v5593_v39  ;;  %v5609_v60 = vmul.f32 %v12123_v49, %v5597_v26  ;;  %v12294_v49 = vld [vmem:[%s12948_s11 + $0xb8] sm:$0xff]  ;;  %v13280_v44 = vpack.c.bf16 %v11972_v62, %v11966_v13  ;;  %v7597_v26 = vld [vmem:[%s12942_s5 + $0xa8] ss:$12 sps:$4 sm:$0xff]  }
0x1155   : > { %v5594_v25 = vsel %vm699_vm4, %v5580_v2, %v5588_v10  ;;  %v5598_v23 = vsel %vm699_vm4, %v5588_v10, %v5580_v2 }
0x1156   : > { %v5612_v11 = vmul.f32 %v11721_v8, %v5594_v25  ;;  %v5582_v47 = vpop.permute.xlu0 %5581  ;;  %v5611_v14 = vmul.f32 %v11734_v37, %v5598_v23 }
0x1157   : > { %5808 = vmatpush1.bf16.msra.mxu1 %v5569_v41 }
0x1158   : > { %v5584_v20 = vpop.permute.xlu1 %5583  ;;  %5809 = vmatprep.subr.bf16.mxu1 %v5572_v5  ;;  %v5618_v15 = vpack.c.bf16 %v5612_v11, %v5610_v50  ;;  %v5617_v48 = vpack.c.bf16 %v5611_v14, %v5609_v60  ;;  %v13283_v50 = vmov 0  }
0x115a   : > { %v5590_v8 = vpop.permute.xlu0 %5589 }
0x115b   : > { %v5595_v38 = vsel %vm699_vm4, %v5582_v47, %v5590_v8  ;;  %v5599_v37 = vsel %vm699_vm4, %v5590_v8, %v5582_v47  ;;  %5810 = vmatpush1.bf16.msra.mxu1 %v5571_v29  ;;  %v7599_v29 = vld [vmem:[%s12942_s5 + $0xb0] ss:$12 sps:$4 sm:$0xff]  }
0x115c   : > { %v5592_v30 = vpop.permute.xlu1 %5591  ;;  %5811 = vmatprep.subr.bf16.mxu1 %v5618_v15  ;;  %v5613_v34 = vmul.f32 %v12274_v33, %v5599_v37  ;;  %v5614_v19 = vmul.f32 %v12280_v0, %v5595_v38 }
0x115d   : > { %v5596_v18 = vsel %vm699_vm4, %v5584_v20, %v5592_v30  ;;  %v5600_v32 = vsel %vm699_vm4, %v5592_v30, %v5584_v20  ;;  %v7598_v20 = vld [vmem:[%s12942_s5 + $0x98] ss:$12 sps:$4 sm:$0xff]  }
0x115e   : > { %v5615_v1 = vmul.f32 %v12289_v12, %v5600_v32  ;;  %v5616_v21 = vmul.f32 %v12294_v49, %v5596_v18  ;;  %v5634_v55 = vpop.permute.xlu0 %5633 }
0x115f   : > { %5812 = vmatpush1.bf16.msra.mxu1 %v5617_v48 }
0x1160   : > { %v5619_v53 = vpack.c.bf16 %v5615_v1, %v5613_v34  ;;  %v5636_v9 = vpop.permute.xlu1 %5635  ;;  %v5620_v54 = vpack.c.bf16 %v5616_v21, %v5614_v19  ;;  %v13284_v34 = vld [vmem:[#allocation14_spill] sm:$0xff]  ;;  %v13285_v1 = vld [vmem:[#allocation13_spill] sm:$0xff] }
0x1162   : > { %v5642_v3 = vpop.permute.xlu0 %5641  ;;  %5813 = vmatprep.subr.bf16.mxu1 %v5620_v54 }
0x1163   : > { %5814 = vmatpush1.bf16.msra.mxu1 %v5619_v53  ;;  %v5653_v17 = vsel %vm757_vm5, %v5642_v3, %v5634_v55  ;;  %v5649_v56 = vsel %vm757_vm5, %v5634_v55, %v5642_v3  ;;  %v13286_v55 = vld [vmem:[#allocation17_spill] sm:$0xff] }
0x1164   : > { %v5644_v2 = vpop.permute.xlu1 %5643  ;;  %5815 = vmatprep.subr.bf16.mxu1 %v13279_v28  ;;  %v5666_v6 = vmul.f32 %v11768_v16, %v5653_v17  ;;  %v5665_v13 = vmul.f32 %v11788_v46, %v5649_v56  ;;  %v7595_v46 = vld [vmem:[%s12942_s5 + $0xac] ss:$12 sps:$4 sm:$0xff]  }
0x1165   : > { %v5654_v57 = vsel %vm757_vm5, %v5644_v2, %v5636_v9  ;;  %v5650_v40 = vsel %vm757_vm5, %v5636_v9, %v5644_v2  ;;  %v13287_v9 = vld [vmem:[#allocation11_spill] sm:$0xff] }
0x1166   : > { %v5668_v27 = vmul.f32 %v11760_v22, %v5654_v57  ;;  %v5638_v7 = vpop.permute.xlu0 %5637  ;;  %v5667_v61 = vmul.f32 %v11777_v43, %v5650_v40  ;;  %v7592_v22 = vld [vmem:[%s12942_s5 + $0x90] ss:$12 sps:$4 sm:$0xff]  }
0x1167   : > { %5816 = vmatpush1.bf16.msra.mxu1 %v13280_v44  ;;  %v12338_v43 = vld [vmem:[%s12948_s11 + $0xf0] sm:$0xff] }
0x1168   : > { %v5640_v35 = vpop.permute.xlu1 %5639  ;;  %5817 = vmatprep.subr.bf16.mxu1 %v13281_v59  ;;  %v5674_v41 = vpack.c.bf16 %v5668_v27, %v5666_v6  ;;  %v5673_v39 = vpack.c.bf16 %v5667_v61, %v5665_v13  ;;  %v13288_v59 = vld [vmem:[#allocation10_spill] sm:$0xff] }
0x116a   : > { %v5646_v10 = vpop.permute.xlu0 %5645 }
0x116b   : > { %v5651_v62 = vsel %vm757_vm5, %v5638_v7, %v5646_v10  ;;  %v5655_v16 = vsel %vm757_vm5, %v5646_v10, %v5638_v7  ;;  %5818 = vmatpush1.bf16.msra.mxu1 %v13282_v52  ;;  %v13289_v10 = vld [vmem:[#allocation12_spill] sm:$0xff] }
0x116c   : > { %v5648_v58 = vpop.permute.xlu1 %5647  ;;  %5840 = vmatprep.subr.bf16.mxu1 %v5674_v41  ;;  %v5669_v25 = vmul.f32 %v12178_v51, %v5651_v62  ;;  %v5670_v23 = vmul.f32 %v12183_v31, %v5655_v16  ;;  %v13291_v62 = vld [vmem:[#allocation25_spill] sm:$0xff] }
0x116d   : > { %v5652_v4 = vsel %vm757_vm5, %v5640_v35, %v5648_v58  ;;  %v5656_v63 = vsel %vm757_vm5, %v5648_v58, %v5640_v35  ;;  %v7600_v58 = vld [vmem:[%s12944_s7 + $0x30] sm:$0xff]  }
0x116e   : > { %v5671_v11 = vmul.f32 %v12338_v43, %v5652_v4  ;;  %v5672_v47 = vmul.f32 %v12343_v24, %v5656_v63  ;;  %5820 = vmatmul.mubr.bf16.vlgmr.msra.gmra.mrb[32].mxu1 %v7592_v22  ;;  %v13290_v22 = vld [vmem:[#allocation24_spill] sm:$0xff] }
0x116f   : > { %5841 = vmatpush1.bf16.msra.mxu1 %v5673_v39  ;;  %5829 = vmatprep.mubr.bf16.mxu1 %v7595_v46  ;;  %v7601_v39 = vld [vmem:[%s12944_s7 + $0x38] sm:$0xff]  }
0x1170   : > { %v5675_v5 = vpack.c.bf16 %v5671_v11, %v5669_v25  ;;  %v5676_v42 = vpack.c.bf16 %v5672_v47, %v5670_v23 }
0x1172   : > { %5842 = vmatprep.subr.bf16.mxu1 %v5676_v42 }
0x1173   : > { %5843 = vmatpush1.bf16.msra.mxu1 %v5675_v5 }
0x1176   : > { %5830 = vmatmul.mubr.bf16.gmra.mrb[36].mxu1 %v7597_v26 }
0x1177   : > { %5872 = vmatprep.mubr.bf16.mxu1 %v13283_v50 }
0x117b   : > { %v5734_v14 = vpop.permute.xlu0 %5733 }
0x117d   : > { %v5739_v38 = vpop.permute.xlu1 %5738 }
0x117e   : > { %7263 = vmatmul.mubr.msk.bf16.vlgmr.msra.gmra.mrb[32].mxu1 %vm1097_vm6, %v7598_v20 }
0x117f   : > { %5882 = vmatprep.mubr.bf16.mxu1 %v13283_v50  ;;  %v5744_v2 = vpop.permute.xlu0 %5743 }
0x1181   : > { %v5749_v27 = vpop.permute.xlu1 %5748 }
0x1183   : > { %v565_v4 = vpop.permute.xlu0 %564 }
0x1185   : > { %v570_v11 = vpop.permute.xlu1 %569 }
0x1186   : > { %7264 = vmatmul.mubr.msk.bf16.gmra.mrb[36].mxu1 %vm1097_vm6, %v7599_v29 }
0x1187   : > { %5990 = vmatprep.mubr.bf16.mxu1 %v13283_v50 }
0x1251   : > { %v5874_v8 = vpop.f32.mrb[32].mxu1 }
0x1252   : > { %v7400_v15 = vadd.f32 %v5874_v8, %v5734_v14  ;;  %v5876_v60 = vpop.f32.mrb[33].mxu1 }
0x1253   : > { %v7401_v37 = vadd.f32 %v5876_v60, %v5734_v14  ;;  %v5878_v30 = vpop.f32.mrb[34].mxu1 }
0x1254   : > { %v7402_v48 = vadd.f32 %v5878_v30, %v5739_v38  ;;  %v5880_v18 = vpop.f32.mrb[35].mxu1  ;;  %v5901_v19 = vadd.f32 %v7400_v15, %v13284_v34  ;;  %v580_v15 = vpop.permute.xlu1 %579  ;;  %v6059_v34 = vld [vmem:[%s12948_s11] sm:$0xff] }
0x1255   : > { %v7403_v32 = vadd.f32 %v5880_v18, %v5739_v38  ;;  %v5902_v53 = vadd.f32 %v7401_v37, %v13286_v55 }
0x1256   : > { %v5903_v21 = vadd.f32 %v7402_v48, %v13285_v1  ;;  %v6060_v1 = vld [vmem:[%s12948_s11 + $0x8] sm:$0xff] }
0x1257   : > { %v5904_v54 = vadd.f32 %v7403_v32, %v13287_v9  ;;  %v6062_v9 = vld [vmem:[%s12948_s11 + $0x18] sm:$0xff] }
0x1258   : > { %v5938_v3 = vpack.c.bf16 %v5903_v21, %v5901_v19 }
0x1259   : > { %v5884_v28 = vpop.f32.mrb[36].mxu1  ;;  %v5939_v17 = vpack.c.bf16 %v5904_v54, %v5902_v53  ;;  %v6061_v53 = vld [vmem:[%s12948_s11 + $0x10] sm:$0xff] }
0x125a   : > { %v7404_v57 = vadd.f32 %v5884_v28, %v5744_v2  ;;  %v5886_v40 = vpop.f32.mrb[37].mxu1 }
0x125b   : > { %v7405_v7 = vadd.f32 %v5886_v40, %v5744_v2  ;;  %v5888_v44 = vpop.f32.mrb[38].mxu1  ;;  %5958 = vmatprep.subr.bf16.mxu1 %v5939_v17 }
0x125c   : > { %v7406_v56 = vadd.f32 %v5888_v44, %v5749_v27  ;;  %v5890_v6 = vpop.f32.mrb[39].mxu1  ;;  %5959 = vmatpush1.bf16.msra.mxu1 %v5938_v3  ;;  %v5905_v61 = vadd.f32 %v7404_v57, %v13288_v59  ;;  %v6064_v59 = vld [vmem:[%s12948_s11 + $0x28] sm:$0xff] }
0x125d   : > { %v7407_v35 = vadd.f32 %v5890_v6, %v5749_v27  ;;  %v5906_v13 = vadd.f32 %v7405_v7, %v13290_v22  ;;  %v6063_v6 = vld [vmem:[%s12948_s11 + $0x20] sm:$0xff]  ;;  %v6066_v22 = vld [vmem:[%s12948_s11 + $0x38] sm:$0xff] }
0x125e   : > { %v5907_v41 = vadd.f32 %v7406_v56, %v13289_v10 }
0x125f   : > { %v5908_v16 = vadd.f32 %v7407_v35, %v13291_v62 }
0x1260   : > { %v5940_v52 = vpack.c.bf16 %v5907_v41, %v5905_v61  ;;  %v6065_v41 = vld [vmem:[%s12948_s11 + $0x30] sm:$0xff] }
0x1261   : > { %v5941_v46 = vpack.c.bf16 %v5908_v16, %v5906_v13 }
0x1263   : > { %5960 = vmatprep.subr.bf16.mxu1 %v5941_v46 }
0x1264   : > { %5961 = vmatpush1.bf16.msra.mxu1 %v5940_v52 }
0x1267   : > { %7271 = vmatmul.mubr.msk.bf16.vlgmr.msra.gmra.mrb[8].mxu1 %vm1097_vm6, %v7600_v58 }
0x1268   : > { %6000 = vmatprep.mubr.bf16.mxu1 %v13283_v50 }
0x126f   : > { %7272 = vmatmul.mubr.msk.bf16.gmra.mrb[12].mxu1 %vm1097_vm6, %v7601_v39 }
0x1270   : > { %6572 = vmatprep.mubr.bf16.mxu1 %v13283_v50  ;;  %v575_v50 = vpop.permute.xlu0 %574 }
0x133a   : > { %v5992_v63 = vpop.f32.mrb[8].mxu1 }
0x133b   : > { %v12388_v25 = vadd.f32 %v5992_v63, %v565_v4  ;;  %v5994_v23 = vpop.f32.mrb[9].mxu1 }
0x133c   : > { %v5996_v47 = vpop.f32.mrb[10].mxu1  ;;  %v12394_v26 = vadd.f32 %v5994_v23, %v565_v4 }
0x133d   : > { %v12390_v5 = vadd.f32 %v5996_v47, %v570_v11  ;;  %6035 = vrot.lane.b32.xlu0 %v12388_v25, %s7616_s23  ;;  %v5998_v42 = vpop.f32.mrb[11].mxu1  ;;  %v7273_v47 = vld [vmem:[%s12948_s11 + $0x40] sm:$0xff] }
0x133e   : > { %v12398_v20 = vadd.f32 %v5998_v42, %v570_v11 }
0x133f   : > { %6037 = vrot.lane.b32.xlu1 %v12390_v5, %s7616_s23 }
0x1341   : > { %6043 = vrot.lane.b32.xlu0 %v12394_v26, %s7616_s23 }
0x1342   : > { %v6002_v29 = vpop.f32.mrb[12].mxu1 }
0x1343   : > { %v12402_v14 = vadd.f32 %v6002_v29, %v575_v50  ;;  %6045 = vrot.lane.b32.xlu1 %v12398_v20, %s7616_s23  ;;  %v6004_v8 = vpop.f32.mrb[13].mxu1 }
0x1344   : > { %v6006_v60 = vpop.f32.mrb[14].mxu1  ;;  %v12410_v30 = vadd.f32 %v6004_v8, %v575_v50  ;;  %v7274_v50 = vld [vmem:[%s12948_s11 + $0x48] sm:$0xff] }
0x1345   : > { %v12406_v38 = vadd.f32 %v6006_v60, %v580_v15  ;;  %6039 = vrot.lane.b32.xlu0 %v12402_v14, %s7616_s23  ;;  %v6008_v37 = vpop.f32.mrb[15].mxu1  ;;  %v7276_v60 = vld [vmem:[%s12948_s11 + $0x58] sm:$0xff] }
0x1346   : > { %v12414_v48 = vadd.f32 %v6008_v37, %v580_v15  ;;  %v7275_v15 = vld [vmem:[%s12948_s11 + $0x50] sm:$0xff] }
0x1347   : > { %6041 = vrot.lane.b32.xlu1 %v12406_v38, %s7616_s23 }
0x1349   : > { %6047 = vrot.lane.b32.xlu0 %v12410_v30, %s7616_s23 }
0x134b   : > { %6049 = vrot.lane.b32.xlu1 %v12414_v48, %s7616_s23 }
0x134d   : > { %6075 = vrot.lane.b32.xlu0 %v12388_v25, %s7617_s24 }
0x134f   : > { %6077 = vrot.lane.b32.xlu1 %v12390_v5, %s7617_s24 }
0x1351   : > { %6083 = vrot.lane.b32.xlu0 %v12394_v26, %s7617_s24 }
0x1353   : > { %6085 = vrot.lane.b32.xlu1 %v12398_v20, %s7617_s24 }
0x1355   : > { %6079 = vrot.lane.b32.xlu0 %v12402_v14, %s7617_s24 }
0x1357   : > { %6081 = vrot.lane.b32.xlu1 %v12406_v38, %s7617_s24 }
0x1359   : > { %6087 = vrot.lane.b32.xlu0 %v12410_v30, %s7617_s24 }
0x135b   : > { %6221 = vrot.lane.b32.xlu1 %v12390_v5, %s7618_s25 }
0x135d   : > { %6219 = vrot.lane.b32.xlu0 %v12388_v25, %s7618_s25 }
0x135f   : > { %6229 = vrot.lane.b32.xlu1 %v12398_v20, %s7618_s25 }
0x1361   : > { %6227 = vrot.lane.b32.xlu0 %v12394_v26, %s7618_s25 }
0x1363   : > { %6225 = vrot.lane.b32.xlu1 %v12406_v38, %s7618_s25 }
0x1365   : > { %6223 = vrot.lane.b32.xlu0 %v12402_v14, %s7618_s25 }
0x1367   : > { %6089 = vrot.lane.b32.xlu1 %v12414_v48, %s7617_s24  ;;  %s413_s24 = scalar_lea.vmem %s12949_s12, %s7335_s28 }
0x13af   : > { %v6036_v18 = vpop.permute.xlu0 %6035 }
0x13b1   : > { %v6038_v32 = vpop.permute.xlu1 %6037 }
0x13b3   : > { %v6044_v19 = vpop.permute.xlu0 %6043 }
0x13b4   : > { %v6051_v21 = vsel %vm616_vm2, %v6036_v18, %v6044_v19  ;;  %v6055_v55 = vsel %vm616_vm2, %v6044_v19, %v6036_v18 }
0x13b5   : > { %v12464_v54 = vmul.f32 %v6059_v34, %v6055_v55  ;;  %v6046_v3 = vpop.permute.xlu1 %6045  ;;  %v12470_v17 = vmul.f32 %v6060_v1, %v6051_v21 }
0x13b6   : > { %v6052_v2 = vsel %vm616_vm2, %v6038_v32, %v6046_v3  ;;  %v6056_v28 = vsel %vm616_vm2, %v6046_v3, %v6038_v32 }
0x13b7   : > { %v12472_v57 = vmul.f32 %v6061_v53, %v6056_v28  ;;  %v12474_v40 = vmul.f32 %v6062_v9, %v6052_v2  ;;  %v6040_v27 = vpop.permute.xlu0 %6039  ;;  %6115 = vrot.lane.b32.xlu0 %v12464_v54, %s7618_s25 }
0x13b9   : > { %v6042_v44 = vpop.permute.xlu1 %6041  ;;  %6117 = vrot.lane.b32.xlu1 %v12472_v57, %s7618_s25 }
0x13bb   : > { %6123 = vrot.lane.b32.xlu0 %v12470_v17, %s7618_s25  ;;  %v6048_v35 = vpop.permute.xlu0 %6047 }
0x13bc   : > { %v6053_v61 = vsel %vm616_vm2, %v6040_v27, %v6048_v35  ;;  %v6057_v10 = vsel %vm616_vm2, %v6048_v35, %v6040_v27 }
0x13bd   : > { %6125 = vrot.lane.b32.xlu1 %v12474_v40, %s7618_s25  ;;  %v6050_v13 = vpop.permute.xlu1 %6049  ;;  %v12508_v52 = vmul.f32 %v6063_v6, %v6057_v10  ;;  %v12510_v46 = vmul.f32 %v6064_v59, %v6053_v61  ;;  %v7277_v59 = vld [vmem:[%s12948_s11 + $0x60] sm:$0xff]  ;;  %v7278_v61 = vld [vmem:[%s12948_s11 + $0x68] sm:$0xff] }
0x13be   : > { %v6054_v62 = vsel %vm616_vm2, %v6042_v44, %v6050_v13  ;;  %v6058_v16 = vsel %vm616_vm2, %v6050_v13, %v6042_v44  ;;  %v7280_v13 = vld [vmem:[%s12948_s11 + $0x78] sm:$0xff] }
0x13bf   : > { %v12512_v58 = vmul.f32 %v6065_v41, %v6058_v16  ;;  %v12514_v39 = vmul.f32 %v6066_v22, %v6054_v62  ;;  %6171 = vrot.lane.b32.xlu0 %v12464_v54, %s7619_s29  ;;  %v6076_v4 = vpop.permute.xlu0 %6075  ;;  %v7279_v22 = vld [vmem:[%s12948_s11 + $0x70] sm:$0xff] }
0x13c1   : > { %6173 = vrot.lane.b32.xlu1 %v12472_v57, %s7619_s29  ;;  %v6078_v23 = vpop.permute.xlu1 %6077 }
0x13c3   : > { %6179 = vrot.lane.b32.xlu0 %v12470_v17, %s7619_s29  ;;  %v6084_v42 = vpop.permute.xlu0 %6083 }
0x13c4   : > { %v6091_v29 = vsel %vm657_vm3, %v6076_v4, %v6084_v42  ;;  %v6095_v8 = vsel %vm657_vm3, %v6084_v42, %v6076_v4 }
0x13c5   : > { %6181 = vrot.lane.b32.xlu1 %v12474_v40, %s7619_s29  ;;  %v6086_v37 = vpop.permute.xlu1 %6085  ;;  %v12548_v34 = vmul.f32 %v7273_v47, %v6091_v29  ;;  %v12550_v19 = vmul.f32 %v7274_v50, %v6095_v8 }
0x13c6   : > { %v6092_v18 = vsel %vm657_vm3, %v6078_v23, %v6086_v37  ;;  %v6096_v32 = vsel %vm657_vm3, %v6086_v37, %v6078_v23  ;;  %v6432_v37 = vld [vmem:[%s12947_s10 + $0x8] sm:$0xf] }
0x13c7   : > { %v12552_v1 = vmul.f32 %v7275_v15, %v6092_v18  ;;  %v12554_v21 = vmul.f32 %v7276_v60, %v6096_v32  ;;  %6119 = vrot.lane.b32.xlu0 %v12508_v52, %s7618_s25  ;;  %v6080_v2 = vpop.permute.xlu0 %6079  ;;  %v7604_v15 = vld [vmem:[%s12946_s9 + $0x4] ss:$12 sps:$4 sm:$0x3f]  }
0x13c8   : > { %6529 = vmatprep.mubr.bf16.mxu0 %v7604_v15  ;;  %v6431_v60 = vld [vmem:[%s12947_s10] sm:$0xff] }
0x13c9   : > { %6121 = vrot.lane.b32.xlu1 %v12512_v58, %s7618_s25  ;;  %v6082_v53 = vpop.permute.xlu1 %6081 }
0x13cb   : > { %6127 = vrot.lane.b32.xlu0 %v12510_v46, %s7618_s25  ;;  %v6088_v6 = vpop.permute.xlu0 %6087 }
0x13cc   : > { %v6093_v10 = vsel %vm657_vm3, %v6080_v2, %v6088_v6  ;;  %v6097_v41 = vsel %vm657_vm3, %v6088_v6, %v6080_v2  ;;  %v12688_v6 = vld [vmem:[%s12948_s11 + $0x80] sm:$0xff] }
0x13cd   : > { %6129 = vrot.lane.b32.xlu1 %v12514_v39, %s7618_s25  ;;  %v6222_v3 = vpop.permute.xlu1 %6221  ;;  %v12610_v23 = vmul.f32 %v7277_v59, %v6093_v10  ;;  %v12612_v47 = vmul.f32 %v7278_v61, %v6097_v41  ;;  %v12693_v59 = vld [vmem:[%s12948_s11 + $0x88] sm:$0xff] }
0x13cf   : > { %6231 = vrot.lane.b32.xlu0 %v12410_v30, %s7618_s25  ;;  %v12679_v18 = vpop.permute.xlu0 %6219 }
0x13d1   : > { %6233 = vrot.lane.b32.xlu1 %v12414_v48, %s7618_s25  ;;  %v6230_v28 = vpop.permute.xlu1 %6229 }
0x13d2   : > { %v12574_v27 = vsel %vm699_vm4, %v6222_v3, %v6230_v28  ;;  %v12578_v44 = vsel %vm699_vm4, %v6230_v28, %v6222_v3 }
0x13d3   : > { %6175 = vrot.lane.b32.xlu0 %v12508_v52, %s7619_s29  ;;  %v12681_v32 = vpop.permute.xlu0 %6227 }
0x13d5   : > { %6277 = vrot.lane.b32.xlu1 %v12390_v5, %s7619_s29  ;;  %v12584_v35 = vpop.permute.xlu1 %6225 }
0x13d7   : > { %6183 = vrot.lane.b32.xlu0 %v12510_v46, %s7619_s29 }
0x13d9   : > { %6177 = vrot.lane.b32.xlu1 %v12512_v58, %s7619_s29  ;;  %v6090_v62 = vpop.permute.xlu1 %6089 }
0x13da   : > { %v6094_v16 = vsel %vm657_vm3, %v6082_v53, %v6090_v62  ;;  %v6098_v4 = vsel %vm657_vm3, %v6090_v62, %v6082_v53  ;;  %v12683_v53 = vpop.permute.xlu0 %6223 }
0x13db   : > { %v12614_v42 = vmul.f32 %v7279_v22, %v6094_v16  ;;  %v12616_v50 = vmul.f32 %v7280_v13, %v6098_v4  ;;  %6275 = vrot.lane.b32.xlu0 %v12388_v25, %s7619_s29  ;;  %v12702_v22 = vld [vmem:[%s12948_s11 + $0x90] sm:$0xff]  ;;  %v12707_v13 = vld [vmem:[%s12948_s11 + $0x98] sm:$0xff] }
0x13dd   : > { %6185 = vrot.lane.b32.xlu1 %v12514_v39, %s7619_s29 }
0x13df   : > { %6283 = vrot.lane.b32.xlu0 %v12394_v26, %s7619_s29 }
0x13e1   : > { %6285 = vrot.lane.b32.xlu1 %v12398_v20, %s7619_s29 }
0x13e3   : > { %6279 = vrot.lane.b32.xlu0 %v12402_v14, %s7619_s29 }
0x13e5   : > { %6281 = vrot.lane.b32.xlu1 %v12406_v38, %s7619_s29 }
0x13e7   : > { %6287 = vrot.lane.b32.xlu0 %v12410_v30, %s7619_s29 }
0x13e9   : > { %6289 = vrot.lane.b32.xlu1 %v12414_v48, %s7619_s29 }
0x13eb   : > { %6323 = vrot.lane.b32.xlu0 %v12548_v34, %s7618_s25 }
0x13ed   : > { %6325 = vrot.lane.b32.xlu1 %v12552_v1, %s7618_s25 }
0x13ef   : > { %6331 = vrot.lane.b32.xlu0 %v12550_v19, %s7618_s25 }
0x13f1   : > { %6333 = vrot.lane.b32.xlu1 %v12554_v21, %s7618_s25 }
0x13f3   : > { %6327 = vrot.lane.b32.xlu0 %v12610_v23, %s7618_s25 }
0x13f5   : > { %6381 = vrot.lane.b32.xlu1 %v12552_v1, %s7619_s29 }
0x13f7   : > { %6335 = vrot.lane.b32.xlu0 %v12612_v47, %s7618_s25 }
0x13f9   : > { %6329 = vrot.lane.b32.xlu1 %v12614_v42, %s7618_s25 }
0x13fb   : > { %6379 = vrot.lane.b32.xlu0 %v12548_v34, %s7619_s29 }
0x13fd   : > { %6337 = vrot.lane.b32.xlu1 %v12616_v50, %s7618_s25 }
0x13ff   : > { %6387 = vrot.lane.b32.xlu0 %v12550_v19, %s7619_s29 }
0x1401   : > { %6389 = vrot.lane.b32.xlu1 %v12554_v21, %s7619_s29 }
0x1403   : > { %6383 = vrot.lane.b32.xlu0 %v12610_v23, %s7619_s29 }
0x1405   : > { %6385 = vrot.lane.b32.xlu1 %v12614_v42, %s7619_s29 }
0x1407   : > { %6391 = vrot.lane.b32.xlu0 %v12612_v47, %s7619_s29 }
0x1409   : > { %6393 = vrot.lane.b32.xlu1 %v12616_v50, %s7619_s29 }
0x140b   : > { %6471 = vperm.xlu0 %7518, %v6431_v60  }
0x140d   : > { %6476 = vperm.xlu1 %7519, %v6432_v37  }
0x1429   : > { %v6116_v3 = vpop.permute.xlu0 %6115 }
0x142b   : > { %v6118_v2 = vpop.permute.xlu1 %6117 }
0x142d   : > { %v6124_v28 = vpop.permute.xlu0 %6123 }
0x142e   : > { %v6131_v61 = vsel %vm699_vm4, %v6116_v3, %v6124_v28  ;;  %v6135_v10 = vsel %vm699_vm4, %v6124_v28, %v6116_v3 }
0x142f   : > { %v6126_v41 = vpop.permute.xlu1 %6125  ;;  %v6147_v4 = vmul.f32 %v12688_v6, %v6135_v10  ;;  %v6148_v15 = vmul.f32 %v12693_v59, %v6131_v61 }
0x1430   : > { %v6132_v62 = vsel %vm699_vm4, %v6118_v2, %v6126_v41  ;;  %v6136_v16 = vsel %vm699_vm4, %v6126_v41, %v6118_v2 }
0x1431   : > { %v6149_v60 = vmul.f32 %v12702_v22, %v6136_v16  ;;  %v6150_v37 = vmul.f32 %v12707_v13, %v6132_v62  ;;  %v6172_v3 = vpop.permute.xlu0 %6171 }
0x1433   : > { %v6155_v28 = vpack.c.bf16 %v6149_v60, %v6147_v4  ;;  %v6174_v29 = vpop.permute.xlu1 %6173  ;;  %v6156_v8 = vpack.c.bf16 %v6150_v37, %v6148_v15 }
0x1435   : > { %v6180_v55 = vpop.permute.xlu0 %6179  ;;  %6497 = vmatprep.subr.bf16.mxu0 %v6156_v8 }
0x1436   : > { %6498 = vmatpush1.bf16.msra.mxu0 %v6155_v28 }
0x1437   : > { %v6182_v9 = vpop.permute.xlu1 %6181 }
0x1439   : > { %v6120_v63 = vpop.permute.xlu0 %6119 }
0x143b   : > { %v6122_v11 = vpop.permute.xlu1 %6121 }
0x143d   : > { %v6128_v7 = vpop.permute.xlu0 %6127 }
0x143e   : > { %v6133_v2 = vsel %vm699_vm4, %v6120_v63, %v6128_v7  ;;  %v6137_v61 = vsel %vm699_vm4, %v6128_v7, %v6120_v63  ;;  %v12732_v63 = vld [vmem:[%s12948_s11 + $0xd8] sm:$0xff] }
0x143f   : > { %v6130_v10 = vpop.permute.xlu1 %6129  ;;  %v6151_v8 = vmul.f32 %v12274_v33, %v6137_v61  ;;  %v6152_v16 = vmul.f32 %v12280_v0, %v6133_v2  ;;  %v13292_v2 = vpack.c.bf16 %v12474_v40, %v12470_v17 }
0x1440   : > { %v6134_v41 = vsel %vm699_vm4, %v6122_v11, %v6130_v10  ;;  %v6138_v62 = vsel %vm699_vm4, %v6130_v10, %v6122_v11  ;;  %v6192_v11 = vsel %vm757_vm5, %v6182_v9, %v6174_v29  ;;  %v12744_v10 = vld [vmem:[%s12948_s11 + $0xc8] sm:$0xff] }
0x1441   : > { %v6153_v4 = vmul.f32 %v12289_v12, %v6138_v62  ;;  %v6154_v15 = vmul.f32 %v12294_v49, %v6134_v41  ;;  %v6232_v60 = vpop.permute.xlu0 %6231  ;;  %v12751_v41 = vld [vmem:[%s12948_s11 + $0xd0] sm:$0xff]  ;;  %v6188_v62 = vsel %vm757_vm5, %v6174_v29, %v6182_v9  ;;  %v6206_v17 = vmul.f32 %v12732_v63, %v6192_v11 }
0x1442   : > { %v13294_v9 = vpack.c.bf16 %v12514_v39, %v12510_v46  ;;  %v13295_v46 = vpack.c.bf16 %v12512_v58, %v12508_v52  ;;  %v6239_v39 = vsel %vm699_vm4, %v12681_v32, %v12679_v18 }
0x1443   : > { %v6157_v37 = vpack.c.bf16 %v6153_v4, %v6151_v8  ;;  %v6234_v28 = vpop.permute.xlu1 %6233  ;;  %v6158_v56 = vpack.c.bf16 %v6154_v15, %v6152_v16  ;;  %v13293_v8 = vpack.c.bf16 %v12472_v57, %v12464_v54  ;;  %v12762_v16 = vld [vmem:[%s12948_s11 + $0xc0] sm:$0xff]  ;;  %v6187_v4 = vsel %vm757_vm5, %v6172_v3, %v6180_v55 }
0x1444   : > { %v6235_v54 = vsel %vm699_vm4, %v12679_v18, %v12681_v32  ;;  %v6254_v32 = vmul.f32 %v12707_v13, %v12574_v27 }
0x1445   : > { %v6176_v7 = vpop.permute.xlu0 %6175  ;;  %6499 = vmatprep.subr.bf16.mxu0 %v6158_v56  ;;  %v6191_v56 = vsel %vm757_vm5, %v6180_v55, %v6172_v3 }
0x1446   : > { %6500 = vmatpush1.bf16.msra.mxu0 %v6157_v37  ;;  %v6204_v15 = vmul.f32 %v12744_v10, %v6191_v56  ;;  %v6205_v37 = vmul.f32 %v12751_v41, %v6188_v62  ;;  %v6252_v62 = vmul.f32 %v12128_v45, %v6235_v54  ;;  %v6238_v45 = vsel %vm699_vm4, %v12584_v35, %v6234_v28 }
0x1447   : > { %6501 = vmatprep.subr.bf16.mxu0 %v13292_v2  ;;  %v12739_v61 = vpop.permute.xlu1 %6277  ;;  %v6203_v2 = vmul.f32 %v12762_v16, %v6187_v4  ;;  %v6242_v54 = vsel %vm699_vm4, %v6234_v28, %v12584_v35 }
0x1448   : > { %v6212_v11 = vpack.c.bf16 %v6206_v17, %v6204_v15  ;;  %v6260_v27 = vpack.c.bf16 %v6254_v32, %v6252_v62  ;;  %v6257_v35 = vmul.f32 %v12289_v12, %v6242_v54  ;;  %v12858_v54 = vld [vmem:[%s12948_s11 + $0xe0] sm:$0xff] }
0x1449   : > { %v6184_v40 = vpop.permute.xlu0 %6183  ;;  %v6211_v17 = vpack.c.bf16 %v6205_v37, %v6203_v2  ;;  %v6237_v37 = vsel %vm699_vm4, %v12683_v53, %v6232_v60 }
0x144a   : > { %6502 = vmatpush1.bf16.msra.mxu0 %v13293_v8  ;;  %v6189_v55 = vsel %vm757_vm5, %v6176_v7, %v6184_v40  ;;  %v6193_v3 = vsel %vm757_vm5, %v6184_v40, %v6176_v7 }
0x144b   : > { %6503 = vmatprep.subr.bf16.mxu0 %v13294_v9  ;;  %v6178_v29 = vpop.permute.xlu1 %6177  ;;  %v6207_v40 = vmul.f32 %v12178_v51, %v6189_v55  ;;  %v6208_v52 = vmul.f32 %v12183_v31, %v6193_v3  ;;  %v7606_v51 = vld [vmem:[%s12948_s11 + $0x80] sm:$0xff]  ;;  %v6253_v55 = vmul.f32 %v12702_v22, %v12578_v44  ;;  %v6241_v3 = vsel %vm699_vm4, %v6232_v60, %v12683_v53 }
0x144c   : > { %v6251_v31 = vmul.f32 %v7606_v51, %v6239_v39 }
0x144d   : > { %v6276_v57 = vpop.permute.xlu0 %6275 }
0x144e   : > { %6504 = vmatpush1.bf16.msra.mxu0 %v13295_v46  ;;  %v6256_v46 = vmul.f32 %v12280_v0, %v6237_v37 }
0x144f   : > { %6505 = vmatprep.subr.bf16.mxu0 %v6212_v11  ;;  %v6186_v56 = vpop.permute.xlu1 %6185  ;;  %v6258_v11 = vmul.f32 %v12294_v49, %v6238_v45 }
0x1450   : > { %v6190_v8 = vsel %vm757_vm5, %v6178_v29, %v6186_v56  ;;  %v6194_v7 = vsel %vm757_vm5, %v6186_v56, %v6178_v29  ;;  %v6259_v56 = vpack.c.bf16 %v6253_v55, %v6251_v31 }
0x1451   : > { %v6209_v58 = vmul.f32 %v12338_v43, %v6190_v8  ;;  %v6210_v4 = vmul.f32 %v12343_v24, %v6194_v7  ;;  %v6284_v18 = vpop.permute.xlu0 %6283  ;;  %v6255_v8 = vmul.f32 %v12274_v33, %v6241_v3 }
0x1452   : > { %6506 = vmatpush1.bf16.msra.mxu0 %v6211_v17  ;;  %v6262_v17 = vpack.c.bf16 %v6258_v11, %v6256_v46 }
0x1453   : > { %v6213_v15 = vpack.c.bf16 %v6209_v58, %v6207_v40  ;;  %v6286_v9 = vpop.permute.xlu1 %6285  ;;  %v6214_v29 = vpack.c.bf16 %v6210_v4, %v6208_v52  ;;  %v6261_v44 = vpack.c.bf16 %v6257_v35, %v6255_v8  ;;  %v6268_v40 = vpack.c.bf16 %v12398_v20, %v12394_v26 }
0x1454   : > { %v6296_v53 = vsel %vm757_vm5, %v6286_v9, %v12739_v61  ;;  %v6295_v52 = vsel %vm757_vm5, %v6284_v18, %v6276_v57  ;;  %v6267_v58 = vpack.c.bf16 %v12390_v5, %v12388_v25  ;;  %v6292_v4 = vsel %vm757_vm5, %v12739_v61, %v6286_v9  ;;  %v12843_v61 = vld [vmem:[%s12948_s11 + $0xe8] sm:$0xff] }
0x1455   : > { %v6280_v2 = vpop.permute.xlu0 %6279  ;;  %6507 = vmatprep.subr.bf16.mxu0 %v6214_v29  ;;  %v6310_v45 = vmul.f32 %v12732_v63, %v6296_v53  ;;  %v6270_v20 = vpack.c.bf16 %v12414_v48, %v12410_v30  ;;  %v6308_v29 = vmul.f32 %v12744_v10, %v6295_v52  ;;  %v6309_v5 = vmul.f32 %v12751_v41, %v6292_v4 }
0x1456   : > { %6508 = vmatpush1.bf16.msra.mxu0 %v6213_v15  ;;  %v6291_v15 = vsel %vm757_vm5, %v6276_v57, %v6284_v18  ;;  %v6269_v48 = vpack.c.bf16 %v12406_v38, %v12402_v14 }
0x1457   : > { %6509 = vmatprep.subr.bf16.mxu0 %v6260_v27  ;;  %v6282_v39 = vpop.permute.xlu1 %6281  ;;  %v6316_v51 = vpack.c.bf16 %v6310_v45, %v6308_v29  ;;  %v6307_v31 = vmul.f32 %v12762_v16, %v6291_v15 }
0x1459   : > { %v6288_v28 = vpop.permute.xlu0 %6287  ;;  %v6315_v27 = vpack.c.bf16 %v6309_v5, %v6307_v31 }
0x145a   : > { %6510 = vmatpush1.bf16.msra.mxu0 %v6259_v56  ;;  %v6297_v30 = vsel %vm757_vm5, %v6288_v28, %v6280_v2  ;;  %v6293_v14 = vsel %vm757_vm5, %v6280_v2, %v6288_v28 }
0x145b   : > { %6511 = vmatprep.subr.bf16.mxu0 %v6262_v17  ;;  %v6290_v62 = vpop.permute.xlu1 %6289  ;;  %v6312_v38 = vmul.f32 %v12843_v61, %v6297_v30  ;;  %v6311_v17 = vmul.f32 %v12858_v54, %v6293_v14  ;;  %v13298_v14 = vpack.c.bf16 %v12616_v50, %v12612_v47  ;;  %v7602_v47 = vld [vmem:[%s12946_s9] ss:$12 sps:$4 sm:$0x3f]   ;;  %v13299_v50 = vpack.c.bf16 %v12614_v42, %v12610_v23 }
0x145c   : > { %v6298_v32 = vsel %vm757_vm5, %v6290_v62, %v6282_v39  ;;  %v6294_v57 = vsel %vm757_vm5, %v6282_v39, %v6290_v62 }
0x145d   : > { %v6324_v7 = vpop.permute.xlu0 %6323  ;;  %v6314_v18 = vmul.f32 %v12343_v24, %v6298_v32  ;;  %v6313_v55 = vmul.f32 %v12338_v43, %v6294_v57 }
0x145e   : > { %6512 = vmatpush1.bf16.msra.mxu0 %v6261_v44 }
0x145f   : > { %6513 = vmatprep.subr.bf16.mxu0 %v6268_v40  ;;  %v6326_v60 = vpop.permute.xlu1 %6325  ;;  %v6318_v35 = vpack.c.bf16 %v6314_v18, %v6312_v38  ;;  %v6317_v62 = vpack.c.bf16 %v6313_v55, %v6311_v17 }
0x1461   : > { %v6332_v26 = vpop.permute.xlu0 %6331 }
0x1462   : > { %6514 = vmatpush1.bf16.msra.mxu0 %v6267_v58  ;;  %v6339_v3 = vsel %vm699_vm4, %v6324_v7, %v6332_v26  ;;  %v6343_v2 = vsel %vm699_vm4, %v6332_v26, %v6324_v7 }
0x1463   : > { %v6334_v25 = vpop.permute.xlu1 %6333  ;;  %6515 = vmatprep.subr.bf16.mxu0 %v6270_v20  ;;  %v6356_v28 = vmul.f32 %v12693_v59, %v6339_v3 }
0x1464   : > { %v6340_v37 = vsel %vm699_vm4, %v6326_v60, %v6334_v25  ;;  %v6344_v46 = vsel %vm699_vm4, %v6334_v25, %v6326_v60  ;;  %v6355_v60 = vmul.f32 %v12688_v6, %v6343_v2 }
0x1465   : > { %v6328_v9 = vpop.permute.xlu0 %6327  ;;  %v6358_v39 = vmul.f32 %v12707_v13, %v6340_v37  ;;  %v6357_v44 = vmul.f32 %v12702_v22, %v6344_v46 }
0x1466   : > { %6516 = vmatpush1.bf16.msra.mxu0 %v6269_v48 }
0x1467   : > { %v6382_v11 = vpop.permute.xlu1 %6381  ;;  %6517 = vmatprep.subr.bf16.mxu0 %v6316_v51  ;;  %v6364_v53 = vpack.c.bf16 %v6358_v39, %v6356_v28  ;;  %v6363_v7 = vpack.c.bf16 %v6357_v44, %v6355_v60  ;;  %v13296_v51 = vpack.c.bf16 %v12554_v21, %v12550_v19 }
0x1469   : > { %v6336_v56 = vpop.permute.xlu0 %6335 }
0x146a   : > { %6518 = vmatpush1.bf16.msra.mxu0 %v6315_v27  ;;  %v6341_v13 = vsel %vm699_vm4, %v6328_v9, %v6336_v56  ;;  %v6345_v52 = vsel %vm699_vm4, %v6336_v56, %v6328_v9 }
0x146b   : > { %v6330_v8 = vpop.permute.xlu1 %6329  ;;  %6519 = vmatprep.subr.bf16.mxu0 %v6318_v35  ;;  %v6359_v4 = vmul.f32 %v12274_v33, %v6345_v52  ;;  %v6360_v6 = vmul.f32 %v12280_v0, %v6341_v13 }
0x146d   : > { %v6380_v40 = vpop.permute.xlu0 %6379 }
0x146e   : > { %6520 = vmatpush1.bf16.msra.mxu0 %v6317_v62 }
0x146f   : > { %v6338_v58 = vpop.permute.xlu1 %6337  ;;  %6521 = vmatprep.subr.bf16.mxu0 %v6364_v53 }
0x1470   : > { %v6342_v59 = vsel %vm699_vm4, %v6330_v8, %v6338_v58  ;;  %v6346_v22 = vsel %vm699_vm4, %v6338_v58, %v6330_v8 }
0x1471   : > { %v6361_v45 = vmul.f32 %v12289_v12, %v6346_v22  ;;  %v6362_v26 = vmul.f32 %v12294_v49, %v6342_v59  ;;  %v6388_v20 = vpop.permute.xlu0 %6387 }
0x1472   : > { %v6395_v32 = vsel %vm757_vm5, %v6380_v40, %v6388_v20  ;;  %v6399_v15 = vsel %vm757_vm5, %v6388_v20, %v6380_v40  ;;  %6522 = vmatpush1.bf16.msra.mxu0 %v6363_v7 }
0x1473   : > { %v6365_v29 = vpack.c.bf16 %v6361_v45, %v6359_v4  ;;  %v6390_v25 = vpop.permute.xlu1 %6389  ;;  %v6366_v5 = vpack.c.bf16 %v6362_v26, %v6360_v6  ;;  %v6411_v12 = vmul.f32 %v12762_v16, %v6395_v32  ;;  %v6412_v49 = vmul.f32 %v12744_v10, %v6399_v15 }
0x1474   : > { %v6396_v33 = vsel %vm757_vm5, %v6382_v11, %v6390_v25  ;;  %v6400_v0 = vsel %vm757_vm5, %v6390_v25, %v6382_v11 }
0x1475   : > { %v6413_v30 = vmul.f32 %v12751_v41, %v6396_v33  ;;  %v6414_v48 = vmul.f32 %v12732_v63, %v6400_v0  ;;  %v6384_v57 = vpop.permute.xlu0 %6383  ;;  %6523 = vmatprep.subr.bf16.mxu0 %v6366_v5  ;;  %v13297_v63 = vpack.c.bf16 %v12552_v1, %v12548_v34 }
0x1476   : > { %6524 = vmatpush1.bf16.msra.mxu0 %v6365_v29 }
0x1477   : > { %v6419_v18 = vpack.c.bf16 %v6413_v30, %v6411_v12  ;;  %v6386_v9 = vpop.permute.xlu1 %6385  ;;  %6525 = vmatprep.subr.bf16.mxu0 %v13296_v51  ;;  %v6420_v31 = vpack.c.bf16 %v6414_v48, %v6412_v49 }
0x1479   : > { %v6392_v37 = vpop.permute.xlu0 %6391  ;;  %6540 = vmatprep.subr.bf16.mxu1 %v6420_v31 }
0x147a   : > { %v6397_v16 = vsel %vm757_vm5, %v6384_v57, %v6392_v37  ;;  %v6401_v10 = vsel %vm757_vm5, %v6392_v37, %v6384_v57  ;;  %6526 = vmatpush1.bf16.msra.mxu0 %v13297_v63  ;;  %6541 = vmatpush1.bf16.msra.mxu1 %v6419_v18 }
0x147b   : > { %v6394_v41 = vpop.permute.xlu1 %6393  ;;  %6527 = vmatprep.subr.bf16.mxu0 %v13298_v14  ;;  %v6415_v38 = vmul.f32 %v12858_v54, %v6397_v16  ;;  %v6416_v11 = vmul.f32 %v12843_v61, %v6401_v10  ;;  %v7605_v61 = vld [vmem:[%s12946_s9 + $0x8] ss:$12 sps:$4 sm:$0x3f]  }
0x147c   : > { %v6398_v19 = vsel %vm757_vm5, %v6386_v9, %v6394_v41  ;;  %v6402_v21 = vsel %vm757_vm5, %v6394_v41, %v6386_v9 }
0x147d   : > { %v6417_v34 = vmul.f32 %v12338_v43, %v6398_v19  ;;  %v6418_v1 = vmul.f32 %v12343_v24, %v6402_v21 }
0x147e   : > { %6528 = vmatpush1.bf16.msra.mxu0 %v13299_v50 }
0x147f   : > { %v6421_v27 = vpack.c.bf16 %v6417_v34, %v6415_v38  ;;  %v6422_v36 = vpack.c.bf16 %v6418_v1, %v6416_v11 }
0x1481   : > { %6530 = vmatmul.mubr.bf16.vlgmr.msra.gmra.mrb[40].mxu0 %v7602_v47  ;;  %6542 = vmatprep.subr.bf16.mxu1 %v6422_v36 }
0x1482   : > { %6543 = vmatpush1.bf16.msra.mxu1 %v6421_v27 }
0x1485   : > { %7332 = vmatmul.mubr.msk.bf16.vlgmr.msra.gmra.mrb[40].mxu1 %vm1097_vm6, %v7605_v61 }
0x148a   : > { %v6472_v54 = vpop.permute.xlu0 %6471 }
0x148c   : > { %v6477_v23 = vpop.permute.xlu1 %6476 }
0x1554   : > { %v6531_v43 = vpop.f32.mrb[40].mxu0 }
0x1555   : > { %v6533_v24 = vpop.f32.mrb[41].mxu0  ;;  %v6532_v3 = vadd.f32 %v6531_v43, %v6472_v54 }
0x1556   : > { %v6535_v55 = vpop.f32.mrb[42].mxu0  ;;  %v6534_v42 = vadd.f32 %v6533_v24, %v6472_v54 }
0x1557   : > { %v6537_v46 = vpop.f32.mrb[43].mxu0  ;;  %v6536_v56 = vadd.f32 %v6535_v55, %v6477_v23 }
0x1558   : > { %v6574_v39 = vpop.f32.mrb[40].mxu1  ;;  %v6538_v2 = vadd.f32 %v6537_v46, %v6477_v23 }
0x1559   : > { %v6575_v35 = vadd.f32 %v6574_v39, %v6532_v3  ;;  %v6576_v17 = vpop.f32.mrb[41].mxu1 }
0x155a   : > { %v6577_v28 = vadd.f32 %v6576_v17, %v6534_v42  ;;  %v6578_v8 = vpop.f32.mrb[42].mxu1 }
0x155b   : > { %6583 = vst [vmem:[%s413_s24] sm:$0xff] %v6575_v35  ;;  %v6579_v62 = vadd.f32 %v6578_v8, %v6536_v56  ;;  %v6580_v44 = vpop.f32.mrb[43].mxu1 }
0x155c   : > { %6584 = vst [vmem:[%s413_s24 + $0x8] sm:$0xff] %v6577_v28  ;;  %v6581_v40 = vadd.f32 %v6580_v44, %v6538_v2 }
0x155d   : > { %6585 = vst [vmem:[%s413_s24 + $0x10] sm:$0xf] %v6579_v62 }
0x155e   : > { %6586 = vst [vmem:[%s413_s24 + $0x18] sm:$0xf] %v6581_v40 }
0x155f PF: > { %s22_s21 = sadd.s32 1, %s7613_s21  }
0x1560   : > { %p19_p4 = scmp.ge.s32.totalorder %s22_s21, 4  }
0x1562   :  { %21 = sbr.rel (!%p19_p4) target bundleno = 1 (0x1), region = 116 }

</bundles_post_ra>
